<compile_context>
chip_gen: v5e
topology: v5e:2x2
jax: 0.10.0
libtpu: 0.0.40
codegen_flags: <defaults>
</compile_context>

<pallas_src>
import functools

import jax
import jax.numpy as jnp
from jax import lax
from jax.experimental import pallas as pl
from jax.experimental.pallas import tpu as pltpu

_EPS = 1e-5  # nn.InstanceNorm2d default eps


# ---------------------------------------------------------------------------
# Pallas kernel 1: stride-1 "valid" convolution over an NHWC padded slab.
#   out[n, oh, ow, co] = act(bias[co] +
#       sum_{di,dj,ci} xp[n, oh+di, ow+dj, ci] * w[di, dj, ci, co])
# ---------------------------------------------------------------------------

def _make_conv_kernel(kh, kw, wo, fuse_tanh):
    def kernel(x_ref, w_ref, b_ref, o_ref, acc_ref):
        t = pl.program_id(2)  # tap row (innermost grid axis)

        @pl.when(t == 0)
        def _init():
            acc_ref[...] = jnp.zeros_like(acc_ref)

        # kw shifted bf16 matmuls for this tap row, accumulated in f32.
        for dj in range(kw):
            a = x_ref[0, 0, dj:dj + wo, :]          # (Wo, Cin)  bf16
            wk = w_ref[t, dj]                       # (Cin, Cout) bf16 (resident)
            acc_ref[...] += jnp.dot(a, wk, preferred_element_type=jnp.float32)

        @pl.when(t == kh - 1)
        def _finalize():
            y = acc_ref[...] + b_ref[...]           # (Wo, Cout) + (1, Cout)
            if fuse_tanh:
                y = jnp.tanh(y)
            o_ref[0, 0] = y.astype(o_ref.dtype)

    return kernel


def conv_s1_valid(xp, w, b=None, fuse_tanh=False, out_dtype=jnp.float32):
    """Stride-1 valid conv.

    xp: (N, Hp, Wp, Cin) padded input (any float dtype, cast to bf16)
    w:  (kh, kw, Cin, Cout) bf16 tap weights
    b:  (Cout,) f32 bias or None
    Returns (N, Ho, Wo, Cout) in out_dtype.
    """
    N, Hp, Wp, Cin = xp.shape
    kh, kw, _, Cout = w.shape
    Ho, Wo = Hp - kh + 1, Wp - kw + 1
    if b is None:
        b = jnp.zeros((Cout,), jnp.float32)
    b2 = b.astype(jnp.float32).reshape(1, Cout)

    kernel = _make_conv_kernel(kh, kw, Wo, fuse_tanh)
    return pl.pallas_call(
        kernel,
        out_shape=jax.ShapeDtypeStruct((N, Ho, Wo, Cout), out_dtype),
        grid=(N, Ho, kh),
        in_specs=[
            # one padded input row, shifted window over the tap-row axis
            pl.BlockSpec((1, 1, Wp, Cin), lambda n, oh, t: (n, oh + t, 0, 0)),
            # full tap-weight tensor resident in VMEM (constant index map)
            pl.BlockSpec((kh, kw, Cin, Cout), lambda n, oh, t: (0, 0, 0, 0)),
            pl.BlockSpec((1, Cout), lambda n, oh, t: (0, 0)),
        ],
        out_specs=pl.BlockSpec((1, 1, Wo, Cout), lambda n, oh, t: (n, oh, 0, 0)),
        scratch_shapes=[pltpu.VMEM((Wo, Cout), jnp.float32)],
        compiler_params=pltpu.CompilerParams(
            dimension_semantics=("parallel", "parallel", "arbitrary"),
            vmem_limit_bytes=32 * 1024 * 1024),
    )(xp.astype(jnp.bfloat16), w.astype(jnp.bfloat16), b2)


# ---------------------------------------------------------------------------
# Convolution wrappers (padding / stride phases are indexing glue in JAX;
# all multiply-accumulate work runs in the Pallas kernel above).
# ---------------------------------------------------------------------------

def conv2d_nhwc(x, w, b, stride=1, padding=0, padding_mode="zeros",
                fuse_tanh=False):
    """x: (N,H,W,Cin); w: (kh,kw,Cin,Cout); b: (Cout,) -> (N,Ho,Wo,Cout) f32."""
    kh, kw = w.shape[0], w.shape[1]
    if padding > 0:
        mode = "reflect" if padding_mode == "reflect" else "constant"
        x = jnp.pad(x, ((0, 0), (padding, padding), (padding, padding), (0, 0)),
                    mode=mode)
    if stride == 1:
        return conv_s1_valid(x, w, b, fuse_tanh=fuse_tanh)

    # stride-2: split padded input into its 4 stride phases (no data inflation)
    # and accumulate 4 stride-1 sub-convolutions -- never multiplies by
    # inserted zeros and never builds an im2col matrix.
    assert stride == 2 and not fuse_tanh
    Hp, Wp = x.shape[1], x.shape[2]
    Ho, Wo = (Hp - kh) // 2 + 1, (Wp - kw) // 2 + 1
    out = None
    for r0 in range(2):
        for r1 in range(2):
            w_sub = w[r0::2, r1::2]                          # (khs, kws, Cin, Cout)
            khs, kws = w_sub.shape[0], w_sub.shape[1]
            xph = x[:, r0::2, r1::2, :][:, :Ho + khs - 1, :Wo + kws - 1, :]
            part = conv_s1_valid(xph, w_sub, b if out is None else None)
            out = part if out is None else out + part
    return out


# output parity phase (r0, r1): list of ((qi, qj) input tap, (ki, kj) weight)
# out[2a+r0, 2b+r1] = sum_taps inp[a+qi, b+qj] * w[ki, kj]      (k=3,s=2,p=1,op=1)
_CONVT_PHASE_TAPS = {
    (0, 0): [((0, 0), (1, 1))],
    (0, 1): [((0, 0), (1, 2)), ((0, 1), (1, 0))],
    (1, 0): [((0, 0), (2, 1)), ((1, 0), (0, 1))],
    (1, 1): [((0, 0), (2, 2)), ((0, 1), (2, 0)),
             ((1, 0), (0, 2)), ((1, 1), (0, 0))],
}


def conv_transpose2d_nhwc(x, w, b):
    """ConvTranspose2d(k=3, s=2, p=1, output_padding=1) via sub-pixel (phase)
    decomposition: each output parity phase is a small stride-1 conv on the
    bottom/right zero-padded input.  w: (3,3,Cin,Cout) where w[ki,kj,ci,co]
    equals the PyTorch weight[ci,co,ki,kj]."""
    N, H, W, Cin = x.shape
    Cout = w.shape[3]
    xp = jnp.pad(x, ((0, 0), (0, 1), (0, 1), (0, 0)))        # bottom/right zeros
    phases = {}
    for (r0, r1), taps in _CONVT_PHASE_TAPS.items():
        khs = 1 + max(q[0] for q, _ in taps)
        kws = 1 + max(q[1] for q, _ in taps)
        w_sub = jnp.zeros((khs, kws, Cin, Cout), w.dtype)
        for (qi, qj), (ki, kj) in taps:
            w_sub = w_sub.at[qi, qj].set(w[ki, kj])
        xin = xp[:, :H + khs - 1, :W + kws - 1, :]
        phases[(r0, r1)] = conv_s1_valid(xin, w_sub, b)      # (N, H, W, Cout) f32
    # interleave the 4 parity phases back into (N, 2H, 2W, Cout)
    row_e = jnp.stack([phases[(0, 0)], phases[(0, 1)]], axis=3)
    row_o = jnp.stack([phases[(1, 0)], phases[(1, 1)]], axis=3)
    row_e = row_e.reshape(N, H, 2 * W, Cout)
    row_o = row_o.reshape(N, H, 2 * W, Cout)
    return jnp.stack([row_e, row_o], axis=2).reshape(N, 2 * H, 2 * W, Cout)


# ---------------------------------------------------------------------------
# Pallas kernels 2/3: tiled InstanceNorm2d(affine=False) over (N, H*W, C)
#   pass 1: per-(n, c) sum / sum-of-squares accumulated over spatial tiles
#   pass 2: normalize (+ optional residual add) (+ optional ReLU)
# ---------------------------------------------------------------------------

def _in_stats_kernel(x_ref, sum_ref, sq_ref):
    s = pl.program_id(1)

    @pl.when(s == 0)
    def _init():
        sum_ref[...] = jnp.zeros_like(sum_ref)
        sq_ref[...] = jnp.zeros_like(sq_ref)

    x = x_ref[0].astype(jnp.float32)                          # (ts, C)
    sum_ref[...] += jnp.sum(x, axis=0, keepdims=True).reshape(1, 1, -1)
    sq_ref[...] += jnp.sum(x * x, axis=0, keepdims=True).reshape(1, 1, -1)


def _make_in_apply_kernel(inv_s, relu, has_res):
    def kernel(*refs):
        if has_res:
            x_ref, sum_ref, sq_ref, r_ref, o_ref = refs
        else:
            x_ref, sum_ref, sq_ref, o_ref = refs
        x = x_ref[0].astype(jnp.float32)                      # (ts, C)
        mean = sum_ref[0] * inv_s                             # (1, C)
        var = sq_ref[0] * inv_s - mean * mean                 # biased (PyTorch IN)
        y = (x - mean) * lax.rsqrt(var + _EPS)
        if has_res:
            y = y + r_ref[0].astype(jnp.float32)
        if relu:
            y = jnp.maximum(y, 0.0)
        o_ref[0] = y.astype(o_ref.dtype)
    return kernel


def _pick_tile(total, target):
    """Largest divisor of `total` that is <= target and a multiple of 8."""
    if total <= target:
        return total
    for t in range(target, 7, -1):
        if total % t == 0 and t % 8 == 0:
            return t
    return total


def instance_norm_nhwc(x, relu=False, residual=None, out_dtype=jnp.bfloat16):
    """InstanceNorm2d(affine=False) [+ residual add] [+ ReLU].
    x: (N, S, C) f32 with S = H*W; residual: (N, S, C) or None."""
    N, S, C = x.shape
    ts = _pick_tile(S, 1024)
    grid = (N, S // ts)

    sums, sqs = pl.pallas_call(
        _in_stats_kernel,
        out_shape=(jax.ShapeDtypeStruct((N, 1, C), jnp.float32),
                   jax.ShapeDtypeStruct((N, 1, C), jnp.float32)),
        grid=grid,
        in_specs=[pl.BlockSpec((1, ts, C), lambda n, s: (n, s, 0))],
        out_specs=(pl.BlockSpec((1, 1, C), lambda n, s: (n, 0, 0)),
                   pl.BlockSpec((1, 1, C), lambda n, s: (n, 0, 0))),
        compiler_params=pltpu.CompilerParams(
            dimension_semantics=("parallel", "arbitrary")),
    )(x)

    kernel = _make_in_apply_kernel(1.0 / float(S), relu, residual is not None)
    args = [x, sums, sqs]
    in_specs = [pl.BlockSpec((1, ts, C), lambda n, s: (n, s, 0)),
                pl.BlockSpec((1, 1, C), lambda n, s: (n, 0, 0)),
                pl.BlockSpec((1, 1, C), lambda n, s: (n, 0, 0))]
    if residual is not None:
        args.append(residual)
        in_specs.append(pl.BlockSpec((1, ts, C), lambda n, s: (n, s, 0)))

    return pl.pallas_call(
        kernel,
        out_shape=jax.ShapeDtypeStruct((N, S, C), out_dtype),
        grid=grid,
        in_specs=in_specs,
        out_specs=pl.BlockSpec((1, ts, C), lambda n, s: (n, s, 0)),
        compiler_params=pltpu.CompilerParams(
            dimension_semantics=("parallel", "parallel")),
    )(*args)


# ---------------------------------------------------------------------------
# Generator: parameters + forward
# ---------------------------------------------------------------------------

def init_generator_params(key, input_nc, output_nc, n_residual_blocks=9):
    """Synthetic init matching the reference (weights ~ N(0, 0.02), biases 0).
    Weights are stored directly in kernel layout (kh, kw, Cin, Cout), bf16."""
    n_conv = 1 + 2 + 2 * n_residual_blocks + 2 + 1
    keys = iter(jax.random.split(key, n_conv))

    def conv_p(cin, cout, k):
        w = jax.random.normal(next(keys), (k, k, cin, cout), jnp.float32) * 0.02
        return {"w": w.astype(jnp.bfloat16), "b": jnp.zeros((cout,), jnp.float32)}

    p = {"stem": conv_p(input_nc, 64, 7), "down": [], "res": [], "up": []}
    in_f = 64
    for _ in range(2):
        p["down"].append(conv_p(in_f, in_f * 2, 3))
        in_f *= 2
    for _ in range(n_residual_blocks):
        p["res"].append({"c1": conv_p(in_f, in_f, 3), "c2": conv_p(in_f, in_f, 3)})
    for _ in range(2):
        p["up"].append(conv_p(in_f, in_f // 2, 3))   # ConvTranspose taps, (kh,kw,Cin,Cout)
        in_f //= 2
    # head: pad Cout to 128 lanes for dense stores; real channels are [..., :output_nc]
    head = conv_p(64, output_nc, 7)
    w_pad = jnp.zeros((7, 7, 64, 128), jnp.bfloat16).at[:, :, :, :output_nc].set(head["w"])
    b_pad = jnp.zeros((128,), jnp.float32).at[:output_nc].set(head["b"])
    p["head"] = {"w": w_pad, "b": b_pad}
    return p


def generator_forward(params, x, output_nc=3):
    """x: (N, C, H, W) f32 (PyTorch layout).  Returns (N, output_nc, H, W) f32."""
    N, _, H, W = x.shape
    y = jnp.transpose(x, (0, 2, 3, 1)).astype(jnp.bfloat16)   # NHWC, once

    def to_flat(a):                                           # (N,h,w,c) -> (N,h*w,c)
        return a.reshape(a.shape[0], a.shape[1] * a.shape[2], a.shape[3])

    def to_spatial(a, h, w):                                  # (N,h*w,c) -> (N,h,w,c)
        return a.reshape(a.shape[0], h, w, a.shape[2])

    # stem: Conv(k7, reflect pad 3) + IN + ReLU
    z = conv2d_nhwc(y, params["stem"]["w"], params["stem"]["b"],
                    stride=1, padding=3, padding_mode="reflect")
    h, w = H, W
    y = instance_norm_nhwc(to_flat(z), relu=True)

    # 2x downsampling: Conv(k3, s2, zero pad 1) + IN + ReLU
    for dp in params["down"]:
        z = conv2d_nhwc(to_spatial(y, h, w), dp["w"], dp["b"],
                        stride=2, padding=1, padding_mode="zeros")
        h, w = h // 2, w // 2
        y = instance_norm_nhwc(to_flat(z), relu=True)

    # residual blocks: x + (Conv + IN + ReLU + Conv + IN)(x)
    for rp in params["res"]:
        z = conv2d_nhwc(to_spatial(y, h, w), rp["c1"]["w"], rp["c1"]["b"],
                        stride=1, padding=1, padding_mode="reflect")
        z = instance_norm_nhwc(to_flat(z), relu=True)
        z = conv2d_nhwc(to_spatial(z, h, w), rp["c2"]["w"], rp["c2"]["b"],
                        stride=1, padding=1, padding_mode="reflect")
        y = instance_norm_nhwc(to_flat(z), relu=False, residual=y)

    # 2x upsampling: ConvTranspose(k3, s2, p1, op1) + IN + ReLU
    for up in params["up"]:
        z = conv_transpose2d_nhwc(to_spatial(y, h, w), up["w"], up["b"])
        h, w = h * 2, w * 2
        y = instance_norm_nhwc(to_flat(z), relu=True)

    # head: Conv(k7, reflect pad 3) with fused tanh, lane-padded Cout
    z = conv2d_nhwc(to_spatial(y, h, w), params["head"]["w"], params["head"]["b"],
                    stride=1, padding=3, padding_mode="reflect", fuse_tanh=True)
    z = z[..., :output_nc]                                    # drop lane padding
    return jnp.transpose(z, (0, 3, 1, 2))                     # back to NCHW, once


if __name__ == "__main__":
    key = jax.random.PRNGKey(0)
    pkey, xkey = jax.random.split(key)
    input_nc, output_nc = 3, 3
    # architecture-faithful small demo: 64/128/256 channel trunk, 16x16 spatial,
    # n_residual_blocks reduced via the constructor parameter to keep it fast.
    params = init_generator_params(pkey, input_nc, output_nc, n_residual_blocks=2)
    x = jax.random.normal(xkey, (2, input_nc, 16, 16), jnp.float32)

    fwd = jax.jit(functools.partial(generator_forward, output_nc=output_nc))
    out = jax.block_until_ready(fwd(params, x))

    assert out.shape == (2, output_nc, 16, 16), out.shape
    assert out.dtype == jnp.float32
    assert bool(jnp.all(jnp.isfinite(out)))
    assert bool(jnp.all(jnp.abs(out) <= 1.0))   # tanh output range
    print("KERNEL_OK")
</pallas_src>

<mosaic_0001>
module attributes {stable_mosaic.version = 11 : i64} {
  func.func @_in_stats_kernel(%arg0: i32, %arg1: i32, %arg2: memref<1x256x64xf32, #tpu.memory_space<vmem>>, %arg3: memref<1x1x64xf32, #tpu.memory_space<vmem>>, %arg4: memref<1x1x64xf32, #tpu.memory_space<vmem>>) attributes {dimension_semantics = [#tpu.dimension_semantics<parallel>, #tpu.dimension_semantics<arbitrary>], iteration_bounds = array<i64: 2, 1>, scalar_prefetch = 0 : i64, scratch_operands = 0 : i64, tpu.core_type = #tpu.core_type<tc>, window_params = [{transform_indices = @transform_0, window_bounds = array<i64: 1, 256, 64>}, {transform_indices = @transform_1, window_bounds = array<i64: 1, 1, 64>}, {transform_indices = @transform_2, window_bounds = array<i64: 1, 1, 64>}]} {
    %c0_i32 = arith.constant 0 : i32
    %0 = arith.cmpi eq, %arg1, %c0_i32 : i32
    %1 = arith.extui %0 : i1 to i32
    %c0_i32_0 = arith.constant 0 : i32
    %2 = arith.cmpi ne, %1, %c0_i32_0 : i32
    scf.if %2 {
      %cst_16 = arith.constant 0.000000e+00 : f32
      %18 = vector.broadcast %cst_16 : f32 to vector<1x1x64xf32>
      %c0_17 = arith.constant 0 : index
      %c0_18 = arith.constant 0 : index
      %c0_19 = arith.constant 0 : index
      %19 = vector.load %arg3[%c0_17, %c0_18, %c0_19] : memref<1x1x64xf32, #tpu.memory_space<vmem>>, vector<1x1x64xf32>
      tpu.vector_store %arg3[%c0_17, %c0_18, %c0_19], %18 {strides = array<i32>} : memref<1x1x64xf32, #tpu.memory_space<vmem>>, vector<1x1x64xf32>,
      %cst_20 = arith.constant 0.000000e+00 : f32
      %20 = vector.broadcast %cst_20 : f32 to vector<1x1x64xf32>
      %c0_21 = arith.constant 0 : index
      %c0_22 = arith.constant 0 : index
      %c0_23 = arith.constant 0 : index
      %21 = vector.load %arg4[%c0_21, %c0_22, %c0_23] : memref<1x1x64xf32, #tpu.memory_space<vmem>>, vector<1x1x64xf32>
      tpu.vector_store %arg4[%c0_21, %c0_22, %c0_23], %20 {strides = array<i32>} : memref<1x1x64xf32, #tpu.memory_space<vmem>>, vector<1x1x64xf32>,
    } else {
    }
    %c0 = arith.constant 0 : index
    %c0_1 = arith.constant 0 : index
    %c0_2 = arith.constant 0 : index
    %3 = vector.load %arg2[%c0, %c0_1, %c0_2] : memref<1x256x64xf32, #tpu.memory_space<vmem>>, vector<1x256x64xf32>
    %4 = vector.shape_cast %3 : vector<1x256x64xf32> to vector<256x64xf32>
    %c0_3 = arith.constant 0 : index
    %c0_4 = arith.constant 0 : index
    %c0_5 = arith.constant 0 : index
    %5 = vector.load %arg3[%c0_3, %c0_4, %c0_5] : memref<1x1x64xf32, #tpu.memory_space<vmem>>, vector<1x1x64xf32>
    %cst = arith.constant dense<0.000000e+00> : vector<64xf32>
    %6 = vector.multi_reduction <add>, %4, %cst [0] : vector<256x64xf32> to vector<64xf32>
    %7 = vector.shape_cast %6 : vector<64xf32> to vector<1x64xf32>
    %8 = vector.shape_cast %7 : vector<1x64xf32> to vector<1x1x64xf32>
    %9 = arith.addf %5, %8 : vector<1x1x64xf32>
    %c0_6 = arith.constant 0 : index
    %c0_7 = arith.constant 0 : index
    %c0_8 = arith.constant 0 : index
    %10 = vector.load %arg3[%c0_6, %c0_7, %c0_8] : memref<1x1x64xf32, #tpu.memory_space<vmem>>, vector<1x1x64xf32>
    tpu.vector_store %arg3[%c0_6, %c0_7, %c0_8], %9 {strides = array<i32>} : memref<1x1x64xf32, #tpu.memory_space<vmem>>, vector<1x1x64xf32>,
    %c0_9 = arith.constant 0 : index
    %c0_10 = arith.constant 0 : index
    %c0_11 = arith.constant 0 : index
    %11 = vector.load %arg4[%c0_9, %c0_10, %c0_11] : memref<1x1x64xf32, #tpu.memory_space<vmem>>, vector<1x1x64xf32>
    %12 = arith.mulf %4, %4 : vector<256x64xf32>
    %cst_12 = arith.constant dense<0.000000e+00> : vector<64xf32>
    %13 = vector.multi_reduction <add>, %12, %cst_12 [0] : vector<256x64xf32> to vector<64xf32>
    %14 = vector.shape_cast %13 : vector<64xf32> to vector<1x64xf32>
    %15 = vector.shape_cast %14 : vector<1x64xf32> to vector<1x1x64xf32>
    %16 = arith.addf %11, %15 : vector<1x1x64xf32>
    %c0_13 = arith.constant 0 : index
    %c0_14 = arith.constant 0 : index
    %c0_15 = arith.constant 0 : index
    %17 = vector.load %arg4[%c0_13, %c0_14, %c0_15] : memref<1x1x64xf32, #tpu.memory_space<vmem>>, vector<1x1x64xf32>
    tpu.vector_store %arg4[%c0_13, %c0_14, %c0_15], %16 {strides = array<i32>} : memref<1x1x64xf32, #tpu.memory_space<vmem>>, vector<1x1x64xf32>,
    return
  }
  func.func @transform_0(%arg0: i32, %arg1: i32) -> (i32, i32, i32) {
    %c0_i32 = arith.constant 0 : i32
    %c0_i32_0 = arith.constant 0 : i32
    return %arg0, %arg1, %c0_i32 : i32, i32, i32
  }
  func.func @transform_1(%arg0: i32, %arg1: i32) -> (i32, i32, i32) {
    %c0_i32 = arith.constant 0 : i32
    %c0_i32_0 = arith.constant 0 : i32
    %c0_i32_1 = arith.constant 0 : i32
    return %arg0, %c0_i32, %c0_i32_0 : i32, i32, i32
  }
  func.func @transform_2(%arg0: i32, %arg1: i32) -> (i32, i32, i32) {
    %c0_i32 = arith.constant 0 : i32
    %c0_i32_0 = arith.constant 0 : i32
    %c0_i32_1 = arith.constant 0 : i32
    return %arg0, %c0_i32, %c0_i32_0 : i32, i32, i32
  }
}

module attributes {stable_mosaic.version = 11 : i64} {
  func.func @kernel(%arg0: i32, %arg1: i32, %arg2: i32, %arg3: memref<1x1x22x3xbf16, #tpu.memory_space<vmem>>, %arg4: memref<7x7x3x64xbf16, #tpu.memory_space<vmem>>, %arg5: memref<1x64xf32, #tpu.memory_space<vmem>>, %arg6: memref<1x1x16x64xf32, #tpu.memory_space<vmem>>, %arg7: memref<16x64xf32, #tpu.memory_space<vmem>>) attributes {dimension_semantics = [#tpu.dimension_semantics<parallel>, #tpu.dimension_semantics<parallel>, #tpu.dimension_semantics<arbitrary>], iteration_bounds = array<i64: 2, 16, 7>, scalar_prefetch = 0 : i64, scratch_operands = 1 : i64, tpu.core_type = #tpu.core_type<tc>, window_params = [{transform_indices = @transform_0, window_bounds = array<i64: 1, 1, 22, 3>}, {pipeline_mode = #tpu.pipeline_mode<synchronous>, transform_indices = @transform_1, window_bounds = array<i64: 7, 7, 3, 64>}, {pipeline_mode = #tpu.pipeline_mode<synchronous>, transform_indices = @transform_2, window_bounds = array<i64: 1, 64>}, {transform_indices = @transform_3, window_bounds = array<i64: 1, 1, 16, 64>}]} {
    %c0_i32 = arith.constant 0 : i32
    %0 = arith.cmpi eq, %arg2, %c0_i32 : i32
    %1 = arith.extui %0 : i1 to i32
    %c0_i32_0 = arith.constant 0 : i32
    %2 = arith.cmpi ne, %1, %c0_i32_0 : i32
    scf.if %2 {
      %cst_78 = arith.constant 0.000000e+00 : f32
      %69 = vector.broadcast %cst_78 : f32 to vector<16x64xf32>
      %c0_79 = arith.constant 0 : index
      %c0_80 = arith.constant 0 : index
      %70 = vector.load %arg7[%c0_79, %c0_80] : memref<16x64xf32, #tpu.memory_space<vmem>>, vector<16x64xf32>
      tpu.vector_store %arg7[%c0_79, %c0_80], %69 {strides = array<i32>} : memref<16x64xf32, #tpu.memory_space<vmem>>, vector<16x64xf32>,
    } else {
    }
    %c0 = arith.constant 0 : index
    %c0_1 = arith.constant 0 : index
    %c0_2 = arith.constant 0 : index
    %c0_3 = arith.constant 0 : index
    %3 = vector.load %arg3[%c0, %c0_1, %c0_2, %c0_3] : memref<1x1x22x3xbf16, #tpu.memory_space<vmem>>, vector<1x1x16x3xbf16>
    %4 = vector.shape_cast %3 : vector<1x1x16x3xbf16> to vector<16x3xbf16>
    %5 = arith.index_cast %arg2 : i32 to index
    %c0_4 = arith.constant 0 : index
    %c0_5 = arith.constant 0 : index
    %c0_6 = arith.constant 0 : index
    %6 = vector.load %arg4[%5, %c0_4, %c0_5, %c0_6] : memref<7x7x3x64xbf16, #tpu.memory_space<vmem>>, vector<1x1x3x64xbf16>
    %7 = vector.shape_cast %6 : vector<1x1x3x64xbf16> to vector<3x64xbf16>
    %c0_7 = arith.constant 0 : index
    %c0_8 = arith.constant 0 : index
    %8 = vector.load %arg7[%c0_7, %c0_8] : memref<16x64xf32, #tpu.memory_space<vmem>>, vector<16x64xf32>
    %cst = arith.constant dense<0.000000e+00> : vector<16x64xf32>
    %9 = tpu.matmul %4, %7, %cst {dimension_numbers = #tpu.dot_dimension_numbers<[1], [0], [0], [1], [0, 0, 1, 1], [], []>} : vector<16x3xbf16>, vector<3x64xbf16>, vector<16x64xf32> -> vector<16x64xf32>
    %10 = arith.addf %8, %9 : vector<16x64xf32>
    %c0_9 = arith.constant 0 : index
    %c0_10 = arith.constant 0 : index
    %11 = vector.load %arg7[%c0_9, %c0_10] : memref<16x64xf32, #tpu.memory_space<vmem>>, vector<16x64xf32>
    tpu.vector_store %arg7[%c0_9, %c0_10], %10 {strides = array<i32>} : memref<16x64xf32, #tpu.memory_space<vmem>>, vector<16x64xf32>,
    %c0_11 = arith.constant 0 : index
    %c0_12 = arith.constant 0 : index
    %c1 = arith.constant 1 : index
    %c0_13 = arith.constant 0 : index
    %12 = vector.load %arg3[%c0_11, %c0_12, %c1, %c0_13] : memref<1x1x22x3xbf16, #tpu.memory_space<vmem>>, vector<1x1x16x3xbf16>
    %13 = vector.shape_cast %12 : vector<1x1x16x3xbf16> to vector<16x3xbf16>
    %14 = arith.index_cast %arg2 : i32 to index
    %c1_14 = arith.constant 1 : index
    %c0_15 = arith.constant 0 : index
    %c0_16 = arith.constant 0 : index
    %15 = vector.load %arg4[%14, %c1_14, %c0_15, %c0_16] : memref<7x7x3x64xbf16, #tpu.memory_space<vmem>>, vector<1x1x3x64xbf16>
    %16 = vector.shape_cast %15 : vector<1x1x3x64xbf16> to vector<3x64xbf16>
    %c0_17 = arith.constant 0 : index
    %c0_18 = arith.constant 0 : index
    %17 = vector.load %arg7[%c0_17, %c0_18] : memref<16x64xf32, #tpu.memory_space<vmem>>, vector<16x64xf32>
    %cst_19 = arith.constant dense<0.000000e+00> : vector<16x64xf32>
    %18 = tpu.matmul %13, %16, %cst_19 {dimension_numbers = #tpu.dot_dimension_numbers<[1], [0], [0], [1], [0, 0, 1, 1], [], []>} : vector<16x3xbf16>, vector<3x64xbf16>, vector<16x64xf32> -> vector<16x64xf32>
    %19 = arith.addf %17, %18 : vector<16x64xf32>
    %c0_20 = arith.constant 0 : index
    %c0_21 = arith.constant 0 : index
    %20 = vector.load %arg7[%c0_20, %c0_21] : memref<16x64xf32, #tpu.memory_space<vmem>>, vector<16x64xf32>
    tpu.vector_store %arg7[%c0_20, %c0_21], %19 {strides = array<i32>} : memref<16x64xf32, #tpu.memory_space<vmem>>, vector<16x64xf32>,
    %c0_22 = arith.constant 0 : index
    %c0_23 = arith.constant 0 : index
    %c2 = arith.constant 2 : index
    %c0_24 = arith.constant 0 : index
    %21 = vector.load %arg3[%c0_22, %c0_23, %c2, %c0_24] : memref<1x1x22x3xbf16, #tpu.memory_space<vmem>>, vector<1x1x16x3xbf16>
    %22 = vector.shape_cast %21 : vector<1x1x16x3xbf16> to vector<16x3xbf16>
    %23 = arith.index_cast %arg2 : i32 to index
    %c2_25 = arith.constant 2 : index
    %c0_26 = arith.constant 0 : index
    %c0_27 = arith.constant 0 : index
    %24 = vector.load %arg4[%23, %c2_25, %c0_26, %c0_27] : memref<7x7x3x64xbf16, #tpu.memory_space<vmem>>, vector<1x1x3x64xbf16>
    %25 = vector.shape_cast %24 : vector<1x1x3x64xbf16> to vector<3x64xbf16>
    %c0_28 = arith.constant 0 : index
    %c0_29 = arith.constant 0 : index
    %26 = vector.load %arg7[%c0_28, %c0_29] : memref<16x64xf32, #tpu.memory_space<vmem>>, vector<16x64xf32>
    %cst_30 = arith.constant dense<0.000000e+00> : vector<16x64xf32>
    %27 = tpu.matmul %22, %25, %cst_30 {dimension_numbers = #tpu.dot_dimension_numbers<[1], [0], [0], [1], [0, 0, 1, 1], [], []>} : vector<16x3xbf16>, vector<3x64xbf16>, vector<16x64xf32> -> vector<16x64xf32>
    %28 = arith.addf %26, %27 : vector<16x64xf32>
    %c0_31 = arith.constant 0 : index
    %c0_32 = arith.constant 0 : index
    %29 = vector.load %arg7[%c0_31, %c0_32] : memref<16x64xf32, #tpu.memory_space<vmem>>, vector<16x64xf32>
    tpu.vector_store %arg7[%c0_31, %c0_32], %28 {strides = array<i32>} : memref<16x64xf32, #tpu.memory_space<vmem>>, vector<16x64xf32>,
    %c0_33 = arith.constant 0 : index
    %c0_34 = arith.constant 0 : index
    %c3 = arith.constant 3 : index
    %c0_35 = arith.constant 0 : index
    %30 = vector.load %arg3[%c0_33, %c0_34, %c3, %c0_35] : memref<1x1x22x3xbf16, #tpu.memory_space<vmem>>, vector<1x1x16x3xbf16>
    %31 = vector.shape_cast %30 : vector<1x1x16x3xbf16> to vector<16x3xbf16>
    %32 = arith.index_cast %arg2 : i32 to index
    %c3_36 = arith.constant 3 : index
    %c0_37 = arith.constant 0 : index
    %c0_38 = arith.constant 0 : index
    %33 = vector.load %arg4[%32, %c3_36, %c0_37, %c0_38] : memref<7x7x3x64xbf16, #tpu.memory_space<vmem>>, vector<1x1x3x64xbf16>
    %34 = vector.shape_cast %33 : vector<1x1x3x64xbf16> to vector<3x64xbf16>
    %c0_39 = arith.constant 0 : index
    %c0_40 = arith.constant 0 : index
    %35 = vector.load %arg7[%c0_39, %c0_40] : memref<16x64xf32, #tpu.memory_space<vmem>>, vector<16x64xf32>
    %cst_41 = arith.constant dense<0.000000e+00> : vector<16x64xf32>
    %36 = tpu.matmul %31, %34, %cst_41 {dimension_numbers = #tpu.dot_dimension_numbers<[1], [0], [0], [1], [0, 0, 1, 1], [], []>} : vector<16x3xbf16>, vector<3x64xbf16>, vector<16x64xf32> -> vector<16x64xf32>
    %37 = arith.addf %35, %36 : vector<16x64xf32>
    %c0_42 = arith.constant 0 : index
    %c0_43 = arith.constant 0 : index
    %38 = vector.load %arg7[%c0_42, %c0_43] : memref<16x64xf32, #tpu.memory_space<vmem>>, vector<16x64xf32>
    tpu.vector_store %arg7[%c0_42, %c0_43], %37 {strides = array<i32>} : memref<16x64xf32, #tpu.memory_space<vmem>>, vector<16x64xf32>,
    %c0_44 = arith.constant 0 : index
    %c0_45 = arith.constant 0 : index
    %c4 = arith.constant 4 : index
    %c0_46 = arith.constant 0 : index
    %39 = vector.load %arg3[%c0_44, %c0_45, %c4, %c0_46] : memref<1x1x22x3xbf16, #tpu.memory_space<vmem>>, vector<1x1x16x3xbf16>
    %40 = vector.shape_cast %39 : vector<1x1x16x3xbf16> to vector<16x3xbf16>
    %41 = arith.index_cast %arg2 : i32 to index
    %c4_47 = arith.constant 4 : index
    %c0_48 = arith.constant 0 : index
    %c0_49 = arith.constant 0 : index
    %42 = vector.load %arg4[%41, %c4_47, %c0_48, %c0_49] : memref<7x7x3x64xbf16, #tpu.memory_space<vmem>>, vector<1x1x3x64xbf16>
    %43 = vector.shape_cast %42 : vector<1x1x3x64xbf16> to vector<3x64xbf16>
    %c0_50 = arith.constant 0 : index
    %c0_51 = arith.constant 0 : index
    %44 = vector.load %arg7[%c0_50, %c0_51] : memref<16x64xf32, #tpu.memory_space<vmem>>, vector<16x64xf32>
    %cst_52 = arith.constant dense<0.000000e+00> : vector<16x64xf32>
    %45 = tpu.matmul %40, %43, %cst_52 {dimension_numbers = #tpu.dot_dimension_numbers<[1], [0], [0], [1], [0, 0, 1, 1], [], []>} : vector<16x3xbf16>, vector<3x64xbf16>, vector<16x64xf32> -> vector<16x64xf32>
    %46 = arith.addf %44, %45 : vector<16x64xf32>
    %c0_53 = arith.constant 0 : index
    %c0_54 = arith.constant 0 : index
    %47 = vector.load %arg7[%c0_53, %c0_54] : memref<16x64xf32, #tpu.memory_space<vmem>>, vector<16x64xf32>
    tpu.vector_store %arg7[%c0_53, %c0_54], %46 {strides = array<i32>} : memref<16x64xf32, #tpu.memory_space<vmem>>, vector<16x64xf32>,
    %c0_55 = arith.constant 0 : index
    %c0_56 = arith.constant 0 : index
    %c5 = arith.constant 5 : index
    %c0_57 = arith.constant 0 : index
    %48 = vector.load %arg3[%c0_55, %c0_56, %c5, %c0_57] : memref<1x1x22x3xbf16, #tpu.memory_space<vmem>>, vector<1x1x16x3xbf16>
    %49 = vector.shape_cast %48 : vector<1x1x16x3xbf16> to vector<16x3xbf16>
    %50 = arith.index_cast %arg2 : i32 to index
    %c5_58 = arith.constant 5 : index
    %c0_59 = arith.constant 0 : index
    %c0_60 = arith.constant 0 : index
    %51 = vector.load %arg4[%50, %c5_58, %c0_59, %c0_60] : memref<7x7x3x64xbf16, #tpu.memory_space<vmem>>, vector<1x1x3x64xbf16>
    %52 = vector.shape_cast %51 : vector<1x1x3x64xbf16> to vector<3x64xbf16>
    %c0_61 = arith.constant 0 : index
    %c0_62 = arith.constant 0 : index
    %53 = vector.load %arg7[%c0_61, %c0_62] : memref<16x64xf32, #tpu.memory_space<vmem>>, vector<16x64xf32>
    %cst_63 = arith.constant dense<0.000000e+00> : vector<16x64xf32>
    %54 = tpu.matmul %49, %52, %cst_63 {dimension_numbers = #tpu.dot_dimension_numbers<[1], [0], [0], [1], [0, 0, 1, 1], [], []>} : vector<16x3xbf16>, vector<3x64xbf16>, vector<16x64xf32> -> vector<16x64xf32>
    %55 = arith.addf %53, %54 : vector<16x64xf32>
    %c0_64 = arith.constant 0 : index
    %c0_65 = arith.constant 0 : index
    %56 = vector.load %arg7[%c0_64, %c0_65] : memref<16x64xf32, #tpu.memory_space<vmem>>, vector<16x64xf32>
    tpu.vector_store %arg7[%c0_64, %c0_65], %55 {strides = array<i32>} : memref<16x64xf32, #tpu.memory_space<vmem>>, vector<16x64xf32>,
    %c0_66 = arith.constant 0 : index
    %c0_67 = arith.constant 0 : index
    %c6 = arith.constant 6 : index
    %c0_68 = arith.constant 0 : index
    %57 = vector.load %arg3[%c0_66, %c0_67, %c6, %c0_68] : memref<1x1x22x3xbf16, #tpu.memory_space<vmem>>, vector<1x1x16x3xbf16>
    %58 = vector.shape_cast %57 : vector<1x1x16x3xbf16> to vector<16x3xbf16>
    %59 = arith.index_cast %arg2 : i32 to index
    %c6_69 = arith.constant 6 : index
    %c0_70 = arith.constant 0 : index
    %c0_71 = arith.constant 0 : index
    %60 = vector.load %arg4[%59, %c6_69, %c0_70, %c0_71] : memref<7x7x3x64xbf16, #tpu.memory_space<vmem>>, vector<1x1x3x64xbf16>
    %61 = vector.shape_cast %60 : vector<1x1x3x64xbf16> to vector<3x64xbf16>
    %c0_72 = arith.constant 0 : index
    %c0_73 = arith.constant 0 : index
    %62 = vector.load %arg7[%c0_72, %c0_73] : memref<16x64xf32, #tpu.memory_space<vmem>>, vector<16x64xf32>
    %cst_74 = arith.constant dense<0.000000e+00> : vector<16x64xf32>
    %63 = tpu.matmul %58, %61, %cst_74 {dimension_numbers = #tpu.dot_dimension_numbers<[1], [0], [0], [1], [0, 0, 1, 1], [], []>} : vector<16x3xbf16>, vector<3x64xbf16>, vector<16x64xf32> -> vector<16x64xf32>
    %64 = arith.addf %62, %63 : vector<16x64xf32>
    %c0_75 = arith.constant 0 : index
    %c0_76 = arith.constant 0 : index
    %65 = vector.load %arg7[%c0_75, %c0_76] : memref<16x64xf32, #tpu.memory_space<vmem>>, vector<16x64xf32>
    tpu.vector_store %arg7[%c0_75, %c0_76], %64 {strides = array<i32>} : memref<16x64xf32, #tpu.memory_space<vmem>>, vector<16x64xf32>,
    %c6_i32 = arith.constant 6 : i32
    %66 = arith.cmpi eq, %arg2, %c6_i32 : i32
    %67 = arith.extui %66 : i1 to i32
    %c0_i32_77 = arith.constant 0 : i32
    %68 = arith.cmpi ne, %67, %c0_i32_77 : i32
    scf.if %68 {
      %c0_78 = arith.constant 0 : index
      %c0_79 = arith.constant 0 : index
      %69 = vector.load %arg7[%c0_78, %c0_79] : memref<16x64xf32, #tpu.memory_space<vmem>>, vector<16x64xf32>
      %c0_80 = arith.constant 0 : index
      %c0_81 = arith.constant 0 : index
      %70 = vector.load %arg5[%c0_80, %c0_81] : memref<1x64xf32, #tpu.memory_space<vmem>>, vector<1x64xf32>
      %71 = vector.broadcast %70 : vector<1x64xf32> to vector<16x64xf32>
      %72 = arith.addf %69, %71 : vector<16x64xf32>
      %c0_82 = arith.constant 0 : index
      %c0_83 = arith.constant 0 : index
      %c0_84 = arith.constant 0 : index
      %c0_85 = arith.constant 0 : index
      %73 = vector.load %arg6[%c0_82, %c0_83, %c0_84, %c0_85] : memref<1x1x16x64xf32, #tpu.memory_space<vmem>>, vector<1x1x16x64xf32>
      %74 = vector.shape_cast %73 : vector<1x1x16x64xf32> to vector<16x64xf32>
      %75 = vector.shape_cast %72 : vector<16x64xf32> to vector<1x1x16x64xf32>
      tpu.vector_store %arg6[%c0_82, %c0_83, %c0_84, %c0_85], %75 {strides = array<i32>} : memref<1x1x16x64xf32, #tpu.memory_space<vmem>>, vector<1x1x16x64xf32>,
    } else {
    }
    return
  }
  func.func @transform_0(%arg0: i32, %arg1: i32, %arg2: i32) -> (i32, i32, i32, i32) {
    %0 = arith.addi %arg1, %arg2 : i32
    %c0_i32 = arith.constant 0 : i32
    %c0_i32_0 = arith.constant 0 : i32
    %c0_i32_1 = arith.constant 0 : i32
    return %arg0, %0, %c0_i32, %c0_i32_0 : i32, i32, i32, i32
  }
  func.func @transform_1(%arg0: i32, %arg1: i32, %arg2: i32) -> (i32, i32, i32, i32) {
    %c0_i32 = arith.constant 0 : i32
    %c0_i32_0 = arith.constant 0 : i32
    %c0_i32_1 = arith.constant 0 : i32
    %c0_i32_2 = arith.constant 0 : i32
    %c0_i32_3 = arith.constant 0 : i32
    return %c0_i32, %c0_i32_0, %c0_i32_1, %c0_i32_2 : i32, i32, i32, i32
  }
  func.func @transform_2(%arg0: i32, %arg1: i32, %arg2: i32) -> (i32, i32) {
    %c0_i32 = arith.constant 0 : i32
    %c0_i32_0 = arith.constant 0 : i32
    %c0_i32_1 = arith.constant 0 : i32
    return %c0_i32, %c0_i32_0 : i32, i32
  }
  func.func @transform_3(%arg0: i32, %arg1: i32, %arg2: i32) -> (i32, i32, i32, i32) {
    %c0_i32 = arith.constant 0 : i32
    %c0_i32_0 = arith.constant 0 : i32
    %c0_i32_1 = arith.constant 0 : i32
    return %arg0, %arg1, %c0_i32, %c0_i32_0 : i32, i32, i32, i32
  }
}

module attributes {stable_mosaic.version = 11 : i64} {
  func.func @kernel(%arg0: i32, %arg1: i32, %arg2: memref<1x256x64xf32, #tpu.memory_space<vmem>>, %arg3: memref<1x1x64xf32, #tpu.memory_space<vmem>>, %arg4: memref<1x1x64xf32, #tpu.memory_space<vmem>>, %arg5: memref<1x256x64xbf16, #tpu.memory_space<vmem>>) attributes {dimension_semantics = [#tpu.dimension_semantics<parallel>, #tpu.dimension_semantics<parallel>], iteration_bounds = array<i64: 2, 1>, scalar_prefetch = 0 : i64, scratch_operands = 0 : i64, tpu.core_type = #tpu.core_type<tc>, window_params = [{transform_indices = @transform_0, window_bounds = array<i64: 1, 256, 64>}, {transform_indices = @transform_1, window_bounds = array<i64: 1, 1, 64>}, {transform_indices = @transform_2, window_bounds = array<i64: 1, 1, 64>}, {transform_indices = @transform_3, window_bounds = array<i64: 1, 256, 64>}]} {
    %c0 = arith.constant 0 : index
    %c0_0 = arith.constant 0 : index
    %c0_1 = arith.constant 0 : index
    %0 = vector.load %arg2[%c0, %c0_0, %c0_1] : memref<1x256x64xf32, #tpu.memory_space<vmem>>, vector<1x256x64xf32>
    %1 = vector.shape_cast %0 : vector<1x256x64xf32> to vector<256x64xf32>
    %c0_2 = arith.constant 0 : index
    %c0_3 = arith.constant 0 : index
    %c0_4 = arith.constant 0 : index
    %2 = vector.load %arg3[%c0_2, %c0_3, %c0_4] : memref<1x1x64xf32, #tpu.memory_space<vmem>>, vector<1x1x64xf32>
    %3 = vector.shape_cast %2 : vector<1x1x64xf32> to vector<1x64xf32>
    %cst = arith.constant 3.906250e-03 : f32
    %4 = vector.broadcast %cst : f32 to vector<1x64xf32>
    %5 = arith.mulf %3, %4 : vector<1x64xf32>
    %c0_5 = arith.constant 0 : index
    %c0_6 = arith.constant 0 : index
    %c0_7 = arith.constant 0 : index
    %6 = vector.load %arg4[%c0_5, %c0_6, %c0_7] : memref<1x1x64xf32, #tpu.memory_space<vmem>>, vector<1x1x64xf32>
    %7 = vector.shape_cast %6 : vector<1x1x64xf32> to vector<1x64xf32>
    %cst_8 = arith.constant 3.906250e-03 : f32
    %8 = vector.broadcast %cst_8 : f32 to vector<1x64xf32>
    %9 = arith.mulf %7, %8 : vector<1x64xf32>
    %10 = arith.mulf %5, %5 : vector<1x64xf32>
    %11 = arith.subf %9, %10 : vector<1x64xf32>
    %12 = vector.broadcast %5 : vector<1x64xf32> to vector<256x64xf32>
    %13 = arith.subf %1, %12 : vector<256x64xf32>
    %cst_9 = arith.constant 9.99999974E-6 : f32
    %14 = vector.broadcast %cst_9 : f32 to vector<1x64xf32>
    %15 = arith.addf %11, %14 : vector<1x64xf32>
    %16 = math.rsqrt %15 : vector<1x64xf32>
    %17 = vector.broadcast %16 : vector<1x64xf32> to vector<256x64xf32>
    %18 = arith.mulf %13, %17 : vector<256x64xf32>
    %cst_10 = arith.constant 0.000000e+00 : f32
    %19 = vector.broadcast %cst_10 : f32 to vector<256x64xf32>
    %20 = arith.maximumf %18, %19 : vector<256x64xf32>
    %21 = arith.truncf %20 : vector<256x64xf32> to vector<256x64xbf16>
    %c0_11 = arith.constant 0 : index
    %c0_12 = arith.constant 0 : index
    %c0_13 = arith.constant 0 : index
    %22 = vector.load %arg5[%c0_11, %c0_12, %c0_13] : memref<1x256x64xbf16, #tpu.memory_space<vmem>>, vector<1x256x64xbf16>
    %23 = vector.shape_cast %22 : vector<1x256x64xbf16> to vector<256x64xbf16>
    %24 = vector.shape_cast %21 : vector<256x64xbf16> to vector<1x256x64xbf16>
    tpu.vector_store %arg5[%c0_11, %c0_12, %c0_13], %24 {strides = array<i32>} : memref<1x256x64xbf16, #tpu.memory_space<vmem>>, vector<1x256x64xbf16>,
    return
  }
  func.func @transform_0(%arg0: i32, %arg1: i32) -> (i32, i32, i32) {
    %c0_i32 = arith.constant 0 : i32
    %c0_i32_0 = arith.constant 0 : i32
    return %arg0, %arg1, %c0_i32 : i32, i32, i32
  }
  func.func @transform_1(%arg0: i32, %arg1: i32) -> (i32, i32, i32) {
    %c0_i32 = arith.constant 0 : i32
    %c0_i32_0 = arith.constant 0 : i32
    %c0_i32_1 = arith.constant 0 : i32
    return %arg0, %c0_i32, %c0_i32_0 : i32, i32, i32
  }
  func.func @transform_2(%arg0: i32, %arg1: i32) -> (i32, i32, i32) {
    %c0_i32 = arith.constant 0 : i32
    %c0_i32_0 = arith.constant 0 : i32
    %c0_i32_1 = arith.constant 0 : i32
    return %arg0, %c0_i32, %c0_i32_0 : i32, i32, i32
  }
  func.func @transform_3(%arg0: i32, %arg1: i32) -> (i32, i32, i32) {
    %c0_i32 = arith.constant 0 : i32
    %c0_i32_0 = arith.constant 0 : i32
    return %arg0, %arg1, %c0_i32 : i32, i32, i32
  }
}

module attributes {stable_mosaic.version = 11 : i64} {
  func.func @kernel(%arg0: i32, %arg1: i32, %arg2: i32, %arg3: memref<1x1x9x64xbf16, #tpu.memory_space<vmem>>, %arg4: memref<1x2x64x128xbf16, #tpu.memory_space<vmem>>, %arg5: memref<1x128xf32, #tpu.memory_space<vmem>>, %arg6: memref<1x1x8x128xf32, #tpu.memory_space<vmem>>, %arg7: memref<8x128xf32, #tpu.memory_space<vmem>>) attributes {dimension_semantics = [#tpu.dimension_semantics<parallel>, #tpu.dimension_semantics<parallel>, #tpu.dimension_semantics<arbitrary>], iteration_bounds = array<i64: 2, 8, 1>, scalar_prefetch = 0 : i64, scratch_operands = 1 : i64, tpu.core_type = #tpu.core_type<tc>, window_params = [{transform_indices = @transform_0, window_bounds = array<i64: 1, 1, 9, 64>}, {pipeline_mode = #tpu.pipeline_mode<synchronous>, transform_indices = @transform_1, window_bounds = array<i64: 1, 2, 64, 128>}, {pipeline_mode = #tpu.pipeline_mode<synchronous>, transform_indices = @transform_2, window_bounds = array<i64: 1, 128>}, {transform_indices = @transform_3, window_bounds = array<i64: 1, 1, 8, 128>}]} {
    %c0_i32 = arith.constant 0 : i32
    %0 = arith.cmpi eq, %arg2, %c0_i32 : i32
    %1 = arith.extui %0 : i1 to i32
    %c0_i32_0 = arith.constant 0 : i32
    %2 = arith.cmpi ne, %1, %c0_i32_0 : i32
    scf.if %2 {
      %cst_24 = arith.constant 0.000000e+00 : f32
      %24 = vector.broadcast %cst_24 : f32 to vector<8x128xf32>
      %c0_25 = arith.constant 0 : index
      %c0_26 = arith.constant 0 : index
      %25 = vector.load %arg7[%c0_25, %c0_26] : memref<8x128xf32, #tpu.memory_space<vmem>>, vector<8x128xf32>
      tpu.vector_store %arg7[%c0_25, %c0_26], %24 {strides = array<i32>} : memref<8x128xf32, #tpu.memory_space<vmem>>, vector<8x128xf32>,
    } else {
    }
    %c0 = arith.constant 0 : index
    %c0_1 = arith.constant 0 : index
    %c0_2 = arith.constant 0 : index
    %c0_3 = arith.constant 0 : index
    %3 = vector.load %arg3[%c0, %c0_1, %c0_2, %c0_3] : memref<1x1x9x64xbf16, #tpu.memory_space<vmem>>, vector<1x1x8x64xbf16>
    %4 = vector.shape_cast %3 : vector<1x1x8x64xbf16> to vector<8x64xbf16>
    %5 = arith.index_cast %arg2 : i32 to index
    %c0_4 = arith.constant 0 : index
    %c0_5 = arith.constant 0 : index
    %c0_6 = arith.constant 0 : index
    %6 = vector.load %arg4[%5, %c0_4, %c0_5, %c0_6] : memref<1x2x64x128xbf16, #tpu.memory_space<vmem>>, vector<1x1x64x128xbf16>
    %7 = vector.shape_cast %6 : vector<1x1x64x128xbf16> to vector<64x128xbf16>
    %c0_7 = arith.constant 0 : index
    %c0_8 = arith.constant 0 : index
    %8 = vector.load %arg7[%c0_7, %c0_8] : memref<8x128xf32, #tpu.memory_space<vmem>>, vector<8x128xf32>
    %cst = arith.constant dense<0.000000e+00> : vector<8x128xf32>
    %9 = tpu.matmul %4, %7, %cst {dimension_numbers = #tpu.dot_dimension_numbers<[1], [0], [0], [1], [0, 0, 1, 1], [], []>} : vector<8x64xbf16>, vector<64x128xbf16>, vector<8x128xf32> -> vector<8x128xf32>
    %10 = arith.addf %8, %9 : vector<8x128xf32>
    %c0_9 = arith.constant 0 : index
    %c0_10 = arith.constant 0 : index
    %11 = vector.load %arg7[%c0_9, %c0_10] : memref<8x128xf32, #tpu.memory_space<vmem>>, vector<8x128xf32>
    tpu.vector_store %arg7[%c0_9, %c0_10], %10 {strides = array<i32>} : memref<8x128xf32, #tpu.memory_space<vmem>>, vector<8x128xf32>,
    %c0_11 = arith.constant 0 : index
    %c0_12 = arith.constant 0 : index
    %c1 = arith.constant 1 : index
    %c0_13 = arith.constant 0 : index
    %12 = vector.load %arg3[%c0_11, %c0_12, %c1, %c0_13] : memref<1x1x9x64xbf16, #tpu.memory_space<vmem>>, vector<1x1x8x64xbf16>
    %13 = vector.shape_cast %12 : vector<1x1x8x64xbf16> to vector<8x64xbf16>
    %14 = arith.index_cast %arg2 : i32 to index
    %c1_14 = arith.constant 1 : index
    %c0_15 = arith.constant 0 : index
    %c0_16 = arith.constant 0 : index
    %15 = vector.load %arg4[%14, %c1_14, %c0_15, %c0_16] : memref<1x2x64x128xbf16, #tpu.memory_space<vmem>>, vector<1x1x64x128xbf16>
    %16 = vector.shape_cast %15 : vector<1x1x64x128xbf16> to vector<64x128xbf16>
    %c0_17 = arith.constant 0 : index
    %c0_18 = arith.constant 0 : index
    %17 = vector.load %arg7[%c0_17, %c0_18] : memref<8x128xf32, #tpu.memory_space<vmem>>, vector<8x128xf32>
    %cst_19 = arith.constant dense<0.000000e+00> : vector<8x128xf32>
    %18 = tpu.matmul %13, %16, %cst_19 {dimension_numbers = #tpu.dot_dimension_numbers<[1], [0], [0], [1], [0, 0, 1, 1], [], []>} : vector<8x64xbf16>, vector<64x128xbf16>, vector<8x128xf32> -> vector<8x128xf32>
    %19 = arith.addf %17, %18 : vector<8x128xf32>
    %c0_20 = arith.constant 0 : index
    %c0_21 = arith.constant 0 : index
    %20 = vector.load %arg7[%c0_20, %c0_21] : memref<8x128xf32, #tpu.memory_space<vmem>>, vector<8x128xf32>
    tpu.vector_store %arg7[%c0_20, %c0_21], %19 {strides = array<i32>} : memref<8x128xf32, #tpu.memory_space<vmem>>, vector<8x128xf32>,
    %c0_i32_22 = arith.constant 0 : i32
    %21 = arith.cmpi eq, %arg2, %c0_i32_22 : i32
    %22 = arith.extui %21 : i1 to i32
    %c0_i32_23 = arith.constant 0 : i32
    %23 = arith.cmpi ne, %22, %c0_i32_23 : i32
    scf.if %23 {
      %c0_24 = arith.constant 0 : index
      %c0_25 = arith.constant 0 : index
      %24 = vector.load %arg7[%c0_24, %c0_25] : memref<8x128xf32, #tpu.memory_space<vmem>>, vector<8x128xf32>
      %c0_26 = arith.constant 0 : index
      %c0_27 = arith.constant 0 : index
      %25 = vector.load %arg5[%c0_26, %c0_27] : memref<1x128xf32, #tpu.memory_space<vmem>>, vector<1x128xf32>
      %26 = vector.broadcast %25 : vector<1x128xf32> to vector<8x128xf32>
      %27 = arith.addf %24, %26 : vector<8x128xf32>
      %c0_28 = arith.constant 0 : index
      %c0_29 = arith.constant 0 : index
      %c0_30 = arith.constant 0 : index
      %c0_31 = arith.constant 0 : index
      %28 = vector.load %arg6[%c0_28, %c0_29, %c0_30, %c0_31] : memref<1x1x8x128xf32, #tpu.memory_space<vmem>>, vector<1x1x8x128xf32>
      %29 = vector.shape_cast %28 : vector<1x1x8x128xf32> to vector<8x128xf32>
      %30 = vector.shape_cast %27 : vector<8x128xf32> to vector<1x1x8x128xf32>
      tpu.vector_store %arg6[%c0_28, %c0_29, %c0_30, %c0_31], %30 {strides = array<i32>} : memref<1x1x8x128xf32, #tpu.memory_space<vmem>>, vector<1x1x8x128xf32>,
    } else {
    }
    return
  }
  func.func @transform_0(%arg0: i32, %arg1: i32, %arg2: i32) -> (i32, i32, i32, i32) {
    %0 = arith.addi %arg1, %arg2 : i32
    %c0_i32 = arith.constant 0 : i32
    %c0_i32_0 = arith.constant 0 : i32
    %c0_i32_1 = arith.constant 0 : i32
    return %arg0, %0, %c0_i32, %c0_i32_0 : i32, i32, i32, i32
  }
  func.func @transform_1(%arg0: i32, %arg1: i32, %arg2: i32) -> (i32, i32, i32, i32) {
    %c0_i32 = arith.constant 0 : i32
    %c0_i32_0 = arith.constant 0 : i32
    %c0_i32_1 = arith.constant 0 : i32
    %c0_i32_2 = arith.constant 0 : i32
    %c0_i32_3 = arith.constant 0 : i32
    return %c0_i32, %c0_i32_0, %c0_i32_1, %c0_i32_2 : i32, i32, i32, i32
  }
  func.func @transform_2(%arg0: i32, %arg1: i32, %arg2: i32) -> (i32, i32) {
    %c0_i32 = arith.constant 0 : i32
    %c0_i32_0 = arith.constant 0 : i32
    %c0_i32_1 = arith.constant 0 : i32
    return %c0_i32, %c0_i32_0 : i32, i32
  }
  func.func @transform_3(%arg0: i32, %arg1: i32, %arg2: i32) -> (i32, i32, i32, i32) {
    %c0_i32 = arith.constant 0 : i32
    %c0_i32_0 = arith.constant 0 : i32
    %c0_i32_1 = arith.constant 0 : i32
    return %arg0, %arg1, %c0_i32, %c0_i32_0 : i32, i32, i32, i32
  }
}

module attributes {stable_mosaic.version = 11 : i64} {
  func.func @kernel(%arg0: i32, %arg1: i32, %arg2: i32, %arg3: memref<1x1x8x64xbf16, #tpu.memory_space<vmem>>, %arg4: memref<2x1x64x128xbf16, #tpu.memory_space<vmem>>, %arg5: memref<1x128xf32, #tpu.memory_space<vmem>>, %arg6: memref<1x1x8x128xf32, #tpu.memory_space<vmem>>, %arg7: memref<8x128xf32, #tpu.memory_space<vmem>>) attributes {dimension_semantics = [#tpu.dimension_semantics<parallel>, #tpu.dimension_semantics<parallel>, #tpu.dimension_semantics<arbitrary>], iteration_bounds = array<i64: 2, 8, 2>, scalar_prefetch = 0 : i64, scratch_operands = 1 : i64, tpu.core_type = #tpu.core_type<tc>, window_params = [{transform_indices = @transform_0, window_bounds = array<i64: 1, 1, 8, 64>}, {pipeline_mode = #tpu.pipeline_mode<synchronous>, transform_indices = @transform_1, window_bounds = array<i64: 2, 1, 64, 128>}, {pipeline_mode = #tpu.pipeline_mode<synchronous>, transform_indices = @transform_2, window_bounds = array<i64: 1, 128>}, {transform_indices = @transform_3, window_bounds = array<i64: 1, 1, 8, 128>}]} {
    %c0_i32 = arith.constant 0 : i32
    %0 = arith.cmpi eq, %arg2, %c0_i32 : i32
    %1 = arith.extui %0 : i1 to i32
    %c0_i32_0 = arith.constant 0 : i32
    %2 = arith.cmpi ne, %1, %c0_i32_0 : i32
    scf.if %2 {
      %cst_12 = arith.constant 0.000000e+00 : f32
      %15 = vector.broadcast %cst_12 : f32 to vector<8x128xf32>
      %c0_13 = arith.constant 0 : index
      %c0_14 = arith.constant 0 : index
      %16 = vector.load %arg7[%c0_13, %c0_14] : memref<8x128xf32, #tpu.memory_space<vmem>>, vector<8x128xf32>
      tpu.vector_store %arg7[%c0_13, %c0_14], %15 {strides = array<i32>} : memref<8x128xf32, #tpu.memory_space<vmem>>, vector<8x128xf32>,
    } else {
    }
    %c0 = arith.constant 0 : index
    %c0_1 = arith.constant 0 : index
    %c0_2 = arith.constant 0 : index
    %c0_3 = arith.constant 0 : index
    %3 = vector.load %arg3[%c0, %c0_1, %c0_2, %c0_3] : memref<1x1x8x64xbf16, #tpu.memory_space<vmem>>, vector<1x1x8x64xbf16>
    %4 = vector.shape_cast %3 : vector<1x1x8x64xbf16> to vector<8x64xbf16>
    %5 = arith.index_cast %arg2 : i32 to index
    %c0_4 = arith.constant 0 : index
    %c0_5 = arith.constant 0 : index
    %c0_6 = arith.constant 0 : index
    %6 = vector.load %arg4[%5, %c0_4, %c0_5, %c0_6] : memref<2x1x64x128xbf16, #tpu.memory_space<vmem>>, vector<1x1x64x128xbf16>
    %7 = vector.shape_cast %6 : vector<1x1x64x128xbf16> to vector<64x128xbf16>
    %c0_7 = arith.constant 0 : index
    %c0_8 = arith.constant 0 : index
    %8 = vector.load %arg7[%c0_7, %c0_8] : memref<8x128xf32, #tpu.memory_space<vmem>>, vector<8x128xf32>
    %cst = arith.constant dense<0.000000e+00> : vector<8x128xf32>
    %9 = tpu.matmul %4, %7, %cst {dimension_numbers = #tpu.dot_dimension_numbers<[1], [0], [0], [1], [0, 0, 1, 1], [], []>} : vector<8x64xbf16>, vector<64x128xbf16>, vector<8x128xf32> -> vector<8x128xf32>
    %10 = arith.addf %8, %9 : vector<8x128xf32>
    %c0_9 = arith.constant 0 : index
    %c0_10 = arith.constant 0 : index
    %11 = vector.load %arg7[%c0_9, %c0_10] : memref<8x128xf32, #tpu.memory_space<vmem>>, vector<8x128xf32>
    tpu.vector_store %arg7[%c0_9, %c0_10], %10 {strides = array<i32>} : memref<8x128xf32, #tpu.memory_space<vmem>>, vector<8x128xf32>,
    %c1_i32 = arith.constant 1 : i32
    %12 = arith.cmpi eq, %arg2, %c1_i32 : i32
    %13 = arith.extui %12 : i1 to i32
    %c0_i32_11 = arith.constant 0 : i32
    %14 = arith.cmpi ne, %13, %c0_i32_11 : i32
    scf.if %14 {
      %c0_12 = arith.constant 0 : index
      %c0_13 = arith.constant 0 : index
      %15 = vector.load %arg7[%c0_12, %c0_13] : memref<8x128xf32, #tpu.memory_space<vmem>>, vector<8x128xf32>
      %c0_14 = arith.constant 0 : index
      %c0_15 = arith.constant 0 : index
      %16 = vector.load %arg5[%c0_14, %c0_15] : memref<1x128xf32, #tpu.memory_space<vmem>>, vector<1x128xf32>
      %17 = vector.broadcast %16 : vector<1x128xf32> to vector<8x128xf32>
      %18 = arith.addf %15, %17 : vector<8x128xf32>
      %c0_16 = arith.constant 0 : index
      %c0_17 = arith.constant 0 : index
      %c0_18 = arith.constant 0 : index
      %c0_19 = arith.constant 0 : index
      %19 = vector.load %arg6[%c0_16, %c0_17, %c0_18, %c0_19] : memref<1x1x8x128xf32, #tpu.memory_space<vmem>>, vector<1x1x8x128xf32>
      %20 = vector.shape_cast %19 : vector<1x1x8x128xf32> to vector<8x128xf32>
      %21 = vector.shape_cast %18 : vector<8x128xf32> to vector<1x1x8x128xf32>
      tpu.vector_store %arg6[%c0_16, %c0_17, %c0_18, %c0_19], %21 {strides = array<i32>} : memref<1x1x8x128xf32, #tpu.memory_space<vmem>>, vector<1x1x8x128xf32>,
    } else {
    }
    return
  }
  func.func @transform_0(%arg0: i32, %arg1: i32, %arg2: i32) -> (i32, i32, i32, i32) {
    %0 = arith.addi %arg1, %arg2 : i32
    %c0_i32 = arith.constant 0 : i32
    %c0_i32_0 = arith.constant 0 : i32
    %c0_i32_1 = arith.constant 0 : i32
    return %arg0, %0, %c0_i32, %c0_i32_0 : i32, i32, i32, i32
  }
  func.func @transform_1(%arg0: i32, %arg1: i32, %arg2: i32) -> (i32, i32, i32, i32) {
    %c0_i32 = arith.constant 0 : i32
    %c0_i32_0 = arith.constant 0 : i32
    %c0_i32_1 = arith.constant 0 : i32
    %c0_i32_2 = arith.constant 0 : i32
    %c0_i32_3 = arith.constant 0 : i32
    return %c0_i32, %c0_i32_0, %c0_i32_1, %c0_i32_2 : i32, i32, i32, i32
  }
  func.func @transform_2(%arg0: i32, %arg1: i32, %arg2: i32) -> (i32, i32) {
    %c0_i32 = arith.constant 0 : i32
    %c0_i32_0 = arith.constant 0 : i32
    %c0_i32_1 = arith.constant 0 : i32
    return %c0_i32, %c0_i32_0 : i32, i32
  }
  func.func @transform_3(%arg0: i32, %arg1: i32, %arg2: i32) -> (i32, i32, i32, i32) {
    %c0_i32 = arith.constant 0 : i32
    %c0_i32_0 = arith.constant 0 : i32
    %c0_i32_1 = arith.constant 0 : i32
    return %arg0, %arg1, %c0_i32, %c0_i32_0 : i32, i32, i32, i32
  }
}

module attributes {stable_mosaic.version = 11 : i64} {
  func.func @kernel(%arg0: i32, %arg1: i32, %arg2: i32, %arg3: memref<1x1x9x64xbf16, #tpu.memory_space<vmem>>, %arg4: memref<2x2x64x128xbf16, #tpu.memory_space<vmem>>, %arg5: memref<1x128xf32, #tpu.memory_space<vmem>>, %arg6: memref<1x1x8x128xf32, #tpu.memory_space<vmem>>, %arg7: memref<8x128xf32, #tpu.memory_space<vmem>>) attributes {dimension_semantics = [#tpu.dimension_semantics<parallel>, #tpu.dimension_semantics<parallel>, #tpu.dimension_semantics<arbitrary>], iteration_bounds = array<i64: 2, 8, 2>, scalar_prefetch = 0 : i64, scratch_operands = 1 : i64, tpu.core_type = #tpu.core_type<tc>, window_params = [{transform_indices = @transform_0, window_bounds = array<i64: 1, 1, 9, 64>}, {pipeline_mode = #tpu.pipeline_mode<synchronous>, transform_indices = @transform_1, window_bounds = array<i64: 2, 2, 64, 128>}, {pipeline_mode = #tpu.pipeline_mode<synchronous>, transform_indices = @transform_2, window_bounds = array<i64: 1, 128>}, {transform_indices = @transform_3, window_bounds = array<i64: 1, 1, 8, 128>}]} {
    %c0_i32 = arith.constant 0 : i32
    %0 = arith.cmpi eq, %arg2, %c0_i32 : i32
    %1 = arith.extui %0 : i1 to i32
    %c0_i32_0 = arith.constant 0 : i32
    %2 = arith.cmpi ne, %1, %c0_i32_0 : i32
    scf.if %2 {
      %cst_23 = arith.constant 0.000000e+00 : f32
      %24 = vector.broadcast %cst_23 : f32 to vector<8x128xf32>
      %c0_24 = arith.constant 0 : index
      %c0_25 = arith.constant 0 : index
      %25 = vector.load %arg7[%c0_24, %c0_25] : memref<8x128xf32, #tpu.memory_space<vmem>>, vector<8x128xf32>
      tpu.vector_store %arg7[%c0_24, %c0_25], %24 {strides = array<i32>} : memref<8x128xf32, #tpu.memory_space<vmem>>, vector<8x128xf32>,
    } else {
    }
    %c0 = arith.constant 0 : index
    %c0_1 = arith.constant 0 : index
    %c0_2 = arith.constant 0 : index
    %c0_3 = arith.constant 0 : index
    %3 = vector.load %arg3[%c0, %c0_1, %c0_2, %c0_3] : memref<1x1x9x64xbf16, #tpu.memory_space<vmem>>, vector<1x1x8x64xbf16>
    %4 = vector.shape_cast %3 : vector<1x1x8x64xbf16> to vector<8x64xbf16>
    %5 = arith.index_cast %arg2 : i32 to index
    %c0_4 = arith.constant 0 : index
    %c0_5 = arith.constant 0 : index
    %c0_6 = arith.constant 0 : index
    %6 = vector.load %arg4[%5, %c0_4, %c0_5, %c0_6] : memref<2x2x64x128xbf16, #tpu.memory_space<vmem>>, vector<1x1x64x128xbf16>
    %7 = vector.shape_cast %6 : vector<1x1x64x128xbf16> to vector<64x128xbf16>
    %c0_7 = arith.constant 0 : index
    %c0_8 = arith.constant 0 : index
    %8 = vector.load %arg7[%c0_7, %c0_8] : memref<8x128xf32, #tpu.memory_space<vmem>>, vector<8x128xf32>
    %cst = arith.constant dense<0.000000e+00> : vector<8x128xf32>
    %9 = tpu.matmul %4, %7, %cst {dimension_numbers = #tpu.dot_dimension_numbers<[1], [0], [0], [1], [0, 0, 1, 1], [], []>} : vector<8x64xbf16>, vector<64x128xbf16>, vector<8x128xf32> -> vector<8x128xf32>
    %10 = arith.addf %8, %9 : vector<8x128xf32>
    %c0_9 = arith.constant 0 : index
    %c0_10 = arith.constant 0 : index
    %11 = vector.load %arg7[%c0_9, %c0_10] : memref<8x128xf32, #tpu.memory_space<vmem>>, vector<8x128xf32>
    tpu.vector_store %arg7[%c0_9, %c0_10], %10 {strides = array<i32>} : memref<8x128xf32, #tpu.memory_space<vmem>>, vector<8x128xf32>,
    %c0_11 = arith.constant 0 : index
    %c0_12 = arith.constant 0 : index
    %c1 = arith.constant 1 : index
    %c0_13 = arith.constant 0 : index
    %12 = vector.load %arg3[%c0_11, %c0_12, %c1, %c0_13] : memref<1x1x9x64xbf16, #tpu.memory_space<vmem>>, vector<1x1x8x64xbf16>
    %13 = vector.shape_cast %12 : vector<1x1x8x64xbf16> to vector<8x64xbf16>
    %14 = arith.index_cast %arg2 : i32 to index
    %c1_14 = arith.constant 1 : index
    %c0_15 = arith.constant 0 : index
    %c0_16 = arith.constant 0 : index
    %15 = vector.load %arg4[%14, %c1_14, %c0_15, %c0_16] : memref<2x2x64x128xbf16, #tpu.memory_space<vmem>>, vector<1x1x64x128xbf16>
    %16 = vector.shape_cast %15 : vector<1x1x64x128xbf16> to vector<64x128xbf16>
    %c0_17 = arith.constant 0 : index
    %c0_18 = arith.constant 0 : index
    %17 = vector.load %arg7[%c0_17, %c0_18] : memref<8x128xf32, #tpu.memory_space<vmem>>, vector<8x128xf32>
    %cst_19 = arith.constant dense<0.000000e+00> : vector<8x128xf32>
    %18 = tpu.matmul %13, %16, %cst_19 {dimension_numbers = #tpu.dot_dimension_numbers<[1], [0], [0], [1], [0, 0, 1, 1], [], []>} : vector<8x64xbf16>, vector<64x128xbf16>, vector<8x128xf32> -> vector<8x128xf32>
    %19 = arith.addf %17, %18 : vector<8x128xf32>
    %c0_20 = arith.constant 0 : index
    %c0_21 = arith.constant 0 : index
    %20 = vector.load %arg7[%c0_20, %c0_21] : memref<8x128xf32, #tpu.memory_space<vmem>>, vector<8x128xf32>
    tpu.vector_store %arg7[%c0_20, %c0_21], %19 {strides = array<i32>} : memref<8x128xf32, #tpu.memory_space<vmem>>, vector<8x128xf32>,
    %c1_i32 = arith.constant 1 : i32
    %21 = arith.cmpi eq, %arg2, %c1_i32 : i32
    %22 = arith.extui %21 : i1 to i32
    %c0_i32_22 = arith.constant 0 : i32
    %23 = arith.cmpi ne, %22, %c0_i32_22 : i32
    scf.if %23 {
      %c0_23 = arith.constant 0 : index
      %c0_24 = arith.constant 0 : index
      %24 = vector.load %arg7[%c0_23, %c0_24] : memref<8x128xf32, #tpu.memory_space<vmem>>, vector<8x128xf32>
      %c0_25 = arith.constant 0 : index
      %c0_26 = arith.constant 0 : index
      %25 = vector.load %arg5[%c0_25, %c0_26] : memref<1x128xf32, #tpu.memory_space<vmem>>, vector<1x128xf32>
      %26 = vector.broadcast %25 : vector<1x128xf32> to vector<8x128xf32>
      %27 = arith.addf %24, %26 : vector<8x128xf32>
      %c0_27 = arith.constant 0 : index
      %c0_28 = arith.constant 0 : index
      %c0_29 = arith.constant 0 : index
      %c0_30 = arith.constant 0 : index
      %28 = vector.load %arg6[%c0_27, %c0_28, %c0_29, %c0_30] : memref<1x1x8x128xf32, #tpu.memory_space<vmem>>, vector<1x1x8x128xf32>
      %29 = vector.shape_cast %28 : vector<1x1x8x128xf32> to vector<8x128xf32>
      %30 = vector.shape_cast %27 : vector<8x128xf32> to vector<1x1x8x128xf32>
      tpu.vector_store %arg6[%c0_27, %c0_28, %c0_29, %c0_30], %30 {strides = array<i32>} : memref<1x1x8x128xf32, #tpu.memory_space<vmem>>, vector<1x1x8x128xf32>,
    } else {
    }
    return
  }
  func.func @transform_0(%arg0: i32, %arg1: i32, %arg2: i32) -> (i32, i32, i32, i32) {
    %0 = arith.addi %arg1, %arg2 : i32
    %c0_i32 = arith.constant 0 : i32
    %c0_i32_0 = arith.constant 0 : i32
    %c0_i32_1 = arith.constant 0 : i32
    return %arg0, %0, %c0_i32, %c0_i32_0 : i32, i32, i32, i32
  }
  func.func @transform_1(%arg0: i32, %arg1: i32, %arg2: i32) -> (i32, i32, i32, i32) {
    %c0_i32 = arith.constant 0 : i32
    %c0_i32_0 = arith.constant 0 : i32
    %c0_i32_1 = arith.constant 0 : i32
    %c0_i32_2 = arith.constant 0 : i32
    %c0_i32_3 = arith.constant 0 : i32
    return %c0_i32, %c0_i32_0, %c0_i32_1, %c0_i32_2 : i32, i32, i32, i32
  }
  func.func @transform_2(%arg0: i32, %arg1: i32, %arg2: i32) -> (i32, i32) {
    %c0_i32 = arith.constant 0 : i32
    %c0_i32_0 = arith.constant 0 : i32
    %c0_i32_1 = arith.constant 0 : i32
    return %c0_i32, %c0_i32_0 : i32, i32
  }
  func.func @transform_3(%arg0: i32, %arg1: i32, %arg2: i32) -> (i32, i32, i32, i32) {
    %c0_i32 = arith.constant 0 : i32
    %c0_i32_0 = arith.constant 0 : i32
    %c0_i32_1 = arith.constant 0 : i32
    return %arg0, %arg1, %c0_i32, %c0_i32_0 : i32, i32, i32, i32
  }
}

module attributes {stable_mosaic.version = 11 : i64} {
  func.func @kernel(%arg0: i32, %arg1: i32, %arg2: i32, %arg3: memref<1x1x8x64xbf16, #tpu.memory_space<vmem>>, %arg4: memref<1x1x64x128xbf16, #tpu.memory_space<vmem>>, %arg5: memref<1x128xf32, #tpu.memory_space<vmem>>, %arg6: memref<1x1x8x128xf32, #tpu.memory_space<vmem>>, %arg7: memref<8x128xf32, #tpu.memory_space<vmem>>) attributes {dimension_semantics = [#tpu.dimension_semantics<parallel>, #tpu.dimension_semantics<parallel>, #tpu.dimension_semantics<arbitrary>], iteration_bounds = array<i64: 2, 8, 1>, scalar_prefetch = 0 : i64, scratch_operands = 1 : i64, tpu.core_type = #tpu.core_type<tc>, window_params = [{transform_indices = @transform_0, window_bounds = array<i64: 1, 1, 8, 64>}, {pipeline_mode = #tpu.pipeline_mode<synchronous>, transform_indices = @transform_1, window_bounds = array<i64: 1, 1, 64, 128>}, {pipeline_mode = #tpu.pipeline_mode<synchronous>, transform_indices = @transform_2, window_bounds = array<i64: 1, 128>}, {transform_indices = @transform_3, window_bounds = array<i64: 1, 1, 8, 128>}]} {
    %c0_i32 = arith.constant 0 : i32
    %0 = arith.cmpi eq, %arg2, %c0_i32 : i32
    %1 = arith.extui %0 : i1 to i32
    %c0_i32_0 = arith.constant 0 : i32
    %2 = arith.cmpi ne, %1, %c0_i32_0 : i32
    scf.if %2 {
      %cst_13 = arith.constant 0.000000e+00 : f32
      %15 = vector.broadcast %cst_13 : f32 to vector<8x128xf32>
      %c0_14 = arith.constant 0 : index
      %c0_15 = arith.constant 0 : index
      %16 = vector.load %arg7[%c0_14, %c0_15] : memref<8x128xf32, #tpu.memory_space<vmem>>, vector<8x128xf32>
      tpu.vector_store %arg7[%c0_14, %c0_15], %15 {strides = array<i32>} : memref<8x128xf32, #tpu.memory_space<vmem>>, vector<8x128xf32>,
    } else {
    }
    %c0 = arith.constant 0 : index
    %c0_1 = arith.constant 0 : index
    %c0_2 = arith.constant 0 : index
    %c0_3 = arith.constant 0 : index
    %3 = vector.load %arg3[%c0, %c0_1, %c0_2, %c0_3] : memref<1x1x8x64xbf16, #tpu.memory_space<vmem>>, vector<1x1x8x64xbf16>
    %4 = vector.shape_cast %3 : vector<1x1x8x64xbf16> to vector<8x64xbf16>
    %5 = arith.index_cast %arg2 : i32 to index
    %c0_4 = arith.constant 0 : index
    %c0_5 = arith.constant 0 : index
    %c0_6 = arith.constant 0 : index
    %6 = vector.load %arg4[%5, %c0_4, %c0_5, %c0_6] : memref<1x1x64x128xbf16, #tpu.memory_space<vmem>>, vector<1x1x64x128xbf16>
    %7 = vector.shape_cast %6 : vector<1x1x64x128xbf16> to vector<64x128xbf16>
    %c0_7 = arith.constant 0 : index
    %c0_8 = arith.constant 0 : index
    %8 = vector.load %arg7[%c0_7, %c0_8] : memref<8x128xf32, #tpu.memory_space<vmem>>, vector<8x128xf32>
    %cst = arith.constant dense<0.000000e+00> : vector<8x128xf32>
    %9 = tpu.matmul %4, %7, %cst {dimension_numbers = #tpu.dot_dimension_numbers<[1], [0], [0], [1], [0, 0, 1, 1], [], []>} : vector<8x64xbf16>, vector<64x128xbf16>, vector<8x128xf32> -> vector<8x128xf32>
    %10 = arith.addf %8, %9 : vector<8x128xf32>
    %c0_9 = arith.constant 0 : index
    %c0_10 = arith.constant 0 : index
    %11 = vector.load %arg7[%c0_9, %c0_10] : memref<8x128xf32, #tpu.memory_space<vmem>>, vector<8x128xf32>
    tpu.vector_store %arg7[%c0_9, %c0_10], %10 {strides = array<i32>} : memref<8x128xf32, #tpu.memory_space<vmem>>, vector<8x128xf32>,
    %c0_i32_11 = arith.constant 0 : i32
    %12 = arith.cmpi eq, %arg2, %c0_i32_11 : i32
    %13 = arith.extui %12 : i1 to i32
    %c0_i32_12 = arith.constant 0 : i32
    %14 = arith.cmpi ne, %13, %c0_i32_12 : i32
    scf.if %14 {
      %c0_13 = arith.constant 0 : index
      %c0_14 = arith.constant 0 : index
      %15 = vector.load %arg7[%c0_13, %c0_14] : memref<8x128xf32, #tpu.memory_space<vmem>>, vector<8x128xf32>
      %c0_15 = arith.constant 0 : index
      %c0_16 = arith.constant 0 : index
      %16 = vector.load %arg5[%c0_15, %c0_16] : memref<1x128xf32, #tpu.memory_space<vmem>>, vector<1x128xf32>
      %17 = vector.broadcast %16 : vector<1x128xf32> to vector<8x128xf32>
      %18 = arith.addf %15, %17 : vector<8x128xf32>
      %c0_17 = arith.constant 0 : index
      %c0_18 = arith.constant 0 : index
      %c0_19 = arith.constant 0 : index
      %c0_20 = arith.constant 0 : index
      %19 = vector.load %arg6[%c0_17, %c0_18, %c0_19, %c0_20] : memref<1x1x8x128xf32, #tpu.memory_space<vmem>>, vector<1x1x8x128xf32>
      %20 = vector.shape_cast %19 : vector<1x1x8x128xf32> to vector<8x128xf32>
      %21 = vector.shape_cast %18 : vector<8x128xf32> to vector<1x1x8x128xf32>
      tpu.vector_store %arg6[%c0_17, %c0_18, %c0_19, %c0_20], %21 {strides = array<i32>} : memref<1x1x8x128xf32, #tpu.memory_space<vmem>>, vector<1x1x8x128xf32>,
    } else {
    }
    return
  }
  func.func @transform_0(%arg0: i32, %arg1: i32, %arg2: i32) -> (i32, i32, i32, i32) {
    %0 = arith.addi %arg1, %arg2 : i32
    %c0_i32 = arith.constant 0 : i32
    %c0_i32_0 = arith.constant 0 : i32
    %c0_i32_1 = arith.constant 0 : i32
    return %arg0, %0, %c0_i32, %c0_i32_0 : i32, i32, i32, i32
  }
  func.func @transform_1(%arg0: i32, %arg1: i32, %arg2: i32) -> (i32, i32, i32, i32) {
    %c0_i32 = arith.constant 0 : i32
    %c0_i32_0 = arith.constant 0 : i32
    %c0_i32_1 = arith.constant 0 : i32
    %c0_i32_2 = arith.constant 0 : i32
    %c0_i32_3 = arith.constant 0 : i32
    return %c0_i32, %c0_i32_0, %c0_i32_1, %c0_i32_2 : i32, i32, i32, i32
  }
  func.func @transform_2(%arg0: i32, %arg1: i32, %arg2: i32) -> (i32, i32) {
    %c0_i32 = arith.constant 0 : i32
    %c0_i32_0 = arith.constant 0 : i32
    %c0_i32_1 = arith.constant 0 : i32
    return %c0_i32, %c0_i32_0 : i32, i32
  }
  func.func @transform_3(%arg0: i32, %arg1: i32, %arg2: i32) -> (i32, i32, i32, i32) {
    %c0_i32 = arith.constant 0 : i32
    %c0_i32_0 = arith.constant 0 : i32
    %c0_i32_1 = arith.constant 0 : i32
    return %arg0, %arg1, %c0_i32, %c0_i32_0 : i32, i32, i32, i32
  }
}

module attributes {stable_mosaic.version = 11 : i64} {
  func.func @_in_stats_kernel(%arg0: i32, %arg1: i32, %arg2: memref<1x64x128xf32, #tpu.memory_space<vmem>>, %arg3: memref<1x1x128xf32, #tpu.memory_space<vmem>>, %arg4: memref<1x1x128xf32, #tpu.memory_space<vmem>>) attributes {dimension_semantics = [#tpu.dimension_semantics<parallel>, #tpu.dimension_semantics<arbitrary>], iteration_bounds = array<i64: 2, 1>, scalar_prefetch = 0 : i64, scratch_operands = 0 : i64, tpu.core_type = #tpu.core_type<tc>, window_params = [{transform_indices = @transform_0, window_bounds = array<i64: 1, 64, 128>}, {transform_indices = @transform_1, window_bounds = array<i64: 1, 1, 128>}, {transform_indices = @transform_2, window_bounds = array<i64: 1, 1, 128>}]} {
    %c0_i32 = arith.constant 0 : i32
    %0 = arith.cmpi eq, %arg1, %c0_i32 : i32
    %1 = arith.extui %0 : i1 to i32
    %c0_i32_0 = arith.constant 0 : i32
    %2 = arith.cmpi ne, %1, %c0_i32_0 : i32
    scf.if %2 {
      %cst_16 = arith.constant 0.000000e+00 : f32
      %18 = vector.broadcast %cst_16 : f32 to vector<1x1x128xf32>
      %c0_17 = arith.constant 0 : index
      %c0_18 = arith.constant 0 : index
      %c0_19 = arith.constant 0 : index
      %19 = vector.load %arg3[%c0_17, %c0_18, %c0_19] : memref<1x1x128xf32, #tpu.memory_space<vmem>>, vector<1x1x128xf32>
      tpu.vector_store %arg3[%c0_17, %c0_18, %c0_19], %18 {strides = array<i32>} : memref<1x1x128xf32, #tpu.memory_space<vmem>>, vector<1x1x128xf32>,
      %cst_20 = arith.constant 0.000000e+00 : f32
      %20 = vector.broadcast %cst_20 : f32 to vector<1x1x128xf32>
      %c0_21 = arith.constant 0 : index
      %c0_22 = arith.constant 0 : index
      %c0_23 = arith.constant 0 : index
      %21 = vector.load %arg4[%c0_21, %c0_22, %c0_23] : memref<1x1x128xf32, #tpu.memory_space<vmem>>, vector<1x1x128xf32>
      tpu.vector_store %arg4[%c0_21, %c0_22, %c0_23], %20 {strides = array<i32>} : memref<1x1x128xf32, #tpu.memory_space<vmem>>, vector<1x1x128xf32>,
    } else {
    }
    %c0 = arith.constant 0 : index
    %c0_1 = arith.constant 0 : index
    %c0_2 = arith.constant 0 : index
    %3 = vector.load %arg2[%c0, %c0_1, %c0_2] : memref<1x64x128xf32, #tpu.memory_space<vmem>>, vector<1x64x128xf32>
    %4 = vector.shape_cast %3 : vector<1x64x128xf32> to vector<64x128xf32>
    %c0_3 = arith.constant 0 : index
    %c0_4 = arith.constant 0 : index
    %c0_5 = arith.constant 0 : index
    %5 = vector.load %arg3[%c0_3, %c0_4, %c0_5] : memref<1x1x128xf32, #tpu.memory_space<vmem>>, vector<1x1x128xf32>
    %cst = arith.constant dense<0.000000e+00> : vector<128xf32>
    %6 = vector.multi_reduction <add>, %4, %cst [0] : vector<64x128xf32> to vector<128xf32>
    %7 = vector.shape_cast %6 : vector<128xf32> to vector<1x128xf32>
    %8 = vector.shape_cast %7 : vector<1x128xf32> to vector<1x1x128xf32>
    %9 = arith.addf %5, %8 : vector<1x1x128xf32>
    %c0_6 = arith.constant 0 : index
    %c0_7 = arith.constant 0 : index
    %c0_8 = arith.constant 0 : index
    %10 = vector.load %arg3[%c0_6, %c0_7, %c0_8] : memref<1x1x128xf32, #tpu.memory_space<vmem>>, vector<1x1x128xf32>
    tpu.vector_store %arg3[%c0_6, %c0_7, %c0_8], %9 {strides = array<i32>} : memref<1x1x128xf32, #tpu.memory_space<vmem>>, vector<1x1x128xf32>,
    %c0_9 = arith.constant 0 : index
    %c0_10 = arith.constant 0 : index
    %c0_11 = arith.constant 0 : index
    %11 = vector.load %arg4[%c0_9, %c0_10, %c0_11] : memref<1x1x128xf32, #tpu.memory_space<vmem>>, vector<1x1x128xf32>
    %12 = arith.mulf %4, %4 : vector<64x128xf32>
    %cst_12 = arith.constant dense<0.000000e+00> : vector<128xf32>
    %13 = vector.multi_reduction <add>, %12, %cst_12 [0] : vector<64x128xf32> to vector<128xf32>
    %14 = vector.shape_cast %13 : vector<128xf32> to vector<1x128xf32>
    %15 = vector.shape_cast %14 : vector<1x128xf32> to vector<1x1x128xf32>
    %16 = arith.addf %11, %15 : vector<1x1x128xf32>
    %c0_13 = arith.constant 0 : index
    %c0_14 = arith.constant 0 : index
    %c0_15 = arith.constant 0 : index
    %17 = vector.load %arg4[%c0_13, %c0_14, %c0_15] : memref<1x1x128xf32, #tpu.memory_space<vmem>>, vector<1x1x128xf32>
    tpu.vector_store %arg4[%c0_13, %c0_14, %c0_15], %16 {strides = array<i32>} : memref<1x1x128xf32, #tpu.memory_space<vmem>>, vector<1x1x128xf32>,
    return
  }
  func.func @transform_0(%arg0: i32, %arg1: i32) -> (i32, i32, i32) {
    %c0_i32 = arith.constant 0 : i32
    %c0_i32_0 = arith.constant 0 : i32
    return %arg0, %arg1, %c0_i32 : i32, i32, i32
  }
  func.func @transform_1(%arg0: i32, %arg1: i32) -> (i32, i32, i32) {
    %c0_i32 = arith.constant 0 : i32
    %c0_i32_0 = arith.constant 0 : i32
    %c0_i32_1 = arith.constant 0 : i32
    return %arg0, %c0_i32, %c0_i32_0 : i32, i32, i32
  }
  func.func @transform_2(%arg0: i32, %arg1: i32) -> (i32, i32, i32) {
    %c0_i32 = arith.constant 0 : i32
    %c0_i32_0 = arith.constant 0 : i32
    %c0_i32_1 = arith.constant 0 : i32
    return %arg0, %c0_i32, %c0_i32_0 : i32, i32, i32
  }
}

module attributes {stable_mosaic.version = 11 : i64} {
  func.func @kernel(%arg0: i32, %arg1: i32, %arg2: memref<1x64x128xf32, #tpu.memory_space<vmem>>, %arg3: memref<1x1x128xf32, #tpu.memory_space<vmem>>, %arg4: memref<1x1x128xf32, #tpu.memory_space<vmem>>, %arg5: memref<1x64x128xbf16, #tpu.memory_space<vmem>>) attributes {dimension_semantics = [#tpu.dimension_semantics<parallel>, #tpu.dimension_semantics<parallel>], iteration_bounds = array<i64: 2, 1>, scalar_prefetch = 0 : i64, scratch_operands = 0 : i64, tpu.core_type = #tpu.core_type<tc>, window_params = [{transform_indices = @transform_0, window_bounds = array<i64: 1, 64, 128>}, {transform_indices = @transform_1, window_bounds = array<i64: 1, 1, 128>}, {transform_indices = @transform_2, window_bounds = array<i64: 1, 1, 128>}, {transform_indices = @transform_3, window_bounds = array<i64: 1, 64, 128>}]} {
    %c0 = arith.constant 0 : index
    %c0_0 = arith.constant 0 : index
    %c0_1 = arith.constant 0 : index
    %0 = vector.load %arg2[%c0, %c0_0, %c0_1] : memref<1x64x128xf32, #tpu.memory_space<vmem>>, vector<1x64x128xf32>
    %1 = vector.shape_cast %0 : vector<1x64x128xf32> to vector<64x128xf32>
    %c0_2 = arith.constant 0 : index
    %c0_3 = arith.constant 0 : index
    %c0_4 = arith.constant 0 : index
    %2 = vector.load %arg3[%c0_2, %c0_3, %c0_4] : memref<1x1x128xf32, #tpu.memory_space<vmem>>, vector<1x1x128xf32>
    %3 = vector.shape_cast %2 : vector<1x1x128xf32> to vector<1x128xf32>
    %cst = arith.constant 1.562500e-02 : f32
    %4 = vector.broadcast %cst : f32 to vector<1x128xf32>
    %5 = arith.mulf %3, %4 : vector<1x128xf32>
    %c0_5 = arith.constant 0 : index
    %c0_6 = arith.constant 0 : index
    %c0_7 = arith.constant 0 : index
    %6 = vector.load %arg4[%c0_5, %c0_6, %c0_7] : memref<1x1x128xf32, #tpu.memory_space<vmem>>, vector<1x1x128xf32>
    %7 = vector.shape_cast %6 : vector<1x1x128xf32> to vector<1x128xf32>
    %cst_8 = arith.constant 1.562500e-02 : f32
    %8 = vector.broadcast %cst_8 : f32 to vector<1x128xf32>
    %9 = arith.mulf %7, %8 : vector<1x128xf32>
    %10 = arith.mulf %5, %5 : vector<1x128xf32>
    %11 = arith.subf %9, %10 : vector<1x128xf32>
    %12 = vector.broadcast %5 : vector<1x128xf32> to vector<64x128xf32>
    %13 = arith.subf %1, %12 : vector<64x128xf32>
    %cst_9 = arith.constant 9.99999974E-6 : f32
    %14 = vector.broadcast %cst_9 : f32 to vector<1x128xf32>
    %15 = arith.addf %11, %14 : vector<1x128xf32>
    %16 = math.rsqrt %15 : vector<1x128xf32>
    %17 = vector.broadcast %16 : vector<1x128xf32> to vector<64x128xf32>
    %18 = arith.mulf %13, %17 : vector<64x128xf32>
    %cst_10 = arith.constant 0.000000e+00 : f32
    %19 = vector.broadcast %cst_10 : f32 to vector<64x128xf32>
    %20 = arith.maximumf %18, %19 : vector<64x128xf32>
    %21 = arith.truncf %20 : vector<64x128xf32> to vector<64x128xbf16>
    %c0_11 = arith.constant 0 : index
    %c0_12 = arith.constant 0 : index
    %c0_13 = arith.constant 0 : index
    %22 = vector.load %arg5[%c0_11, %c0_12, %c0_13] : memref<1x64x128xbf16, #tpu.memory_space<vmem>>, vector<1x64x128xbf16>
    %23 = vector.shape_cast %22 : vector<1x64x128xbf16> to vector<64x128xbf16>
    %24 = vector.shape_cast %21 : vector<64x128xbf16> to vector<1x64x128xbf16>
    tpu.vector_store %arg5[%c0_11, %c0_12, %c0_13], %24 {strides = array<i32>} : memref<1x64x128xbf16, #tpu.memory_space<vmem>>, vector<1x64x128xbf16>,
    return
  }
  func.func @transform_0(%arg0: i32, %arg1: i32) -> (i32, i32, i32) {
    %c0_i32 = arith.constant 0 : i32
    %c0_i32_0 = arith.constant 0 : i32
    return %arg0, %arg1, %c0_i32 : i32, i32, i32
  }
  func.func @transform_1(%arg0: i32, %arg1: i32) -> (i32, i32, i32) {
    %c0_i32 = arith.constant 0 : i32
    %c0_i32_0 = arith.constant 0 : i32
    %c0_i32_1 = arith.constant 0 : i32
    return %arg0, %c0_i32, %c0_i32_0 : i32, i32, i32
  }
  func.func @transform_2(%arg0: i32, %arg1: i32) -> (i32, i32, i32) {
    %c0_i32 = arith.constant 0 : i32
    %c0_i32_0 = arith.constant 0 : i32
    %c0_i32_1 = arith.constant 0 : i32
    return %arg0, %c0_i32, %c0_i32_0 : i32, i32, i32
  }
  func.func @transform_3(%arg0: i32, %arg1: i32) -> (i32, i32, i32) {
    %c0_i32 = arith.constant 0 : i32
    %c0_i32_0 = arith.constant 0 : i32
    return %arg0, %arg1, %c0_i32 : i32, i32, i32
  }
}

module attributes {stable_mosaic.version = 11 : i64} {
  func.func @kernel(%arg0: i32, %arg1: i32, %arg2: i32, %arg3: memref<1x1x5x128xbf16, #tpu.memory_space<vmem>>, %arg4: memref<2x2x128x256xbf16, #tpu.memory_space<vmem>>, %arg5: memref<1x256xf32, #tpu.memory_space<vmem>>, %arg6: memref<1x1x4x256xf32, #tpu.memory_space<vmem>>, %arg7: memref<4x256xf32, #tpu.memory_space<vmem>>) attributes {dimension_semantics = [#tpu.dimension_semantics<parallel>, #tpu.dimension_semantics<parallel>, #tpu.dimension_semantics<arbitrary>], iteration_bounds = array<i64: 2, 4, 2>, scalar_prefetch = 0 : i64, scratch_operands = 1 : i64, tpu.core_type = #tpu.core_type<tc>, window_params = [{transform_indices = @transform_0, window_bounds = array<i64: 1, 1, 5, 128>}, {pipeline_mode = #tpu.pipeline_mode<synchronous>, transform_indices = @transform_1, window_bounds = array<i64: 2, 2, 128, 256>}, {pipeline_mode = #tpu.pipeline_mode<synchronous>, transform_indices = @transform_2, window_bounds = array<i64: 1, 256>}, {transform_indices = @transform_3, window_bounds = array<i64: 1, 1, 4, 256>}]} {
    %c0_i32 = arith.constant 0 : i32
    %0 = arith.cmpi eq, %arg2, %c0_i32 : i32
    %1 = arith.extui %0 : i1 to i32
    %c0_i32_0 = arith.constant 0 : i32
    %2 = arith.cmpi ne, %1, %c0_i32_0 : i32
    scf.if %2 {
      %cst_23 = arith.constant 0.000000e+00 : f32
      %24 = vector.broadcast %cst_23 : f32 to vector<4x256xf32>
      %c0_24 = arith.constant 0 : index
      %c0_25 = arith.constant 0 : index
      %25 = vector.load %arg7[%c0_24, %c0_25] : memref<4x256xf32, #tpu.memory_space<vmem>>, vector<4x256xf32>
      tpu.vector_store %arg7[%c0_24, %c0_25], %24 {strides = array<i32>} : memref<4x256xf32, #tpu.memory_space<vmem>>, vector<4x256xf32>,
    } else {
    }
    %c0 = arith.constant 0 : index
    %c0_1 = arith.constant 0 : index
    %c0_2 = arith.constant 0 : index
    %c0_3 = arith.constant 0 : index
    %3 = vector.load %arg3[%c0, %c0_1, %c0_2, %c0_3] : memref<1x1x5x128xbf16, #tpu.memory_space<vmem>>, vector<1x1x4x128xbf16>
    %4 = vector.shape_cast %3 : vector<1x1x4x128xbf16> to vector<4x128xbf16>
    %5 = arith.index_cast %arg2 : i32 to index
    %c0_4 = arith.constant 0 : index
    %c0_5 = arith.constant 0 : index
    %c0_6 = arith.constant 0 : index
    %6 = vector.load %arg4[%5, %c0_4, %c0_5, %c0_6] : memref<2x2x128x256xbf16, #tpu.memory_space<vmem>>, vector<1x1x128x256xbf16>
    %7 = vector.shape_cast %6 : vector<1x1x128x256xbf16> to vector<128x256xbf16>
    %c0_7 = arith.constant 0 : index
    %c0_8 = arith.constant 0 : index
    %8 = vector.load %arg7[%c0_7, %c0_8] : memref<4x256xf32, #tpu.memory_space<vmem>>, vector<4x256xf32>
    %cst = arith.constant dense<0.000000e+00> : vector<4x256xf32>
    %9 = tpu.matmul %4, %7, %cst {dimension_numbers = #tpu.dot_dimension_numbers<[1], [0], [0], [1], [0, 0, 1, 1], [], []>} : vector<4x128xbf16>, vector<128x256xbf16>, vector<4x256xf32> -> vector<4x256xf32>
    %10 = arith.addf %8, %9 : vector<4x256xf32>
    %c0_9 = arith.constant 0 : index
    %c0_10 = arith.constant 0 : index
    %11 = vector.load %arg7[%c0_9, %c0_10] : memref<4x256xf32, #tpu.memory_space<vmem>>, vector<4x256xf32>
    tpu.vector_store %arg7[%c0_9, %c0_10], %10 {strides = array<i32>} : memref<4x256xf32, #tpu.memory_space<vmem>>, vector<4x256xf32>,
    %c0_11 = arith.constant 0 : index
    %c0_12 = arith.constant 0 : index
    %c1 = arith.constant 1 : index
    %c0_13 = arith.constant 0 : index
    %12 = vector.load %arg3[%c0_11, %c0_12, %c1, %c0_13] : memref<1x1x5x128xbf16, #tpu.memory_space<vmem>>, vector<1x1x4x128xbf16>
    %13 = vector.shape_cast %12 : vector<1x1x4x128xbf16> to vector<4x128xbf16>
    %14 = arith.index_cast %arg2 : i32 to index
    %c1_14 = arith.constant 1 : index
    %c0_15 = arith.constant 0 : index
    %c0_16 = arith.constant 0 : index
    %15 = vector.load %arg4[%14, %c1_14, %c0_15, %c0_16] : memref<2x2x128x256xbf16, #tpu.memory_space<vmem>>, vector<1x1x128x256xbf16>
    %16 = vector.shape_cast %15 : vector<1x1x128x256xbf16> to vector<128x256xbf16>
    %c0_17 = arith.constant 0 : index
    %c0_18 = arith.constant 0 : index
    %17 = vector.load %arg7[%c0_17, %c0_18] : memref<4x256xf32, #tpu.memory_space<vmem>>, vector<4x256xf32>
    %cst_19 = arith.constant dense<0.000000e+00> : vector<4x256xf32>
    %18 = tpu.matmul %13, %16, %cst_19 {dimension_numbers = #tpu.dot_dimension_numbers<[1], [0], [0], [1], [0, 0, 1, 1], [], []>} : vector<4x128xbf16>, vector<128x256xbf16>, vector<4x256xf32> -> vector<4x256xf32>
    %19 = arith.addf %17, %18 : vector<4x256xf32>
    %c0_20 = arith.constant 0 : index
    %c0_21 = arith.constant 0 : index
    %20 = vector.load %arg7[%c0_20, %c0_21] : memref<4x256xf32, #tpu.memory_space<vmem>>, vector<4x256xf32>
    tpu.vector_store %arg7[%c0_20, %c0_21], %19 {strides = array<i32>} : memref<4x256xf32, #tpu.memory_space<vmem>>, vector<4x256xf32>,
    %c1_i32 = arith.constant 1 : i32
    %21 = arith.cmpi eq, %arg2, %c1_i32 : i32
    %22 = arith.extui %21 : i1 to i32
    %c0_i32_22 = arith.constant 0 : i32
    %23 = arith.cmpi ne, %22, %c0_i32_22 : i32
    scf.if %23 {
      %c0_23 = arith.constant 0 : index
      %c0_24 = arith.constant 0 : index
      %24 = vector.load %arg7[%c0_23, %c0_24] : memref<4x256xf32, #tpu.memory_space<vmem>>, vector<4x256xf32>
      %c0_25 = arith.constant 0 : index
      %c0_26 = arith.constant 0 : index
      %25 = vector.load %arg5[%c0_25, %c0_26] : memref<1x256xf32, #tpu.memory_space<vmem>>, vector<1x256xf32>
      %26 = vector.broadcast %25 : vector<1x256xf32> to vector<4x256xf32>
      %27 = arith.addf %24, %26 : vector<4x256xf32>
      %c0_27 = arith.constant 0 : index
      %c0_28 = arith.constant 0 : index
      %c0_29 = arith.constant 0 : index
      %c0_30 = arith.constant 0 : index
      %28 = vector.load %arg6[%c0_27, %c0_28, %c0_29, %c0_30] : memref<1x1x4x256xf32, #tpu.memory_space<vmem>>, vector<1x1x4x256xf32>
      %29 = vector.shape_cast %28 : vector<1x1x4x256xf32> to vector<4x256xf32>
      %30 = vector.shape_cast %27 : vector<4x256xf32> to vector<1x1x4x256xf32>
      tpu.vector_store %arg6[%c0_27, %c0_28, %c0_29, %c0_30], %30 {strides = array<i32>} : memref<1x1x4x256xf32, #tpu.memory_space<vmem>>, vector<1x1x4x256xf32>,
    } else {
    }
    return
  }
  func.func @transform_0(%arg0: i32, %arg1: i32, %arg2: i32) -> (i32, i32, i32, i32) {
    %0 = arith.addi %arg1, %arg2 : i32
    %c0_i32 = arith.constant 0 : i32
    %c0_i32_0 = arith.constant 0 : i32
    %c0_i32_1 = arith.constant 0 : i32
    return %arg0, %0, %c0_i32, %c0_i32_0 : i32, i32, i32, i32
  }
  func.func @transform_1(%arg0: i32, %arg1: i32, %arg2: i32) -> (i32, i32, i32, i32) {
    %c0_i32 = arith.constant 0 : i32
    %c0_i32_0 = arith.constant 0 : i32
    %c0_i32_1 = arith.constant 0 : i32
    %c0_i32_2 = arith.constant 0 : i32
    %c0_i32_3 = arith.constant 0 : i32
    return %c0_i32, %c0_i32_0, %c0_i32_1, %c0_i32_2 : i32, i32, i32, i32
  }
  func.func @transform_2(%arg0: i32, %arg1: i32, %arg2: i32) -> (i32, i32) {
    %c0_i32 = arith.constant 0 : i32
    %c0_i32_0 = arith.constant 0 : i32
    %c0_i32_1 = arith.constant 0 : i32
    return %c0_i32, %c0_i32_0 : i32, i32
  }
  func.func @transform_3(%arg0: i32, %arg1: i32, %arg2: i32) -> (i32, i32, i32, i32) {
    %c0_i32 = arith.constant 0 : i32
    %c0_i32_0 = arith.constant 0 : i32
    %c0_i32_1 = arith.constant 0 : i32
    return %arg0, %arg1, %c0_i32, %c0_i32_0 : i32, i32, i32, i32
  }
}

module attributes {stable_mosaic.version = 11 : i64} {
  func.func @kernel(%arg0: i32, %arg1: i32, %arg2: i32, %arg3: memref<1x1x5x128xbf16, #tpu.memory_space<vmem>>, %arg4: memref<1x2x128x256xbf16, #tpu.memory_space<vmem>>, %arg5: memref<1x256xf32, #tpu.memory_space<vmem>>, %arg6: memref<1x1x4x256xf32, #tpu.memory_space<vmem>>, %arg7: memref<4x256xf32, #tpu.memory_space<vmem>>) attributes {dimension_semantics = [#tpu.dimension_semantics<parallel>, #tpu.dimension_semantics<parallel>, #tpu.dimension_semantics<arbitrary>], iteration_bounds = array<i64: 2, 4, 1>, scalar_prefetch = 0 : i64, scratch_operands = 1 : i64, tpu.core_type = #tpu.core_type<tc>, window_params = [{transform_indices = @transform_0, window_bounds = array<i64: 1, 1, 5, 128>}, {pipeline_mode = #tpu.pipeline_mode<synchronous>, transform_indices = @transform_1, window_bounds = array<i64: 1, 2, 128, 256>}, {pipeline_mode = #tpu.pipeline_mode<synchronous>, transform_indices = @transform_2, window_bounds = array<i64: 1, 256>}, {transform_indices = @transform_3, window_bounds = array<i64: 1, 1, 4, 256>}]} {
    %c0_i32 = arith.constant 0 : i32
    %0 = arith.cmpi eq, %arg2, %c0_i32 : i32
    %1 = arith.extui %0 : i1 to i32
    %c0_i32_0 = arith.constant 0 : i32
    %2 = arith.cmpi ne, %1, %c0_i32_0 : i32
    scf.if %2 {
      %cst_24 = arith.constant 0.000000e+00 : f32
      %24 = vector.broadcast %cst_24 : f32 to vector<4x256xf32>
      %c0_25 = arith.constant 0 : index
      %c0_26 = arith.constant 0 : index
      %25 = vector.load %arg7[%c0_25, %c0_26] : memref<4x256xf32, #tpu.memory_space<vmem>>, vector<4x256xf32>
      tpu.vector_store %arg7[%c0_25, %c0_26], %24 {strides = array<i32>} : memref<4x256xf32, #tpu.memory_space<vmem>>, vector<4x256xf32>,
    } else {
    }
    %c0 = arith.constant 0 : index
    %c0_1 = arith.constant 0 : index
    %c0_2 = arith.constant 0 : index
    %c0_3 = arith.constant 0 : index
    %3 = vector.load %arg3[%c0, %c0_1, %c0_2, %c0_3] : memref<1x1x5x128xbf16, #tpu.memory_space<vmem>>, vector<1x1x4x128xbf16>
    %4 = vector.shape_cast %3 : vector<1x1x4x128xbf16> to vector<4x128xbf16>
    %5 = arith.index_cast %arg2 : i32 to index
    %c0_4 = arith.constant 0 : index
    %c0_5 = arith.constant 0 : index
    %c0_6 = arith.constant 0 : index
    %6 = vector.load %arg4[%5, %c0_4, %c0_5, %c0_6] : memref<1x2x128x256xbf16, #tpu.memory_space<vmem>>, vector<1x1x128x256xbf16>
    %7 = vector.shape_cast %6 : vector<1x1x128x256xbf16> to vector<128x256xbf16>
    %c0_7 = arith.constant 0 : index
    %c0_8 = arith.constant 0 : index
    %8 = vector.load %arg7[%c0_7, %c0_8] : memref<4x256xf32, #tpu.memory_space<vmem>>, vector<4x256xf32>
    %cst = arith.constant dense<0.000000e+00> : vector<4x256xf32>
    %9 = tpu.matmul %4, %7, %cst {dimension_numbers = #tpu.dot_dimension_numbers<[1], [0], [0], [1], [0, 0, 1, 1], [], []>} : vector<4x128xbf16>, vector<128x256xbf16>, vector<4x256xf32> -> vector<4x256xf32>
    %10 = arith.addf %8, %9 : vector<4x256xf32>
    %c0_9 = arith.constant 0 : index
    %c0_10 = arith.constant 0 : index
    %11 = vector.load %arg7[%c0_9, %c0_10] : memref<4x256xf32, #tpu.memory_space<vmem>>, vector<4x256xf32>
    tpu.vector_store %arg7[%c0_9, %c0_10], %10 {strides = array<i32>} : memref<4x256xf32, #tpu.memory_space<vmem>>, vector<4x256xf32>,
    %c0_11 = arith.constant 0 : index
    %c0_12 = arith.constant 0 : index
    %c1 = arith.constant 1 : index
    %c0_13 = arith.constant 0 : index
    %12 = vector.load %arg3[%c0_11, %c0_12, %c1, %c0_13] : memref<1x1x5x128xbf16, #tpu.memory_space<vmem>>, vector<1x1x4x128xbf16>
    %13 = vector.shape_cast %12 : vector<1x1x4x128xbf16> to vector<4x128xbf16>
    %14 = arith.index_cast %arg2 : i32 to index
    %c1_14 = arith.constant 1 : index
    %c0_15 = arith.constant 0 : index
    %c0_16 = arith.constant 0 : index
    %15 = vector.load %arg4[%14, %c1_14, %c0_15, %c0_16] : memref<1x2x128x256xbf16, #tpu.memory_space<vmem>>, vector<1x1x128x256xbf16>
    %16 = vector.shape_cast %15 : vector<1x1x128x256xbf16> to vector<128x256xbf16>
    %c0_17 = arith.constant 0 : index
    %c0_18 = arith.constant 0 : index
    %17 = vector.load %arg7[%c0_17, %c0_18] : memref<4x256xf32, #tpu.memory_space<vmem>>, vector<4x256xf32>
    %cst_19 = arith.constant dense<0.000000e+00> : vector<4x256xf32>
    %18 = tpu.matmul %13, %16, %cst_19 {dimension_numbers = #tpu.dot_dimension_numbers<[1], [0], [0], [1], [0, 0, 1, 1], [], []>} : vector<4x128xbf16>, vector<128x256xbf16>, vector<4x256xf32> -> vector<4x256xf32>
    %19 = arith.addf %17, %18 : vector<4x256xf32>
    %c0_20 = arith.constant 0 : index
    %c0_21 = arith.constant 0 : index
    %20 = vector.load %arg7[%c0_20, %c0_21] : memref<4x256xf32, #tpu.memory_space<vmem>>, vector<4x256xf32>
    tpu.vector_store %arg7[%c0_20, %c0_21], %19 {strides = array<i32>} : memref<4x256xf32, #tpu.memory_space<vmem>>, vector<4x256xf32>,
    %c0_i32_22 = arith.constant 0 : i32
    %21 = arith.cmpi eq, %arg2, %c0_i32_22 : i32
    %22 = arith.extui %21 : i1 to i32
    %c0_i32_23 = arith.constant 0 : i32
    %23 = arith.cmpi ne, %22, %c0_i32_23 : i32
    scf.if %23 {
      %c0_24 = arith.constant 0 : index
      %c0_25 = arith.constant 0 : index
      %24 = vector.load %arg7[%c0_24, %c0_25] : memref<4x256xf32, #tpu.memory_space<vmem>>, vector<4x256xf32>
      %c0_26 = arith.constant 0 : index
      %c0_27 = arith.constant 0 : index
      %25 = vector.load %arg5[%c0_26, %c0_27] : memref<1x256xf32, #tpu.memory_space<vmem>>, vector<1x256xf32>
      %26 = vector.broadcast %25 : vector<1x256xf32> to vector<4x256xf32>
      %27 = arith.addf %24, %26 : vector<4x256xf32>
      %c0_28 = arith.constant 0 : index
      %c0_29 = arith.constant 0 : index
      %c0_30 = arith.constant 0 : index
      %c0_31 = arith.constant 0 : index
      %28 = vector.load %arg6[%c0_28, %c0_29, %c0_30, %c0_31] : memref<1x1x4x256xf32, #tpu.memory_space<vmem>>, vector<1x1x4x256xf32>
      %29 = vector.shape_cast %28 : vector<1x1x4x256xf32> to vector<4x256xf32>
      %30 = vector.shape_cast %27 : vector<4x256xf32> to vector<1x1x4x256xf32>
      tpu.vector_store %arg6[%c0_28, %c0_29, %c0_30, %c0_31], %30 {strides = array<i32>} : memref<1x1x4x256xf32, #tpu.memory_space<vmem>>, vector<1x1x4x256xf32>,
    } else {
    }
    return
  }
  func.func @transform_0(%arg0: i32, %arg1: i32, %arg2: i32) -> (i32, i32, i32, i32) {
    %0 = arith.addi %arg1, %arg2 : i32
    %c0_i32 = arith.constant 0 : i32
    %c0_i32_0 = arith.constant 0 : i32
    %c0_i32_1 = arith.constant 0 : i32
    return %arg0, %0, %c0_i32, %c0_i32_0 : i32, i32, i32, i32
  }
  func.func @transform_1(%arg0: i32, %arg1: i32, %arg2: i32) -> (i32, i32, i32, i32) {
    %c0_i32 = arith.constant 0 : i32
    %c0_i32_0 = arith.constant 0 : i32
    %c0_i32_1 = arith.constant 0 : i32
    %c0_i32_2 = arith.constant 0 : i32
    %c0_i32_3 = arith.constant 0 : i32
    return %c0_i32, %c0_i32_0, %c0_i32_1, %c0_i32_2 : i32, i32, i32, i32
  }
  func.func @transform_2(%arg0: i32, %arg1: i32, %arg2: i32) -> (i32, i32) {
    %c0_i32 = arith.constant 0 : i32
    %c0_i32_0 = arith.constant 0 : i32
    %c0_i32_1 = arith.constant 0 : i32
    return %c0_i32, %c0_i32_0 : i32, i32
  }
  func.func @transform_3(%arg0: i32, %arg1: i32, %arg2: i32) -> (i32, i32, i32, i32) {
    %c0_i32 = arith.constant 0 : i32
    %c0_i32_0 = arith.constant 0 : i32
    %c0_i32_1 = arith.constant 0 : i32
    return %arg0, %arg1, %c0_i32, %c0_i32_0 : i32, i32, i32, i32
  }
}

module attributes {stable_mosaic.version = 11 : i64} {
  func.func @kernel(%arg0: i32, %arg1: i32, %arg2: i32, %arg3: memref<1x1x4x128xbf16, #tpu.memory_space<vmem>>, %arg4: memref<2x1x128x256xbf16, #tpu.memory_space<vmem>>, %arg5: memref<1x256xf32, #tpu.memory_space<vmem>>, %arg6: memref<1x1x4x256xf32, #tpu.memory_space<vmem>>, %arg7: memref<4x256xf32, #tpu.memory_space<vmem>>) attributes {dimension_semantics = [#tpu.dimension_semantics<parallel>, #tpu.dimension_semantics<parallel>, #tpu.dimension_semantics<arbitrary>], iteration_bounds = array<i64: 2, 4, 2>, scalar_prefetch = 0 : i64, scratch_operands = 1 : i64, tpu.core_type = #tpu.core_type<tc>, window_params = [{transform_indices = @transform_0, window_bounds = array<i64: 1, 1, 4, 128>}, {pipeline_mode = #tpu.pipeline_mode<synchronous>, transform_indices = @transform_1, window_bounds = array<i64: 2, 1, 128, 256>}, {pipeline_mode = #tpu.pipeline_mode<synchronous>, transform_indices = @transform_2, window_bounds = array<i64: 1, 256>}, {transform_indices = @transform_3, window_bounds = array<i64: 1, 1, 4, 256>}]} {
    %c0_i32 = arith.constant 0 : i32
    %0 = arith.cmpi eq, %arg2, %c0_i32 : i32
    %1 = arith.extui %0 : i1 to i32
    %c0_i32_0 = arith.constant 0 : i32
    %2 = arith.cmpi ne, %1, %c0_i32_0 : i32
    scf.if %2 {
      %cst_12 = arith.constant 0.000000e+00 : f32
      %15 = vector.broadcast %cst_12 : f32 to vector<4x256xf32>
      %c0_13 = arith.constant 0 : index
      %c0_14 = arith.constant 0 : index
      %16 = vector.load %arg7[%c0_13, %c0_14] : memref<4x256xf32, #tpu.memory_space<vmem>>, vector<4x256xf32>
      tpu.vector_store %arg7[%c0_13, %c0_14], %15 {strides = array<i32>} : memref<4x256xf32, #tpu.memory_space<vmem>>, vector<4x256xf32>,
    } else {
    }
    %c0 = arith.constant 0 : index
    %c0_1 = arith.constant 0 : index
    %c0_2 = arith.constant 0 : index
    %c0_3 = arith.constant 0 : index
    %3 = vector.load %arg3[%c0, %c0_1, %c0_2, %c0_3] : memref<1x1x4x128xbf16, #tpu.memory_space<vmem>>, vector<1x1x4x128xbf16>
    %4 = vector.shape_cast %3 : vector<1x1x4x128xbf16> to vector<4x128xbf16>
    %5 = arith.index_cast %arg2 : i32 to index
    %c0_4 = arith.constant 0 : index
    %c0_5 = arith.constant 0 : index
    %c0_6 = arith.constant 0 : index
    %6 = vector.load %arg4[%5, %c0_4, %c0_5, %c0_6] : memref<2x1x128x256xbf16, #tpu.memory_space<vmem>>, vector<1x1x128x256xbf16>
    %7 = vector.shape_cast %6 : vector<1x1x128x256xbf16> to vector<128x256xbf16>
    %c0_7 = arith.constant 0 : index
    %c0_8 = arith.constant 0 : index
    %8 = vector.load %arg7[%c0_7, %c0_8] : memref<4x256xf32, #tpu.memory_space<vmem>>, vector<4x256xf32>
    %cst = arith.constant dense<0.000000e+00> : vector<4x256xf32>
    %9 = tpu.matmul %4, %7, %cst {dimension_numbers = #tpu.dot_dimension_numbers<[1], [0], [0], [1], [0, 0, 1, 1], [], []>} : vector<4x128xbf16>, vector<128x256xbf16>, vector<4x256xf32> -> vector<4x256xf32>
    %10 = arith.addf %8, %9 : vector<4x256xf32>
    %c0_9 = arith.constant 0 : index
    %c0_10 = arith.constant 0 : index
    %11 = vector.load %arg7[%c0_9, %c0_10] : memref<4x256xf32, #tpu.memory_space<vmem>>, vector<4x256xf32>
    tpu.vector_store %arg7[%c0_9, %c0_10], %10 {strides = array<i32>} : memref<4x256xf32, #tpu.memory_space<vmem>>, vector<4x256xf32>,
    %c1_i32 = arith.constant 1 : i32
    %12 = arith.cmpi eq, %arg2, %c1_i32 : i32
    %13 = arith.extui %12 : i1 to i32
    %c0_i32_11 = arith.constant 0 : i32
    %14 = arith.cmpi ne, %13, %c0_i32_11 : i32
    scf.if %14 {
      %c0_12 = arith.constant 0 : index
      %c0_13 = arith.constant 0 : index
      %15 = vector.load %arg7[%c0_12, %c0_13] : memref<4x256xf32, #tpu.memory_space<vmem>>, vector<4x256xf32>
      %c0_14 = arith.constant 0 : index
      %c0_15 = arith.constant 0 : index
      %16 = vector.load %arg5[%c0_14, %c0_15] : memref<1x256xf32, #tpu.memory_space<vmem>>, vector<1x256xf32>
      %17 = vector.broadcast %16 : vector<1x256xf32> to vector<4x256xf32>
      %18 = arith.addf %15, %17 : vector<4x256xf32>
      %c0_16 = arith.constant 0 : index
      %c0_17 = arith.constant 0 : index
      %c0_18 = arith.constant 0 : index
      %c0_19 = arith.constant 0 : index
      %19 = vector.load %arg6[%c0_16, %c0_17, %c0_18, %c0_19] : memref<1x1x4x256xf32, #tpu.memory_space<vmem>>, vector<1x1x4x256xf32>
      %20 = vector.shape_cast %19 : vector<1x1x4x256xf32> to vector<4x256xf32>
      %21 = vector.shape_cast %18 : vector<4x256xf32> to vector<1x1x4x256xf32>
      tpu.vector_store %arg6[%c0_16, %c0_17, %c0_18, %c0_19], %21 {strides = array<i32>} : memref<1x1x4x256xf32, #tpu.memory_space<vmem>>, vector<1x1x4x256xf32>,
    } else {
    }
    return
  }
  func.func @transform_0(%arg0: i32, %arg1: i32, %arg2: i32) -> (i32, i32, i32, i32) {
    %0 = arith.addi %arg1, %arg2 : i32
    %c0_i32 = arith.constant 0 : i32
    %c0_i32_0 = arith.constant 0 : i32
    %c0_i32_1 = arith.constant 0 : i32
    return %arg0, %0, %c0_i32, %c0_i32_0 : i32, i32, i32, i32
  }
  func.func @transform_1(%arg0: i32, %arg1: i32, %arg2: i32) -> (i32, i32, i32, i32) {
    %c0_i32 = arith.constant 0 : i32
    %c0_i32_0 = arith.constant 0 : i32
    %c0_i32_1 = arith.constant 0 : i32
    %c0_i32_2 = arith.constant 0 : i32
    %c0_i32_3 = arith.constant 0 : i32
    return %c0_i32, %c0_i32_0, %c0_i32_1, %c0_i32_2 : i32, i32, i32, i32
  }
  func.func @transform_2(%arg0: i32, %arg1: i32, %arg2: i32) -> (i32, i32) {
    %c0_i32 = arith.constant 0 : i32
    %c0_i32_0 = arith.constant 0 : i32
    %c0_i32_1 = arith.constant 0 : i32
    return %c0_i32, %c0_i32_0 : i32, i32
  }
  func.func @transform_3(%arg0: i32, %arg1: i32, %arg2: i32) -> (i32, i32, i32, i32) {
    %c0_i32 = arith.constant 0 : i32
    %c0_i32_0 = arith.constant 0 : i32
    %c0_i32_1 = arith.constant 0 : i32
    return %arg0, %arg1, %c0_i32, %c0_i32_0 : i32, i32, i32, i32
  }
}

module attributes {stable_mosaic.version = 11 : i64} {
  func.func @kernel(%arg0: i32, %arg1: i32, %arg2: i32, %arg3: memref<1x1x4x128xbf16, #tpu.memory_space<vmem>>, %arg4: memref<1x1x128x256xbf16, #tpu.memory_space<vmem>>, %arg5: memref<1x256xf32, #tpu.memory_space<vmem>>, %arg6: memref<1x1x4x256xf32, #tpu.memory_space<vmem>>, %arg7: memref<4x256xf32, #tpu.memory_space<vmem>>) attributes {dimension_semantics = [#tpu.dimension_semantics<parallel>, #tpu.dimension_semantics<parallel>, #tpu.dimension_semantics<arbitrary>], iteration_bounds = array<i64: 2, 4, 1>, scalar_prefetch = 0 : i64, scratch_operands = 1 : i64, tpu.core_type = #tpu.core_type<tc>, window_params = [{transform_indices = @transform_0, window_bounds = array<i64: 1, 1, 4, 128>}, {pipeline_mode = #tpu.pipeline_mode<synchronous>, transform_indices = @transform_1, window_bounds = array<i64: 1, 1, 128, 256>}, {pipeline_mode = #tpu.pipeline_mode<synchronous>, transform_indices = @transform_2, window_bounds = array<i64: 1, 256>}, {transform_indices = @transform_3, window_bounds = array<i64: 1, 1, 4, 256>}]} {
    %c0_i32 = arith.constant 0 : i32
    %0 = arith.cmpi eq, %arg2, %c0_i32 : i32
    %1 = arith.extui %0 : i1 to i32
    %c0_i32_0 = arith.constant 0 : i32
    %2 = arith.cmpi ne, %1, %c0_i32_0 : i32
    scf.if %2 {
      %cst_13 = arith.constant 0.000000e+00 : f32
      %15 = vector.broadcast %cst_13 : f32 to vector<4x256xf32>
      %c0_14 = arith.constant 0 : index
      %c0_15 = arith.constant 0 : index
      %16 = vector.load %arg7[%c0_14, %c0_15] : memref<4x256xf32, #tpu.memory_space<vmem>>, vector<4x256xf32>
      tpu.vector_store %arg7[%c0_14, %c0_15], %15 {strides = array<i32>} : memref<4x256xf32, #tpu.memory_space<vmem>>, vector<4x256xf32>,
    } else {
    }
    %c0 = arith.constant 0 : index
    %c0_1 = arith.constant 0 : index
    %c0_2 = arith.constant 0 : index
    %c0_3 = arith.constant 0 : index
    %3 = vector.load %arg3[%c0, %c0_1, %c0_2, %c0_3] : memref<1x1x4x128xbf16, #tpu.memory_space<vmem>>, vector<1x1x4x128xbf16>
    %4 = vector.shape_cast %3 : vector<1x1x4x128xbf16> to vector<4x128xbf16>
    %5 = arith.index_cast %arg2 : i32 to index
    %c0_4 = arith.constant 0 : index
    %c0_5 = arith.constant 0 : index
    %c0_6 = arith.constant 0 : index
    %6 = vector.load %arg4[%5, %c0_4, %c0_5, %c0_6] : memref<1x1x128x256xbf16, #tpu.memory_space<vmem>>, vector<1x1x128x256xbf16>
    %7 = vector.shape_cast %6 : vector<1x1x128x256xbf16> to vector<128x256xbf16>
    %c0_7 = arith.constant 0 : index
    %c0_8 = arith.constant 0 : index
    %8 = vector.load %arg7[%c0_7, %c0_8] : memref<4x256xf32, #tpu.memory_space<vmem>>, vector<4x256xf32>
    %cst = arith.constant dense<0.000000e+00> : vector<4x256xf32>
    %9 = tpu.matmul %4, %7, %cst {dimension_numbers = #tpu.dot_dimension_numbers<[1], [0], [0], [1], [0, 0, 1, 1], [], []>} : vector<4x128xbf16>, vector<128x256xbf16>, vector<4x256xf32> -> vector<4x256xf32>
    %10 = arith.addf %8, %9 : vector<4x256xf32>
    %c0_9 = arith.constant 0 : index
    %c0_10 = arith.constant 0 : index
    %11 = vector.load %arg7[%c0_9, %c0_10] : memref<4x256xf32, #tpu.memory_space<vmem>>, vector<4x256xf32>
    tpu.vector_store %arg7[%c0_9, %c0_10], %10 {strides = array<i32>} : memref<4x256xf32, #tpu.memory_space<vmem>>, vector<4x256xf32>,
    %c0_i32_11 = arith.constant 0 : i32
    %12 = arith.cmpi eq, %arg2, %c0_i32_11 : i32
    %13 = arith.extui %12 : i1 to i32
    %c0_i32_12 = arith.constant 0 : i32
    %14 = arith.cmpi ne, %13, %c0_i32_12 : i32
    scf.if %14 {
      %c0_13 = arith.constant 0 : index
      %c0_14 = arith.constant 0 : index
      %15 = vector.load %arg7[%c0_13, %c0_14] : memref<4x256xf32, #tpu.memory_space<vmem>>, vector<4x256xf32>
      %c0_15 = arith.constant 0 : index
      %c0_16 = arith.constant 0 : index
      %16 = vector.load %arg5[%c0_15, %c0_16] : memref<1x256xf32, #tpu.memory_space<vmem>>, vector<1x256xf32>
      %17 = vector.broadcast %16 : vector<1x256xf32> to vector<4x256xf32>
      %18 = arith.addf %15, %17 : vector<4x256xf32>
      %c0_17 = arith.constant 0 : index
      %c0_18 = arith.constant 0 : index
      %c0_19 = arith.constant 0 : index
      %c0_20 = arith.constant 0 : index
      %19 = vector.load %arg6[%c0_17, %c0_18, %c0_19, %c0_20] : memref<1x1x4x256xf32, #tpu.memory_space<vmem>>, vector<1x1x4x256xf32>
      %20 = vector.shape_cast %19 : vector<1x1x4x256xf32> to vector<4x256xf32>
      %21 = vector.shape_cast %18 : vector<4x256xf32> to vector<1x1x4x256xf32>
      tpu.vector_store %arg6[%c0_17, %c0_18, %c0_19, %c0_20], %21 {strides = array<i32>} : memref<1x1x4x256xf32, #tpu.memory_space<vmem>>, vector<1x1x4x256xf32>,
    } else {
    }
    return
  }
  func.func @transform_0(%arg0: i32, %arg1: i32, %arg2: i32) -> (i32, i32, i32, i32) {
    %0 = arith.addi %arg1, %arg2 : i32
    %c0_i32 = arith.constant 0 : i32
    %c0_i32_0 = arith.constant 0 : i32
    %c0_i32_1 = arith.constant 0 : i32
    return %arg0, %0, %c0_i32, %c0_i32_0 : i32, i32, i32, i32
  }
  func.func @transform_1(%arg0: i32, %arg1: i32, %arg2: i32) -> (i32, i32, i32, i32) {
    %c0_i32 = arith.constant 0 : i32
    %c0_i32_0 = arith.constant 0 : i32
    %c0_i32_1 = arith.constant 0 : i32
    %c0_i32_2 = arith.constant 0 : i32
    %c0_i32_3 = arith.constant 0 : i32
    return %c0_i32, %c0_i32_0, %c0_i32_1, %c0_i32_2 : i32, i32, i32, i32
  }
  func.func @transform_2(%arg0: i32, %arg1: i32, %arg2: i32) -> (i32, i32) {
    %c0_i32 = arith.constant 0 : i32
    %c0_i32_0 = arith.constant 0 : i32
    %c0_i32_1 = arith.constant 0 : i32
    return %c0_i32, %c0_i32_0 : i32, i32
  }
  func.func @transform_3(%arg0: i32, %arg1: i32, %arg2: i32) -> (i32, i32, i32, i32) {
    %c0_i32 = arith.constant 0 : i32
    %c0_i32_0 = arith.constant 0 : i32
    %c0_i32_1 = arith.constant 0 : i32
    return %arg0, %arg1, %c0_i32, %c0_i32_0 : i32, i32, i32, i32
  }
}

module attributes {stable_mosaic.version = 11 : i64} {
  func.func @kernel(%arg0: i32, %arg1: i32, %arg2: memref<1x16x256xf32, #tpu.memory_space<vmem>>, %arg3: memref<1x1x256xf32, #tpu.memory_space<vmem>>, %arg4: memref<1x1x256xf32, #tpu.memory_space<vmem>>, %arg5: memref<1x16x256xbf16, #tpu.memory_space<vmem>>) attributes {dimension_semantics = [#tpu.dimension_semantics<parallel>, #tpu.dimension_semantics<parallel>], iteration_bounds = array<i64: 2, 1>, scalar_prefetch = 0 : i64, scratch_operands = 0 : i64, tpu.core_type = #tpu.core_type<tc>, window_params = [{transform_indices = @transform_0, window_bounds = array<i64: 1, 16, 256>}, {transform_indices = @transform_1, window_bounds = array<i64: 1, 1, 256>}, {transform_indices = @transform_2, window_bounds = array<i64: 1, 1, 256>}, {transform_indices = @transform_3, window_bounds = array<i64: 1, 16, 256>}]} {
    %c0 = arith.constant 0 : index
    %c0_0 = arith.constant 0 : index
    %c0_1 = arith.constant 0 : index
    %0 = vector.load %arg2[%c0, %c0_0, %c0_1] : memref<1x16x256xf32, #tpu.memory_space<vmem>>, vector<1x16x256xf32>
    %1 = vector.shape_cast %0 : vector<1x16x256xf32> to vector<16x256xf32>
    %c0_2 = arith.constant 0 : index
    %c0_3 = arith.constant 0 : index
    %c0_4 = arith.constant 0 : index
    %2 = vector.load %arg3[%c0_2, %c0_3, %c0_4] : memref<1x1x256xf32, #tpu.memory_space<vmem>>, vector<1x1x256xf32>
    %3 = vector.shape_cast %2 : vector<1x1x256xf32> to vector<1x256xf32>
    %cst = arith.constant 6.250000e-02 : f32
    %4 = vector.broadcast %cst : f32 to vector<1x256xf32>
    %5 = arith.mulf %3, %4 : vector<1x256xf32>
    %c0_5 = arith.constant 0 : index
    %c0_6 = arith.constant 0 : index
    %c0_7 = arith.constant 0 : index
    %6 = vector.load %arg4[%c0_5, %c0_6, %c0_7] : memref<1x1x256xf32, #tpu.memory_space<vmem>>, vector<1x1x256xf32>
    %7 = vector.shape_cast %6 : vector<1x1x256xf32> to vector<1x256xf32>
    %cst_8 = arith.constant 6.250000e-02 : f32
    %8 = vector.broadcast %cst_8 : f32 to vector<1x256xf32>
    %9 = arith.mulf %7, %8 : vector<1x256xf32>
    %10 = arith.mulf %5, %5 : vector<1x256xf32>
    %11 = arith.subf %9, %10 : vector<1x256xf32>
    %12 = vector.broadcast %5 : vector<1x256xf32> to vector<16x256xf32>
    %13 = arith.subf %1, %12 : vector<16x256xf32>
    %cst_9 = arith.constant 9.99999974E-6 : f32
    %14 = vector.broadcast %cst_9 : f32 to vector<1x256xf32>
    %15 = arith.addf %11, %14 : vector<1x256xf32>
    %16 = math.rsqrt %15 : vector<1x256xf32>
    %17 = vector.broadcast %16 : vector<1x256xf32> to vector<16x256xf32>
    %18 = arith.mulf %13, %17 : vector<16x256xf32>
    %cst_10 = arith.constant 0.000000e+00 : f32
    %19 = vector.broadcast %cst_10 : f32 to vector<16x256xf32>
    %20 = arith.maximumf %18, %19 : vector<16x256xf32>
    %21 = arith.truncf %20 : vector<16x256xf32> to vector<16x256xbf16>
    %c0_11 = arith.constant 0 : index
    %c0_12 = arith.constant 0 : index
    %c0_13 = arith.constant 0 : index
    %22 = vector.load %arg5[%c0_11, %c0_12, %c0_13] : memref<1x16x256xbf16, #tpu.memory_space<vmem>>, vector<1x16x256xbf16>
    %23 = vector.shape_cast %22 : vector<1x16x256xbf16> to vector<16x256xbf16>
    %24 = vector.shape_cast %21 : vector<16x256xbf16> to vector<1x16x256xbf16>
    tpu.vector_store %arg5[%c0_11, %c0_12, %c0_13], %24 {strides = array<i32>} : memref<1x16x256xbf16, #tpu.memory_space<vmem>>, vector<1x16x256xbf16>,
    return
  }
  func.func @transform_0(%arg0: i32, %arg1: i32) -> (i32, i32, i32) {
    %c0_i32 = arith.constant 0 : i32
    %c0_i32_0 = arith.constant 0 : i32
    return %arg0, %arg1, %c0_i32 : i32, i32, i32
  }
  func.func @transform_1(%arg0: i32, %arg1: i32) -> (i32, i32, i32) {
    %c0_i32 = arith.constant 0 : i32
    %c0_i32_0 = arith.constant 0 : i32
    %c0_i32_1 = arith.constant 0 : i32
    return %arg0, %c0_i32, %c0_i32_0 : i32, i32, i32
  }
  func.func @transform_2(%arg0: i32, %arg1: i32) -> (i32, i32, i32) {
    %c0_i32 = arith.constant 0 : i32
    %c0_i32_0 = arith.constant 0 : i32
    %c0_i32_1 = arith.constant 0 : i32
    return %arg0, %c0_i32, %c0_i32_0 : i32, i32, i32
  }
  func.func @transform_3(%arg0: i32, %arg1: i32) -> (i32, i32, i32) {
    %c0_i32 = arith.constant 0 : i32
    %c0_i32_0 = arith.constant 0 : i32
    return %arg0, %arg1, %c0_i32 : i32, i32, i32
  }
}

module attributes {stable_mosaic.version = 11 : i64} {
  func.func @_in_stats_kernel(%arg0: i32, %arg1: i32, %arg2: memref<1x16x256xf32, #tpu.memory_space<vmem>>, %arg3: memref<1x1x256xf32, #tpu.memory_space<vmem>>, %arg4: memref<1x1x256xf32, #tpu.memory_space<vmem>>) attributes {dimension_semantics = [#tpu.dimension_semantics<parallel>, #tpu.dimension_semantics<arbitrary>], iteration_bounds = array<i64: 2, 1>, scalar_prefetch = 0 : i64, scratch_operands = 0 : i64, tpu.core_type = #tpu.core_type<tc>, window_params = [{transform_indices = @transform_0, window_bounds = array<i64: 1, 16, 256>}, {transform_indices = @transform_1, window_bounds = array<i64: 1, 1, 256>}, {transform_indices = @transform_2, window_bounds = array<i64: 1, 1, 256>}]} {
    %c0_i32 = arith.constant 0 : i32
    %0 = arith.cmpi eq, %arg1, %c0_i32 : i32
    %1 = arith.extui %0 : i1 to i32
    %c0_i32_0 = arith.constant 0 : i32
    %2 = arith.cmpi ne, %1, %c0_i32_0 : i32
    scf.if %2 {
      %cst_16 = arith.constant 0.000000e+00 : f32
      %18 = vector.broadcast %cst_16 : f32 to vector<1x1x256xf32>
      %c0_17 = arith.constant 0 : index
      %c0_18 = arith.constant 0 : index
      %c0_19 = arith.constant 0 : index
      %19 = vector.load %arg3[%c0_17, %c0_18, %c0_19] : memref<1x1x256xf32, #tpu.memory_space<vmem>>, vector<1x1x256xf32>
      tpu.vector_store %arg3[%c0_17, %c0_18, %c0_19], %18 {strides = array<i32>} : memref<1x1x256xf32, #tpu.memory_space<vmem>>, vector<1x1x256xf32>,
      %cst_20 = arith.constant 0.000000e+00 : f32
      %20 = vector.broadcast %cst_20 : f32 to vector<1x1x256xf32>
      %c0_21 = arith.constant 0 : index
      %c0_22 = arith.constant 0 : index
      %c0_23 = arith.constant 0 : index
      %21 = vector.load %arg4[%c0_21, %c0_22, %c0_23] : memref<1x1x256xf32, #tpu.memory_space<vmem>>, vector<1x1x256xf32>
      tpu.vector_store %arg4[%c0_21, %c0_22, %c0_23], %20 {strides = array<i32>} : memref<1x1x256xf32, #tpu.memory_space<vmem>>, vector<1x1x256xf32>,
    } else {
    }
    %c0 = arith.constant 0 : index
    %c0_1 = arith.constant 0 : index
    %c0_2 = arith.constant 0 : index
    %3 = vector.load %arg2[%c0, %c0_1, %c0_2] : memref<1x16x256xf32, #tpu.memory_space<vmem>>, vector<1x16x256xf32>
    %4 = vector.shape_cast %3 : vector<1x16x256xf32> to vector<16x256xf32>
    %c0_3 = arith.constant 0 : index
    %c0_4 = arith.constant 0 : index
    %c0_5 = arith.constant 0 : index
    %5 = vector.load %arg3[%c0_3, %c0_4, %c0_5] : memref<1x1x256xf32, #tpu.memory_space<vmem>>, vector<1x1x256xf32>
    %cst = arith.constant dense<0.000000e+00> : vector<256xf32>
    %6 = vector.multi_reduction <add>, %4, %cst [0] : vector<16x256xf32> to vector<256xf32>
    %7 = vector.shape_cast %6 : vector<256xf32> to vector<1x256xf32>
    %8 = vector.shape_cast %7 : vector<1x256xf32> to vector<1x1x256xf32>
    %9 = arith.addf %5, %8 : vector<1x1x256xf32>
    %c0_6 = arith.constant 0 : index
    %c0_7 = arith.constant 0 : index
    %c0_8 = arith.constant 0 : index
    %10 = vector.load %arg3[%c0_6, %c0_7, %c0_8] : memref<1x1x256xf32, #tpu.memory_space<vmem>>, vector<1x1x256xf32>
    tpu.vector_store %arg3[%c0_6, %c0_7, %c0_8], %9 {strides = array<i32>} : memref<1x1x256xf32, #tpu.memory_space<vmem>>, vector<1x1x256xf32>,
    %c0_9 = arith.constant 0 : index
    %c0_10 = arith.constant 0 : index
    %c0_11 = arith.constant 0 : index
    %11 = vector.load %arg4[%c0_9, %c0_10, %c0_11] : memref<1x1x256xf32, #tpu.memory_space<vmem>>, vector<1x1x256xf32>
    %12 = arith.mulf %4, %4 : vector<16x256xf32>
    %cst_12 = arith.constant dense<0.000000e+00> : vector<256xf32>
    %13 = vector.multi_reduction <add>, %12, %cst_12 [0] : vector<16x256xf32> to vector<256xf32>
    %14 = vector.shape_cast %13 : vector<256xf32> to vector<1x256xf32>
    %15 = vector.shape_cast %14 : vector<1x256xf32> to vector<1x1x256xf32>
    %16 = arith.addf %11, %15 : vector<1x1x256xf32>
    %c0_13 = arith.constant 0 : index
    %c0_14 = arith.constant 0 : index
    %c0_15 = arith.constant 0 : index
    %17 = vector.load %arg4[%c0_13, %c0_14, %c0_15] : memref<1x1x256xf32, #tpu.memory_space<vmem>>, vector<1x1x256xf32>
    tpu.vector_store %arg4[%c0_13, %c0_14, %c0_15], %16 {strides = array<i32>} : memref<1x1x256xf32, #tpu.memory_space<vmem>>, vector<1x1x256xf32>,
    return
  }
  func.func @transform_0(%arg0: i32, %arg1: i32) -> (i32, i32, i32) {
    %c0_i32 = arith.constant 0 : i32
    %c0_i32_0 = arith.constant 0 : i32
    return %arg0, %arg1, %c0_i32 : i32, i32, i32
  }
  func.func @transform_1(%arg0: i32, %arg1: i32) -> (i32, i32, i32) {
    %c0_i32 = arith.constant 0 : i32
    %c0_i32_0 = arith.constant 0 : i32
    %c0_i32_1 = arith.constant 0 : i32
    return %arg0, %c0_i32, %c0_i32_0 : i32, i32, i32
  }
  func.func @transform_2(%arg0: i32, %arg1: i32) -> (i32, i32, i32) {
    %c0_i32 = arith.constant 0 : i32
    %c0_i32_0 = arith.constant 0 : i32
    %c0_i32_1 = arith.constant 0 : i32
    return %arg0, %c0_i32, %c0_i32_0 : i32, i32, i32
  }
}

module attributes {stable_mosaic.version = 11 : i64} {
  func.func @kernel(%arg0: i32, %arg1: i32, %arg2: i32, %arg3: memref<1x1x6x256xbf16, #tpu.memory_space<vmem>>, %arg4: memref<3x3x256x256xbf16, #tpu.memory_space<vmem>>, %arg5: memref<1x256xf32, #tpu.memory_space<vmem>>, %arg6: memref<1x1x4x256xf32, #tpu.memory_space<vmem>>, %arg7: memref<4x256xf32, #tpu.memory_space<vmem>>) attributes {dimension_semantics = [#tpu.dimension_semantics<parallel>, #tpu.dimension_semantics<parallel>, #tpu.dimension_semantics<arbitrary>], iteration_bounds = array<i64: 2, 4, 3>, scalar_prefetch = 0 : i64, scratch_operands = 1 : i64, tpu.core_type = #tpu.core_type<tc>, window_params = [{transform_indices = @transform_0, window_bounds = array<i64: 1, 1, 6, 256>}, {pipeline_mode = #tpu.pipeline_mode<synchronous>, transform_indices = @transform_1, window_bounds = array<i64: 3, 3, 256, 256>}, {pipeline_mode = #tpu.pipeline_mode<synchronous>, transform_indices = @transform_2, window_bounds = array<i64: 1, 256>}, {transform_indices = @transform_3, window_bounds = array<i64: 1, 1, 4, 256>}]} {
    %c0_i32 = arith.constant 0 : i32
    %0 = arith.cmpi eq, %arg2, %c0_i32 : i32
    %1 = arith.extui %0 : i1 to i32
    %c0_i32_0 = arith.constant 0 : i32
    %2 = arith.cmpi ne, %1, %c0_i32_0 : i32
    scf.if %2 {
      %cst_34 = arith.constant 0.000000e+00 : f32
      %33 = vector.broadcast %cst_34 : f32 to vector<4x256xf32>
      %c0_35 = arith.constant 0 : index
      %c0_36 = arith.constant 0 : index
      %34 = vector.load %arg7[%c0_35, %c0_36] : memref<4x256xf32, #tpu.memory_space<vmem>>, vector<4x256xf32>
      tpu.vector_store %arg7[%c0_35, %c0_36], %33 {strides = array<i32>} : memref<4x256xf32, #tpu.memory_space<vmem>>, vector<4x256xf32>,
    } else {
    }
    %c0 = arith.constant 0 : index
    %c0_1 = arith.constant 0 : index
    %c0_2 = arith.constant 0 : index
    %c0_3 = arith.constant 0 : index
    %3 = vector.load %arg3[%c0, %c0_1, %c0_2, %c0_3] : memref<1x1x6x256xbf16, #tpu.memory_space<vmem>>, vector<1x1x4x256xbf16>
    %4 = vector.shape_cast %3 : vector<1x1x4x256xbf16> to vector<4x256xbf16>
    %5 = arith.index_cast %arg2 : i32 to index
    %c0_4 = arith.constant 0 : index
    %c0_5 = arith.constant 0 : index
    %c0_6 = arith.constant 0 : index
    %6 = vector.load %arg4[%5, %c0_4, %c0_5, %c0_6] : memref<3x3x256x256xbf16, #tpu.memory_space<vmem>>, vector<1x1x256x256xbf16>
    %7 = vector.shape_cast %6 : vector<1x1x256x256xbf16> to vector<256x256xbf16>
    %c0_7 = arith.constant 0 : index
    %c0_8 = arith.constant 0 : index
    %8 = vector.load %arg7[%c0_7, %c0_8] : memref<4x256xf32, #tpu.memory_space<vmem>>, vector<4x256xf32>
    %cst = arith.constant dense<0.000000e+00> : vector<4x256xf32>
    %9 = tpu.matmul %4, %7, %cst {dimension_numbers = #tpu.dot_dimension_numbers<[1], [0], [0], [1], [0, 0, 1, 1], [], []>} : vector<4x256xbf16>, vector<256x256xbf16>, vector<4x256xf32> -> vector<4x256xf32>
    %10 = arith.addf %8, %9 : vector<4x256xf32>
    %c0_9 = arith.constant 0 : index
    %c0_10 = arith.constant 0 : index
    %11 = vector.load %arg7[%c0_9, %c0_10] : memref<4x256xf32, #tpu.memory_space<vmem>>, vector<4x256xf32>
    tpu.vector_store %arg7[%c0_9, %c0_10], %10 {strides = array<i32>} : memref<4x256xf32, #tpu.memory_space<vmem>>, vector<4x256xf32>,
    %c0_11 = arith.constant 0 : index
    %c0_12 = arith.constant 0 : index
    %c1 = arith.constant 1 : index
    %c0_13 = arith.constant 0 : index
    %12 = vector.load %arg3[%c0_11, %c0_12, %c1, %c0_13] : memref<1x1x6x256xbf16, #tpu.memory_space<vmem>>, vector<1x1x4x256xbf16>
    %13 = vector.shape_cast %12 : vector<1x1x4x256xbf16> to vector<4x256xbf16>
    %14 = arith.index_cast %arg2 : i32 to index
    %c1_14 = arith.constant 1 : index
    %c0_15 = arith.constant 0 : index
    %c0_16 = arith.constant 0 : index
    %15 = vector.load %arg4[%14, %c1_14, %c0_15, %c0_16] : memref<3x3x256x256xbf16, #tpu.memory_space<vmem>>, vector<1x1x256x256xbf16>
    %16 = vector.shape_cast %15 : vector<1x1x256x256xbf16> to vector<256x256xbf16>
    %c0_17 = arith.constant 0 : index
    %c0_18 = arith.constant 0 : index
    %17 = vector.load %arg7[%c0_17, %c0_18] : memref<4x256xf32, #tpu.memory_space<vmem>>, vector<4x256xf32>
    %cst_19 = arith.constant dense<0.000000e+00> : vector<4x256xf32>
    %18 = tpu.matmul %13, %16, %cst_19 {dimension_numbers = #tpu.dot_dimension_numbers<[1], [0], [0], [1], [0, 0, 1, 1], [], []>} : vector<4x256xbf16>, vector<256x256xbf16>, vector<4x256xf32> -> vector<4x256xf32>
    %19 = arith.addf %17, %18 : vector<4x256xf32>
    %c0_20 = arith.constant 0 : index
    %c0_21 = arith.constant 0 : index
    %20 = vector.load %arg7[%c0_20, %c0_21] : memref<4x256xf32, #tpu.memory_space<vmem>>, vector<4x256xf32>
    tpu.vector_store %arg7[%c0_20, %c0_21], %19 {strides = array<i32>} : memref<4x256xf32, #tpu.memory_space<vmem>>, vector<4x256xf32>,
    %c0_22 = arith.constant 0 : index
    %c0_23 = arith.constant 0 : index
    %c2 = arith.constant 2 : index
    %c0_24 = arith.constant 0 : index
    %21 = vector.load %arg3[%c0_22, %c0_23, %c2, %c0_24] : memref<1x1x6x256xbf16, #tpu.memory_space<vmem>>, vector<1x1x4x256xbf16>
    %22 = vector.shape_cast %21 : vector<1x1x4x256xbf16> to vector<4x256xbf16>
    %23 = arith.index_cast %arg2 : i32 to index
    %c2_25 = arith.constant 2 : index
    %c0_26 = arith.constant 0 : index
    %c0_27 = arith.constant 0 : index
    %24 = vector.load %arg4[%23, %c2_25, %c0_26, %c0_27] : memref<3x3x256x256xbf16, #tpu.memory_space<vmem>>, vector<1x1x256x256xbf16>
    %25 = vector.shape_cast %24 : vector<1x1x256x256xbf16> to vector<256x256xbf16>
    %c0_28 = arith.constant 0 : index
    %c0_29 = arith.constant 0 : index
    %26 = vector.load %arg7[%c0_28, %c0_29] : memref<4x256xf32, #tpu.memory_space<vmem>>, vector<4x256xf32>
    %cst_30 = arith.constant dense<0.000000e+00> : vector<4x256xf32>
    %27 = tpu.matmul %22, %25, %cst_30 {dimension_numbers = #tpu.dot_dimension_numbers<[1], [0], [0], [1], [0, 0, 1, 1], [], []>} : vector<4x256xbf16>, vector<256x256xbf16>, vector<4x256xf32> -> vector<4x256xf32>
    %28 = arith.addf %26, %27 : vector<4x256xf32>
    %c0_31 = arith.constant 0 : index
    %c0_32 = arith.constant 0 : index
    %29 = vector.load %arg7[%c0_31, %c0_32] : memref<4x256xf32, #tpu.memory_space<vmem>>, vector<4x256xf32>
    tpu.vector_store %arg7[%c0_31, %c0_32], %28 {strides = array<i32>} : memref<4x256xf32, #tpu.memory_space<vmem>>, vector<4x256xf32>,
    %c2_i32 = arith.constant 2 : i32
    %30 = arith.cmpi eq, %arg2, %c2_i32 : i32
    %31 = arith.extui %30 : i1 to i32
    %c0_i32_33 = arith.constant 0 : i32
    %32 = arith.cmpi ne, %31, %c0_i32_33 : i32
    scf.if %32 {
      %c0_34 = arith.constant 0 : index
      %c0_35 = arith.constant 0 : index
      %33 = vector.load %arg7[%c0_34, %c0_35] : memref<4x256xf32, #tpu.memory_space<vmem>>, vector<4x256xf32>
      %c0_36 = arith.constant 0 : index
      %c0_37 = arith.constant 0 : index
      %34 = vector.load %arg5[%c0_36, %c0_37] : memref<1x256xf32, #tpu.memory_space<vmem>>, vector<1x256xf32>
      %35 = vector.broadcast %34 : vector<1x256xf32> to vector<4x256xf32>
      %36 = arith.addf %33, %35 : vector<4x256xf32>
      %c0_38 = arith.constant 0 : index
      %c0_39 = arith.constant 0 : index
      %c0_40 = arith.constant 0 : index
      %c0_41 = arith.constant 0 : index
      %37 = vector.load %arg6[%c0_38, %c0_39, %c0_40, %c0_41] : memref<1x1x4x256xf32, #tpu.memory_space<vmem>>, vector<1x1x4x256xf32>
      %38 = vector.shape_cast %37 : vector<1x1x4x256xf32> to vector<4x256xf32>
      %39 = vector.shape_cast %36 : vector<4x256xf32> to vector<1x1x4x256xf32>
      tpu.vector_store %arg6[%c0_38, %c0_39, %c0_40, %c0_41], %39 {strides = array<i32>} : memref<1x1x4x256xf32, #tpu.memory_space<vmem>>, vector<1x1x4x256xf32>,
    } else {
    }
    return
  }
  func.func @transform_0(%arg0: i32, %arg1: i32, %arg2: i32) -> (i32, i32, i32, i32) {
    %0 = arith.addi %arg1, %arg2 : i32
    %c0_i32 = arith.constant 0 : i32
    %c0_i32_0 = arith.constant 0 : i32
    %c0_i32_1 = arith.constant 0 : i32
    return %arg0, %0, %c0_i32, %c0_i32_0 : i32, i32, i32, i32
  }
  func.func @transform_1(%arg0: i32, %arg1: i32, %arg2: i32) -> (i32, i32, i32, i32) {
    %c0_i32 = arith.constant 0 : i32
    %c0_i32_0 = arith.constant 0 : i32
    %c0_i32_1 = arith.constant 0 : i32
    %c0_i32_2 = arith.constant 0 : i32
    %c0_i32_3 = arith.constant 0 : i32
    return %c0_i32, %c0_i32_0, %c0_i32_1, %c0_i32_2 : i32, i32, i32, i32
  }
  func.func @transform_2(%arg0: i32, %arg1: i32, %arg2: i32) -> (i32, i32) {
    %c0_i32 = arith.constant 0 : i32
    %c0_i32_0 = arith.constant 0 : i32
    %c0_i32_1 = arith.constant 0 : i32
    return %c0_i32, %c0_i32_0 : i32, i32
  }
  func.func @transform_3(%arg0: i32, %arg1: i32, %arg2: i32) -> (i32, i32, i32, i32) {
    %c0_i32 = arith.constant 0 : i32
    %c0_i32_0 = arith.constant 0 : i32
    %c0_i32_1 = arith.constant 0 : i32
    return %arg0, %arg1, %c0_i32, %c0_i32_0 : i32, i32, i32, i32
  }
}

module attributes {stable_mosaic.version = 11 : i64} {
  func.func @kernel(%arg0: i32, %arg1: i32, %arg2: memref<1x16x256xf32, #tpu.memory_space<vmem>>, %arg3: memref<1x1x256xf32, #tpu.memory_space<vmem>>, %arg4: memref<1x1x256xf32, #tpu.memory_space<vmem>>, %arg5: memref<1x16x256xbf16, #tpu.memory_space<vmem>>, %arg6: memref<1x16x256xbf16, #tpu.memory_space<vmem>>) attributes {dimension_semantics = [#tpu.dimension_semantics<parallel>, #tpu.dimension_semantics<parallel>], iteration_bounds = array<i64: 2, 1>, scalar_prefetch = 0 : i64, scratch_operands = 0 : i64, tpu.core_type = #tpu.core_type<tc>, window_params = [{transform_indices = @transform_0, window_bounds = array<i64: 1, 16, 256>}, {transform_indices = @transform_1, window_bounds = array<i64: 1, 1, 256>}, {transform_indices = @transform_2, window_bounds = array<i64: 1, 1, 256>}, {transform_indices = @transform_3, window_bounds = array<i64: 1, 16, 256>}, {transform_indices = @transform_4, window_bounds = array<i64: 1, 16, 256>}]} {
    %c0 = arith.constant 0 : index
    %c0_0 = arith.constant 0 : index
    %c0_1 = arith.constant 0 : index
    %0 = vector.load %arg2[%c0, %c0_0, %c0_1] : memref<1x16x256xf32, #tpu.memory_space<vmem>>, vector<1x16x256xf32>
    %1 = vector.shape_cast %0 : vector<1x16x256xf32> to vector<16x256xf32>
    %c0_2 = arith.constant 0 : index
    %c0_3 = arith.constant 0 : index
    %c0_4 = arith.constant 0 : index
    %2 = vector.load %arg3[%c0_2, %c0_3, %c0_4] : memref<1x1x256xf32, #tpu.memory_space<vmem>>, vector<1x1x256xf32>
    %3 = vector.shape_cast %2 : vector<1x1x256xf32> to vector<1x256xf32>
    %cst = arith.constant 6.250000e-02 : f32
    %4 = vector.broadcast %cst : f32 to vector<1x256xf32>
    %5 = arith.mulf %3, %4 : vector<1x256xf32>
    %c0_5 = arith.constant 0 : index
    %c0_6 = arith.constant 0 : index
    %c0_7 = arith.constant 0 : index
    %6 = vector.load %arg4[%c0_5, %c0_6, %c0_7] : memref<1x1x256xf32, #tpu.memory_space<vmem>>, vector<1x1x256xf32>
    %7 = vector.shape_cast %6 : vector<1x1x256xf32> to vector<1x256xf32>
    %cst_8 = arith.constant 6.250000e-02 : f32
    %8 = vector.broadcast %cst_8 : f32 to vector<1x256xf32>
    %9 = arith.mulf %7, %8 : vector<1x256xf32>
    %10 = arith.mulf %5, %5 : vector<1x256xf32>
    %11 = arith.subf %9, %10 : vector<1x256xf32>
    %12 = vector.broadcast %5 : vector<1x256xf32> to vector<16x256xf32>
    %13 = arith.subf %1, %12 : vector<16x256xf32>
    %cst_9 = arith.constant 9.99999974E-6 : f32
    %14 = vector.broadcast %cst_9 : f32 to vector<1x256xf32>
    %15 = arith.addf %11, %14 : vector<1x256xf32>
    %16 = math.rsqrt %15 : vector<1x256xf32>
    %17 = vector.broadcast %16 : vector<1x256xf32> to vector<16x256xf32>
    %18 = arith.mulf %13, %17 : vector<16x256xf32>
    %c0_10 = arith.constant 0 : index
    %c0_11 = arith.constant 0 : index
    %c0_12 = arith.constant 0 : index
    %19 = vector.load %arg5[%c0_10, %c0_11, %c0_12] : memref<1x16x256xbf16, #tpu.memory_space<vmem>>, vector<1x16x256xbf16>
    %20 = vector.shape_cast %19 : vector<1x16x256xbf16> to vector<16x256xbf16>
    %21 = arith.extf %20 : vector<16x256xbf16> to vector<16x256xf32>
    %22 = arith.addf %18, %21 : vector<16x256xf32>
    %23 = arith.truncf %22 : vector<16x256xf32> to vector<16x256xbf16>
    %c0_13 = arith.constant 0 : index
    %c0_14 = arith.constant 0 : index
    %c0_15 = arith.constant 0 : index
    %24 = vector.load %arg6[%c0_13, %c0_14, %c0_15] : memref<1x16x256xbf16, #tpu.memory_space<vmem>>, vector<1x16x256xbf16>
    %25 = vector.shape_cast %24 : vector<1x16x256xbf16> to vector<16x256xbf16>
    %26 = vector.shape_cast %23 : vector<16x256xbf16> to vector<1x16x256xbf16>
    tpu.vector_store %arg6[%c0_13, %c0_14, %c0_15], %26 {strides = array<i32>} : memref<1x16x256xbf16, #tpu.memory_space<vmem>>, vector<1x16x256xbf16>,
    return
  }
  func.func @transform_0(%arg0: i32, %arg1: i32) -> (i32, i32, i32) {
    %c0_i32 = arith.constant 0 : i32
    %c0_i32_0 = arith.constant 0 : i32
    return %arg0, %arg1, %c0_i32 : i32, i32, i32
  }
  func.func @transform_1(%arg0: i32, %arg1: i32) -> (i32, i32, i32) {
    %c0_i32 = arith.constant 0 : i32
    %c0_i32_0 = arith.constant 0 : i32
    %c0_i32_1 = arith.constant 0 : i32
    return %arg0, %c0_i32, %c0_i32_0 : i32, i32, i32
  }
  func.func @transform_2(%arg0: i32, %arg1: i32) -> (i32, i32, i32) {
    %c0_i32 = arith.constant 0 : i32
    %c0_i32_0 = arith.constant 0 : i32
    %c0_i32_1 = arith.constant 0 : i32
    return %arg0, %c0_i32, %c0_i32_0 : i32, i32, i32
  }
  func.func @transform_3(%arg0: i32, %arg1: i32) -> (i32, i32, i32) {
    %c0_i32 = arith.constant 0 : i32
    %c0_i32_0 = arith.constant 0 : i32
    return %arg0, %arg1, %c0_i32 : i32, i32, i32
  }
  func.func @transform_4(%arg0: i32, %arg1: i32) -> (i32, i32, i32) {
    %c0_i32 = arith.constant 0 : i32
    %c0_i32_0 = arith.constant 0 : i32
    return %arg0, %arg1, %c0_i32 : i32, i32, i32
  }
}

module attributes {stable_mosaic.version = 11 : i64} {
  func.func @kernel(%arg0: i32, %arg1: i32, %arg2: i32, %arg3: memref<1x1x6x256xbf16, #tpu.memory_space<vmem>>, %arg4: memref<3x3x256x256xbf16, #tpu.memory_space<vmem>>, %arg5: memref<1x256xf32, #tpu.memory_space<vmem>>, %arg6: memref<1x1x4x256xf32, #tpu.memory_space<vmem>>, %arg7: memref<4x256xf32, #tpu.memory_space<vmem>>) attributes {dimension_semantics = [#tpu.dimension_semantics<parallel>, #tpu.dimension_semantics<parallel>, #tpu.dimension_semantics<arbitrary>], iteration_bounds = array<i64: 2, 4, 3>, scalar_prefetch = 0 : i64, scratch_operands = 1 : i64, tpu.core_type = #tpu.core_type<tc>, window_params = [{transform_indices = @transform_0, window_bounds = array<i64: 1, 1, 6, 256>}, {pipeline_mode = #tpu.pipeline_mode<synchronous>, transform_indices = @transform_1, window_bounds = array<i64: 3, 3, 256, 256>}, {pipeline_mode = #tpu.pipeline_mode<synchronous>, transform_indices = @transform_2, window_bounds = array<i64: 1, 256>}, {transform_indices = @transform_3, window_bounds = array<i64: 1, 1, 4, 256>}]} {
    %c0_i32 = arith.constant 0 : i32
    %0 = arith.cmpi eq, %arg2, %c0_i32 : i32
    %1 = arith.extui %0 : i1 to i32
    %c0_i32_0 = arith.constant 0 : i32
    %2 = arith.cmpi ne, %1, %c0_i32_0 : i32
    scf.if %2 {
      %cst_34 = arith.constant 0.000000e+00 : f32
      %33 = vector.broadcast %cst_34 : f32 to vector<4x256xf32>
      %c0_35 = arith.constant 0 : index
      %c0_36 = arith.constant 0 : index
      %34 = vector.load %arg7[%c0_35, %c0_36] : memref<4x256xf32, #tpu.memory_space<vmem>>, vector<4x256xf32>
      tpu.vector_store %arg7[%c0_35, %c0_36], %33 {strides = array<i32>} : memref<4x256xf32, #tpu.memory_space<vmem>>, vector<4x256xf32>,
    } else {
    }
    %c0 = arith.constant 0 : index
    %c0_1 = arith.constant 0 : index
    %c0_2 = arith.constant 0 : index
    %c0_3 = arith.constant 0 : index
    %3 = vector.load %arg3[%c0, %c0_1, %c0_2, %c0_3] : memref<1x1x6x256xbf16, #tpu.memory_space<vmem>>, vector<1x1x4x256xbf16>
    %4 = vector.shape_cast %3 : vector<1x1x4x256xbf16> to vector<4x256xbf16>
    %5 = arith.index_cast %arg2 : i32 to index
    %c0_4 = arith.constant 0 : index
    %c0_5 = arith.constant 0 : index
    %c0_6 = arith.constant 0 : index
    %6 = vector.load %arg4[%5, %c0_4, %c0_5, %c0_6] : memref<3x3x256x256xbf16, #tpu.memory_space<vmem>>, vector<1x1x256x256xbf16>
    %7 = vector.shape_cast %6 : vector<1x1x256x256xbf16> to vector<256x256xbf16>
    %c0_7 = arith.constant 0 : index
    %c0_8 = arith.constant 0 : index
    %8 = vector.load %arg7[%c0_7, %c0_8] : memref<4x256xf32, #tpu.memory_space<vmem>>, vector<4x256xf32>
    %cst = arith.constant dense<0.000000e+00> : vector<4x256xf32>
    %9 = tpu.matmul %4, %7, %cst {dimension_numbers = #tpu.dot_dimension_numbers<[1], [0], [0], [1], [0, 0, 1, 1], [], []>} : vector<4x256xbf16>, vector<256x256xbf16>, vector<4x256xf32> -> vector<4x256xf32>
    %10 = arith.addf %8, %9 : vector<4x256xf32>
    %c0_9 = arith.constant 0 : index
    %c0_10 = arith.constant 0 : index
    %11 = vector.load %arg7[%c0_9, %c0_10] : memref<4x256xf32, #tpu.memory_space<vmem>>, vector<4x256xf32>
    tpu.vector_store %arg7[%c0_9, %c0_10], %10 {strides = array<i32>} : memref<4x256xf32, #tpu.memory_space<vmem>>, vector<4x256xf32>,
    %c0_11 = arith.constant 0 : index
    %c0_12 = arith.constant 0 : index
    %c1 = arith.constant 1 : index
    %c0_13 = arith.constant 0 : index
    %12 = vector.load %arg3[%c0_11, %c0_12, %c1, %c0_13] : memref<1x1x6x256xbf16, #tpu.memory_space<vmem>>, vector<1x1x4x256xbf16>
    %13 = vector.shape_cast %12 : vector<1x1x4x256xbf16> to vector<4x256xbf16>
    %14 = arith.index_cast %arg2 : i32 to index
    %c1_14 = arith.constant 1 : index
    %c0_15 = arith.constant 0 : index
    %c0_16 = arith.constant 0 : index
    %15 = vector.load %arg4[%14, %c1_14, %c0_15, %c0_16] : memref<3x3x256x256xbf16, #tpu.memory_space<vmem>>, vector<1x1x256x256xbf16>
    %16 = vector.shape_cast %15 : vector<1x1x256x256xbf16> to vector<256x256xbf16>
    %c0_17 = arith.constant 0 : index
    %c0_18 = arith.constant 0 : index
    %17 = vector.load %arg7[%c0_17, %c0_18] : memref<4x256xf32, #tpu.memory_space<vmem>>, vector<4x256xf32>
    %cst_19 = arith.constant dense<0.000000e+00> : vector<4x256xf32>
    %18 = tpu.matmul %13, %16, %cst_19 {dimension_numbers = #tpu.dot_dimension_numbers<[1], [0], [0], [1], [0, 0, 1, 1], [], []>} : vector<4x256xbf16>, vector<256x256xbf16>, vector<4x256xf32> -> vector<4x256xf32>
    %19 = arith.addf %17, %18 : vector<4x256xf32>
    %c0_20 = arith.constant 0 : index
    %c0_21 = arith.constant 0 : index
    %20 = vector.load %arg7[%c0_20, %c0_21] : memref<4x256xf32, #tpu.memory_space<vmem>>, vector<4x256xf32>
    tpu.vector_store %arg7[%c0_20, %c0_21], %19 {strides = array<i32>} : memref<4x256xf32, #tpu.memory_space<vmem>>, vector<4x256xf32>,
    %c0_22 = arith.constant 0 : index
    %c0_23 = arith.constant 0 : index
    %c2 = arith.constant 2 : index
    %c0_24 = arith.constant 0 : index
    %21 = vector.load %arg3[%c0_22, %c0_23, %c2, %c0_24] : memref<1x1x6x256xbf16, #tpu.memory_space<vmem>>, vector<1x1x4x256xbf16>
    %22 = vector.shape_cast %21 : vector<1x1x4x256xbf16> to vector<4x256xbf16>
    %23 = arith.index_cast %arg2 : i32 to index
    %c2_25 = arith.constant 2 : index
    %c0_26 = arith.constant 0 : index
    %c0_27 = arith.constant 0 : index
    %24 = vector.load %arg4[%23, %c2_25, %c0_26, %c0_27] : memref<3x3x256x256xbf16, #tpu.memory_space<vmem>>, vector<1x1x256x256xbf16>
    %25 = vector.shape_cast %24 : vector<1x1x256x256xbf16> to vector<256x256xbf16>
    %c0_28 = arith.constant 0 : index
    %c0_29 = arith.constant 0 : index
    %26 = vector.load %arg7[%c0_28, %c0_29] : memref<4x256xf32, #tpu.memory_space<vmem>>, vector<4x256xf32>
    %cst_30 = arith.constant dense<0.000000e+00> : vector<4x256xf32>
    %27 = tpu.matmul %22, %25, %cst_30 {dimension_numbers = #tpu.dot_dimension_numbers<[1], [0], [0], [1], [0, 0, 1, 1], [], []>} : vector<4x256xbf16>, vector<256x256xbf16>, vector<4x256xf32> -> vector<4x256xf32>
    %28 = arith.addf %26, %27 : vector<4x256xf32>
    %c0_31 = arith.constant 0 : index
    %c0_32 = arith.constant 0 : index
    %29 = vector.load %arg7[%c0_31, %c0_32] : memref<4x256xf32, #tpu.memory_space<vmem>>, vector<4x256xf32>
    tpu.vector_store %arg7[%c0_31, %c0_32], %28 {strides = array<i32>} : memref<4x256xf32, #tpu.memory_space<vmem>>, vector<4x256xf32>,
    %c2_i32 = arith.constant 2 : i32
    %30 = arith.cmpi eq, %arg2, %c2_i32 : i32
    %31 = arith.extui %30 : i1 to i32
    %c0_i32_33 = arith.constant 0 : i32
    %32 = arith.cmpi ne, %31, %c0_i32_33 : i32
    scf.if %32 {
      %c0_34 = arith.constant 0 : index
      %c0_35 = arith.constant 0 : index
      %33 = vector.load %arg7[%c0_34, %c0_35] : memref<4x256xf32, #tpu.memory_space<vmem>>, vector<4x256xf32>
      %c0_36 = arith.constant 0 : index
      %c0_37 = arith.constant 0 : index
      %34 = vector.load %arg5[%c0_36, %c0_37] : memref<1x256xf32, #tpu.memory_space<vmem>>, vector<1x256xf32>
      %35 = vector.broadcast %34 : vector<1x256xf32> to vector<4x256xf32>
      %36 = arith.addf %33, %35 : vector<4x256xf32>
      %c0_38 = arith.constant 0 : index
      %c0_39 = arith.constant 0 : index
      %c0_40 = arith.constant 0 : index
      %c0_41 = arith.constant 0 : index
      %37 = vector.load %arg6[%c0_38, %c0_39, %c0_40, %c0_41] : memref<1x1x4x256xf32, #tpu.memory_space<vmem>>, vector<1x1x4x256xf32>
      %38 = vector.shape_cast %37 : vector<1x1x4x256xf32> to vector<4x256xf32>
      %39 = vector.shape_cast %36 : vector<4x256xf32> to vector<1x1x4x256xf32>
      tpu.vector_store %arg6[%c0_38, %c0_39, %c0_40, %c0_41], %39 {strides = array<i32>} : memref<1x1x4x256xf32, #tpu.memory_space<vmem>>, vector<1x1x4x256xf32>,
    } else {
    }
    return
  }
  func.func @transform_0(%arg0: i32, %arg1: i32, %arg2: i32) -> (i32, i32, i32, i32) {
    %0 = arith.addi %arg1, %arg2 : i32
    %c0_i32 = arith.constant 0 : i32
    %c0_i32_0 = arith.constant 0 : i32
    %c0_i32_1 = arith.constant 0 : i32
    return %arg0, %0, %c0_i32, %c0_i32_0 : i32, i32, i32, i32
  }
  func.func @transform_1(%arg0: i32, %arg1: i32, %arg2: i32) -> (i32, i32, i32, i32) {
    %c0_i32 = arith.constant 0 : i32
    %c0_i32_0 = arith.constant 0 : i32
    %c0_i32_1 = arith.constant 0 : i32
    %c0_i32_2 = arith.constant 0 : i32
    %c0_i32_3 = arith.constant 0 : i32
    return %c0_i32, %c0_i32_0, %c0_i32_1, %c0_i32_2 : i32, i32, i32, i32
  }
  func.func @transform_2(%arg0: i32, %arg1: i32, %arg2: i32) -> (i32, i32) {
    %c0_i32 = arith.constant 0 : i32
    %c0_i32_0 = arith.constant 0 : i32
    %c0_i32_1 = arith.constant 0 : i32
    return %c0_i32, %c0_i32_0 : i32, i32
  }
  func.func @transform_3(%arg0: i32, %arg1: i32, %arg2: i32) -> (i32, i32, i32, i32) {
    %c0_i32 = arith.constant 0 : i32
    %c0_i32_0 = arith.constant 0 : i32
    %c0_i32_1 = arith.constant 0 : i32
    return %arg0, %arg1, %c0_i32, %c0_i32_0 : i32, i32, i32, i32
  }
}

module attributes {stable_mosaic.version = 11 : i64} {
  func.func @kernel(%arg0: i32, %arg1: i32, %arg2: i32, %arg3: memref<1x1x4x256xbf16, #tpu.memory_space<vmem>>, %arg4: memref<1x1x256x128xbf16, #tpu.memory_space<vmem>>, %arg5: memref<1x128xf32, #tpu.memory_space<vmem>>, %arg6: memref<1x1x4x128xf32, #tpu.memory_space<vmem>>, %arg7: memref<4x128xf32, #tpu.memory_space<vmem>>) attributes {dimension_semantics = [#tpu.dimension_semantics<parallel>, #tpu.dimension_semantics<parallel>, #tpu.dimension_semantics<arbitrary>], iteration_bounds = array<i64: 2, 4, 1>, scalar_prefetch = 0 : i64, scratch_operands = 1 : i64, tpu.core_type = #tpu.core_type<tc>, window_params = [{transform_indices = @transform_0, window_bounds = array<i64: 1, 1, 4, 256>}, {pipeline_mode = #tpu.pipeline_mode<synchronous>, transform_indices = @transform_1, window_bounds = array<i64: 1, 1, 256, 128>}, {pipeline_mode = #tpu.pipeline_mode<synchronous>, transform_indices = @transform_2, window_bounds = array<i64: 1, 128>}, {transform_indices = @transform_3, window_bounds = array<i64: 1, 1, 4, 128>}]} {
    %c0_i32 = arith.constant 0 : i32
    %0 = arith.cmpi eq, %arg2, %c0_i32 : i32
    %1 = arith.extui %0 : i1 to i32
    %c0_i32_0 = arith.constant 0 : i32
    %2 = arith.cmpi ne, %1, %c0_i32_0 : i32
    scf.if %2 {
      %cst_13 = arith.constant 0.000000e+00 : f32
      %15 = vector.broadcast %cst_13 : f32 to vector<4x128xf32>
      %c0_14 = arith.constant 0 : index
      %c0_15 = arith.constant 0 : index
      %16 = vector.load %arg7[%c0_14, %c0_15] : memref<4x128xf32, #tpu.memory_space<vmem>>, vector<4x128xf32>
      tpu.vector_store %arg7[%c0_14, %c0_15], %15 {strides = array<i32>} : memref<4x128xf32, #tpu.memory_space<vmem>>, vector<4x128xf32>,
    } else {
    }
    %c0 = arith.constant 0 : index
    %c0_1 = arith.constant 0 : index
    %c0_2 = arith.constant 0 : index
    %c0_3 = arith.constant 0 : index
    %3 = vector.load %arg3[%c0, %c0_1, %c0_2, %c0_3] : memref<1x1x4x256xbf16, #tpu.memory_space<vmem>>, vector<1x1x4x256xbf16>
    %4 = vector.shape_cast %3 : vector<1x1x4x256xbf16> to vector<4x256xbf16>
    %5 = arith.index_cast %arg2 : i32 to index
    %c0_4 = arith.constant 0 : index
    %c0_5 = arith.constant 0 : index
    %c0_6 = arith.constant 0 : index
    %6 = vector.load %arg4[%5, %c0_4, %c0_5, %c0_6] : memref<1x1x256x128xbf16, #tpu.memory_space<vmem>>, vector<1x1x256x128xbf16>
    %7 = vector.shape_cast %6 : vector<1x1x256x128xbf16> to vector<256x128xbf16>
    %c0_7 = arith.constant 0 : index
    %c0_8 = arith.constant 0 : index
    %8 = vector.load %arg7[%c0_7, %c0_8] : memref<4x128xf32, #tpu.memory_space<vmem>>, vector<4x128xf32>
    %cst = arith.constant dense<0.000000e+00> : vector<4x128xf32>
    %9 = tpu.matmul %4, %7, %cst {dimension_numbers = #tpu.dot_dimension_numbers<[1], [0], [0], [1], [0, 0, 1, 1], [], []>} : vector<4x256xbf16>, vector<256x128xbf16>, vector<4x128xf32> -> vector<4x128xf32>
    %10 = arith.addf %8, %9 : vector<4x128xf32>
    %c0_9 = arith.constant 0 : index
    %c0_10 = arith.constant 0 : index
    %11 = vector.load %arg7[%c0_9, %c0_10] : memref<4x128xf32, #tpu.memory_space<vmem>>, vector<4x128xf32>
    tpu.vector_store %arg7[%c0_9, %c0_10], %10 {strides = array<i32>} : memref<4x128xf32, #tpu.memory_space<vmem>>, vector<4x128xf32>,
    %c0_i32_11 = arith.constant 0 : i32
    %12 = arith.cmpi eq, %arg2, %c0_i32_11 : i32
    %13 = arith.extui %12 : i1 to i32
    %c0_i32_12 = arith.constant 0 : i32
    %14 = arith.cmpi ne, %13, %c0_i32_12 : i32
    scf.if %14 {
      %c0_13 = arith.constant 0 : index
      %c0_14 = arith.constant 0 : index
      %15 = vector.load %arg7[%c0_13, %c0_14] : memref<4x128xf32, #tpu.memory_space<vmem>>, vector<4x128xf32>
      %c0_15 = arith.constant 0 : index
      %c0_16 = arith.constant 0 : index
      %16 = vector.load %arg5[%c0_15, %c0_16] : memref<1x128xf32, #tpu.memory_space<vmem>>, vector<1x128xf32>
      %17 = vector.broadcast %16 : vector<1x128xf32> to vector<4x128xf32>
      %18 = arith.addf %15, %17 : vector<4x128xf32>
      %c0_17 = arith.constant 0 : index
      %c0_18 = arith.constant 0 : index
      %c0_19 = arith.constant 0 : index
      %c0_20 = arith.constant 0 : index
      %19 = vector.load %arg6[%c0_17, %c0_18, %c0_19, %c0_20] : memref<1x1x4x128xf32, #tpu.memory_space<vmem>>, vector<1x1x4x128xf32>
      %20 = vector.shape_cast %19 : vector<1x1x4x128xf32> to vector<4x128xf32>
      %21 = vector.shape_cast %18 : vector<4x128xf32> to vector<1x1x4x128xf32>
      tpu.vector_store %arg6[%c0_17, %c0_18, %c0_19, %c0_20], %21 {strides = array<i32>} : memref<1x1x4x128xf32, #tpu.memory_space<vmem>>, vector<1x1x4x128xf32>,
    } else {
    }
    return
  }
  func.func @transform_0(%arg0: i32, %arg1: i32, %arg2: i32) -> (i32, i32, i32, i32) {
    %0 = arith.addi %arg1, %arg2 : i32
    %c0_i32 = arith.constant 0 : i32
    %c0_i32_0 = arith.constant 0 : i32
    %c0_i32_1 = arith.constant 0 : i32
    return %arg0, %0, %c0_i32, %c0_i32_0 : i32, i32, i32, i32
  }
  func.func @transform_1(%arg0: i32, %arg1: i32, %arg2: i32) -> (i32, i32, i32, i32) {
    %c0_i32 = arith.constant 0 : i32
    %c0_i32_0 = arith.constant 0 : i32
    %c0_i32_1 = arith.constant 0 : i32
    %c0_i32_2 = arith.constant 0 : i32
    %c0_i32_3 = arith.constant 0 : i32
    return %c0_i32, %c0_i32_0, %c0_i32_1, %c0_i32_2 : i32, i32, i32, i32
  }
  func.func @transform_2(%arg0: i32, %arg1: i32, %arg2: i32) -> (i32, i32) {
    %c0_i32 = arith.constant 0 : i32
    %c0_i32_0 = arith.constant 0 : i32
    %c0_i32_1 = arith.constant 0 : i32
    return %c0_i32, %c0_i32_0 : i32, i32
  }
  func.func @transform_3(%arg0: i32, %arg1: i32, %arg2: i32) -> (i32, i32, i32, i32) {
    %c0_i32 = arith.constant 0 : i32
    %c0_i32_0 = arith.constant 0 : i32
    %c0_i32_1 = arith.constant 0 : i32
    return %arg0, %arg1, %c0_i32, %c0_i32_0 : i32, i32, i32, i32
  }
}

module attributes {stable_mosaic.version = 11 : i64} {
  func.func @kernel(%arg0: i32, %arg1: i32, %arg2: i32, %arg3: memref<1x1x5x256xbf16, #tpu.memory_space<vmem>>, %arg4: memref<1x2x256x128xbf16, #tpu.memory_space<vmem>>, %arg5: memref<1x128xf32, #tpu.memory_space<vmem>>, %arg6: memref<1x1x4x128xf32, #tpu.memory_space<vmem>>, %arg7: memref<4x128xf32, #tpu.memory_space<vmem>>) attributes {dimension_semantics = [#tpu.dimension_semantics<parallel>, #tpu.dimension_semantics<parallel>, #tpu.dimension_semantics<arbitrary>], iteration_bounds = array<i64: 2, 4, 1>, scalar_prefetch = 0 : i64, scratch_operands = 1 : i64, tpu.core_type = #tpu.core_type<tc>, window_params = [{transform_indices = @transform_0, window_bounds = array<i64: 1, 1, 5, 256>}, {pipeline_mode = #tpu.pipeline_mode<synchronous>, transform_indices = @transform_1, window_bounds = array<i64: 1, 2, 256, 128>}, {pipeline_mode = #tpu.pipeline_mode<synchronous>, transform_indices = @transform_2, window_bounds = array<i64: 1, 128>}, {transform_indices = @transform_3, window_bounds = array<i64: 1, 1, 4, 128>}]} {
    %c0_i32 = arith.constant 0 : i32
    %0 = arith.cmpi eq, %arg2, %c0_i32 : i32
    %1 = arith.extui %0 : i1 to i32
    %c0_i32_0 = arith.constant 0 : i32
    %2 = arith.cmpi ne, %1, %c0_i32_0 : i32
    scf.if %2 {
      %cst_24 = arith.constant 0.000000e+00 : f32
      %24 = vector.broadcast %cst_24 : f32 to vector<4x128xf32>
      %c0_25 = arith.constant 0 : index
      %c0_26 = arith.constant 0 : index
      %25 = vector.load %arg7[%c0_25, %c0_26] : memref<4x128xf32, #tpu.memory_space<vmem>>, vector<4x128xf32>
      tpu.vector_store %arg7[%c0_25, %c0_26], %24 {strides = array<i32>} : memref<4x128xf32, #tpu.memory_space<vmem>>, vector<4x128xf32>,
    } else {
    }
    %c0 = arith.constant 0 : index
    %c0_1 = arith.constant 0 : index
    %c0_2 = arith.constant 0 : index
    %c0_3 = arith.constant 0 : index
    %3 = vector.load %arg3[%c0, %c0_1, %c0_2, %c0_3] : memref<1x1x5x256xbf16, #tpu.memory_space<vmem>>, vector<1x1x4x256xbf16>
    %4 = vector.shape_cast %3 : vector<1x1x4x256xbf16> to vector<4x256xbf16>
    %5 = arith.index_cast %arg2 : i32 to index
    %c0_4 = arith.constant 0 : index
    %c0_5 = arith.constant 0 : index
    %c0_6 = arith.constant 0 : index
    %6 = vector.load %arg4[%5, %c0_4, %c0_5, %c0_6] : memref<1x2x256x128xbf16, #tpu.memory_space<vmem>>, vector<1x1x256x128xbf16>
    %7 = vector.shape_cast %6 : vector<1x1x256x128xbf16> to vector<256x128xbf16>
    %c0_7 = arith.constant 0 : index
    %c0_8 = arith.constant 0 : index
    %8 = vector.load %arg7[%c0_7, %c0_8] : memref<4x128xf32, #tpu.memory_space<vmem>>, vector<4x128xf32>
    %cst = arith.constant dense<0.000000e+00> : vector<4x128xf32>
    %9 = tpu.matmul %4, %7, %cst {dimension_numbers = #tpu.dot_dimension_numbers<[1], [0], [0], [1], [0, 0, 1, 1], [], []>} : vector<4x256xbf16>, vector<256x128xbf16>, vector<4x128xf32> -> vector<4x128xf32>
    %10 = arith.addf %8, %9 : vector<4x128xf32>
    %c0_9 = arith.constant 0 : index
    %c0_10 = arith.constant 0 : index
    %11 = vector.load %arg7[%c0_9, %c0_10] : memref<4x128xf32, #tpu.memory_space<vmem>>, vector<4x128xf32>
    tpu.vector_store %arg7[%c0_9, %c0_10], %10 {strides = array<i32>} : memref<4x128xf32, #tpu.memory_space<vmem>>, vector<4x128xf32>,
    %c0_11 = arith.constant 0 : index
    %c0_12 = arith.constant 0 : index
    %c1 = arith.constant 1 : index
    %c0_13 = arith.constant 0 : index
    %12 = vector.load %arg3[%c0_11, %c0_12, %c1, %c0_13] : memref<1x1x5x256xbf16, #tpu.memory_space<vmem>>, vector<1x1x4x256xbf16>
    %13 = vector.shape_cast %12 : vector<1x1x4x256xbf16> to vector<4x256xbf16>
    %14 = arith.index_cast %arg2 : i32 to index
    %c1_14 = arith.constant 1 : index
    %c0_15 = arith.constant 0 : index
    %c0_16 = arith.constant 0 : index
    %15 = vector.load %arg4[%14, %c1_14, %c0_15, %c0_16] : memref<1x2x256x128xbf16, #tpu.memory_space<vmem>>, vector<1x1x256x128xbf16>
    %16 = vector.shape_cast %15 : vector<1x1x256x128xbf16> to vector<256x128xbf16>
    %c0_17 = arith.constant 0 : index
    %c0_18 = arith.constant 0 : index
    %17 = vector.load %arg7[%c0_17, %c0_18] : memref<4x128xf32, #tpu.memory_space<vmem>>, vector<4x128xf32>
    %cst_19 = arith.constant dense<0.000000e+00> : vector<4x128xf32>
    %18 = tpu.matmul %13, %16, %cst_19 {dimension_numbers = #tpu.dot_dimension_numbers<[1], [0], [0], [1], [0, 0, 1, 1], [], []>} : vector<4x256xbf16>, vector<256x128xbf16>, vector<4x128xf32> -> vector<4x128xf32>
    %19 = arith.addf %17, %18 : vector<4x128xf32>
    %c0_20 = arith.constant 0 : index
    %c0_21 = arith.constant 0 : index
    %20 = vector.load %arg7[%c0_20, %c0_21] : memref<4x128xf32, #tpu.memory_space<vmem>>, vector<4x128xf32>
    tpu.vector_store %arg7[%c0_20, %c0_21], %19 {strides = array<i32>} : memref<4x128xf32, #tpu.memory_space<vmem>>, vector<4x128xf32>,
    %c0_i32_22 = arith.constant 0 : i32
    %21 = arith.cmpi eq, %arg2, %c0_i32_22 : i32
    %22 = arith.extui %21 : i1 to i32
    %c0_i32_23 = arith.constant 0 : i32
    %23 = arith.cmpi ne, %22, %c0_i32_23 : i32
    scf.if %23 {
      %c0_24 = arith.constant 0 : index
      %c0_25 = arith.constant 0 : index
      %24 = vector.load %arg7[%c0_24, %c0_25] : memref<4x128xf32, #tpu.memory_space<vmem>>, vector<4x128xf32>
      %c0_26 = arith.constant 0 : index
      %c0_27 = arith.constant 0 : index
      %25 = vector.load %arg5[%c0_26, %c0_27] : memref<1x128xf32, #tpu.memory_space<vmem>>, vector<1x128xf32>
      %26 = vector.broadcast %25 : vector<1x128xf32> to vector<4x128xf32>
      %27 = arith.addf %24, %26 : vector<4x128xf32>
      %c0_28 = arith.constant 0 : index
      %c0_29 = arith.constant 0 : index
      %c0_30 = arith.constant 0 : index
      %c0_31 = arith.constant 0 : index
      %28 = vector.load %arg6[%c0_28, %c0_29, %c0_30, %c0_31] : memref<1x1x4x128xf32, #tpu.memory_space<vmem>>, vector<1x1x4x128xf32>
      %29 = vector.shape_cast %28 : vector<1x1x4x128xf32> to vector<4x128xf32>
      %30 = vector.shape_cast %27 : vector<4x128xf32> to vector<1x1x4x128xf32>
      tpu.vector_store %arg6[%c0_28, %c0_29, %c0_30, %c0_31], %30 {strides = array<i32>} : memref<1x1x4x128xf32, #tpu.memory_space<vmem>>, vector<1x1x4x128xf32>,
    } else {
    }
    return
  }
  func.func @transform_0(%arg0: i32, %arg1: i32, %arg2: i32) -> (i32, i32, i32, i32) {
    %0 = arith.addi %arg1, %arg2 : i32
    %c0_i32 = arith.constant 0 : i32
    %c0_i32_0 = arith.constant 0 : i32
    %c0_i32_1 = arith.constant 0 : i32
    return %arg0, %0, %c0_i32, %c0_i32_0 : i32, i32, i32, i32
  }
  func.func @transform_1(%arg0: i32, %arg1: i32, %arg2: i32) -> (i32, i32, i32, i32) {
    %c0_i32 = arith.constant 0 : i32
    %c0_i32_0 = arith.constant 0 : i32
    %c0_i32_1 = arith.constant 0 : i32
    %c0_i32_2 = arith.constant 0 : i32
    %c0_i32_3 = arith.constant 0 : i32
    return %c0_i32, %c0_i32_0, %c0_i32_1, %c0_i32_2 : i32, i32, i32, i32
  }
  func.func @transform_2(%arg0: i32, %arg1: i32, %arg2: i32) -> (i32, i32) {
    %c0_i32 = arith.constant 0 : i32
    %c0_i32_0 = arith.constant 0 : i32
    %c0_i32_1 = arith.constant 0 : i32
    return %c0_i32, %c0_i32_0 : i32, i32
  }
  func.func @transform_3(%arg0: i32, %arg1: i32, %arg2: i32) -> (i32, i32, i32, i32) {
    %c0_i32 = arith.constant 0 : i32
    %c0_i32_0 = arith.constant 0 : i32
    %c0_i32_1 = arith.constant 0 : i32
    return %arg0, %arg1, %c0_i32, %c0_i32_0 : i32, i32, i32, i32
  }
}

module attributes {stable_mosaic.version = 11 : i64} {
  func.func @kernel(%arg0: i32, %arg1: i32, %arg2: i32, %arg3: memref<1x1x4x256xbf16, #tpu.memory_space<vmem>>, %arg4: memref<2x1x256x128xbf16, #tpu.memory_space<vmem>>, %arg5: memref<1x128xf32, #tpu.memory_space<vmem>>, %arg6: memref<1x1x4x128xf32, #tpu.memory_space<vmem>>, %arg7: memref<4x128xf32, #tpu.memory_space<vmem>>) attributes {dimension_semantics = [#tpu.dimension_semantics<parallel>, #tpu.dimension_semantics<parallel>, #tpu.dimension_semantics<arbitrary>], iteration_bounds = array<i64: 2, 4, 2>, scalar_prefetch = 0 : i64, scratch_operands = 1 : i64, tpu.core_type = #tpu.core_type<tc>, window_params = [{transform_indices = @transform_0, window_bounds = array<i64: 1, 1, 4, 256>}, {pipeline_mode = #tpu.pipeline_mode<synchronous>, transform_indices = @transform_1, window_bounds = array<i64: 2, 1, 256, 128>}, {pipeline_mode = #tpu.pipeline_mode<synchronous>, transform_indices = @transform_2, window_bounds = array<i64: 1, 128>}, {transform_indices = @transform_3, window_bounds = array<i64: 1, 1, 4, 128>}]} {
    %c0_i32 = arith.constant 0 : i32
    %0 = arith.cmpi eq, %arg2, %c0_i32 : i32
    %1 = arith.extui %0 : i1 to i32
    %c0_i32_0 = arith.constant 0 : i32
    %2 = arith.cmpi ne, %1, %c0_i32_0 : i32
    scf.if %2 {
      %cst_12 = arith.constant 0.000000e+00 : f32
      %15 = vector.broadcast %cst_12 : f32 to vector<4x128xf32>
      %c0_13 = arith.constant 0 : index
      %c0_14 = arith.constant 0 : index
      %16 = vector.load %arg7[%c0_13, %c0_14] : memref<4x128xf32, #tpu.memory_space<vmem>>, vector<4x128xf32>
      tpu.vector_store %arg7[%c0_13, %c0_14], %15 {strides = array<i32>} : memref<4x128xf32, #tpu.memory_space<vmem>>, vector<4x128xf32>,
    } else {
    }
    %c0 = arith.constant 0 : index
    %c0_1 = arith.constant 0 : index
    %c0_2 = arith.constant 0 : index
    %c0_3 = arith.constant 0 : index
    %3 = vector.load %arg3[%c0, %c0_1, %c0_2, %c0_3] : memref<1x1x4x256xbf16, #tpu.memory_space<vmem>>, vector<1x1x4x256xbf16>
    %4 = vector.shape_cast %3 : vector<1x1x4x256xbf16> to vector<4x256xbf16>
    %5 = arith.index_cast %arg2 : i32 to index
    %c0_4 = arith.constant 0 : index
    %c0_5 = arith.constant 0 : index
    %c0_6 = arith.constant 0 : index
    %6 = vector.load %arg4[%5, %c0_4, %c0_5, %c0_6] : memref<2x1x256x128xbf16, #tpu.memory_space<vmem>>, vector<1x1x256x128xbf16>
    %7 = vector.shape_cast %6 : vector<1x1x256x128xbf16> to vector<256x128xbf16>
    %c0_7 = arith.constant 0 : index
    %c0_8 = arith.constant 0 : index
    %8 = vector.load %arg7[%c0_7, %c0_8] : memref<4x128xf32, #tpu.memory_space<vmem>>, vector<4x128xf32>
    %cst = arith.constant dense<0.000000e+00> : vector<4x128xf32>
    %9 = tpu.matmul %4, %7, %cst {dimension_numbers = #tpu.dot_dimension_numbers<[1], [0], [0], [1], [0, 0, 1, 1], [], []>} : vector<4x256xbf16>, vector<256x128xbf16>, vector<4x128xf32> -> vector<4x128xf32>
    %10 = arith.addf %8, %9 : vector<4x128xf32>
    %c0_9 = arith.constant 0 : index
    %c0_10 = arith.constant 0 : index
    %11 = vector.load %arg7[%c0_9, %c0_10] : memref<4x128xf32, #tpu.memory_space<vmem>>, vector<4x128xf32>
    tpu.vector_store %arg7[%c0_9, %c0_10], %10 {strides = array<i32>} : memref<4x128xf32, #tpu.memory_space<vmem>>, vector<4x128xf32>,
    %c1_i32 = arith.constant 1 : i32
    %12 = arith.cmpi eq, %arg2, %c1_i32 : i32
    %13 = arith.extui %12 : i1 to i32
    %c0_i32_11 = arith.constant 0 : i32
    %14 = arith.cmpi ne, %13, %c0_i32_11 : i32
    scf.if %14 {
      %c0_12 = arith.constant 0 : index
      %c0_13 = arith.constant 0 : index
      %15 = vector.load %arg7[%c0_12, %c0_13] : memref<4x128xf32, #tpu.memory_space<vmem>>, vector<4x128xf32>
      %c0_14 = arith.constant 0 : index
      %c0_15 = arith.constant 0 : index
      %16 = vector.load %arg5[%c0_14, %c0_15] : memref<1x128xf32, #tpu.memory_space<vmem>>, vector<1x128xf32>
      %17 = vector.broadcast %16 : vector<1x128xf32> to vector<4x128xf32>
      %18 = arith.addf %15, %17 : vector<4x128xf32>
      %c0_16 = arith.constant 0 : index
      %c0_17 = arith.constant 0 : index
      %c0_18 = arith.constant 0 : index
      %c0_19 = arith.constant 0 : index
      %19 = vector.load %arg6[%c0_16, %c0_17, %c0_18, %c0_19] : memref<1x1x4x128xf32, #tpu.memory_space<vmem>>, vector<1x1x4x128xf32>
      %20 = vector.shape_cast %19 : vector<1x1x4x128xf32> to vector<4x128xf32>
      %21 = vector.shape_cast %18 : vector<4x128xf32> to vector<1x1x4x128xf32>
      tpu.vector_store %arg6[%c0_16, %c0_17, %c0_18, %c0_19], %21 {strides = array<i32>} : memref<1x1x4x128xf32, #tpu.memory_space<vmem>>, vector<1x1x4x128xf32>,
    } else {
    }
    return
  }
  func.func @transform_0(%arg0: i32, %arg1: i32, %arg2: i32) -> (i32, i32, i32, i32) {
    %0 = arith.addi %arg1, %arg2 : i32
    %c0_i32 = arith.constant 0 : i32
    %c0_i32_0 = arith.constant 0 : i32
    %c0_i32_1 = arith.constant 0 : i32
    return %arg0, %0, %c0_i32, %c0_i32_0 : i32, i32, i32, i32
  }
  func.func @transform_1(%arg0: i32, %arg1: i32, %arg2: i32) -> (i32, i32, i32, i32) {
    %c0_i32 = arith.constant 0 : i32
    %c0_i32_0 = arith.constant 0 : i32
    %c0_i32_1 = arith.constant 0 : i32
    %c0_i32_2 = arith.constant 0 : i32
    %c0_i32_3 = arith.constant 0 : i32
    return %c0_i32, %c0_i32_0, %c0_i32_1, %c0_i32_2 : i32, i32, i32, i32
  }
  func.func @transform_2(%arg0: i32, %arg1: i32, %arg2: i32) -> (i32, i32) {
    %c0_i32 = arith.constant 0 : i32
    %c0_i32_0 = arith.constant 0 : i32
    %c0_i32_1 = arith.constant 0 : i32
    return %c0_i32, %c0_i32_0 : i32, i32
  }
  func.func @transform_3(%arg0: i32, %arg1: i32, %arg2: i32) -> (i32, i32, i32, i32) {
    %c0_i32 = arith.constant 0 : i32
    %c0_i32_0 = arith.constant 0 : i32
    %c0_i32_1 = arith.constant 0 : i32
    return %arg0, %arg1, %c0_i32, %c0_i32_0 : i32, i32, i32, i32
  }
}

module attributes {stable_mosaic.version = 11 : i64} {
  func.func @kernel(%arg0: i32, %arg1: i32, %arg2: i32, %arg3: memref<1x1x5x256xbf16, #tpu.memory_space<vmem>>, %arg4: memref<2x2x256x128xbf16, #tpu.memory_space<vmem>>, %arg5: memref<1x128xf32, #tpu.memory_space<vmem>>, %arg6: memref<1x1x4x128xf32, #tpu.memory_space<vmem>>, %arg7: memref<4x128xf32, #tpu.memory_space<vmem>>) attributes {dimension_semantics = [#tpu.dimension_semantics<parallel>, #tpu.dimension_semantics<parallel>, #tpu.dimension_semantics<arbitrary>], iteration_bounds = array<i64: 2, 4, 2>, scalar_prefetch = 0 : i64, scratch_operands = 1 : i64, tpu.core_type = #tpu.core_type<tc>, window_params = [{transform_indices = @transform_0, window_bounds = array<i64: 1, 1, 5, 256>}, {pipeline_mode = #tpu.pipeline_mode<synchronous>, transform_indices = @transform_1, window_bounds = array<i64: 2, 2, 256, 128>}, {pipeline_mode = #tpu.pipeline_mode<synchronous>, transform_indices = @transform_2, window_bounds = array<i64: 1, 128>}, {transform_indices = @transform_3, window_bounds = array<i64: 1, 1, 4, 128>}]} {
    %c0_i32 = arith.constant 0 : i32
    %0 = arith.cmpi eq, %arg2, %c0_i32 : i32
    %1 = arith.extui %0 : i1 to i32
    %c0_i32_0 = arith.constant 0 : i32
    %2 = arith.cmpi ne, %1, %c0_i32_0 : i32
    scf.if %2 {
      %cst_23 = arith.constant 0.000000e+00 : f32
      %24 = vector.broadcast %cst_23 : f32 to vector<4x128xf32>
      %c0_24 = arith.constant 0 : index
      %c0_25 = arith.constant 0 : index
      %25 = vector.load %arg7[%c0_24, %c0_25] : memref<4x128xf32, #tpu.memory_space<vmem>>, vector<4x128xf32>
      tpu.vector_store %arg7[%c0_24, %c0_25], %24 {strides = array<i32>} : memref<4x128xf32, #tpu.memory_space<vmem>>, vector<4x128xf32>,
    } else {
    }
    %c0 = arith.constant 0 : index
    %c0_1 = arith.constant 0 : index
    %c0_2 = arith.constant 0 : index
    %c0_3 = arith.constant 0 : index
    %3 = vector.load %arg3[%c0, %c0_1, %c0_2, %c0_3] : memref<1x1x5x256xbf16, #tpu.memory_space<vmem>>, vector<1x1x4x256xbf16>
    %4 = vector.shape_cast %3 : vector<1x1x4x256xbf16> to vector<4x256xbf16>
    %5 = arith.index_cast %arg2 : i32 to index
    %c0_4 = arith.constant 0 : index
    %c0_5 = arith.constant 0 : index
    %c0_6 = arith.constant 0 : index
    %6 = vector.load %arg4[%5, %c0_4, %c0_5, %c0_6] : memref<2x2x256x128xbf16, #tpu.memory_space<vmem>>, vector<1x1x256x128xbf16>
    %7 = vector.shape_cast %6 : vector<1x1x256x128xbf16> to vector<256x128xbf16>
    %c0_7 = arith.constant 0 : index
    %c0_8 = arith.constant 0 : index
    %8 = vector.load %arg7[%c0_7, %c0_8] : memref<4x128xf32, #tpu.memory_space<vmem>>, vector<4x128xf32>
    %cst = arith.constant dense<0.000000e+00> : vector<4x128xf32>
    %9 = tpu.matmul %4, %7, %cst {dimension_numbers = #tpu.dot_dimension_numbers<[1], [0], [0], [1], [0, 0, 1, 1], [], []>} : vector<4x256xbf16>, vector<256x128xbf16>, vector<4x128xf32> -> vector<4x128xf32>
    %10 = arith.addf %8, %9 : vector<4x128xf32>
    %c0_9 = arith.constant 0 : index
    %c0_10 = arith.constant 0 : index
    %11 = vector.load %arg7[%c0_9, %c0_10] : memref<4x128xf32, #tpu.memory_space<vmem>>, vector<4x128xf32>
    tpu.vector_store %arg7[%c0_9, %c0_10], %10 {strides = array<i32>} : memref<4x128xf32, #tpu.memory_space<vmem>>, vector<4x128xf32>,
    %c0_11 = arith.constant 0 : index
    %c0_12 = arith.constant 0 : index
    %c1 = arith.constant 1 : index
    %c0_13 = arith.constant 0 : index
    %12 = vector.load %arg3[%c0_11, %c0_12, %c1, %c0_13] : memref<1x1x5x256xbf16, #tpu.memory_space<vmem>>, vector<1x1x4x256xbf16>
    %13 = vector.shape_cast %12 : vector<1x1x4x256xbf16> to vector<4x256xbf16>
    %14 = arith.index_cast %arg2 : i32 to index
    %c1_14 = arith.constant 1 : index
    %c0_15 = arith.constant 0 : index
    %c0_16 = arith.constant 0 : index
    %15 = vector.load %arg4[%14, %c1_14, %c0_15, %c0_16] : memref<2x2x256x128xbf16, #tpu.memory_space<vmem>>, vector<1x1x256x128xbf16>
    %16 = vector.shape_cast %15 : vector<1x1x256x128xbf16> to vector<256x128xbf16>
    %c0_17 = arith.constant 0 : index
    %c0_18 = arith.constant 0 : index
    %17 = vector.load %arg7[%c0_17, %c0_18] : memref<4x128xf32, #tpu.memory_space<vmem>>, vector<4x128xf32>
    %cst_19 = arith.constant dense<0.000000e+00> : vector<4x128xf32>
    %18 = tpu.matmul %13, %16, %cst_19 {dimension_numbers = #tpu.dot_dimension_numbers<[1], [0], [0], [1], [0, 0, 1, 1], [], []>} : vector<4x256xbf16>, vector<256x128xbf16>, vector<4x128xf32> -> vector<4x128xf32>
    %19 = arith.addf %17, %18 : vector<4x128xf32>
    %c0_20 = arith.constant 0 : index
    %c0_21 = arith.constant 0 : index
    %20 = vector.load %arg7[%c0_20, %c0_21] : memref<4x128xf32, #tpu.memory_space<vmem>>, vector<4x128xf32>
    tpu.vector_store %arg7[%c0_20, %c0_21], %19 {strides = array<i32>} : memref<4x128xf32, #tpu.memory_space<vmem>>, vector<4x128xf32>,
    %c1_i32 = arith.constant 1 : i32
    %21 = arith.cmpi eq, %arg2, %c1_i32 : i32
    %22 = arith.extui %21 : i1 to i32
    %c0_i32_22 = arith.constant 0 : i32
    %23 = arith.cmpi ne, %22, %c0_i32_22 : i32
    scf.if %23 {
      %c0_23 = arith.constant 0 : index
      %c0_24 = arith.constant 0 : index
      %24 = vector.load %arg7[%c0_23, %c0_24] : memref<4x128xf32, #tpu.memory_space<vmem>>, vector<4x128xf32>
      %c0_25 = arith.constant 0 : index
      %c0_26 = arith.constant 0 : index
      %25 = vector.load %arg5[%c0_25, %c0_26] : memref<1x128xf32, #tpu.memory_space<vmem>>, vector<1x128xf32>
      %26 = vector.broadcast %25 : vector<1x128xf32> to vector<4x128xf32>
      %27 = arith.addf %24, %26 : vector<4x128xf32>
      %c0_27 = arith.constant 0 : index
      %c0_28 = arith.constant 0 : index
      %c0_29 = arith.constant 0 : index
      %c0_30 = arith.constant 0 : index
      %28 = vector.load %arg6[%c0_27, %c0_28, %c0_29, %c0_30] : memref<1x1x4x128xf32, #tpu.memory_space<vmem>>, vector<1x1x4x128xf32>
      %29 = vector.shape_cast %28 : vector<1x1x4x128xf32> to vector<4x128xf32>
      %30 = vector.shape_cast %27 : vector<4x128xf32> to vector<1x1x4x128xf32>
      tpu.vector_store %arg6[%c0_27, %c0_28, %c0_29, %c0_30], %30 {strides = array<i32>} : memref<1x1x4x128xf32, #tpu.memory_space<vmem>>, vector<1x1x4x128xf32>,
    } else {
    }
    return
  }
  func.func @transform_0(%arg0: i32, %arg1: i32, %arg2: i32) -> (i32, i32, i32, i32) {
    %0 = arith.addi %arg1, %arg2 : i32
    %c0_i32 = arith.constant 0 : i32
    %c0_i32_0 = arith.constant 0 : i32
    %c0_i32_1 = arith.constant 0 : i32
    return %arg0, %0, %c0_i32, %c0_i32_0 : i32, i32, i32, i32
  }
  func.func @transform_1(%arg0: i32, %arg1: i32, %arg2: i32) -> (i32, i32, i32, i32) {
    %c0_i32 = arith.constant 0 : i32
    %c0_i32_0 = arith.constant 0 : i32
    %c0_i32_1 = arith.constant 0 : i32
    %c0_i32_2 = arith.constant 0 : i32
    %c0_i32_3 = arith.constant 0 : i32
    return %c0_i32, %c0_i32_0, %c0_i32_1, %c0_i32_2 : i32, i32, i32, i32
  }
  func.func @transform_2(%arg0: i32, %arg1: i32, %arg2: i32) -> (i32, i32) {
    %c0_i32 = arith.constant 0 : i32
    %c0_i32_0 = arith.constant 0 : i32
    %c0_i32_1 = arith.constant 0 : i32
    return %c0_i32, %c0_i32_0 : i32, i32
  }
  func.func @transform_3(%arg0: i32, %arg1: i32, %arg2: i32) -> (i32, i32, i32, i32) {
    %c0_i32 = arith.constant 0 : i32
    %c0_i32_0 = arith.constant 0 : i32
    %c0_i32_1 = arith.constant 0 : i32
    return %arg0, %arg1, %c0_i32, %c0_i32_0 : i32, i32, i32, i32
  }
}

module attributes {stable_mosaic.version = 11 : i64} {
  func.func @kernel(%arg0: i32, %arg1: i32, %arg2: i32, %arg3: memref<1x1x8x128xbf16, #tpu.memory_space<vmem>>, %arg4: memref<1x1x128x64xbf16, #tpu.memory_space<vmem>>, %arg5: memref<1x64xf32, #tpu.memory_space<vmem>>, %arg6: memref<1x1x8x64xf32, #tpu.memory_space<vmem>>, %arg7: memref<8x64xf32, #tpu.memory_space<vmem>>) attributes {dimension_semantics = [#tpu.dimension_semantics<parallel>, #tpu.dimension_semantics<parallel>, #tpu.dimension_semantics<arbitrary>], iteration_bounds = array<i64: 2, 8, 1>, scalar_prefetch = 0 : i64, scratch_operands = 1 : i64, tpu.core_type = #tpu.core_type<tc>, window_params = [{transform_indices = @transform_0, window_bounds = array<i64: 1, 1, 8, 128>}, {pipeline_mode = #tpu.pipeline_mode<synchronous>, transform_indices = @transform_1, window_bounds = array<i64: 1, 1, 128, 64>}, {pipeline_mode = #tpu.pipeline_mode<synchronous>, transform_indices = @transform_2, window_bounds = array<i64: 1, 64>}, {transform_indices = @transform_3, window_bounds = array<i64: 1, 1, 8, 64>}]} {
    %c0_i32 = arith.constant 0 : i32
    %0 = arith.cmpi eq, %arg2, %c0_i32 : i32
    %1 = arith.extui %0 : i1 to i32
    %c0_i32_0 = arith.constant 0 : i32
    %2 = arith.cmpi ne, %1, %c0_i32_0 : i32
    scf.if %2 {
      %cst_13 = arith.constant 0.000000e+00 : f32
      %15 = vector.broadcast %cst_13 : f32 to vector<8x64xf32>
      %c0_14 = arith.constant 0 : index
      %c0_15 = arith.constant 0 : index
      %16 = vector.load %arg7[%c0_14, %c0_15] : memref<8x64xf32, #tpu.memory_space<vmem>>, vector<8x64xf32>
      tpu.vector_store %arg7[%c0_14, %c0_15], %15 {strides = array<i32>} : memref<8x64xf32, #tpu.memory_space<vmem>>, vector<8x64xf32>,
    } else {
    }
    %c0 = arith.constant 0 : index
    %c0_1 = arith.constant 0 : index
    %c0_2 = arith.constant 0 : index
    %c0_3 = arith.constant 0 : index
    %3 = vector.load %arg3[%c0, %c0_1, %c0_2, %c0_3] : memref<1x1x8x128xbf16, #tpu.memory_space<vmem>>, vector<1x1x8x128xbf16>
    %4 = vector.shape_cast %3 : vector<1x1x8x128xbf16> to vector<8x128xbf16>
    %5 = arith.index_cast %arg2 : i32 to index
    %c0_4 = arith.constant 0 : index
    %c0_5 = arith.constant 0 : index
    %c0_6 = arith.constant 0 : index
    %6 = vector.load %arg4[%5, %c0_4, %c0_5, %c0_6] : memref<1x1x128x64xbf16, #tpu.memory_space<vmem>>, vector<1x1x128x64xbf16>
    %7 = vector.shape_cast %6 : vector<1x1x128x64xbf16> to vector<128x64xbf16>
    %c0_7 = arith.constant 0 : index
    %c0_8 = arith.constant 0 : index
    %8 = vector.load %arg7[%c0_7, %c0_8] : memref<8x64xf32, #tpu.memory_space<vmem>>, vector<8x64xf32>
    %cst = arith.constant dense<0.000000e+00> : vector<8x64xf32>
    %9 = tpu.matmul %4, %7, %cst {dimension_numbers = #tpu.dot_dimension_numbers<[1], [0], [0], [1], [0, 0, 1, 1], [], []>} : vector<8x128xbf16>, vector<128x64xbf16>, vector<8x64xf32> -> vector<8x64xf32>
    %10 = arith.addf %8, %9 : vector<8x64xf32>
    %c0_9 = arith.constant 0 : index
    %c0_10 = arith.constant 0 : index
    %11 = vector.load %arg7[%c0_9, %c0_10] : memref<8x64xf32, #tpu.memory_space<vmem>>, vector<8x64xf32>
    tpu.vector_store %arg7[%c0_9, %c0_10], %10 {strides = array<i32>} : memref<8x64xf32, #tpu.memory_space<vmem>>, vector<8x64xf32>,
    %c0_i32_11 = arith.constant 0 : i32
    %12 = arith.cmpi eq, %arg2, %c0_i32_11 : i32
    %13 = arith.extui %12 : i1 to i32
    %c0_i32_12 = arith.constant 0 : i32
    %14 = arith.cmpi ne, %13, %c0_i32_12 : i32
    scf.if %14 {
      %c0_13 = arith.constant 0 : index
      %c0_14 = arith.constant 0 : index
      %15 = vector.load %arg7[%c0_13, %c0_14] : memref<8x64xf32, #tpu.memory_space<vmem>>, vector<8x64xf32>
      %c0_15 = arith.constant 0 : index
      %c0_16 = arith.constant 0 : index
      %16 = vector.load %arg5[%c0_15, %c0_16] : memref<1x64xf32, #tpu.memory_space<vmem>>, vector<1x64xf32>
      %17 = vector.broadcast %16 : vector<1x64xf32> to vector<8x64xf32>
      %18 = arith.addf %15, %17 : vector<8x64xf32>
      %c0_17 = arith.constant 0 : index
      %c0_18 = arith.constant 0 : index
      %c0_19 = arith.constant 0 : index
      %c0_20 = arith.constant 0 : index
      %19 = vector.load %arg6[%c0_17, %c0_18, %c0_19, %c0_20] : memref<1x1x8x64xf32, #tpu.memory_space<vmem>>, vector<1x1x8x64xf32>
      %20 = vector.shape_cast %19 : vector<1x1x8x64xf32> to vector<8x64xf32>
      %21 = vector.shape_cast %18 : vector<8x64xf32> to vector<1x1x8x64xf32>
      tpu.vector_store %arg6[%c0_17, %c0_18, %c0_19, %c0_20], %21 {strides = array<i32>} : memref<1x1x8x64xf32, #tpu.memory_space<vmem>>, vector<1x1x8x64xf32>,
    } else {
    }
    return
  }
  func.func @transform_0(%arg0: i32, %arg1: i32, %arg2: i32) -> (i32, i32, i32, i32) {
    %0 = arith.addi %arg1, %arg2 : i32
    %c0_i32 = arith.constant 0 : i32
    %c0_i32_0 = arith.constant 0 : i32
    %c0_i32_1 = arith.constant 0 : i32
    return %arg0, %0, %c0_i32, %c0_i32_0 : i32, i32, i32, i32
  }
  func.func @transform_1(%arg0: i32, %arg1: i32, %arg2: i32) -> (i32, i32, i32, i32) {
    %c0_i32 = arith.constant 0 : i32
    %c0_i32_0 = arith.constant 0 : i32
    %c0_i32_1 = arith.constant 0 : i32
    %c0_i32_2 = arith.constant 0 : i32
    %c0_i32_3 = arith.constant 0 : i32
    return %c0_i32, %c0_i32_0, %c0_i32_1, %c0_i32_2 : i32, i32, i32, i32
  }
  func.func @transform_2(%arg0: i32, %arg1: i32, %arg2: i32) -> (i32, i32) {
    %c0_i32 = arith.constant 0 : i32
    %c0_i32_0 = arith.constant 0 : i32
    %c0_i32_1 = arith.constant 0 : i32
    return %c0_i32, %c0_i32_0 : i32, i32
  }
  func.func @transform_3(%arg0: i32, %arg1: i32, %arg2: i32) -> (i32, i32, i32, i32) {
    %c0_i32 = arith.constant 0 : i32
    %c0_i32_0 = arith.constant 0 : i32
    %c0_i32_1 = arith.constant 0 : i32
    return %arg0, %arg1, %c0_i32, %c0_i32_0 : i32, i32, i32, i32
  }
}

module attributes {stable_mosaic.version = 11 : i64} {
  func.func @kernel(%arg0: i32, %arg1: i32, %arg2: i32, %arg3: memref<1x1x9x128xbf16, #tpu.memory_space<vmem>>, %arg4: memref<1x2x128x64xbf16, #tpu.memory_space<vmem>>, %arg5: memref<1x64xf32, #tpu.memory_space<vmem>>, %arg6: memref<1x1x8x64xf32, #tpu.memory_space<vmem>>, %arg7: memref<8x64xf32, #tpu.memory_space<vmem>>) attributes {dimension_semantics = [#tpu.dimension_semantics<parallel>, #tpu.dimension_semantics<parallel>, #tpu.dimension_semantics<arbitrary>], iteration_bounds = array<i64: 2, 8, 1>, scalar_prefetch = 0 : i64, scratch_operands = 1 : i64, tpu.core_type = #tpu.core_type<tc>, window_params = [{transform_indices = @transform_0, window_bounds = array<i64: 1, 1, 9, 128>}, {pipeline_mode = #tpu.pipeline_mode<synchronous>, transform_indices = @transform_1, window_bounds = array<i64: 1, 2, 128, 64>}, {pipeline_mode = #tpu.pipeline_mode<synchronous>, transform_indices = @transform_2, window_bounds = array<i64: 1, 64>}, {transform_indices = @transform_3, window_bounds = array<i64: 1, 1, 8, 64>}]} {
    %c0_i32 = arith.constant 0 : i32
    %0 = arith.cmpi eq, %arg2, %c0_i32 : i32
    %1 = arith.extui %0 : i1 to i32
    %c0_i32_0 = arith.constant 0 : i32
    %2 = arith.cmpi ne, %1, %c0_i32_0 : i32
    scf.if %2 {
      %cst_24 = arith.constant 0.000000e+00 : f32
      %24 = vector.broadcast %cst_24 : f32 to vector<8x64xf32>
      %c0_25 = arith.constant 0 : index
      %c0_26 = arith.constant 0 : index
      %25 = vector.load %arg7[%c0_25, %c0_26] : memref<8x64xf32, #tpu.memory_space<vmem>>, vector<8x64xf32>
      tpu.vector_store %arg7[%c0_25, %c0_26], %24 {strides = array<i32>} : memref<8x64xf32, #tpu.memory_space<vmem>>, vector<8x64xf32>,
    } else {
    }
    %c0 = arith.constant 0 : index
    %c0_1 = arith.constant 0 : index
    %c0_2 = arith.constant 0 : index
    %c0_3 = arith.constant 0 : index
    %3 = vector.load %arg3[%c0, %c0_1, %c0_2, %c0_3] : memref<1x1x9x128xbf16, #tpu.memory_space<vmem>>, vector<1x1x8x128xbf16>
    %4 = vector.shape_cast %3 : vector<1x1x8x128xbf16> to vector<8x128xbf16>
    %5 = arith.index_cast %arg2 : i32 to index
    %c0_4 = arith.constant 0 : index
    %c0_5 = arith.constant 0 : index
    %c0_6 = arith.constant 0 : index
    %6 = vector.load %arg4[%5, %c0_4, %c0_5, %c0_6] : memref<1x2x128x64xbf16, #tpu.memory_space<vmem>>, vector<1x1x128x64xbf16>
    %7 = vector.shape_cast %6 : vector<1x1x128x64xbf16> to vector<128x64xbf16>
    %c0_7 = arith.constant 0 : index
    %c0_8 = arith.constant 0 : index
    %8 = vector.load %arg7[%c0_7, %c0_8] : memref<8x64xf32, #tpu.memory_space<vmem>>, vector<8x64xf32>
    %cst = arith.constant dense<0.000000e+00> : vector<8x64xf32>
    %9 = tpu.matmul %4, %7, %cst {dimension_numbers = #tpu.dot_dimension_numbers<[1], [0], [0], [1], [0, 0, 1, 1], [], []>} : vector<8x128xbf16>, vector<128x64xbf16>, vector<8x64xf32> -> vector<8x64xf32>
    %10 = arith.addf %8, %9 : vector<8x64xf32>
    %c0_9 = arith.constant 0 : index
    %c0_10 = arith.constant 0 : index
    %11 = vector.load %arg7[%c0_9, %c0_10] : memref<8x64xf32, #tpu.memory_space<vmem>>, vector<8x64xf32>
    tpu.vector_store %arg7[%c0_9, %c0_10], %10 {strides = array<i32>} : memref<8x64xf32, #tpu.memory_space<vmem>>, vector<8x64xf32>,
    %c0_11 = arith.constant 0 : index
    %c0_12 = arith.constant 0 : index
    %c1 = arith.constant 1 : index
    %c0_13 = arith.constant 0 : index
    %12 = vector.load %arg3[%c0_11, %c0_12, %c1, %c0_13] : memref<1x1x9x128xbf16, #tpu.memory_space<vmem>>, vector<1x1x8x128xbf16>
    %13 = vector.shape_cast %12 : vector<1x1x8x128xbf16> to vector<8x128xbf16>
    %14 = arith.index_cast %arg2 : i32 to index
    %c1_14 = arith.constant 1 : index
    %c0_15 = arith.constant 0 : index
    %c0_16 = arith.constant 0 : index
    %15 = vector.load %arg4[%14, %c1_14, %c0_15, %c0_16] : memref<1x2x128x64xbf16, #tpu.memory_space<vmem>>, vector<1x1x128x64xbf16>
    %16 = vector.shape_cast %15 : vector<1x1x128x64xbf16> to vector<128x64xbf16>
    %c0_17 = arith.constant 0 : index
    %c0_18 = arith.constant 0 : index
    %17 = vector.load %arg7[%c0_17, %c0_18] : memref<8x64xf32, #tpu.memory_space<vmem>>, vector<8x64xf32>
    %cst_19 = arith.constant dense<0.000000e+00> : vector<8x64xf32>
    %18 = tpu.matmul %13, %16, %cst_19 {dimension_numbers = #tpu.dot_dimension_numbers<[1], [0], [0], [1], [0, 0, 1, 1], [], []>} : vector<8x128xbf16>, vector<128x64xbf16>, vector<8x64xf32> -> vector<8x64xf32>
    %19 = arith.addf %17, %18 : vector<8x64xf32>
    %c0_20 = arith.constant 0 : index
    %c0_21 = arith.constant 0 : index
    %20 = vector.load %arg7[%c0_20, %c0_21] : memref<8x64xf32, #tpu.memory_space<vmem>>, vector<8x64xf32>
    tpu.vector_store %arg7[%c0_20, %c0_21], %19 {strides = array<i32>} : memref<8x64xf32, #tpu.memory_space<vmem>>, vector<8x64xf32>,
    %c0_i32_22 = arith.constant 0 : i32
    %21 = arith.cmpi eq, %arg2, %c0_i32_22 : i32
    %22 = arith.extui %21 : i1 to i32
    %c0_i32_23 = arith.constant 0 : i32
    %23 = arith.cmpi ne, %22, %c0_i32_23 : i32
    scf.if %23 {
      %c0_24 = arith.constant 0 : index
      %c0_25 = arith.constant 0 : index
      %24 = vector.load %arg7[%c0_24, %c0_25] : memref<8x64xf32, #tpu.memory_space<vmem>>, vector<8x64xf32>
      %c0_26 = arith.constant 0 : index
      %c0_27 = arith.constant 0 : index
      %25 = vector.load %arg5[%c0_26, %c0_27] : memref<1x64xf32, #tpu.memory_space<vmem>>, vector<1x64xf32>
      %26 = vector.broadcast %25 : vector<1x64xf32> to vector<8x64xf32>
      %27 = arith.addf %24, %26 : vector<8x64xf32>
      %c0_28 = arith.constant 0 : index
      %c0_29 = arith.constant 0 : index
      %c0_30 = arith.constant 0 : index
      %c0_31 = arith.constant 0 : index
      %28 = vector.load %arg6[%c0_28, %c0_29, %c0_30, %c0_31] : memref<1x1x8x64xf32, #tpu.memory_space<vmem>>, vector<1x1x8x64xf32>
      %29 = vector.shape_cast %28 : vector<1x1x8x64xf32> to vector<8x64xf32>
      %30 = vector.shape_cast %27 : vector<8x64xf32> to vector<1x1x8x64xf32>
      tpu.vector_store %arg6[%c0_28, %c0_29, %c0_30, %c0_31], %30 {strides = array<i32>} : memref<1x1x8x64xf32, #tpu.memory_space<vmem>>, vector<1x1x8x64xf32>,
    } else {
    }
    return
  }
  func.func @transform_0(%arg0: i32, %arg1: i32, %arg2: i32) -> (i32, i32, i32, i32) {
    %0 = arith.addi %arg1, %arg2 : i32
    %c0_i32 = arith.constant 0 : i32
    %c0_i32_0 = arith.constant 0 : i32
    %c0_i32_1 = arith.constant 0 : i32
    return %arg0, %0, %c0_i32, %c0_i32_0 : i32, i32, i32, i32
  }
  func.func @transform_1(%arg0: i32, %arg1: i32, %arg2: i32) -> (i32, i32, i32, i32) {
    %c0_i32 = arith.constant 0 : i32
    %c0_i32_0 = arith.constant 0 : i32
    %c0_i32_1 = arith.constant 0 : i32
    %c0_i32_2 = arith.constant 0 : i32
    %c0_i32_3 = arith.constant 0 : i32
    return %c0_i32, %c0_i32_0, %c0_i32_1, %c0_i32_2 : i32, i32, i32, i32
  }
  func.func @transform_2(%arg0: i32, %arg1: i32, %arg2: i32) -> (i32, i32) {
    %c0_i32 = arith.constant 0 : i32
    %c0_i32_0 = arith.constant 0 : i32
    %c0_i32_1 = arith.constant 0 : i32
    return %c0_i32, %c0_i32_0 : i32, i32
  }
  func.func @transform_3(%arg0: i32, %arg1: i32, %arg2: i32) -> (i32, i32, i32, i32) {
    %c0_i32 = arith.constant 0 : i32
    %c0_i32_0 = arith.constant 0 : i32
    %c0_i32_1 = arith.constant 0 : i32
    return %arg0, %arg1, %c0_i32, %c0_i32_0 : i32, i32, i32, i32
  }
}

module attributes {stable_mosaic.version = 11 : i64} {
  func.func @kernel(%arg0: i32, %arg1: i32, %arg2: i32, %arg3: memref<1x1x8x128xbf16, #tpu.memory_space<vmem>>, %arg4: memref<2x1x128x64xbf16, #tpu.memory_space<vmem>>, %arg5: memref<1x64xf32, #tpu.memory_space<vmem>>, %arg6: memref<1x1x8x64xf32, #tpu.memory_space<vmem>>, %arg7: memref<8x64xf32, #tpu.memory_space<vmem>>) attributes {dimension_semantics = [#tpu.dimension_semantics<parallel>, #tpu.dimension_semantics<parallel>, #tpu.dimension_semantics<arbitrary>], iteration_bounds = array<i64: 2, 8, 2>, scalar_prefetch = 0 : i64, scratch_operands = 1 : i64, tpu.core_type = #tpu.core_type<tc>, window_params = [{transform_indices = @transform_0, window_bounds = array<i64: 1, 1, 8, 128>}, {pipeline_mode = #tpu.pipeline_mode<synchronous>, transform_indices = @transform_1, window_bounds = array<i64: 2, 1, 128, 64>}, {pipeline_mode = #tpu.pipeline_mode<synchronous>, transform_indices = @transform_2, window_bounds = array<i64: 1, 64>}, {transform_indices = @transform_3, window_bounds = array<i64: 1, 1, 8, 64>}]} {
    %c0_i32 = arith.constant 0 : i32
    %0 = arith.cmpi eq, %arg2, %c0_i32 : i32
    %1 = arith.extui %0 : i1 to i32
    %c0_i32_0 = arith.constant 0 : i32
    %2 = arith.cmpi ne, %1, %c0_i32_0 : i32
    scf.if %2 {
      %cst_12 = arith.constant 0.000000e+00 : f32
      %15 = vector.broadcast %cst_12 : f32 to vector<8x64xf32>
      %c0_13 = arith.constant 0 : index
      %c0_14 = arith.constant 0 : index
      %16 = vector.load %arg7[%c0_13, %c0_14] : memref<8x64xf32, #tpu.memory_space<vmem>>, vector<8x64xf32>
      tpu.vector_store %arg7[%c0_13, %c0_14], %15 {strides = array<i32>} : memref<8x64xf32, #tpu.memory_space<vmem>>, vector<8x64xf32>,
    } else {
    }
    %c0 = arith.constant 0 : index
    %c0_1 = arith.constant 0 : index
    %c0_2 = arith.constant 0 : index
    %c0_3 = arith.constant 0 : index
    %3 = vector.load %arg3[%c0, %c0_1, %c0_2, %c0_3] : memref<1x1x8x128xbf16, #tpu.memory_space<vmem>>, vector<1x1x8x128xbf16>
    %4 = vector.shape_cast %3 : vector<1x1x8x128xbf16> to vector<8x128xbf16>
    %5 = arith.index_cast %arg2 : i32 to index
    %c0_4 = arith.constant 0 : index
    %c0_5 = arith.constant 0 : index
    %c0_6 = arith.constant 0 : index
    %6 = vector.load %arg4[%5, %c0_4, %c0_5, %c0_6] : memref<2x1x128x64xbf16, #tpu.memory_space<vmem>>, vector<1x1x128x64xbf16>
    %7 = vector.shape_cast %6 : vector<1x1x128x64xbf16> to vector<128x64xbf16>
    %c0_7 = arith.constant 0 : index
    %c0_8 = arith.constant 0 : index
    %8 = vector.load %arg7[%c0_7, %c0_8] : memref<8x64xf32, #tpu.memory_space<vmem>>, vector<8x64xf32>
    %cst = arith.constant dense<0.000000e+00> : vector<8x64xf32>
    %9 = tpu.matmul %4, %7, %cst {dimension_numbers = #tpu.dot_dimension_numbers<[1], [0], [0], [1], [0, 0, 1, 1], [], []>} : vector<8x128xbf16>, vector<128x64xbf16>, vector<8x64xf32> -> vector<8x64xf32>
    %10 = arith.addf %8, %9 : vector<8x64xf32>
    %c0_9 = arith.constant 0 : index
    %c0_10 = arith.constant 0 : index
    %11 = vector.load %arg7[%c0_9, %c0_10] : memref<8x64xf32, #tpu.memory_space<vmem>>, vector<8x64xf32>
    tpu.vector_store %arg7[%c0_9, %c0_10], %10 {strides = array<i32>} : memref<8x64xf32, #tpu.memory_space<vmem>>, vector<8x64xf32>,
    %c1_i32 = arith.constant 1 : i32
    %12 = arith.cmpi eq, %arg2, %c1_i32 : i32
    %13 = arith.extui %12 : i1 to i32
    %c0_i32_11 = arith.constant 0 : i32
    %14 = arith.cmpi ne, %13, %c0_i32_11 : i32
    scf.if %14 {
      %c0_12 = arith.constant 0 : index
      %c0_13 = arith.constant 0 : index
      %15 = vector.load %arg7[%c0_12, %c0_13] : memref<8x64xf32, #tpu.memory_space<vmem>>, vector<8x64xf32>
      %c0_14 = arith.constant 0 : index
      %c0_15 = arith.constant 0 : index
      %16 = vector.load %arg5[%c0_14, %c0_15] : memref<1x64xf32, #tpu.memory_space<vmem>>, vector<1x64xf32>
      %17 = vector.broadcast %16 : vector<1x64xf32> to vector<8x64xf32>
      %18 = arith.addf %15, %17 : vector<8x64xf32>
      %c0_16 = arith.constant 0 : index
      %c0_17 = arith.constant 0 : index
      %c0_18 = arith.constant 0 : index
      %c0_19 = arith.constant 0 : index
      %19 = vector.load %arg6[%c0_16, %c0_17, %c0_18, %c0_19] : memref<1x1x8x64xf32, #tpu.memory_space<vmem>>, vector<1x1x8x64xf32>
      %20 = vector.shape_cast %19 : vector<1x1x8x64xf32> to vector<8x64xf32>
      %21 = vector.shape_cast %18 : vector<8x64xf32> to vector<1x1x8x64xf32>
      tpu.vector_store %arg6[%c0_16, %c0_17, %c0_18, %c0_19], %21 {strides = array<i32>} : memref<1x1x8x64xf32, #tpu.memory_space<vmem>>, vector<1x1x8x64xf32>,
    } else {
    }
    return
  }
  func.func @transform_0(%arg0: i32, %arg1: i32, %arg2: i32) -> (i32, i32, i32, i32) {
    %0 = arith.addi %arg1, %arg2 : i32
    %c0_i32 = arith.constant 0 : i32
    %c0_i32_0 = arith.constant 0 : i32
    %c0_i32_1 = arith.constant 0 : i32
    return %arg0, %0, %c0_i32, %c0_i32_0 : i32, i32, i32, i32
  }
  func.func @transform_1(%arg0: i32, %arg1: i32, %arg2: i32) -> (i32, i32, i32, i32) {
    %c0_i32 = arith.constant 0 : i32
    %c0_i32_0 = arith.constant 0 : i32
    %c0_i32_1 = arith.constant 0 : i32
    %c0_i32_2 = arith.constant 0 : i32
    %c0_i32_3 = arith.constant 0 : i32
    return %c0_i32, %c0_i32_0, %c0_i32_1, %c0_i32_2 : i32, i32, i32, i32
  }
  func.func @transform_2(%arg0: i32, %arg1: i32, %arg2: i32) -> (i32, i32) {
    %c0_i32 = arith.constant 0 : i32
    %c0_i32_0 = arith.constant 0 : i32
    %c0_i32_1 = arith.constant 0 : i32
    return %c0_i32, %c0_i32_0 : i32, i32
  }
  func.func @transform_3(%arg0: i32, %arg1: i32, %arg2: i32) -> (i32, i32, i32, i32) {
    %c0_i32 = arith.constant 0 : i32
    %c0_i32_0 = arith.constant 0 : i32
    %c0_i32_1 = arith.constant 0 : i32
    return %arg0, %arg1, %c0_i32, %c0_i32_0 : i32, i32, i32, i32
  }
}

module attributes {stable_mosaic.version = 11 : i64} {
  func.func @kernel(%arg0: i32, %arg1: i32, %arg2: i32, %arg3: memref<1x1x9x128xbf16, #tpu.memory_space<vmem>>, %arg4: memref<2x2x128x64xbf16, #tpu.memory_space<vmem>>, %arg5: memref<1x64xf32, #tpu.memory_space<vmem>>, %arg6: memref<1x1x8x64xf32, #tpu.memory_space<vmem>>, %arg7: memref<8x64xf32, #tpu.memory_space<vmem>>) attributes {dimension_semantics = [#tpu.dimension_semantics<parallel>, #tpu.dimension_semantics<parallel>, #tpu.dimension_semantics<arbitrary>], iteration_bounds = array<i64: 2, 8, 2>, scalar_prefetch = 0 : i64, scratch_operands = 1 : i64, tpu.core_type = #tpu.core_type<tc>, window_params = [{transform_indices = @transform_0, window_bounds = array<i64: 1, 1, 9, 128>}, {pipeline_mode = #tpu.pipeline_mode<synchronous>, transform_indices = @transform_1, window_bounds = array<i64: 2, 2, 128, 64>}, {pipeline_mode = #tpu.pipeline_mode<synchronous>, transform_indices = @transform_2, window_bounds = array<i64: 1, 64>}, {transform_indices = @transform_3, window_bounds = array<i64: 1, 1, 8, 64>}]} {
    %c0_i32 = arith.constant 0 : i32
    %0 = arith.cmpi eq, %arg2, %c0_i32 : i32
    %1 = arith.extui %0 : i1 to i32
    %c0_i32_0 = arith.constant 0 : i32
    %2 = arith.cmpi ne, %1, %c0_i32_0 : i32
    scf.if %2 {
      %cst_23 = arith.constant 0.000000e+00 : f32
      %24 = vector.broadcast %cst_23 : f32 to vector<8x64xf32>
      %c0_24 = arith.constant 0 : index
      %c0_25 = arith.constant 0 : index
      %25 = vector.load %arg7[%c0_24, %c0_25] : memref<8x64xf32, #tpu.memory_space<vmem>>, vector<8x64xf32>
      tpu.vector_store %arg7[%c0_24, %c0_25], %24 {strides = array<i32>} : memref<8x64xf32, #tpu.memory_space<vmem>>, vector<8x64xf32>,
    } else {
    }
    %c0 = arith.constant 0 : index
    %c0_1 = arith.constant 0 : index
    %c0_2 = arith.constant 0 : index
    %c0_3 = arith.constant 0 : index
    %3 = vector.load %arg3[%c0, %c0_1, %c0_2, %c0_3] : memref<1x1x9x128xbf16, #tpu.memory_space<vmem>>, vector<1x1x8x128xbf16>
    %4 = vector.shape_cast %3 : vector<1x1x8x128xbf16> to vector<8x128xbf16>
    %5 = arith.index_cast %arg2 : i32 to index
    %c0_4 = arith.constant 0 : index
    %c0_5 = arith.constant 0 : index
    %c0_6 = arith.constant 0 : index
    %6 = vector.load %arg4[%5, %c0_4, %c0_5, %c0_6] : memref<2x2x128x64xbf16, #tpu.memory_space<vmem>>, vector<1x1x128x64xbf16>
    %7 = vector.shape_cast %6 : vector<1x1x128x64xbf16> to vector<128x64xbf16>
    %c0_7 = arith.constant 0 : index
    %c0_8 = arith.constant 0 : index
    %8 = vector.load %arg7[%c0_7, %c0_8] : memref<8x64xf32, #tpu.memory_space<vmem>>, vector<8x64xf32>
    %cst = arith.constant dense<0.000000e+00> : vector<8x64xf32>
    %9 = tpu.matmul %4, %7, %cst {dimension_numbers = #tpu.dot_dimension_numbers<[1], [0], [0], [1], [0, 0, 1, 1], [], []>} : vector<8x128xbf16>, vector<128x64xbf16>, vector<8x64xf32> -> vector<8x64xf32>
    %10 = arith.addf %8, %9 : vector<8x64xf32>
    %c0_9 = arith.constant 0 : index
    %c0_10 = arith.constant 0 : index
    %11 = vector.load %arg7[%c0_9, %c0_10] : memref<8x64xf32, #tpu.memory_space<vmem>>, vector<8x64xf32>
    tpu.vector_store %arg7[%c0_9, %c0_10], %10 {strides = array<i32>} : memref<8x64xf32, #tpu.memory_space<vmem>>, vector<8x64xf32>,
    %c0_11 = arith.constant 0 : index
    %c0_12 = arith.constant 0 : index
    %c1 = arith.constant 1 : index
    %c0_13 = arith.constant 0 : index
    %12 = vector.load %arg3[%c0_11, %c0_12, %c1, %c0_13] : memref<1x1x9x128xbf16, #tpu.memory_space<vmem>>, vector<1x1x8x128xbf16>
    %13 = vector.shape_cast %12 : vector<1x1x8x128xbf16> to vector<8x128xbf16>
    %14 = arith.index_cast %arg2 : i32 to index
    %c1_14 = arith.constant 1 : index
    %c0_15 = arith.constant 0 : index
    %c0_16 = arith.constant 0 : index
    %15 = vector.load %arg4[%14, %c1_14, %c0_15, %c0_16] : memref<2x2x128x64xbf16, #tpu.memory_space<vmem>>, vector<1x1x128x64xbf16>
    %16 = vector.shape_cast %15 : vector<1x1x128x64xbf16> to vector<128x64xbf16>
    %c0_17 = arith.constant 0 : index
    %c0_18 = arith.constant 0 : index
    %17 = vector.load %arg7[%c0_17, %c0_18] : memref<8x64xf32, #tpu.memory_space<vmem>>, vector<8x64xf32>
    %cst_19 = arith.constant dense<0.000000e+00> : vector<8x64xf32>
    %18 = tpu.matmul %13, %16, %cst_19 {dimension_numbers = #tpu.dot_dimension_numbers<[1], [0], [0], [1], [0, 0, 1, 1], [], []>} : vector<8x128xbf16>, vector<128x64xbf16>, vector<8x64xf32> -> vector<8x64xf32>
    %19 = arith.addf %17, %18 : vector<8x64xf32>
    %c0_20 = arith.constant 0 : index
    %c0_21 = arith.constant 0 : index
    %20 = vector.load %arg7[%c0_20, %c0_21] : memref<8x64xf32, #tpu.memory_space<vmem>>, vector<8x64xf32>
    tpu.vector_store %arg7[%c0_20, %c0_21], %19 {strides = array<i32>} : memref<8x64xf32, #tpu.memory_space<vmem>>, vector<8x64xf32>,
    %c1_i32 = arith.constant 1 : i32
    %21 = arith.cmpi eq, %arg2, %c1_i32 : i32
    %22 = arith.extui %21 : i1 to i32
    %c0_i32_22 = arith.constant 0 : i32
    %23 = arith.cmpi ne, %22, %c0_i32_22 : i32
    scf.if %23 {
      %c0_23 = arith.constant 0 : index
      %c0_24 = arith.constant 0 : index
      %24 = vector.load %arg7[%c0_23, %c0_24] : memref<8x64xf32, #tpu.memory_space<vmem>>, vector<8x64xf32>
      %c0_25 = arith.constant 0 : index
      %c0_26 = arith.constant 0 : index
      %25 = vector.load %arg5[%c0_25, %c0_26] : memref<1x64xf32, #tpu.memory_space<vmem>>, vector<1x64xf32>
      %26 = vector.broadcast %25 : vector<1x64xf32> to vector<8x64xf32>
      %27 = arith.addf %24, %26 : vector<8x64xf32>
      %c0_27 = arith.constant 0 : index
      %c0_28 = arith.constant 0 : index
      %c0_29 = arith.constant 0 : index
      %c0_30 = arith.constant 0 : index
      %28 = vector.load %arg6[%c0_27, %c0_28, %c0_29, %c0_30] : memref<1x1x8x64xf32, #tpu.memory_space<vmem>>, vector<1x1x8x64xf32>
      %29 = vector.shape_cast %28 : vector<1x1x8x64xf32> to vector<8x64xf32>
      %30 = vector.shape_cast %27 : vector<8x64xf32> to vector<1x1x8x64xf32>
      tpu.vector_store %arg6[%c0_27, %c0_28, %c0_29, %c0_30], %30 {strides = array<i32>} : memref<1x1x8x64xf32, #tpu.memory_space<vmem>>, vector<1x1x8x64xf32>,
    } else {
    }
    return
  }
  func.func @transform_0(%arg0: i32, %arg1: i32, %arg2: i32) -> (i32, i32, i32, i32) {
    %0 = arith.addi %arg1, %arg2 : i32
    %c0_i32 = arith.constant 0 : i32
    %c0_i32_0 = arith.constant 0 : i32
    %c0_i32_1 = arith.constant 0 : i32
    return %arg0, %0, %c0_i32, %c0_i32_0 : i32, i32, i32, i32
  }
  func.func @transform_1(%arg0: i32, %arg1: i32, %arg2: i32) -> (i32, i32, i32, i32) {
    %c0_i32 = arith.constant 0 : i32
    %c0_i32_0 = arith.constant 0 : i32
    %c0_i32_1 = arith.constant 0 : i32
    %c0_i32_2 = arith.constant 0 : i32
    %c0_i32_3 = arith.constant 0 : i32
    return %c0_i32, %c0_i32_0, %c0_i32_1, %c0_i32_2 : i32, i32, i32, i32
  }
  func.func @transform_2(%arg0: i32, %arg1: i32, %arg2: i32) -> (i32, i32) {
    %c0_i32 = arith.constant 0 : i32
    %c0_i32_0 = arith.constant 0 : i32
    %c0_i32_1 = arith.constant 0 : i32
    return %c0_i32, %c0_i32_0 : i32, i32
  }
  func.func @transform_3(%arg0: i32, %arg1: i32, %arg2: i32) -> (i32, i32, i32, i32) {
    %c0_i32 = arith.constant 0 : i32
    %c0_i32_0 = arith.constant 0 : i32
    %c0_i32_1 = arith.constant 0 : i32
    return %arg0, %arg1, %c0_i32, %c0_i32_0 : i32, i32, i32, i32
  }
}

module attributes {stable_mosaic.version = 11 : i64} {
  func.func @kernel(%arg0: i32, %arg1: i32, %arg2: i32, %arg3: memref<1x1x22x64xbf16, #tpu.memory_space<vmem>>, %arg4: memref<7x7x64x128xbf16, #tpu.memory_space<vmem>>, %arg5: memref<1x128xf32, #tpu.memory_space<vmem>>, %arg6: memref<1x1x16x128xf32, #tpu.memory_space<vmem>>, %arg7: memref<16x128xf32, #tpu.memory_space<vmem>>) attributes {dimension_semantics = [#tpu.dimension_semantics<parallel>, #tpu.dimension_semantics<parallel>, #tpu.dimension_semantics<arbitrary>], iteration_bounds = array<i64: 2, 16, 7>, scalar_prefetch = 0 : i64, scratch_operands = 1 : i64, tpu.core_type = #tpu.core_type<tc>, window_params = [{transform_indices = @transform_0, window_bounds = array<i64: 1, 1, 22, 64>}, {pipeline_mode = #tpu.pipeline_mode<synchronous>, transform_indices = @transform_1, window_bounds = array<i64: 7, 7, 64, 128>}, {pipeline_mode = #tpu.pipeline_mode<synchronous>, transform_indices = @transform_2, window_bounds = array<i64: 1, 128>}, {transform_indices = @transform_3, window_bounds = array<i64: 1, 1, 16, 128>}]} {
    %c0_i32 = arith.constant 0 : i32
    %0 = arith.cmpi eq, %arg2, %c0_i32 : i32
    %1 = arith.extui %0 : i1 to i32
    %c0_i32_0 = arith.constant 0 : i32
    %2 = arith.cmpi ne, %1, %c0_i32_0 : i32
    scf.if %2 {
      %cst_78 = arith.constant 0.000000e+00 : f32
      %69 = vector.broadcast %cst_78 : f32 to vector<16x128xf32>
      %c0_79 = arith.constant 0 : index
      %c0_80 = arith.constant 0 : index
      %70 = vector.load %arg7[%c0_79, %c0_80] : memref<16x128xf32, #tpu.memory_space<vmem>>, vector<16x128xf32>
      tpu.vector_store %arg7[%c0_79, %c0_80], %69 {strides = array<i32>} : memref<16x128xf32, #tpu.memory_space<vmem>>, vector<16x128xf32>,
    } else {
    }
    %c0 = arith.constant 0 : index
    %c0_1 = arith.constant 0 : index
    %c0_2 = arith.constant 0 : index
    %c0_3 = arith.constant 0 : index
    %3 = vector.load %arg3[%c0, %c0_1, %c0_2, %c0_3] : memref<1x1x22x64xbf16, #tpu.memory_space<vmem>>, vector<1x1x16x64xbf16>
    %4 = vector.shape_cast %3 : vector<1x1x16x64xbf16> to vector<16x64xbf16>
    %5 = arith.index_cast %arg2 : i32 to index
    %c0_4 = arith.constant 0 : index
    %c0_5 = arith.constant 0 : index
    %c0_6 = arith.constant 0 : index
    %6 = vector.load %arg4[%5, %c0_4, %c0_5, %c0_6] : memref<7x7x64x128xbf16, #tpu.memory_space<vmem>>, vector<1x1x64x128xbf16>
    %7 = vector.shape_cast %6 : vector<1x1x64x128xbf16> to vector<64x128xbf16>
    %c0_7 = arith.constant 0 : index
    %c0_8 = arith.constant 0 : index
    %8 = vector.load %arg7[%c0_7, %c0_8] : memref<16x128xf32, #tpu.memory_space<vmem>>, vector<16x128xf32>
    %cst = arith.constant dense<0.000000e+00> : vector<16x128xf32>
    %9 = tpu.matmul %4, %7, %cst {dimension_numbers = #tpu.dot_dimension_numbers<[1], [0], [0], [1], [0, 0, 1, 1], [], []>} : vector<16x64xbf16>, vector<64x128xbf16>, vector<16x128xf32> -> vector<16x128xf32>
    %10 = arith.addf %8, %9 : vector<16x128xf32>
    %c0_9 = arith.constant 0 : index
    %c0_10 = arith.constant 0 : index
    %11 = vector.load %arg7[%c0_9, %c0_10] : memref<16x128xf32, #tpu.memory_space<vmem>>, vector<16x128xf32>
    tpu.vector_store %arg7[%c0_9, %c0_10], %10 {strides = array<i32>} : memref<16x128xf32, #tpu.memory_space<vmem>>, vector<16x128xf32>,
    %c0_11 = arith.constant 0 : index
    %c0_12 = arith.constant 0 : index
    %c1 = arith.constant 1 : index
    %c0_13 = arith.constant 0 : index
    %12 = vector.load %arg3[%c0_11, %c0_12, %c1, %c0_13] : memref<1x1x22x64xbf16, #tpu.memory_space<vmem>>, vector<1x1x16x64xbf16>
    %13 = vector.shape_cast %12 : vector<1x1x16x64xbf16> to vector<16x64xbf16>
    %14 = arith.index_cast %arg2 : i32 to index
    %c1_14 = arith.constant 1 : index
    %c0_15 = arith.constant 0 : index
    %c0_16 = arith.constant 0 : index
    %15 = vector.load %arg4[%14, %c1_14, %c0_15, %c0_16] : memref<7x7x64x128xbf16, #tpu.memory_space<vmem>>, vector<1x1x64x128xbf16>
    %16 = vector.shape_cast %15 : vector<1x1x64x128xbf16> to vector<64x128xbf16>
    %c0_17 = arith.constant 0 : index
    %c0_18 = arith.constant 0 : index
    %17 = vector.load %arg7[%c0_17, %c0_18] : memref<16x128xf32, #tpu.memory_space<vmem>>, vector<16x128xf32>
    %cst_19 = arith.constant dense<0.000000e+00> : vector<16x128xf32>
    %18 = tpu.matmul %13, %16, %cst_19 {dimension_numbers = #tpu.dot_dimension_numbers<[1], [0], [0], [1], [0, 0, 1, 1], [], []>} : vector<16x64xbf16>, vector<64x128xbf16>, vector<16x128xf32> -> vector<16x128xf32>
    %19 = arith.addf %17, %18 : vector<16x128xf32>
    %c0_20 = arith.constant 0 : index
    %c0_21 = arith.constant 0 : index
    %20 = vector.load %arg7[%c0_20, %c0_21] : memref<16x128xf32, #tpu.memory_space<vmem>>, vector<16x128xf32>
    tpu.vector_store %arg7[%c0_20, %c0_21], %19 {strides = array<i32>} : memref<16x128xf32, #tpu.memory_space<vmem>>, vector<16x128xf32>,
    %c0_22 = arith.constant 0 : index
    %c0_23 = arith.constant 0 : index
    %c2 = arith.constant 2 : index
    %c0_24 = arith.constant 0 : index
    %21 = vector.load %arg3[%c0_22, %c0_23, %c2, %c0_24] : memref<1x1x22x64xbf16, #tpu.memory_space<vmem>>, vector<1x1x16x64xbf16>
    %22 = vector.shape_cast %21 : vector<1x1x16x64xbf16> to vector<16x64xbf16>
    %23 = arith.index_cast %arg2 : i32 to index
    %c2_25 = arith.constant 2 : index
    %c0_26 = arith.constant 0 : index
    %c0_27 = arith.constant 0 : index
    %24 = vector.load %arg4[%23, %c2_25, %c0_26, %c0_27] : memref<7x7x64x128xbf16, #tpu.memory_space<vmem>>, vector<1x1x64x128xbf16>
    %25 = vector.shape_cast %24 : vector<1x1x64x128xbf16> to vector<64x128xbf16>
    %c0_28 = arith.constant 0 : index
    %c0_29 = arith.constant 0 : index
    %26 = vector.load %arg7[%c0_28, %c0_29] : memref<16x128xf32, #tpu.memory_space<vmem>>, vector<16x128xf32>
    %cst_30 = arith.constant dense<0.000000e+00> : vector<16x128xf32>
    %27 = tpu.matmul %22, %25, %cst_30 {dimension_numbers = #tpu.dot_dimension_numbers<[1], [0], [0], [1], [0, 0, 1, 1], [], []>} : vector<16x64xbf16>, vector<64x128xbf16>, vector<16x128xf32> -> vector<16x128xf32>
    %28 = arith.addf %26, %27 : vector<16x128xf32>
    %c0_31 = arith.constant 0 : index
    %c0_32 = arith.constant 0 : index
    %29 = vector.load %arg7[%c0_31, %c0_32] : memref<16x128xf32, #tpu.memory_space<vmem>>, vector<16x128xf32>
    tpu.vector_store %arg7[%c0_31, %c0_32], %28 {strides = array<i32>} : memref<16x128xf32, #tpu.memory_space<vmem>>, vector<16x128xf32>,
    %c0_33 = arith.constant 0 : index
    %c0_34 = arith.constant 0 : index
    %c3 = arith.constant 3 : index
    %c0_35 = arith.constant 0 : index
    %30 = vector.load %arg3[%c0_33, %c0_34, %c3, %c0_35] : memref<1x1x22x64xbf16, #tpu.memory_space<vmem>>, vector<1x1x16x64xbf16>
    %31 = vector.shape_cast %30 : vector<1x1x16x64xbf16> to vector<16x64xbf16>
    %32 = arith.index_cast %arg2 : i32 to index
    %c3_36 = arith.constant 3 : index
    %c0_37 = arith.constant 0 : index
    %c0_38 = arith.constant 0 : index
    %33 = vector.load %arg4[%32, %c3_36, %c0_37, %c0_38] : memref<7x7x64x128xbf16, #tpu.memory_space<vmem>>, vector<1x1x64x128xbf16>
    %34 = vector.shape_cast %33 : vector<1x1x64x128xbf16> to vector<64x128xbf16>
    %c0_39 = arith.constant 0 : index
    %c0_40 = arith.constant 0 : index
    %35 = vector.load %arg7[%c0_39, %c0_40] : memref<16x128xf32, #tpu.memory_space<vmem>>, vector<16x128xf32>
    %cst_41 = arith.constant dense<0.000000e+00> : vector<16x128xf32>
    %36 = tpu.matmul %31, %34, %cst_41 {dimension_numbers = #tpu.dot_dimension_numbers<[1], [0], [0], [1], [0, 0, 1, 1], [], []>} : vector<16x64xbf16>, vector<64x128xbf16>, vector<16x128xf32> -> vector<16x128xf32>
    %37 = arith.addf %35, %36 : vector<16x128xf32>
    %c0_42 = arith.constant 0 : index
    %c0_43 = arith.constant 0 : index
    %38 = vector.load %arg7[%c0_42, %c0_43] : memref<16x128xf32, #tpu.memory_space<vmem>>, vector<16x128xf32>
    tpu.vector_store %arg7[%c0_42, %c0_43], %37 {strides = array<i32>} : memref<16x128xf32, #tpu.memory_space<vmem>>, vector<16x128xf32>,
    %c0_44 = arith.constant 0 : index
    %c0_45 = arith.constant 0 : index
    %c4 = arith.constant 4 : index
    %c0_46 = arith.constant 0 : index
    %39 = vector.load %arg3[%c0_44, %c0_45, %c4, %c0_46] : memref<1x1x22x64xbf16, #tpu.memory_space<vmem>>, vector<1x1x16x64xbf16>
    %40 = vector.shape_cast %39 : vector<1x1x16x64xbf16> to vector<16x64xbf16>
    %41 = arith.index_cast %arg2 : i32 to index
    %c4_47 = arith.constant 4 : index
    %c0_48 = arith.constant 0 : index
    %c0_49 = arith.constant 0 : index
    %42 = vector.load %arg4[%41, %c4_47, %c0_48, %c0_49] : memref<7x7x64x128xbf16, #tpu.memory_space<vmem>>, vector<1x1x64x128xbf16>
    %43 = vector.shape_cast %42 : vector<1x1x64x128xbf16> to vector<64x128xbf16>
    %c0_50 = arith.constant 0 : index
    %c0_51 = arith.constant 0 : index
    %44 = vector.load %arg7[%c0_50, %c0_51] : memref<16x128xf32, #tpu.memory_space<vmem>>, vector<16x128xf32>
    %cst_52 = arith.constant dense<0.000000e+00> : vector<16x128xf32>
    %45 = tpu.matmul %40, %43, %cst_52 {dimension_numbers = #tpu.dot_dimension_numbers<[1], [0], [0], [1], [0, 0, 1, 1], [], []>} : vector<16x64xbf16>, vector<64x128xbf16>, vector<16x128xf32> -> vector<16x128xf32>
    %46 = arith.addf %44, %45 : vector<16x128xf32>
    %c0_53 = arith.constant 0 : index
    %c0_54 = arith.constant 0 : index
    %47 = vector.load %arg7[%c0_53, %c0_54] : memref<16x128xf32, #tpu.memory_space<vmem>>, vector<16x128xf32>
    tpu.vector_store %arg7[%c0_53, %c0_54], %46 {strides = array<i32>} : memref<16x128xf32, #tpu.memory_space<vmem>>, vector<16x128xf32>,
    %c0_55 = arith.constant 0 : index
    %c0_56 = arith.constant 0 : index
    %c5 = arith.constant 5 : index
    %c0_57 = arith.constant 0 : index
    %48 = vector.load %arg3[%c0_55, %c0_56, %c5, %c0_57] : memref<1x1x22x64xbf16, #tpu.memory_space<vmem>>, vector<1x1x16x64xbf16>
    %49 = vector.shape_cast %48 : vector<1x1x16x64xbf16> to vector<16x64xbf16>
    %50 = arith.index_cast %arg2 : i32 to index
    %c5_58 = arith.constant 5 : index
    %c0_59 = arith.constant 0 : index
    %c0_60 = arith.constant 0 : index
    %51 = vector.load %arg4[%50, %c5_58, %c0_59, %c0_60] : memref<7x7x64x128xbf16, #tpu.memory_space<vmem>>, vector<1x1x64x128xbf16>
    %52 = vector.shape_cast %51 : vector<1x1x64x128xbf16> to vector<64x128xbf16>
    %c0_61 = arith.constant 0 : index
    %c0_62 = arith.constant 0 : index
    %53 = vector.load %arg7[%c0_61, %c0_62] : memref<16x128xf32, #tpu.memory_space<vmem>>, vector<16x128xf32>
    %cst_63 = arith.constant dense<0.000000e+00> : vector<16x128xf32>
    %54 = tpu.matmul %49, %52, %cst_63 {dimension_numbers = #tpu.dot_dimension_numbers<[1], [0], [0], [1], [0, 0, 1, 1], [], []>} : vector<16x64xbf16>, vector<64x128xbf16>, vector<16x128xf32> -> vector<16x128xf32>
    %55 = arith.addf %53, %54 : vector<16x128xf32>
    %c0_64 = arith.constant 0 : index
    %c0_65 = arith.constant 0 : index
    %56 = vector.load %arg7[%c0_64, %c0_65] : memref<16x128xf32, #tpu.memory_space<vmem>>, vector<16x128xf32>
    tpu.vector_store %arg7[%c0_64, %c0_65], %55 {strides = array<i32>} : memref<16x128xf32, #tpu.memory_space<vmem>>, vector<16x128xf32>,
    %c0_66 = arith.constant 0 : index
    %c0_67 = arith.constant 0 : index
    %c6 = arith.constant 6 : index
    %c0_68 = arith.constant 0 : index
    %57 = vector.load %arg3[%c0_66, %c0_67, %c6, %c0_68] : memref<1x1x22x64xbf16, #tpu.memory_space<vmem>>, vector<1x1x16x64xbf16>
    %58 = vector.shape_cast %57 : vector<1x1x16x64xbf16> to vector<16x64xbf16>
    %59 = arith.index_cast %arg2 : i32 to index
    %c6_69 = arith.constant 6 : index
    %c0_70 = arith.constant 0 : index
    %c0_71 = arith.constant 0 : index
    %60 = vector.load %arg4[%59, %c6_69, %c0_70, %c0_71] : memref<7x7x64x128xbf16, #tpu.memory_space<vmem>>, vector<1x1x64x128xbf16>
    %61 = vector.shape_cast %60 : vector<1x1x64x128xbf16> to vector<64x128xbf16>
    %c0_72 = arith.constant 0 : index
    %c0_73 = arith.constant 0 : index
    %62 = vector.load %arg7[%c0_72, %c0_73] : memref<16x128xf32, #tpu.memory_space<vmem>>, vector<16x128xf32>
    %cst_74 = arith.constant dense<0.000000e+00> : vector<16x128xf32>
    %63 = tpu.matmul %58, %61, %cst_74 {dimension_numbers = #tpu.dot_dimension_numbers<[1], [0], [0], [1], [0, 0, 1, 1], [], []>} : vector<16x64xbf16>, vector<64x128xbf16>, vector<16x128xf32> -> vector<16x128xf32>
    %64 = arith.addf %62, %63 : vector<16x128xf32>
    %c0_75 = arith.constant 0 : index
    %c0_76 = arith.constant 0 : index
    %65 = vector.load %arg7[%c0_75, %c0_76] : memref<16x128xf32, #tpu.memory_space<vmem>>, vector<16x128xf32>
    tpu.vector_store %arg7[%c0_75, %c0_76], %64 {strides = array<i32>} : memref<16x128xf32, #tpu.memory_space<vmem>>, vector<16x128xf32>,
    %c6_i32 = arith.constant 6 : i32
    %66 = arith.cmpi eq, %arg2, %c6_i32 : i32
    %67 = arith.extui %66 : i1 to i32
    %c0_i32_77 = arith.constant 0 : i32
    %68 = arith.cmpi ne, %67, %c0_i32_77 : i32
    scf.if %68 {
      %c0_78 = arith.constant 0 : index
      %c0_79 = arith.constant 0 : index
      %69 = vector.load %arg7[%c0_78, %c0_79] : memref<16x128xf32, #tpu.memory_space<vmem>>, vector<16x128xf32>
      %c0_80 = arith.constant 0 : index
      %c0_81 = arith.constant 0 : index
      %70 = vector.load %arg5[%c0_80, %c0_81] : memref<1x128xf32, #tpu.memory_space<vmem>>, vector<1x128xf32>
      %71 = vector.broadcast %70 : vector<1x128xf32> to vector<16x128xf32>
      %72 = arith.addf %69, %71 : vector<16x128xf32>
      %73 = math.tanh %72 : vector<16x128xf32>
      %c0_82 = arith.constant 0 : index
      %c0_83 = arith.constant 0 : index
      %c0_84 = arith.constant 0 : index
      %c0_85 = arith.constant 0 : index
      %74 = vector.load %arg6[%c0_82, %c0_83, %c0_84, %c0_85] : memref<1x1x16x128xf32, #tpu.memory_space<vmem>>, vector<1x1x16x128xf32>
      %75 = vector.shape_cast %74 : vector<1x1x16x128xf32> to vector<16x128xf32>
      %76 = vector.shape_cast %73 : vector<16x128xf32> to vector<1x1x16x128xf32>
      tpu.vector_store %arg6[%c0_82, %c0_83, %c0_84, %c0_85], %76 {strides = array<i32>} : memref<1x1x16x128xf32, #tpu.memory_space<vmem>>, vector<1x1x16x128xf32>,
    } else {
    }
    return
  }
  func.func @transform_0(%arg0: i32, %arg1: i32, %arg2: i32) -> (i32, i32, i32, i32) {
    %0 = arith.addi %arg1, %arg2 : i32
    %c0_i32 = arith.constant 0 : i32
    %c0_i32_0 = arith.constant 0 : i32
    %c0_i32_1 = arith.constant 0 : i32
    return %arg0, %0, %c0_i32, %c0_i32_0 : i32, i32, i32, i32
  }
  func.func @transform_1(%arg0: i32, %arg1: i32, %arg2: i32) -> (i32, i32, i32, i32) {
    %c0_i32 = arith.constant 0 : i32
    %c0_i32_0 = arith.constant 0 : i32
    %c0_i32_1 = arith.constant 0 : i32
    %c0_i32_2 = arith.constant 0 : i32
    %c0_i32_3 = arith.constant 0 : i32
    return %c0_i32, %c0_i32_0, %c0_i32_1, %c0_i32_2 : i32, i32, i32, i32
  }
  func.func @transform_2(%arg0: i32, %arg1: i32, %arg2: i32) -> (i32, i32) {
    %c0_i32 = arith.constant 0 : i32
    %c0_i32_0 = arith.constant 0 : i32
    %c0_i32_1 = arith.constant 0 : i32
    return %c0_i32, %c0_i32_0 : i32, i32
  }
  func.func @transform_3(%arg0: i32, %arg1: i32, %arg2: i32) -> (i32, i32, i32, i32) {
    %c0_i32 = arith.constant 0 : i32
    %c0_i32_0 = arith.constant 0 : i32
    %c0_i32_1 = arith.constant 0 : i32
    return %arg0, %arg1, %c0_i32, %c0_i32_0 : i32, i32, i32, i32
  }
}

</mosaic_0001>

<bundles_post_ra>
// kernel: generator_forward.41
= control target key start
LH: loop header
LB: loop body
LE: loop exit
PB: predicated region body
PF: predicated region fallthrough
CT: control target
= control target key end

     0   :  { %s555_s9 = smov 0   ;;  %s557_s10 = smov 0   ;;  %s703_s0 = inlined_call_operand.vmem [shape: f32[2,256,64], index: 0, kind: input, shape index: {}]   ;;  %s704_s1 = inlined_call_operand.vmem [shape: f32[2,1,64], index: 1, kind: output, shape index: {0}]   ;;  %s705_s2 = inlined_call_operand.vmem [shape: f32[2,1,64], index: 2, kind: output, shape index: {1}]  }
   0x1   :  { %s559_s11 = smov 0  }
   0x2 LB: > { %s25_s12 = sadd.s32 1, %s533_s10  ;;  %p484_p0 = scmp.ge.s32.totalorder %s537_s11, 1  ;;  %s537_s11 = sphi %s559_s11, %s13_s11   ;;  %s533_s10 = sphi %s557_s10, %s707_s10   ;;  %s529_s9 = sphi %s555_s9, %s706_s9  }
   0x3   : > { %p27_p1 = scmp.ge.s32.totalorder %s25_s12, 2  ;;  %p134_p2 = scmp.lt.s32.totalorder %s537_s11, 3 }
   0x5   : > { %s709_s12 = smov (%p27_p1, %s25_s12), 0  ;;  %p135_p3 = pnand %p484_p0, %p134_p2 }
   0x6   : > { %p162_p4 = scmp.lt.s32.totalorder (!%p135_p3), %s529_s9, 1 }
   0x7   : > { %138 = sbr.rel (%p135_p3) target bundleno = 98 (0x62), region = 24 }
   0xc   : > { %s711_s9 = smov (!%p162_p4, %s529_s9), 1  ;;  %vm181_vm0 = vcmask 516096   ;;  %vm217_vm1 = vcmask 523264   ;;  %v539_v0 = vmov 0.0  }
   0xd   : > { %s489_s13 = sshll.u32 %s711_s9, 8  ;;  %s576_s16 = scalar_lea.vmem %s704_s1, %s711_s9 }
   0xe   : > { %s581_s19 = scalar_lea.vmem %s703_s0, %s489_s13  ;;  %182 = vst.msk [vmem:[%s576_s16] sm:$0x1] %vm181_vm0, %v539_v0  ;;  %s588_s22 = scalar_lea.vmem %s705_s2, %s711_s9 }
   0xf   : > { %v184_v1 = vld [vmem:[%s581_s19] sm:$0xff]  ;;  %v185_v2 = vld [vmem:[%s581_s19 + $0x8] sm:$0xff]  ;;  %v186_v3 = vld [vmem:[%s581_s19 + $0x10] sm:$0xff]  ;;  %183 = vst.msk [vmem:[%s588_s22] sm:$0x1] %vm181_vm0, %v539_v0 }
  0x10   : > { %v218_v4 = vsel %vm217_vm1, %v184_v1, 0.0  ;;  %v219_v5 = vsel %vm217_vm1, %v185_v2, 0.0  ;;  %v221_v6 = vsel %vm217_vm1, %v186_v3, 0.0  ;;  %v187_v7 = vld [vmem:[%s581_s19 + $0x18] sm:$0xff]  ;;  %v188_v10 = vld [vmem:[%s581_s19 + $0x20] sm:$0xff]  ;;  %v189_v13 = vld [vmem:[%s581_s19 + $0x28] sm:$0xff]  ;;  %v291_v21 = vmul.f32 %v184_v1, %v184_v1 }
  0x11   : > { %v220_v8 = vadd.f32 %v219_v5, %v218_v4  ;;  %v223_v9 = vsel %vm217_vm1, %v187_v7, 0.0  ;;  %v225_v12 = vsel %vm217_vm1, %v188_v10, 0.0  ;;  %v227_v15 = vsel %vm217_vm1, %v189_v13, 0.0  ;;  %v190_v16 = vld [vmem:[%s581_s19 + $0x30] sm:$0xff]  ;;  %v191_v19 = vld [vmem:[%s581_s19 + $0x38] sm:$0xff]  ;;  %v192_v25 = vld [vmem:[%s581_s19 + $0x40] sm:$0xff] }
  0x12   : > { %v229_v18 = vsel %vm217_vm1, %v190_v16, 0.0  ;;  %v231_v22 = vsel %vm217_vm1, %v191_v19, 0.0  ;;  %v292_v23 = vmul.f32 %v185_v2, %v185_v2  ;;  %v293_v24 = vmul.f32 %v186_v3, %v186_v3  ;;  %v193_v29 = vld [vmem:[%s581_s19 + $0x48] sm:$0xff]  ;;  %v194_v36 = vld [vmem:[%s581_s19 + $0x50] sm:$0xff]  ;;  %v195_v42 = vld [vmem:[%s581_s19 + $0x58] sm:$0xff] }
  0x13   : > { %v222_v11 = vadd.f32 %v221_v6, %v220_v8  ;;  %v233_v27 = vsel %vm217_vm1, %v192_v25, 0.0  ;;  %v294_v28 = vmul.f32 %v187_v7, %v187_v7  ;;  %v323_v31 = vsel %vm217_vm1, %v291_v21, 0.0  ;;  %v196_v48 = vld [vmem:[%s581_s19 + $0x60] sm:$0xff]  ;;  %v197_v54 = vld [vmem:[%s581_s19 + $0x68] sm:$0xff]  ;;  %v198_v60 = vld [vmem:[%s581_s19 + $0x70] sm:$0xff] }
  0x14   : > { %v235_v32 = vsel %vm217_vm1, %v193_v29, 0.0  ;;  %v295_v33 = vmul.f32 %v188_v10, %v188_v10  ;;  %v324_v34 = vsel %vm217_vm1, %v292_v23, 0.0  ;;  %v326_v35 = vsel %vm217_vm1, %v293_v24, 0.0  ;;  %v199_v2 = vld [vmem:[%s581_s19 + $0x78] sm:$0xff]  ;;  %v200_v8 = vld [vmem:[%s581_s19 + $0x80] sm:$0xff] }
  0x15   : > { %v224_v14 = vadd.f32 %v223_v9, %v222_v11  ;;  %v325_v38 = vadd.f32 %v324_v34, %v323_v31  ;;  %v237_v39 = vsel %vm217_vm1, %v194_v36, 0.0  ;;  %v296_v40 = vmul.f32 %v189_v13, %v189_v13 }
  0x16   : > { %v328_v41 = vsel %vm217_vm1, %v294_v28, 0.0  ;;  %v239_v45 = vsel %vm217_vm1, %v195_v42, 0.0  ;;  %v297_v46 = vmul.f32 %v190_v16, %v190_v16  ;;  %v330_v47 = vsel %vm217_vm1, %v295_v33, 0.0 }
  0x17   : > { %v226_v17 = vadd.f32 %v225_v12, %v224_v14  ;;  %v327_v44 = vadd.f32 %v326_v35, %v325_v38  ;;  %v241_v51 = vsel %vm217_vm1, %v196_v48, 0.0  ;;  %v298_v52 = vmul.f32 %v191_v19, %v191_v19  ;;  %v201_v14 = vld [vmem:[%s581_s19 + $0x88] sm:$0xff] }
  0x18   : > { %v332_v53 = vsel %vm217_vm1, %v296_v40, 0.0  ;;  %v243_v57 = vsel %vm217_vm1, %v197_v54, 0.0  ;;  %v299_v58 = vmul.f32 %v192_v25, %v192_v25  ;;  %v334_v59 = vsel %vm217_vm1, %v297_v46, 0.0  ;;  %v205_v38 = vld [vmem:[%s581_s19 + $0xa8] sm:$0xff] }
  0x19   : > { %v228_v20 = vadd.f32 %v227_v15, %v226_v17  ;;  %v329_v50 = vadd.f32 %v328_v41, %v327_v44  ;;  %v245_v63 = vsel %vm217_vm1, %v198_v60, 0.0  ;;  %v300_v0 = vmul.f32 %v193_v29, %v193_v29  ;;  %v206_v44 = vld [vmem:[%s581_s19 + $0xb0] sm:$0xff] }
  0x1a   : > { %v336_v1 = vsel %vm217_vm1, %v298_v52, 0.0  ;;  %v247_v5 = vsel %vm217_vm1, %v199_v2, 0.0  ;;  %v301_v6 = vmul.f32 %v194_v36, %v194_v36  ;;  %v338_v7 = vsel %vm217_vm1, %v299_v58, 0.0 }
  0x1b   : > { %v230_v26 = vadd.f32 %v229_v18, %v228_v20  ;;  %v331_v56 = vadd.f32 %v330_v47, %v329_v50  ;;  %v249_v11 = vsel %vm217_vm1, %v200_v8, 0.0  ;;  %v302_v12 = vmul.f32 %v195_v42, %v195_v42  ;;  %v202_v20 = vld [vmem:[%s581_s19 + $0x90] sm:$0xff]  ;;  %v207_v50 = vld [vmem:[%s581_s19 + $0xb8] sm:$0xff] }
  0x1c   : > { %v340_v13 = vsel %vm217_vm1, %v300_v0, 0.0  ;;  %v251_v17 = vsel %vm217_vm1, %v201_v14, 0.0  ;;  %v303_v18 = vmul.f32 %v196_v48, %v196_v48  ;;  %v342_v19 = vsel %vm217_vm1, %v301_v6, 0.0 }
  0x1d   : > { %v232_v30 = vadd.f32 %v231_v22, %v230_v26  ;;  %v333_v62 = vadd.f32 %v332_v53, %v331_v56  ;;  %v253_v23 = vsel %vm217_vm1, %v202_v20, 0.0  ;;  %v304_v24 = vmul.f32 %v197_v54, %v197_v54  ;;  %v203_v26 = vld [vmem:[%s581_s19 + $0x98] sm:$0xff]  ;;  %v208_v56 = vld [vmem:[%s581_s19 + $0xc0] sm:$0xff] }
  0x1e   : > { %v344_v25 = vsel %vm217_vm1, %v302_v12, 0.0  ;;  %v255_v29 = vsel %vm217_vm1, %v203_v26, 0.0  ;;  %v346_v31 = vsel %vm217_vm1, %v303_v18, 0.0  ;;  %v306_v36 = vmul.f32 %v199_v2, %v199_v2 }
  0x1f   : > { %v234_v37 = vadd.f32 %v233_v27, %v232_v30  ;;  %v335_v4 = vadd.f32 %v334_v59, %v333_v62  ;;  %v305_v30 = vmul.f32 %v198_v60, %v198_v60  ;;  %v259_v41 = vsel %vm217_vm1, %v205_v38, 0.0  ;;  %v209_v62 = vld [vmem:[%s581_s19 + $0xc8] sm:$0xff] }
  0x20   : > { %v307_v42 = vmul.f32 %v200_v8, %v200_v8  ;;  %v261_v47 = vsel %vm217_vm1, %v206_v44, 0.0  ;;  %v308_v48 = vmul.f32 %v201_v14, %v201_v14  ;;  %v263_v53 = vsel %vm217_vm1, %v207_v50, 0.0 }
  0x21   : > { %v236_v43 = vadd.f32 %v235_v32, %v234_v37  ;;  %v337_v10 = vadd.f32 %v336_v1, %v335_v4  ;;  %v204_v32 = vld [vmem:[%s581_s19 + $0xa0] sm:$0xff]  ;;  %v348_v37 = vsel %vm217_vm1, %v304_v24, 0.0  ;;  %v309_v54 = vmul.f32 %v202_v20, %v202_v20  ;;  %v210_v4 = vld [vmem:[%s581_s19 + $0xd0] sm:$0xff] }
  0x22   : > { %v257_v35 = vsel %vm217_vm1, %v204_v32, 0.0  ;;  %v265_v59 = vsel %vm217_vm1, %v208_v56, 0.0  ;;  %v310_v60 = vmul.f32 %v203_v26, %v203_v26  ;;  %v267_v1 = vsel %vm217_vm1, %v209_v62, 0.0 }
  0x23   : > { %v238_v49 = vadd.f32 %v237_v39, %v236_v43  ;;  %v339_v16 = vadd.f32 %v338_v7, %v337_v10  ;;  %v350_v43 = vsel %vm217_vm1, %v305_v30, 0.0  ;;  %v311_v2 = vmul.f32 %v204_v32, %v204_v32  ;;  %v211_v10 = vld [vmem:[%s581_s19 + $0xd8] sm:$0xff] }
  0x24   : > { %v269_v7 = vsel %vm217_vm1, %v210_v4, 0.0  ;;  %v312_v8 = vmul.f32 %v205_v38, %v205_v38  ;;  %v313_v14 = vmul.f32 %v206_v44, %v206_v44  ;;  %v314_v20 = vmul.f32 %v207_v50, %v207_v50 }
  0x25   : > { %v240_v55 = vadd.f32 %v239_v45, %v238_v49  ;;  %v341_v22 = vadd.f32 %v340_v13, %v339_v16  ;;  %v352_v49 = vsel %vm217_vm1, %v306_v36, 0.0  ;;  %v271_v13 = vsel %vm217_vm1, %v211_v10, 0.0  ;;  %v212_v16 = vld [vmem:[%s581_s19 + $0xe0] sm:$0xff] }
  0x26   : > { %v315_v26 = vmul.f32 %v208_v56, %v208_v56  ;;  %v316_v32 = vmul.f32 %v209_v62, %v209_v62  ;;  %v317_v38 = vmul.f32 %v210_v4, %v210_v4 }
  0x27   : > { %v242_v61 = vadd.f32 %v241_v51, %v240_v55  ;;  %v343_v28 = vadd.f32 %v342_v19, %v341_v22  ;;  %v354_v55 = vsel %vm217_vm1, %v307_v42, 0.0  ;;  %v273_v19 = vsel %vm217_vm1, %v212_v16, 0.0  ;;  %v213_v22 = vld [vmem:[%s581_s19 + $0xe8] sm:$0xff] }
  0x28   : > { %v318_v42 = vmul.f32 %v211_v10, %v211_v10  ;;  %v320_v50 = vmul.f32 %v213_v22, %v213_v22 }
  0x29   : > { %v244_v3 = vadd.f32 %v243_v57, %v242_v61  ;;  %v345_v34 = vadd.f32 %v344_v25, %v343_v28  ;;  %v356_v61 = vsel %vm217_vm1, %v308_v48, 0.0  ;;  %v275_v25 = vsel %vm217_vm1, %v213_v22, 0.0  ;;  %v214_v28 = vld [vmem:[%s581_s19 + $0xf0] sm:$0xff] }
  0x2b   : > { %v246_v9 = vadd.f32 %v245_v63, %v244_v3  ;;  %v347_v40 = vadd.f32 %v346_v31, %v345_v34  ;;  %v358_v3 = vsel %vm217_vm1, %v309_v54, 0.0  ;;  %v277_v31 = vsel %vm217_vm1, %v214_v28, 0.0  ;;  %v215_v34 = vld [vmem:[%s581_s19 + $0xf8] sm:$0xff] }
  0x2c   : > { %v321_v54 = vmul.f32 %v214_v28, %v214_v28 }
  0x2d   : > { %v248_v15 = vadd.f32 %v247_v5, %v246_v9  ;;  %v349_v46 = vadd.f32 %v348_v37, %v347_v40  ;;  %v360_v9 = vsel %vm217_vm1, %v310_v60, 0.0  ;;  %v279_v37 = vsel %vm217_vm1, %v215_v34, 0.0 }
  0x2e   : > { %v382_v62 = vsel %vm217_vm1, %v321_v54, 0.0 }
  0x2f   : > { %v250_v21 = vadd.f32 %v249_v11, %v248_v15  ;;  %v351_v52 = vadd.f32 %v350_v43, %v349_v46  ;;  %v362_v15 = vsel %vm217_vm1, %v311_v2, 0.0  ;;  %v372_v43 = vsel %vm217_vm1, %v316_v32, 0.0 }
  0x30   : > { %v319_v46 = vmul.f32 %v212_v16, %v212_v16 }
  0x31   : > { %v252_v27 = vadd.f32 %v251_v17, %v250_v21  ;;  %v353_v58 = vadd.f32 %v352_v49, %v351_v52  ;;  %v364_v21 = vsel %vm217_vm1, %v312_v8, 0.0 }
  0x33   : > { %v254_v33 = vadd.f32 %v253_v23, %v252_v27  ;;  %v355_v0 = vadd.f32 %v354_v55, %v353_v58  ;;  %v366_v27 = vsel %vm217_vm1, %v313_v14, 0.0  ;;  %v378_v55 = vsel %vm217_vm1, %v319_v46, 0.0 }
  0x34   : > { %v322_v58 = vmul.f32 %v215_v34, %v215_v34 }
  0x35   : > { %v256_v39 = vadd.f32 %v255_v29, %v254_v33  ;;  %v357_v6 = vadd.f32 %v356_v61, %v355_v0  ;;  %v368_v33 = vsel %vm217_vm1, %v314_v20, 0.0 }
  0x36   : > { %v384_v2 = vsel %vm217_vm1, %v322_v58, 0.0 }
  0x37   : > { %v258_v45 = vadd.f32 %v257_v35, %v256_v39  ;;  %v359_v12 = vadd.f32 %v358_v3, %v357_v6  ;;  %v370_v39 = vsel %vm217_vm1, %v315_v26, 0.0 }
  0x39   : > { %v260_v51 = vadd.f32 %v259_v41, %v258_v45  ;;  %v361_v18 = vadd.f32 %v360_v9, %v359_v12  ;;  %v290_v12 = vld [vmem:[%s588_s22] sm:$0x1] }
  0x3b   : > { %v262_v57 = vadd.f32 %v261_v47, %v260_v51  ;;  %v363_v24 = vadd.f32 %v362_v15, %v361_v18  ;;  %v374_v47 = vsel %vm217_vm1, %v317_v38, 0.0  ;;  %v376_v51 = vsel %vm217_vm1, %v318_v42, 0.0 }
  0x3d   : > { %v264_v63 = vadd.f32 %v263_v53, %v262_v57  ;;  %v365_v30 = vadd.f32 %v364_v21, %v363_v24 }
  0x3f   : > { %v266_v5 = vadd.f32 %v265_v59, %v264_v63  ;;  %v367_v36 = vadd.f32 %v366_v27, %v365_v30  ;;  %v380_v59 = vsel %vm217_vm1, %v320_v50, 0.0 }
  0x41   : > { %v268_v11 = vadd.f32 %v267_v1, %v266_v5  ;;  %v369_v41 = vadd.f32 %v368_v33, %v367_v36  ;;  %v216_v1 = vld [vmem:[%s576_s16] sm:$0x1] }
  0x43   : > { %v270_v17 = vadd.f32 %v269_v7, %v268_v11  ;;  %v371_v45 = vadd.f32 %v370_v39, %v369_v41 }
  0x45   : > { %v272_v23 = vadd.f32 %v271_v13, %v270_v17  ;;  %v373_v49 = vadd.f32 %v372_v43, %v371_v45 }
  0x47   : > { %v274_v29 = vadd.f32 %v273_v19, %v272_v23  ;;  %v375_v53 = vadd.f32 %v374_v47, %v373_v49 }
  0x49   : > { %v276_v35 = vadd.f32 %v275_v25, %v274_v29  ;;  %v377_v57 = vadd.f32 %v376_v51, %v375_v53 }
  0x4b   : > { %v278_v40 = vadd.f32 %v277_v31, %v276_v35  ;;  %v379_v61 = vadd.f32 %v378_v55, %v377_v57 }
  0x4d   : > { %v280_v44 = vadd.f32 %v279_v37, %v278_v40  ;;  %v381_v0 = vadd.f32 %v380_v59, %v379_v61 }
  0x4f   : > { %v281_v48 = vrot.slane %v280_v44, 4  ;;  %v383_v4 = vadd.f32 %v382_v62, %v381_v0 }
  0x51   : > { %v282_v52 = vadd.f32 %v281_v48, %v280_v44  ;;  %v385_v6 = vadd.f32 %v384_v2, %v383_v4 }
  0x53   : > { %v283_v56 = vrot.slane %v282_v52, 2  ;;  %v386_v7 = vrot.slane %v385_v6, 4 }
  0x55   : > { %v284_v60 = vadd.f32 %v283_v56, %v282_v52  ;;  %v387_v8 = vadd.f32 %v386_v7, %v385_v6 }
  0x57   : > { %v285_v63 = vrot.slane %v284_v60, 1  ;;  %v388_v9 = vrot.slane %v387_v8, 2 }
  0x59   : > { %v286_v3 = vadd.f32 %v285_v63, %v284_v60  ;;  %v389_v10 = vadd.f32 %v388_v9, %v387_v8 }
  0x5b   : > { %v287_v5 = vadd.f32 %v286_v3, %v216_v1  ;;  %v390_v11 = vrot.slane %v389_v10, 1 }
  0x5d   : > { %289 = vst.msk [vmem:[%s576_s16] sm:$0x1] %vm181_vm0, %v287_v5  ;;  %v391_v13 = vadd.f32 %v390_v11, %v389_v10 }
  0x5f   : > { %v392_v14 = vadd.f32 %v391_v13, %v290_v12 }
  0x61   : > { %393 = vst.msk [vmem:[%s588_s22] sm:$0x1] %vm181_vm0, %v392_v14 }
  0x62 PF: > { %s13_s11 = sadd.s32 1, %s537_s11   ;;  %s706_s9 = smov %s533_s10 }
  0x63   : > { %p10_p5 = scmp.ge.s32.totalorder %s13_s11, 4   ;;  %s707_s10 = smov %s709_s12 }
  0x65   :  { %12 = sbr.rel (!%p10_p5) target bundleno = 2 (0x2), region = 70 }

// kernel: generator_forward.40
= control target key start
LH: loop header
LB: loop body
LE: loop exit
PB: predicated region body
PF: predicated region fallthrough
CT: control target
= control target key end

     0   :  { %s928_s12 = smov 0   ;;  %s930_s13 = smov 0   ;;  %s1082_s0 = inlined_call_operand.vmem [shape: bf16[2,22,22,3], index: 0, kind: input, shape index: {}]   ;;  %s1083_s1 = inlined_call_operand.vmem [shape: bf16[7,7,3,64], index: 1, kind: input, shape index: {}]   ;;  %s1084_s2 = inlined_call_operand.vmem [shape: f32[1,64], index: 2, kind: input, shape index: {}]   ;;  %s1085_s3 = inlined_call_operand.vmem [shape: f32[2,16,16,64], index: 3, kind: output, shape index: {}]  }
   0x1   :  { %s932_s14 = smov 0   ;;  %s934_s15 = smov 0  }
   0x2   :  { %s936_s16 = smov 0   ;;  %s938_s17 = smov 0  }
   0x3   :  { %s940_s18 = smov 0  }
   0x4 LB: > { %s25_s19 = sadd.s32 1, %s892_s15  ;;  %s28_s20 = sadd.s32 1, %s896_s16  ;;  %s904_s18 = sphi %s940_s18, %s13_s18   ;;  %s900_s17 = sphi %s938_s17, %s1091_s17   ;;  %s896_s16 = sphi %s936_s16, %s1090_s16   ;;  %s892_s15 = sphi %s934_s15, %s1089_s15   ;;  %s888_s14 = sphi %s932_s14, %s1088_s14   ;;  %s884_s13 = sphi %s930_s13, %s1087_s13   ;;  %s880_s12 = sphi %s928_s12, %s1086_s12  }
   0x5   : > { %p26_p0 = scmp.ge.s32.totalorder %s25_s19, 7  ;;  %p724_p1 = scmp.ge.s32.totalorder %s904_s18, 1 }
   0x6   : > { %p168_p2 = scmp.lt.s32.totalorder %s904_s18, 225  ;;  %s32_s21 = sadd.s32 1, %s900_s17 }
   0x7   : > { %s1093_s19 = smov (%p26_p0, %s25_s19), 0  ;;  %s1095_s20 = smov (!%p26_p0, %s28_s20), %s896_s16 }
   0x8   : > { %p169_p3 = pnand %p724_p1, %p168_p2  ;;  %p30_p4 = scmp.ge.s32.totalorder %s1095_s20, 16 }
   0x9   : > { %s201_s22 = sadd.s32 (!%p169_p3), %s880_s12, %s884_s13  ;;  %p202_p6 = scmp.lt.s32.totalorder (!%p169_p3), %s888_s14, 1 }
   0xa   : > { %s1097_s20 = smov (%p30_p4, %s1095_s20), 0  ;;  %s1099_s21 = smov (!%p30_p4, %s32_s21), %s900_s17 }
   0xb   : > { %p34_p5 = scmp.ge.s32.totalorder %s1099_s21, 2  ;;  %172 = sbr.rel (%p169_p3) target bundleno = 243 (0xf3), region = 32 }
   0xc   : > { %p204_p7 = scmp.lt.s32.totalorder (!%p169_p3), %s201_s22, 21  ;;  %p214_p8 = scmp.lt.s32.totalorder (!%p169_p3), %s884_s13, 15 }
   0xd   : > { %s1101_s21 = smov (%p34_p5, %s1099_s21), 0  ;;  %p729_p9 = scmp.ne.s32.totalorder (!%p169_p3), %s880_s12, 0 }
  0x10   : > { %s1103_s14 = smov (!%p202_p6, %s888_s14), 1  ;;  %s1105_s22 = smov (!%p204_p7, %s201_s22), 21 }
  0x11   : > { %s790_s23 = smul.u32 66, %s1103_s14  ;;  %s727_s25 = sshll.u32 %s1103_s14, 5 }
  0x12   : > { %s789_s24 = smul.u32 3, %s1105_s22  ;;  %s1107_s13 = smov (!%p214_p8, %s884_s13), 15 }
  0x13   : > { %s726_s28 = sshll.u32 %s1107_s13, 1  ;;  %225 = sbr.rel (%p729_p9) target bundleno = 27 (0x1b), region = 36 }
  0x14   : > { %s208_s26 = sadd.s32 %s790_s23, %s789_s24  ;;  %s218_s5 = sadd.s32 %s727_s25, %s726_s28 }
  0x15   : > { %s725_s27 = sshll.u32 %s208_s26, 2  ;;  %s728_s6 = sshll.u32 %s218_s5, 3 }
  0x16   : > { %s981_s4 = scalar_lea.vmem %s1082_s0, %s725_s27  ;;  %s986_s9 = scalar_lea.vmem %s1085_s3, %s728_s6 }
  0x18   : > { %vm226_vm0 = vcmask 523264   ;;  %v906_v0 = vmov 0.0  }
  0x19   : > { %227 = vst.msk [vmem:[#allocation2] sm:$0xff] %vm226_vm0, %v906_v0 }
  0x1a   : > { %228 = vst.msk [vmem:[#allocation2 + $0x8] sm:$0xff] %vm226_vm0, %v906_v0 }
  0x1b PF: > { %s782_s10 = smul.u32 14, %s880_s12  ;;  %vm246_vm1 = vcmask 1040384   ;;  %vm247_vm2 = vcmask 1041408   ;;  %v907_v1 = vmov 65535   ;;  %v783_v3 = vld [vmem:[%s981_s4] sm:$0xff]  ;;  %vm242_vm4 = vcmask 23552  }
  0x1c   : > { %v248_v2 = vsel %vm246_vm1, 4294967295, %v907_v1  ;;  %v274_v4 = vld [vmem:[%s981_s4 + $0x8] sm:$0x1]  ;;  %vm289_vm3 = vsmask.f32 7424  ;;  %v781_v11 = vld [vmem:[%s981_s4] sm:$0xff] }
  0x1d   : > { %s995_s14 = scalar_lea.vmem %s1083_s1, %s782_s10  ;;  %v997_v5 = vsel %vm247_vm2, %v248_v2, 0  ;;  %v286_v6 = vunpack.c.l.b16 %v274_v4  ;;  %v747_v7 = vld [vmem:[%s981_s4] sm:$0xe]  ;;  %v784_v8 = vld [vmem:[%s981_s4] sm:$0xf0]  ;;  %v291_v12 = vshrl.u32 %v783_v3, 16 }
  0x1e   : > { %v234_v9 = vld [vmem:[%s995_s14] sm:$0x3]  ;;  %v737_v10 = vld [vmem:[%s995_s14 + $0x2] sm:$0x3]  ;;  %v293_v13 = vshll.u32 %v783_v3, 16  ;;  %v748_v14 = vor.u32 %v784_v8, %v747_v7  ;;  %vm343_vm5 = vcmask 1046528  }
  0x1f   : > { %v251_v15 = vand.u32 %v997_v5, %v234_v9  ;;  %v306_v16 = vand.u32 %v737_v10, %v997_v5  ;;  %v288_v17 = vpack.c.b16 %v286_v6, %v286_v6  ;;  %v744_v18 = vld [vmem:[%s995_s14 + $0x4] sm:$0x3]  ;;  %v328_v19 = vld [vmem:[%s981_s4 + $0x8] sm:$0x1]  ;;  %v751_v20 = vld [vmem:[%s995_s14 + $0x6] sm:$0x3] }
  0x20   : > { %v295_v21 = vrot.slane %v293_v13, 1  ;;  %v351_v22 = vand.u32 %v744_v18, %v997_v5  ;;  %v340_v23 = vunpack.c.l.b16 %v328_v19  ;;  %v754_v24 = vld [vmem:[%s981_s4] sm:$0xe]  ;;  %v785_v25 = vld [vmem:[%s981_s4] sm:$0xf0]  ;;  %v410_v27 = vand.u32 %v751_v20, %v997_v5  ;;  %p778_p10 = scmp.ne.s32.totalorder %s880_s12, 6 }
  0x21   : > { %260 = vmatpush.bf16.msra.mxu0 %v251_v15  ;;  %315 = vmatpush.bf16.msra.mxu1 %v306_v16  ;;  %v298_v26 = vshll.u32 %v288_v17, 16  ;;  %v373_v28 = vld [vmem:[%s981_s4 + $0x8] sm:$0x3]  ;;  %v755_v29 = vor.u32 %v785_v25, %v754_v24  ;;  %v344_v32 = vrot.slane %v748_v14, 1  ;;  %v761_v42 = vld [vmem:[%s981_s4] sm:$0xc] }
  0x22   : > { %v296_v30 = vor.u32 %v295_v21, %v291_v12  ;;  %360 = vmatpush.bf16.msra.mxu2 %v351_v22  ;;  %v342_v31 = vpack.c.b16 %v340_v23, %v340_v23  ;;  %v385_v33 = vunpack.c.l.b16 %v373_v28  ;;  %v758_v34 = vld [vmem:[%s995_s14 + $0x8] sm:$0x3]  ;;  %419 = vmatpush.bf16.msra.mxu3 %v410_v27  ;;  %v765_v43 = vld [vmem:[%s995_s14 + $0xa] sm:$0x3]  ;;  %v772_v44 = vld [vmem:[%s995_s14 + $0xc] sm:$0x3] }
  0x23   : > { %v300_v35 = vrot.slane %v298_v26, 1  ;;  %v390_v36 = vshrl.u32 %v755_v29, 16  ;;  %v393_v37 = vshll.u32 %v755_v29, 16  ;;  %v455_v38 = vand.u32 %v758_v34, %v997_v5  ;;  %v432_v39 = vld [vmem:[%s981_s4 + $0x8] sm:$0x3]  ;;  %v235_v27 = vld [vmem:[#allocation2] sm:$0xff] }
  0x24   : > { %735 = vmatmul.msk.bf16.vlgmr.msra.gmra.mxu0 %vm242_vm4, %v781_v11  ;;  %v345_v40 = vrot.slane %v342_v31, 1  ;;  %v387_v41 = vpack.c.b16 %v385_v33, %v385_v33  ;;  %v786_v48 = vld [vmem:[%s981_s4] sm:$0xf0]  ;;  %v444_v49 = vunpack.c.l.b16 %v432_v39  ;;  %v768_v50 = vld [vmem:[%s981_s4] sm:$0xc]  ;;  %v514_v56 = vand.u32 %v765_v43, %v997_v5 }
  0x25   : > { %v301_v45 = vsel %vm289_vm3, %v296_v30, %v300_v35  ;;  %v392_v46 = vrot.slane %v390_v36, 1  ;;  %v395_v47 = vrot.slane %v393_v37, 2  ;;  %464 = vmatpush.bf16.msrb.mxu0 %v455_v38  ;;  %v787_v54 = vld [vmem:[%s981_s4] sm:$0xf0]  ;;  %v477_v55 = vld [vmem:[%s981_s4 + $0x8] sm:$0x7]  ;;  %v559_v57 = vand.u32 %v772_v44, %v997_v5 }
  0x26   : > { %742 = vmatmul.msk.bf16.vlgmr.msra.gmra.mxu1 %vm242_vm4, %v301_v45  ;;  %v346_v51 = vsel %vm343_vm5, %v344_v32, %v345_v40  ;;  %v398_v52 = vshrl.u32 %v387_v41, 16  ;;  %v401_v53 = vshll.u32 %v387_v41, 16  ;;  %vm388_vm6 = vsmask.f32 6400  ;;  %v775_v58 = vld [vmem:[%s981_s4] sm:$0x8] }
  0x27   : > { %749 = vmatmul.msk.bf16.vlgmr.msra.gmra.mxu2 %vm242_vm4, %v346_v51  ;;  %v396_v59 = vor.u32 %v395_v47, %v392_v46  ;;  %v489_v62 = vunpack.c.l.b16 %v477_v55  ;;  %v788_v63 = vld [vmem:[%s981_s4] sm:$0xf0]  ;;  %v536_v0 = vld [vmem:[%s981_s4 + $0x8] sm:$0x7]  ;;  %v762_v1 = vor.u32 %v786_v48, %v761_v42  ;;  %v446_v2 = vpack.c.b16 %v444_v49, %v444_v49  ;;  %523 = vmatpush.bf16.msrb.mxu1 %v514_v56 }
  0x28   : > { %v400_v60 = vrot.slane %v398_v52, 1  ;;  %v403_v61 = vrot.slane %v401_v53, 2  ;;  %568 = vmatpush.bf16.msrb.mxu2 %v559_v57  ;;  %v769_v3 = vor.u32 %v787_v54, %v768_v50  ;;  %v548_v4 = vunpack.c.l.b16 %v536_v0  ;;  %v236_v30 = vld [vmem:[#allocation2 + $0x8] sm:$0xff] }
  0x29   : > { %v491_v7 = vpack.c.b16 %v489_v62, %v489_v62  ;;  %v776_v10 = vor.u32 %v788_v63, %v775_v58  ;;  %v448_v14 = vrot.slane %v762_v1, 2  ;;  %v449_v15 = vrot.slane %v446_v2, 2 }
  0x2a   : > { %v404_v6 = vor.u32 %v403_v61, %v400_v60  ;;  %v494_v8 = vshrl.u32 %v769_v3, 16  ;;  %v497_v9 = vshll.u32 %v769_v3, 16  ;;  %v550_v13 = vpack.c.b16 %v548_v4, %v548_v4 }
  0x2b   : > { %v502_v11 = vshrl.u32 %v491_v7, 16  ;;  %v505_v12 = vshll.u32 %v491_v7, 16  ;;  %vm447_vm7 = vcmask 1045504   ;;  %vm492_vm8 = vsmask.f32 5376 }
  0x2c   : > { %v405_v5 = vsel %vm388_vm6, %v396_v59, %v404_v6  ;;  %v496_v16 = vrot.slane %v494_v8, 2  ;;  %v499_v17 = vrot.slane %v497_v9, 3  ;;  %v552_v22 = vrot.slane %v776_v10, 3 }
  0x2d   : > { %756 = vmatmul.msk.bf16.vlgmr.msra.gmra.mxu3 %vm242_vm4, %v405_v5  ;;  %v504_v18 = vrot.slane %v502_v11, 2  ;;  %v507_v19 = vrot.slane %v505_v12, 3  ;;  %v553_v23 = vrot.slane %v550_v13, 3  ;;  %v450_v24 = vsel %vm447_vm7, %v448_v14, %v449_v15 }
  0x2e   : > { %v500_v20 = vor.u32 %v499_v17, %v496_v16  ;;  %vm551_vm9 = vcmask 1044480   ;;  %vm269_vm10 = vcmask 523264  }
  0x2f   : > { %v508_v21 = vor.u32 %v507_v19, %v504_v18  ;;  %v554_v26 = vsel %vm551_vm9, %v552_v22, %v553_v23 }
  0x31   : > { %v509_v25 = vsel %vm492_vm8, %v500_v20, %v508_v21 }
  0x34   : > { %763 = vmatmul.msk.bf16.vlgmr.msrb.gmra.mxu0 %vm242_vm4, %v450_v24 }
  0x36   : > { %770 = vmatmul.msk.bf16.vlgmr.msrb.gmra.mxu1 %vm242_vm4, %v509_v25 }
  0x37   : > { %777 = vmatmul.msk.bf16.vlgmr.msrb.gmra.mxu2 %vm242_vm4, %v554_v26 }
  0xa1   : > { %v262_v28 = vpop.f32.mrf.mxu0 }
  0xa2   : > { %v267_v29 = vadd.f32 %v262_v28, %v235_v27 }
  0xa3   : > { %v317_v31 = vpop.f32.mrf.mxu1 }
  0xa4   : > { %270 = vst.msk [vmem:[#allocation2] sm:$0xff] %vm269_vm10, %v267_v29 }
  0xa9   : > { %v264_v32 = vpop.f32.mrf.mxu0 }
  0xaa   : > { %v268_v33 = vadd.f32 %v264_v32, %v236_v30  ;;  %v362_v38 = vpop.f32.mrf.mxu2 }
  0xab   : > { %v279_v34 = vld [vmem:[#allocation2] sm:$0xff]  ;;  %v319_v37 = vpop.f32.mrf.mxu1 }
  0xac   : > { %v322_v35 = vadd.f32 %v317_v31, %v279_v34  ;;  %271 = vst.msk [vmem:[#allocation2 + $0x8] sm:$0xff] %vm269_vm10, %v268_v33 }
  0xae   : > { %324 = vst.msk [vmem:[#allocation2] sm:$0xff] %vm269_vm10, %v322_v35 }
  0xb0   : > { %v421_v44 = vpop.f32.mrf.mxu3 }
  0xb1   : > { %v466_v50 = vpop.f32.mrf.mxu0 }
  0xb2   : > { %v364_v43 = vpop.f32.mrf.mxu2 }
  0xb3   : > { %v280_v36 = vld [vmem:[#allocation2 + $0x8] sm:$0xff]  ;;  %v525_v56 = vpop.f32.mrf.mxu1 }
  0xb4   : > { %v323_v39 = vadd.f32 %v319_v37, %v280_v36 }
  0xb5   : > { %v333_v40 = vld [vmem:[#allocation2] sm:$0xff] }
  0xb6   : > { %325 = vst.msk [vmem:[#allocation2 + $0x8] sm:$0xff] %vm269_vm10, %v323_v39  ;;  %v367_v41 = vadd.f32 %v362_v38, %v333_v40 }
  0xb8   : > { %369 = vst.msk [vmem:[#allocation2] sm:$0xff] %vm269_vm10, %v367_v41  ;;  %v423_v49 = vpop.f32.mrf.mxu3 }
  0xb9   : > { %v468_v55 = vpop.f32.mrf.mxu0 }
  0xba   : > { %v570_v62 = vpop.f32.mrf.mxu2 }
  0xbb   : > { %v527_v61 = vpop.f32.mrf.mxu1 }
  0xbd   : > { %v334_v42 = vld [vmem:[#allocation2 + $0x8] sm:$0xff] }
  0xbe   : > { %v368_v45 = vadd.f32 %v364_v43, %v334_v42 }
  0xbf   : > { %v378_v46 = vld [vmem:[#allocation2] sm:$0xff] }
  0xc0   : > { %370 = vst.msk [vmem:[#allocation2 + $0x8] sm:$0xff] %vm269_vm10, %v368_v45  ;;  %v426_v47 = vadd.f32 %v421_v44, %v378_v46 }
  0xc2   : > { %428 = vst.msk [vmem:[#allocation2] sm:$0xff] %vm269_vm10, %v426_v47  ;;  %v572_v3 = vpop.f32.mrf.mxu2 }
  0xc7   : > { %v379_v48 = vld [vmem:[#allocation2 + $0x8] sm:$0xff] }
  0xc8   : > { %v427_v51 = vadd.f32 %v423_v49, %v379_v48 }
  0xc9   : > { %v437_v52 = vld [vmem:[#allocation2] sm:$0xff] }
  0xca   : > { %429 = vst.msk [vmem:[#allocation2 + $0x8] sm:$0xff] %vm269_vm10, %v427_v51  ;;  %v471_v53 = vadd.f32 %v466_v50, %v437_v52 }
  0xcc   : > { %473 = vst.msk [vmem:[#allocation2] sm:$0xff] %vm269_vm10, %v471_v53 }
  0xd1   : > { %v438_v54 = vld [vmem:[#allocation2 + $0x8] sm:$0xff] }
  0xd2   : > { %v472_v57 = vadd.f32 %v468_v55, %v438_v54 }
  0xd3   : > { %v482_v58 = vld [vmem:[#allocation2] sm:$0xff] }
  0xd4   : > { %474 = vst.msk [vmem:[#allocation2 + $0x8] sm:$0xff] %vm269_vm10, %v472_v57  ;;  %v530_v59 = vadd.f32 %v525_v56, %v482_v58 }
  0xd6   : > { %532 = vst.msk [vmem:[#allocation2] sm:$0xff] %vm269_vm10, %v530_v59 }
  0xdb   : > { %v483_v60 = vld [vmem:[#allocation2 + $0x8] sm:$0xff] }
  0xdc   : > { %v531_v63 = vadd.f32 %v527_v61, %v483_v60 }
  0xdd   : > { %v541_v0 = vld [vmem:[#allocation2] sm:$0xff] }
  0xde   : > { %533 = vst.msk [vmem:[#allocation2 + $0x8] sm:$0xff] %vm269_vm10, %v531_v63  ;;  %v575_v1 = vadd.f32 %v570_v62, %v541_v0 }
  0xe0   : > { %577 = vst.msk [vmem:[#allocation2] sm:$0xff] %vm269_vm10, %v575_v1 }
  0xe4   : > { %582 = sbr.rel (%p778_p10) target bundleno = 243 (0xf3), region = 40 }
  0xe5   : > { %v542_v2 = vld [vmem:[#allocation2 + $0x8] sm:$0xff] }
  0xe6   : > { %v576_v4 = vadd.f32 %v572_v3, %v542_v2 }
  0xe8   : > { %578 = vst.msk [vmem:[#allocation2 + $0x8] sm:$0xff] %vm269_vm10, %v576_v4 }
  0xe9   : > { %v583_v6 = vld [vmem:[#allocation2] sm:$0xff] }
  0xea   : > { %v849_v7 = vld [vmem:[%s1084_s2] ss:$0 sm:$0xff] }
  0xeb   : > { %v589_v9 = vadd.f32 %v849_v7, %v583_v6 }
  0xed   : > { %591 = vst.msk [vmem:[%s986_s9] sm:$0xff] %vm269_vm10, %v589_v9 }
  0xef   : > { %v584_v8 = vld [vmem:[#allocation2 + $0x8] sm:$0xff] }
  0xf0   : > { %v590_v10 = vadd.f32 %v849_v7, %v584_v8 }
  0xf2   : > { %592 = vst.msk [vmem:[%s986_s9 + $0x8] sm:$0xff] %vm269_vm10, %v590_v10 }
  0xf3 PF: > { %s13_s18 = sadd.s32 1, %s904_s18   ;;  %s1086_s12 = smov %s892_s15 }
  0xf4   : > { %p10_p11 = scmp.ge.s32.totalorder %s13_s18, 226   ;;  %s1087_s13 = smov %s896_s16 }
  0xf5   : > { %s1088_s14 = smov %s900_s17  ;;  %s1089_s15 = smov %s1093_s19 }
  0xf6   : > { %s1090_s16 = smov %s1097_s20  ;;  %s1091_s17 = smov %s1101_s21 }
  0xf7   :  { %12 = sbr.rel (!%p10_p11) target bundleno = 4 (0x4), region = 77 }

// kernel: generator_forward.42
= control target key start
LH: loop header
LB: loop body
LE: loop exit
PB: predicated region body
PF: predicated region fallthrough
CT: control target
= control target key end

     0   :  { %s642_s12 = smov 0   ;;  %s644_s13 = smov 0   ;;  %s870_s0 = inlined_call_operand.vmem [shape: f32[2,256,64], index: 0, kind: input, shape index: {}]   ;;  %s871_s1 = inlined_call_operand.vmem [shape: f32[2,1,64], index: 1, kind: input, shape index: {}]   ;;  %s872_s2 = inlined_call_operand.vmem [shape: f32[2,1,64], index: 2, kind: input, shape index: {}]   ;;  %s873_s3 = inlined_call_operand.vmem [shape: bf16[2,256,64], index: 3, kind: output, shape index: {}]  }
   0x1   :  { %s646_s14 = smov 0  }
   0x2 LB: > { %s25_s15 = sadd.s32 1, %s616_s13  ;;  %p563_p0 = scmp.ge.s32.totalorder %s620_s14, 1  ;;  %s620_s14 = sphi %s646_s14, %s13_s14   ;;  %s616_s13 = sphi %s644_s13, %s877_s13   ;;  %s612_s12 = sphi %s642_s12, %s876_s12  }
   0x3   : > { %p27_p1 = scmp.ge.s32.totalorder %s25_s15, 2  ;;  %p174_p2 = scmp.lt.s32.totalorder %s620_s14, 3 }
   0x5   : > { %s879_s15 = smov (%p27_p1, %s25_s15), 0  ;;  %p175_p3 = pnand %p563_p0, %p174_p2 }
   0x6   : > { %p213_p4 = scmp.lt.s32.totalorder (!%p175_p3), %s612_s12, 1 }
   0x7   : > { %178 = sbr.rel (%p175_p3) target bundleno = 81 (0x51), region = 32 }
   0xc   : > { %s881_s12 = smov (!%p213_p4, %s612_s12), 1  ;;  %vm421_vm3 = vcmask 519168  }
   0xd   : > { %s224_s18 = scalar_lea.vmem %s871_s1, %s881_s12  ;;  %s227_s21 = scalar_lea.vmem %s872_s2, %s881_s12 }
   0xe   : > { %v270_v0 = vld [vmem:[%s224_s18] sm:$0x1]  ;;  %s570_s22 = sshll.u32 %s881_s12, 8  ;;  %s571_s26 = sshll.u32 %s881_s12, 7 }
   0xf   : > { %v271_v1 = vmul.f32 0.00390625, %v270_v0  ;;  %v272_v2 = vld [vmem:[%s227_s21] sm:$0x1]  ;;  %s674_s25 = scalar_lea.vmem %s870_s0, %s570_s22  ;;  %s740_s29 = scalar_lea.vmem %s873_s3, %s571_s26 }
  0x10   : > { %v273_v3 = vmul.f32 0.00390625, %v272_v2  ;;  %v238_v10 = vld [vmem:[%s674_s25] sm:$0xff]  ;;  %v239_v13 = vld [vmem:[%s674_s25 + $0x8] sm:$0xff]  ;;  %v240_v14 = vld [vmem:[%s674_s25 + $0x10] sm:$0xff] }
  0x11   : > { %v274_v4 = vmul.f32 %v271_v1, %v271_v1  ;;  %v677_v11 = vperm.slane %v271_v1, 0  ;;  %v241_v15 = vld [vmem:[%s674_s25 + $0x18] sm:$0xff]  ;;  %v242_v16 = vld [vmem:[%s674_s25 + $0x20] sm:$0xff]  ;;  %v243_v18 = vld [vmem:[%s674_s25 + $0x28] sm:$0xff] }
  0x12   : > { %v244_v19 = vld [vmem:[%s674_s25 + $0x30] sm:$0xff]  ;;  %v245_v20 = vld [vmem:[%s674_s25 + $0x38] sm:$0xff]  ;;  %v246_v22 = vld [vmem:[%s674_s25 + $0x40] sm:$0xff] }
  0x13   : > { %v275_v5 = vsub.f32 %v273_v3, %v274_v4  ;;  %v247_v23 = vld [vmem:[%s674_s25 + $0x48] sm:$0xff]  ;;  %v279_v24 = vsub.f32 %v238_v10, %v677_v11  ;;  %v280_v26 = vsub.f32 %v239_v13, %v677_v11  ;;  %v248_v27 = vld [vmem:[%s674_s25 + $0x50] sm:$0xff]  ;;  %v249_v28 = vld [vmem:[%s674_s25 + $0x58] sm:$0xff]  ;;  %v281_v30 = vsub.f32 %v240_v14, %v677_v11 }
  0x14   : > { %v250_v29 = vld [vmem:[%s674_s25 + $0x60] sm:$0xff]  ;;  %v282_v31 = vsub.f32 %v241_v15, %v677_v11  ;;  %v283_v32 = vsub.f32 %v242_v16, %v677_v11  ;;  %v284_v33 = vsub.f32 %v243_v18, %v677_v11  ;;  %v251_v34 = vld [vmem:[%s674_s25 + $0x68] sm:$0xff]  ;;  %v252_v35 = vld [vmem:[%s674_s25 + $0x70] sm:$0xff]  ;;  %v285_v38 = vsub.f32 %v244_v19, %v677_v11 }
  0x15   : > { %v311_v6 = vadd.f32 1e-05, %v275_v5  ;;  %v704_v36 = vld [vmem:[%s674_s25 + $0x78] sm:$0xff]  ;;  %v286_v39 = vsub.f32 %v245_v20, %v677_v11  ;;  %v287_v40 = vsub.f32 %v246_v22, %v677_v11  ;;  %v288_v42 = vsub.f32 %v247_v23, %v677_v11  ;;  %v727_v53 = vld [vmem:[%s674_s25 + $0x80] sm:$0xff]  ;;  %v730_v54 = vld [vmem:[%s674_s25 + $0x88] sm:$0xff] }
  0x16   : > { %v289_v43 = vsub.f32 %v248_v27, %v677_v11  ;;  %v290_v44 = vsub.f32 %v249_v28, %v677_v11  ;;  %v291_v45 = vsub.f32 %v250_v29, %v677_v11  ;;  %v292_v46 = vsub.f32 %v251_v34, %v677_v11  ;;  %v256_v63 = vld [vmem:[%s674_s25 + $0x90] sm:$0xff]  ;;  %v258_v22 = vld [vmem:[%s674_s25 + $0xa0] sm:$0xff]  ;;  %v259_v23 = vld [vmem:[%s674_s25 + $0xa8] sm:$0xff] }
  0x17   : > { %596 = vrsqrt.f32 %v311_v6  ;;  %vm318_vm0 = vweird.f32 %v311_v6  ;;  %v293_v47 = vsub.f32 %v252_v35, %v677_v11  ;;  %v294_v48 = vsub.f32 %v704_v36, %v677_v11  ;;  %v260_v28 = vld [vmem:[%s674_s25 + $0xb0] sm:$0xff] }
  0x18   : > { %v295_v2 = vsub.f32 %v727_v53, %v677_v11  ;;  %v296_v3 = vsub.f32 %v730_v54, %v677_v11  ;;  %v299_v35 = vsub.f32 %v258_v22, %v677_v11  ;;  %v300_v36 = vsub.f32 %v259_v23, %v677_v11  ;;  %v264_v53 = vld [vmem:[%s674_s25 + $0xd0] sm:$0xff] }
  0x1d   : > { %v597_v7 = vpop.eup %596 }
  0x1e   : > { %v313_v8 = vmul.f32 %v597_v7, %v311_v6  ;;  %vm319_vm1 = vweird.f32 %v597_v7 }
  0x1f   : > { %vm686_vm2 = vmor %vm318_vm0, %vm319_vm1 }
  0x20   : > { %v314_v9 = vmul.f32 %v597_v7, %v313_v8 }
  0x22   : > { %v315_v12 = vmul.f32 0.5, %v314_v9 }
  0x24   : > { %v316_v17 = vsub.f32 1.5, %v315_v12  ;;  %v297_v12 = vsub.f32 %v256_v63, %v677_v11  ;;  %v266_v63 = vld [vmem:[%s674_s25 + $0xe0] sm:$0xff] }
  0x26   : > { %v317_v25 = vmul.f32 %v597_v7, %v316_v17  ;;  %v257_v17 = vld [vmem:[%s674_s25 + $0x98] sm:$0xff] }
  0x28   : > { %v321_v37 = vsel %vm686_vm2, %v597_v7, %v317_v25 }
  0x29   : > { %v711_v41 = vperm.slane %v321_v37, 0  ;;  %v261_v37 = vld [vmem:[%s674_s25 + $0xb8] sm:$0xff] }
  0x2b   : > { %v325_v49 = vmul.f32 %v711_v41, %v279_v24  ;;  %v326_v50 = vmul.f32 %v711_v41, %v280_v26  ;;  %v327_v51 = vmul.f32 %v711_v41, %v281_v30  ;;  %v328_v52 = vmul.f32 %v711_v41, %v282_v31 }
  0x2c   : > { %v329_v55 = vmul.f32 %v711_v41, %v283_v32  ;;  %v330_v56 = vmul.f32 %v711_v41, %v284_v33  ;;  %v331_v57 = vmul.f32 %v711_v41, %v285_v38  ;;  %v332_v58 = vmul.f32 %v711_v41, %v286_v39 }
  0x2d   : > { %v357_v59 = vmax.f32 %v325_v49, 0.0  ;;  %v358_v60 = vmax.f32 %v326_v50, 0.0  ;;  %v359_v61 = vmax.f32 %v327_v51, 0.0  ;;  %v360_v62 = vmax.f32 %v328_v52, 0.0 }
  0x2e   : > { %v361_v0 = vmax.f32 %v329_v55, 0.0  ;;  %v362_v1 = vmax.f32 %v330_v56, 0.0  ;;  %v363_v7 = vmax.f32 %v331_v57, 0.0  ;;  %v364_v10 = vmax.f32 %v332_v58, 0.0  ;;  %v265_v58 = vld [vmem:[%s674_s25 + $0xd8] sm:$0xff] }
  0x2f   : > { %v389_v4 = vpack.c.bf16 %v357_v59, %v357_v59  ;;  %v390_v5 = vpack.c.bf16 %v358_v60, %v358_v60  ;;  %v391_v6 = vpack.c.bf16 %v359_v61, %v359_v61  ;;  %v392_v8 = vpack.c.bf16 %v360_v62, %v360_v62 }
  0x30   : > { %v393_v9 = vpack.c.bf16 %v361_v0, %v361_v0  ;;  %v333_v13 = vmul.f32 %v711_v41, %v287_v40  ;;  %v334_v14 = vmul.f32 %v711_v41, %v288_v42  ;;  %v335_v15 = vmul.f32 %v711_v41, %v289_v43  ;;  %v262_v43 = vld [vmem:[%s674_s25 + $0xc0] sm:$0xff] }
  0x31   : > { %422 = vst.msk [vmem:[%s740_s29] sm:$0xf] %vm421_vm3, %v389_v4  ;;  %v336_v16 = vmul.f32 %v711_v41, %v290_v44  ;;  %v394_v18 = vpack.c.bf16 %v362_v1, %v362_v1  ;;  %v337_v19 = vmul.f32 %v711_v41, %v291_v45  ;;  %v338_v20 = vmul.f32 %v711_v41, %v292_v46  ;;  %v267_v4 = vld [vmem:[%s674_s25 + $0xe8] sm:$0xff] }
  0x32   : > { %423 = vst.msk [vmem:[%s740_s29 + $0x4] sm:$0xf] %vm421_vm3, %v390_v5  ;;  %v339_v21 = vmul.f32 %v711_v41, %v293_v47  ;;  %v395_v24 = vpack.c.bf16 %v363_v7, %v363_v7  ;;  %v365_v25 = vmax.f32 %v333_v13, 0.0  ;;  %v366_v26 = vmax.f32 %v334_v14, 0.0 }
  0x33   : > { %424 = vst.msk [vmem:[%s740_s29 + $0x8] sm:$0xf] %vm421_vm3, %v391_v6  ;;  %v367_v27 = vmax.f32 %v335_v15, 0.0  ;;  %v396_v29 = vpack.c.bf16 %v364_v10, %v364_v10  ;;  %v368_v30 = vmax.f32 %v336_v16, 0.0  ;;  %v340_v31 = vmul.f32 %v711_v41, %v294_v48  ;;  %v263_v48 = vld [vmem:[%s674_s25 + $0xc8] sm:$0xff]  ;;  %v269_v15 = vld [vmem:[%s674_s25 + $0xf8] sm:$0xff] }
  0x34   : > { %425 = vst.msk [vmem:[%s740_s29 + $0xc] sm:$0xf] %vm421_vm3, %v392_v8  ;;  %v298_v32 = vsub.f32 %v257_v17, %v677_v11  ;;  %v397_v33 = vpack.c.bf16 %v365_v25, %v365_v25  ;;  %v369_v34 = vmax.f32 %v337_v19, 0.0  ;;  %v398_v38 = vpack.c.bf16 %v366_v26, %v366_v26 }
  0x35   : > { %426 = vst.msk [vmem:[%s740_s29 + $0x10] sm:$0xf] %vm421_vm3, %v393_v9  ;;  %v370_v39 = vmax.f32 %v338_v20, 0.0  ;;  %v371_v40 = vmax.f32 %v339_v21, 0.0  ;;  %v301_v42 = vsub.f32 %v260_v28, %v677_v11  ;;  %v399_v44 = vpack.c.bf16 %v367_v27, %v367_v27  ;;  %v268_v9 = vld [vmem:[%s674_s25 + $0xf0] sm:$0xff] }
  0x36   : > { %427 = vst.msk [vmem:[%s740_s29 + $0x14] sm:$0xf] %vm421_vm3, %v394_v18  ;;  %v341_v45 = vmul.f32 %v711_v41, %v295_v2  ;;  %v342_v46 = vmul.f32 %v711_v41, %v296_v3  ;;  %v343_v47 = vmul.f32 %v711_v41, %v297_v12  ;;  %v400_v49 = vpack.c.bf16 %v368_v30, %v368_v30 }
  0x37   : > { %428 = vst.msk [vmem:[%s740_s29 + $0x18] sm:$0xf] %vm421_vm3, %v395_v24  ;;  %v372_v50 = vmax.f32 %v340_v31, 0.0  ;;  %v344_v51 = vmul.f32 %v711_v41, %v298_v32  ;;  %v302_v52 = vsub.f32 %v261_v37, %v677_v11  ;;  %v401_v54 = vpack.c.bf16 %v369_v34, %v369_v34 }
  0x38   : > { %429 = vst.msk [vmem:[%s740_s29 + $0x1c] sm:$0xf] %vm421_vm3, %v396_v29  ;;  %v373_v55 = vmax.f32 %v341_v45, 0.0  ;;  %v345_v56 = vmul.f32 %v711_v41, %v299_v35  ;;  %v303_v57 = vsub.f32 %v262_v43, %v677_v11  ;;  %v402_v59 = vpack.c.bf16 %v370_v39, %v370_v39 }
  0x39   : > { %430 = vst.msk [vmem:[%s740_s29 + $0x20] sm:$0xf] %vm421_vm3, %v397_v33  ;;  %v374_v60 = vmax.f32 %v342_v46, 0.0  ;;  %v346_v61 = vmul.f32 %v711_v41, %v300_v36  ;;  %v304_v62 = vsub.f32 %v263_v48, %v677_v11  ;;  %v403_v0 = vpack.c.bf16 %v371_v40, %v371_v40 }
  0x3a   : > { %431 = vst.msk [vmem:[%s740_s29 + $0x24] sm:$0xf] %vm421_vm3, %v398_v38  ;;  %v375_v1 = vmax.f32 %v343_v47, 0.0  ;;  %v347_v2 = vmul.f32 %v711_v41, %v301_v42  ;;  %v305_v3 = vsub.f32 %v264_v53, %v677_v11  ;;  %v404_v5 = vpack.c.bf16 %v372_v50, %v372_v50 }
  0x3b   : > { %432 = vst.msk [vmem:[%s740_s29 + $0x28] sm:$0xf] %vm421_vm3, %v399_v44  ;;  %v376_v6 = vmax.f32 %v344_v51, 0.0  ;;  %v348_v7 = vmul.f32 %v711_v41, %v302_v52  ;;  %v306_v8 = vsub.f32 %v265_v58, %v677_v11  ;;  %v405_v10 = vpack.c.bf16 %v373_v55, %v373_v55 }
  0x3c   : > { %433 = vst.msk [vmem:[%s740_s29 + $0x2c] sm:$0xf] %vm421_vm3, %v400_v49  ;;  %v377_v12 = vmax.f32 %v345_v56, 0.0  ;;  %v349_v13 = vmul.f32 %v711_v41, %v303_v57  ;;  %v307_v14 = vsub.f32 %v266_v63, %v677_v11  ;;  %v406_v16 = vpack.c.bf16 %v374_v60, %v374_v60 }
  0x3d   : > { %434 = vst.msk [vmem:[%s740_s29 + $0x30] sm:$0xf] %vm421_vm3, %v401_v54  ;;  %v378_v17 = vmax.f32 %v346_v61, 0.0  ;;  %v350_v18 = vmul.f32 %v711_v41, %v304_v62  ;;  %v308_v19 = vsub.f32 %v267_v4, %v677_v11  ;;  %v407_v20 = vpack.c.bf16 %v375_v1, %v375_v1 }
  0x3e   : > { %435 = vst.msk [vmem:[%s740_s29 + $0x34] sm:$0xf] %vm421_vm3, %v402_v59  ;;  %v379_v21 = vmax.f32 %v347_v2, 0.0  ;;  %v351_v22 = vmul.f32 %v711_v41, %v305_v3  ;;  %v309_v23 = vsub.f32 %v268_v9, %v677_v11  ;;  %v408_v24 = vpack.c.bf16 %v376_v6, %v376_v6 }
  0x3f   : > { %436 = vst.msk [vmem:[%s740_s29 + $0x38] sm:$0xf] %vm421_vm3, %v403_v0  ;;  %v380_v25 = vmax.f32 %v348_v7, 0.0  ;;  %v352_v26 = vmul.f32 %v711_v41, %v306_v8  ;;  %v310_v27 = vsub.f32 %v269_v15, %v677_v11  ;;  %v409_v28 = vpack.c.bf16 %v377_v12, %v377_v12 }
  0x40   : > { %437 = vst.msk [vmem:[%s740_s29 + $0x3c] sm:$0xf] %vm421_vm3, %v404_v5  ;;  %v381_v29 = vmax.f32 %v349_v13, 0.0  ;;  %v353_v30 = vmul.f32 %v711_v41, %v307_v14  ;;  %v410_v31 = vpack.c.bf16 %v378_v17, %v378_v17  ;;  %v382_v32 = vmax.f32 %v350_v18, 0.0 }
  0x41   : > { %438 = vst.msk [vmem:[%s740_s29 + $0x40] sm:$0xf] %vm421_vm3, %v405_v10  ;;  %v354_v33 = vmul.f32 %v711_v41, %v308_v19  ;;  %v411_v34 = vpack.c.bf16 %v379_v21, %v379_v21  ;;  %v383_v11 = vmax.f32 %v351_v22, 0.0  ;;  %v355_v35 = vmul.f32 %v711_v41, %v309_v23 }
  0x42   : > { %439 = vst.msk [vmem:[%s740_s29 + $0x44] sm:$0xf] %vm421_vm3, %v406_v16  ;;  %v412_v36 = vpack.c.bf16 %v380_v25, %v380_v25  ;;  %v384_v37 = vmax.f32 %v352_v26, 0.0  ;;  %v356_v38 = vmul.f32 %v711_v41, %v310_v27  ;;  %v413_v39 = vpack.c.bf16 %v381_v29, %v381_v29 }
  0x43   : > { %440 = vst.msk [vmem:[%s740_s29 + $0x48] sm:$0xf] %vm421_vm3, %v407_v20  ;;  %v385_v40 = vmax.f32 %v353_v30, 0.0  ;;  %v414_v42 = vpack.c.bf16 %v382_v32, %v382_v32  ;;  %v386_v43 = vmax.f32 %v354_v33, 0.0  ;;  %v415_v44 = vpack.c.bf16 %v383_v11, %v383_v11 }
  0x44   : > { %441 = vst.msk [vmem:[%s740_s29 + $0x4c] sm:$0xf] %vm421_vm3, %v408_v24  ;;  %v387_v45 = vmax.f32 %v355_v35, 0.0  ;;  %v416_v41 = vpack.c.bf16 %v384_v37, %v384_v37  ;;  %v388_v46 = vmax.f32 %v356_v38, 0.0 }
  0x45   : > { %442 = vst.msk [vmem:[%s740_s29 + $0x50] sm:$0xf] %vm421_vm3, %v409_v28  ;;  %v417_v47 = vpack.c.bf16 %v385_v40, %v385_v40  ;;  %v418_v48 = vpack.c.bf16 %v386_v43, %v386_v43 }
  0x46   : > { %443 = vst.msk [vmem:[%s740_s29 + $0x54] sm:$0xf] %vm421_vm3, %v410_v31  ;;  %v419_v49 = vpack.c.bf16 %v387_v45, %v387_v45  ;;  %v420_v50 = vpack.c.bf16 %v388_v46, %v388_v46 }
  0x47   : > { %444 = vst.msk [vmem:[%s740_s29 + $0x58] sm:$0xf] %vm421_vm3, %v411_v34 }
  0x48   : > { %445 = vst.msk [vmem:[%s740_s29 + $0x5c] sm:$0xf] %vm421_vm3, %v412_v36 }
  0x49   : > { %446 = vst.msk [vmem:[%s740_s29 + $0x60] sm:$0xf] %vm421_vm3, %v413_v39 }
  0x4a   : > { %447 = vst.msk [vmem:[%s740_s29 + $0x64] sm:$0xf] %vm421_vm3, %v414_v42 }
  0x4b   : > { %448 = vst.msk [vmem:[%s740_s29 + $0x68] sm:$0xf] %vm421_vm3, %v415_v44 }
  0x4c   : > { %449 = vst.msk [vmem:[%s740_s29 + $0x6c] sm:$0xf] %vm421_vm3, %v416_v41 }
  0x4d   : > { %450 = vst.msk [vmem:[%s740_s29 + $0x70] sm:$0xf] %vm421_vm3, %v417_v47 }
  0x4e   : > { %451 = vst.msk [vmem:[%s740_s29 + $0x74] sm:$0xf] %vm421_vm3, %v418_v48 }
  0x4f   : > { %452 = vst.msk [vmem:[%s740_s29 + $0x78] sm:$0xf] %vm421_vm3, %v419_v49 }
  0x50   : > { %453 = vst.msk [vmem:[%s740_s29 + $0x7c] sm:$0xf] %vm421_vm3, %v420_v50 }
  0x51 PF: > { %s13_s14 = sadd.s32 1, %s620_s14   ;;  %s876_s12 = smov %s616_s13 }
  0x52   : > { %p10_p5 = scmp.ge.s32.totalorder %s13_s14, 4   ;;  %s877_s13 = smov %s879_s15 }
  0x54   :  { %12 = sbr.rel (!%p10_p5) target bundleno = 2 (0x2), region = 68 }

// kernel: generator_forward.45
= control target key start
LH: loop header
LB: loop body
LE: loop exit
PB: predicated region body
PF: predicated region fallthrough
CT: control target
= control target key end

     0   :  { %s625_s12 = smov 0   ;;  %s627_s13 = smov 0   ;;  %s703_s0 = inlined_call_operand.vmem [shape: bf16[2,8,9,64], index: 0, kind: input, shape index: {}]   ;;  %s704_s1 = inlined_call_operand.vmem [shape: bf16[1,2,64,128], index: 1, kind: input, shape index: {}]   ;;  %s705_s2 = inlined_call_operand.vmem [shape: f32[1,128], index: 2, kind: input, shape index: {}]   ;;  %s706_s3 = inlined_call_operand.vmem [shape: f32[2,8,8,128], index: 3, kind: output, shape index: {}]  }
   0x1   :  { %s629_s14 = smov 0   ;;  %s631_s15 = smov 0  }
   0x2   :  { %s633_s16 = smov 0  }
   0x3 LB: > { %s28_s17 = sadd.s32 1, %s595_s14  ;;  %s32_s18 = sadd.s32 1, %s599_s15  ;;  %s603_s16 = sphi %s633_s16, %s13_s16   ;;  %s599_s15 = sphi %s631_s15, %s710_s15   ;;  %s595_s14 = sphi %s629_s14, %s709_s14   ;;  %s591_s13 = sphi %s627_s13, %s708_s13   ;;  %s587_s12 = sphi %s625_s12, %s707_s12  }
   0x4   : > { %p30_p0 = scmp.ge.s32.totalorder %s28_s17, 8  ;;  %p461_p1 = scmp.ge.s32.totalorder %s603_s16, 1 }
   0x5   : > { %p168_p2 = scmp.lt.s32.totalorder %s603_s16, 17 }
   0x6   : > { %s712_s17 = smov (%p30_p0, %s28_s17), 0  ;;  %s714_s18 = smov (!%p30_p0, %s32_s18), %s599_s15 }
   0x7   : > { %p169_p3 = pnand %p461_p1, %p168_p2  ;;  %p34_p4 = scmp.ge.s32.totalorder %s714_s18, 2 }
   0x8   : > { %p201_p5 = scmp.lt.s32.totalorder (!%p169_p3), %s591_s13, 1  ;;  %p203_p6 = scmp.lt.s32.totalorder (!%p169_p3), %s587_s12, 7 }
   0x9   : > { %s716_s18 = smov (%p34_p4, %s714_s18), 0  ;;  %172 = sbr.rel (%p169_p3) target bundleno = 165 (0xa5), region = 32 }
   0xe   : > { %v518_v0 = vld [vmem:[%s704_s1 + $0x18] sm:$0xff]  ;;  %v517_v2 = vld [vmem:[%s704_s1 + $0x10] sm:$0xff]  ;;  %s718_s13 = smov (!%p201_p5, %s591_s13), 1  ;;  %s720_s12 = smov (!%p203_p6, %s587_s12), 7  ;;  %v516_v4 = vld [vmem:[%s704_s1 + $0x8] sm:$0xff]  ;;  %vm262_vm0 = vcmask 523264  }
   0xf   : > { %v523_v1 = vld [vmem:[%s704_s1 + $0x38] sm:$0xff]  ;;  %270 = vmatpush.bf16.msra.mxu0 %v518_v0  ;;  %v522_v3 = vld [vmem:[%s704_s1 + $0x30] sm:$0xff]  ;;  %s463_s27 = sshll.u32 %s718_s13, 4  ;;  %s462_s28 = sshll.u32 %s720_s12, 1  ;;  %v521_v5 = vld [vmem:[%s704_s1 + $0x28] sm:$0xff] }
  0x10   : > { %338 = vmatpush.bf16.msra.mxu1 %v523_v1  ;;  %s207_s6 = sadd.s32 %s463_s27, %s462_s28  ;;  %v515_v8 = vld [vmem:[%s704_s1] sm:$0xff]  ;;  %s465_s22 = sshll.u32 %s718_s13, 3 }
  0x11   : > { %s464_s7 = sshll.u32 %s207_s6, 2  ;;  %v520_v9 = vld [vmem:[%s704_s1 + $0x20] sm:$0xff]  ;;  %s216_s23 = sadd.s32 %s465_s22, %s720_s12 }
  0x12   : > { %s209_s10 = scalar_lea.vmem %s703_s0, %s464_s7  ;;  %s466_s24 = sshll.u32 %s216_s23, 3  ;;  %v564_v17 = vld [vmem:[%s705_s2] ss:$0 sm:$0xff] }
  0x13   : > { %271 = vmatpush.bf16.msra.mxu0 %v517_v2  ;;  %v494_v6 = vld [vmem:[%s209_s10] sm:$0xf]  ;;  %v519_v7 = vld [vmem:[%s209_s10] sm:$0x10]  ;;  %s218_s29 = scalar_lea.vmem %s706_s3, %s466_s24 }
  0x14   : > { %339 = vmatpush.bf16.msra.mxu1 %v522_v3  ;;  %v495_v10 = vor.u32 %v519_v7, %v494_v6  ;;  %v225_v13 = vld [vmem:[%s209_s10] sm:$0xf] }
  0x16   : > { %v301_v11 = vshrl.u32 %v495_v10, 16  ;;  %v303_v12 = vshll.u32 %v495_v10, 16 }
  0x17   : > { %272 = vmatpush.bf16.msra.mxu0 %v516_v4 }
  0x18   : > { %340 = vmatpush.bf16.msra.mxu1 %v521_v5  ;;  %v305_v14 = vrot.slane %v303_v12, 1 }
  0x1a   : > { %v306_v15 = vor.u32 %v305_v14, %v301_v11 }
  0x1b   : > { %273 = vmatpush.bf16.msra.mxu0 %v515_v8 }
  0x1c   : > { %341 = vmatpush.bf16.msra.mxu1 %v520_v9 }
  0x1e   : > { %483 = vmatmul.msk.bf16.vlgmr.msra.gmra.mxu0 %vm262_vm0, %v225_v13 }
  0x1f   : > { %512 = vmatmul.msk.bf16.vlgmr.msra.gmra.mxu1 %vm262_vm0, %v306_v15 }
  0x9b   : > { %v275_v16 = vpop.f32.mrf.mxu0 }
  0x9c   : > { %v343_v18 = vpop.f32.mrf.mxu1 }
  0x9d   : > { %v347_v19 = vadd.f32 %v343_v18, %v275_v16 }
  0x9f   : > { %v357_v20 = vadd.f32 %v564_v17, %v347_v19 }
  0xa1   : > { %358 = vst [vmem:[%s218_s29] sm:$0xff] %v357_v20 }
  0xa3   : > { %v277_v21 = vpop.f32.mrf.mxu0 }
  0xa4   : > { %v345_v22 = vpop.f32.mrf.mxu1 }
  0xa5 PF: > { %s13_s16 = sadd.s32 1, %s603_s16   ;;  %s707_s12 = smov %s595_s14 }
  0xa6   : > { %p10_p7 = scmp.ge.s32.totalorder %s13_s16, 18   ;;  %s708_s13 = smov %s599_s15 }
  0xa7   : > { %s709_s14 = smov %s712_s17  ;;  %s710_s15 = smov %s716_s18 }
  0xa8   :  { %12 = sbr.rel (!%p10_p7) target bundleno = 3 (0x3), region = 72 }

// kernel: generator_forward.44
= control target key start
LH: loop header
LB: loop body
LE: loop exit
PB: predicated region body
PF: predicated region fallthrough
CT: control target
= control target key end

     0   :  { %s555_s12 = smov 0   ;;  %s557_s13 = smov 0   ;;  %s636_s0 = inlined_call_operand.vmem [shape: bf16[2,9,8,64], index: 0, kind: input, shape index: {}]   ;;  %s637_s1 = inlined_call_operand.vmem [shape: bf16[2,1,64,128], index: 1, kind: input, shape index: {}]   ;;  %s638_s2 = inlined_call_operand.vmem [shape: f32[1,128], index: 2, kind: input, shape index: {}]   ;;  %s639_s3 = inlined_call_operand.vmem [shape: f32[2,8,8,128], index: 3, kind: output, shape index: {}]  }
   0x1   :  { %s559_s14 = smov 0   ;;  %s561_s15 = smov 0  }
   0x2   :  { %s563_s16 = smov 0   ;;  %s565_s17 = smov 0  }
   0x3   :  { %s567_s18 = smov 0  }
   0x4 LB: > { %s25_s19 = sadd.s32 1, %s520_s15  ;;  %s28_s20 = sadd.s32 1, %s524_s16  ;;  %s532_s18 = sphi %s567_s18, %s13_s18   ;;  %s528_s17 = sphi %s565_s17, %s645_s17   ;;  %s524_s16 = sphi %s563_s16, %s644_s16   ;;  %s520_s15 = sphi %s561_s15, %s643_s15   ;;  %s516_s14 = sphi %s559_s14, %s642_s14   ;;  %s512_s13 = sphi %s557_s13, %s641_s13   ;;  %s508_s12 = sphi %s555_s12, %s640_s12  }
   0x5   : > { %p26_p0 = scmp.ge.s32.totalorder %s25_s19, 2  ;;  %p387_p1 = scmp.ge.s32.totalorder %s532_s18, 1 }
   0x6   : > { %p167_p2 = scmp.lt.s32.totalorder %s532_s18, 33  ;;  %s32_s21 = sadd.s32 1, %s528_s17 }
   0x7   : > { %s647_s19 = smov (%p26_p0, %s25_s19), 0  ;;  %s649_s20 = smov (!%p26_p0, %s28_s20), %s524_s16 }
   0x8   : > { %p168_p3 = pnand %p387_p1, %p167_p2  ;;  %p30_p4 = scmp.ge.s32.totalorder %s649_s20, 8 }
   0x9   : > { %s198_s22 = sadd.s32 (!%p168_p3), %s508_s12, %s512_s13  ;;  %p199_p6 = scmp.lt.s32.totalorder (!%p168_p3), %s516_s14, 1 }
   0xa   : > { %s651_s20 = smov (%p30_p4, %s649_s20), 0  ;;  %s653_s21 = smov (!%p30_p4, %s32_s21), %s528_s17 }
   0xb   : > { %p34_p5 = scmp.ge.s32.totalorder %s653_s21, 2  ;;  %171 = sbr.rel (%p168_p3) target bundleno = 182 (0xb6), region = 32 }
   0xc   : > { %p201_p7 = scmp.lt.s32.totalorder (!%p168_p3), %s198_s22, 8  ;;  %p210_p8 = scmp.lt.s32.totalorder (!%p168_p3), %s512_s13, 7 }
   0xd   : > { %s655_s21 = smov (%p34_p5, %s653_s21), 0  ;;  %p391_p9 = scmp.ne.s32.totalorder (!%p168_p3), %s508_s12, 0 }
  0x10   : > { %s657_s14 = smov (!%p199_p6, %s516_s14), 1  ;;  %s659_s22 = smov (!%p201_p7, %s198_s22), 8 }
  0x11   : > { %s419_s23 = smul.u32 9, %s657_s14  ;;  %s389_s24 = sshll.u32 %s657_s14, 3 }
  0x12   : > { %s661_s13 = smov (!%p210_p8, %s512_s13), 7  ;;  %220 = sbr.rel (%p391_p9) target bundleno = 25 (0x19), region = 36 }
  0x13   : > { %s204_s25 = sadd.s32 %s419_s23, %s659_s22  ;;  %s213_s27 = sadd.s32 %s389_s24, %s661_s13 }
  0x14   : > { %s388_s26 = sshll.u32 %s204_s25, 2  ;;  %s390_s4 = sshll.u32 %s213_s27, 3 }
  0x15   : > { %s206_s30 = scalar_lea.vmem %s636_s0, %s388_s26  ;;  %s215_s7 = scalar_lea.vmem %s639_s3, %s390_s4 }
  0x17   : > { %v534_v0 = vmov 0.0  }
  0x18   : > { %221 = vst [vmem:[#allocation2] sm:$0xff] %v534_v0 }
  0x19 PF: > { %s414_s8 = sshll.u32 %s508_s12, 5  ;;  %v222_v5 = vld [vmem:[%s206_s30] sm:$0xf]  ;;  %vm259_vm0 = vcmask 523264   ;;  %p411_p10 = scmp.ne.s32.totalorder %s508_s12, 1 }
  0x1a   : > { %s225_s11 = scalar_lea.vmem %s637_s1, %s414_s8 }
  0x1b   : > { %v418_v1 = vld [vmem:[%s225_s11 + $0x18] sm:$0xff]  ;;  %v417_v2 = vld [vmem:[%s225_s11 + $0x10] sm:$0xff]  ;;  %v416_v3 = vld [vmem:[%s225_s11 + $0x8] sm:$0xff] }
  0x1c   : > { %267 = vmatpush.bf16.msra.mxu0 %v418_v1  ;;  %v415_v4 = vld [vmem:[%s225_s11] sm:$0xff] }
  0x1f   : > { %v234_v6 = vld [vmem:[#allocation2] sm:$0xff] }
  0x20   : > { %268 = vmatpush.bf16.msra.mxu0 %v417_v2 }
  0x24   : > { %269 = vmatpush.bf16.msra.mxu0 %v416_v3 }
  0x28   : > { %270 = vmatpush.bf16.msra.mxu0 %v415_v4 }
  0x2b   : > { %410 = vmatmul.msk.bf16.vlgmr.msra.gmra.mxu0 %vm259_vm0, %v222_v5 }
  0xa8   : > { %v272_v7 = vpop.f32.mrf.mxu0 }
  0xa9   : > { %v276_v8 = vadd.f32 %v272_v7, %v234_v6 }
  0xab   : > { %277 = vst [vmem:[#allocation2] sm:$0xff] %v276_v8 }
  0xac   : > { %281 = sbr.rel (%p411_p10) target bundleno = 182 (0xb6), region = 40 }
  0xb0   : > { %v274_v9 = vpop.f32.mrf.mxu0 }
  0xb1   : > { %v477_v11 = vld [vmem:[%s638_s2] ss:$0 sm:$0xff] }
  0xb2   : > { %v282_v10 = vld [vmem:[#allocation2] sm:$0xff] }
  0xb3   : > { %v287_v12 = vadd.f32 %v477_v11, %v282_v10 }
  0xb5   : > { %288 = vst [vmem:[%s215_s7] sm:$0xff] %v287_v12 }
  0xb6 PF: > { %s13_s18 = sadd.s32 1, %s532_s18   ;;  %s640_s12 = smov %s520_s15 }
  0xb7   : > { %p10_p11 = scmp.ge.s32.totalorder %s13_s18, 34   ;;  %s641_s13 = smov %s524_s16 }
  0xb8   : > { %s642_s14 = smov %s528_s17  ;;  %s643_s15 = smov %s647_s19 }
  0xb9   : > { %s644_s16 = smov %s651_s20  ;;  %s645_s17 = smov %s655_s21 }
  0xba   :  { %12 = sbr.rel (!%p10_p11) target bundleno = 4 (0x4), region = 71 }

// kernel: generator_forward.43
= control target key start
LH: loop header
LB: loop body
LE: loop exit
PB: predicated region body
PF: predicated region fallthrough
CT: control target
= control target key end

     0   :  { %s671_s12 = smov 0   ;;  %s673_s13 = smov 0   ;;  %s765_s0 = inlined_call_operand.vmem [shape: bf16[2,9,9,64], index: 0, kind: input, shape index: {}]   ;;  %s766_s1 = inlined_call_operand.vmem [shape: bf16[2,2,64,128], index: 1, kind: input, shape index: {}]   ;;  %s767_s2 = inlined_call_operand.vmem [shape: f32[1,128], index: 2, kind: input, shape index: {}]   ;;  %s768_s3 = inlined_call_operand.vmem [shape: f32[2,8,8,128], index: 3, kind: output, shape index: {}]  }
   0x1   :  { %s675_s14 = smov 0   ;;  %s677_s15 = smov 0  }
   0x2   :  { %s679_s16 = smov 0   ;;  %s681_s17 = smov 0  }
   0x3   :  { %s683_s18 = smov 0  }
   0x4 LB: > { %s25_s19 = sadd.s32 1, %s636_s15  ;;  %s28_s20 = sadd.s32 1, %s640_s16  ;;  %s648_s18 = sphi %s683_s18, %s13_s18   ;;  %s644_s17 = sphi %s681_s17, %s774_s17   ;;  %s640_s16 = sphi %s679_s16, %s773_s16   ;;  %s636_s15 = sphi %s677_s15, %s772_s15   ;;  %s632_s14 = sphi %s675_s14, %s771_s14   ;;  %s628_s13 = sphi %s673_s13, %s770_s13   ;;  %s624_s12 = sphi %s671_s12, %s769_s12  }
   0x5   : > { %p26_p0 = scmp.ge.s32.totalorder %s25_s19, 2  ;;  %p465_p1 = scmp.ge.s32.totalorder %s648_s18, 1 }
   0x6   : > { %p168_p2 = scmp.lt.s32.totalorder %s648_s18, 33  ;;  %s32_s21 = sadd.s32 1, %s644_s17 }
   0x7   : > { %s776_s19 = smov (%p26_p0, %s25_s19), 0  ;;  %s778_s20 = smov (!%p26_p0, %s28_s20), %s640_s16 }
   0x8   : > { %p169_p3 = pnand %p465_p1, %p168_p2  ;;  %p30_p4 = scmp.ge.s32.totalorder %s778_s20, 8 }
   0x9   : > { %s200_s22 = sadd.s32 (!%p169_p3), %s624_s12, %s628_s13  ;;  %p201_p6 = scmp.lt.s32.totalorder (!%p169_p3), %s632_s14, 1 }
   0xa   : > { %s780_s20 = smov (%p30_p4, %s778_s20), 0  ;;  %s782_s21 = smov (!%p30_p4, %s32_s21), %s644_s17 }
   0xb   : > { %p34_p5 = scmp.ge.s32.totalorder %s782_s21, 2  ;;  %172 = sbr.rel (%p169_p3) target bundleno = 188 (0xbc), region = 32 }
   0xc   : > { %p203_p7 = scmp.lt.s32.totalorder (!%p169_p3), %s200_s22, 8  ;;  %p213_p8 = scmp.lt.s32.totalorder (!%p169_p3), %s628_s13, 7 }
   0xd   : > { %s784_s21 = smov (%p34_p5, %s782_s21), 0  ;;  %p470_p9 = scmp.ne.s32.totalorder (!%p169_p3), %s624_s12, 0 }
  0x10   : > { %s786_s14 = smov (!%p201_p6, %s632_s14), 1  ;;  %s788_s22 = smov (!%p203_p7, %s200_s22), 8 }
  0x11   : > { %s535_s23 = smul.u32 18, %s786_s14  ;;  %s466_s24 = sshll.u32 %s788_s22, 1 }
  0x12   : > { %s468_s30 = sshll.u32 %s786_s14, 3  ;;  %s790_s13 = smov (!%p213_p8, %s628_s13), 7 }
  0x13   : > { %s207_s25 = sadd.s32 %s535_s23, %s466_s24  ;;  %s216_s4 = sadd.s32 %s468_s30, %s790_s13 }
  0x14   : > { %s467_s26 = sshll.u32 %s207_s25, 2  ;;  %s469_s5 = sshll.u32 %s216_s4, 3 }
  0x15   : > { %s723_s29 = scalar_lea.vmem %s765_s0, %s467_s26  ;;  %s729_s8 = scalar_lea.vmem %s768_s3, %s469_s5 }
  0x16   : > { %223 = sbr.rel (%p470_p9) target bundleno = 29 (0x1d), region = 36 }
  0x1b   : > { %v650_v0 = vmov 0.0  }
  0x1c   : > { %224 = vst [vmem:[#allocation2] sm:$0xff] %v650_v0 }
  0x1d PF: > { %s524_s9 = sshll.u32 %s624_s12, 6  ;;  %v502_v1 = vld [vmem:[%s723_s29] sm:$0xf]  ;;  %v529_v2 = vld [vmem:[%s723_s29] sm:$0x10]  ;;  %vm262_vm0 = vcmask 523264  }
  0x1e   : > { %s228_s13 = scalar_lea.vmem %s766_s1, %s524_s9  ;;  %v503_v5 = vor.u32 %v529_v2, %v502_v1  ;;  %v225_v16 = vld [vmem:[%s723_s29] sm:$0xf]  ;;  %p521_p10 = scmp.ne.s32.totalorder %s624_s12, 1 }
  0x1f   : > { %v528_v3 = vld [vmem:[%s228_s13 + $0x18] sm:$0xff]  ;;  %v527_v6 = vld [vmem:[%s228_s13 + $0x10] sm:$0xff]  ;;  %v526_v9 = vld [vmem:[%s228_s13 + $0x8] sm:$0xff] }
  0x20   : > { %v534_v4 = vld [vmem:[%s228_s13 + $0x38] sm:$0xff]  ;;  %270 = vmatpush.bf16.msra.mxu0 %v528_v3  ;;  %v533_v7 = vld [vmem:[%s228_s13 + $0x30] sm:$0xff]  ;;  %v303_v8 = vshll.u32 %v503_v5, 16  ;;  %v532_v10 = vld [vmem:[%s228_s13 + $0x28] sm:$0xff]  ;;  %v301_v11 = vshrl.u32 %v503_v5, 16 }
  0x21   : > { %338 = vmatpush.bf16.msra.mxu1 %v534_v4  ;;  %v525_v13 = vld [vmem:[%s228_s13] sm:$0xff] }
  0x22   : > { %v305_v12 = vrot.slane %v303_v8, 1  ;;  %v531_v14 = vld [vmem:[%s228_s13 + $0x20] sm:$0xff] }
  0x23   : > { %v237_v17 = vld [vmem:[#allocation2] sm:$0xff] }
  0x24   : > { %271 = vmatpush.bf16.msra.mxu0 %v527_v6  ;;  %v306_v15 = vor.u32 %v305_v12, %v301_v11 }
  0x25   : > { %339 = vmatpush.bf16.msra.mxu1 %v533_v7 }
  0x28   : > { %272 = vmatpush.bf16.msra.mxu0 %v526_v9 }
  0x29   : > { %340 = vmatpush.bf16.msra.mxu1 %v532_v10 }
  0x2c   : > { %273 = vmatpush.bf16.msra.mxu0 %v525_v13 }
  0x2d   : > { %341 = vmatpush.bf16.msra.mxu1 %v531_v14 }
  0x2f   : > { %489 = vmatmul.msk.bf16.vlgmr.msra.gmra.mxu0 %vm262_vm0, %v225_v16 }
  0x30   : > { %520 = vmatmul.msk.bf16.vlgmr.msra.gmra.mxu1 %vm262_vm0, %v306_v15 }
  0xac   : > { %v275_v18 = vpop.f32.mrf.mxu0 }
  0xad   : > { %v343_v19 = vpop.f32.mrf.mxu1  ;;  %v279_v20 = vadd.f32 %v275_v18, %v237_v17 }
  0xaf   : > { %v347_v21 = vadd.f32 %v343_v19, %v279_v20 }
  0xb1   : > { %348 = vst [vmem:[#allocation2] sm:$0xff] %v347_v21  ;;  %352 = sbr.rel (%p521_p10) target bundleno = 188 (0xbc), region = 40 }
  0xb4   : > { %v277_v22 = vpop.f32.mrf.mxu0 }
  0xb5   : > { %v345_v23 = vpop.f32.mrf.mxu1 }
  0xb6   : > { %v593_v25 = vld [vmem:[%s767_s2] ss:$0 sm:$0xff] }
  0xb8   : > { %v353_v24 = vld [vmem:[#allocation2] sm:$0xff] }
  0xb9   : > { %v358_v26 = vadd.f32 %v593_v25, %v353_v24 }
  0xbb   : > { %359 = vst [vmem:[%s729_s8] sm:$0xff] %v358_v26 }
  0xbc PF: > { %s13_s18 = sadd.s32 1, %s648_s18   ;;  %s769_s12 = smov %s636_s15 }
  0xbd   : > { %p10_p11 = scmp.ge.s32.totalorder %s13_s18, 34   ;;  %s770_s13 = smov %s640_s16 }
  0xbe   : > { %s771_s14 = smov %s644_s17  ;;  %s772_s15 = smov %s776_s19 }
  0xbf   : > { %s773_s16 = smov %s780_s20  ;;  %s774_s17 = smov %s784_s21 }
  0xc0   :  { %12 = sbr.rel (!%p10_p11) target bundleno = 4 (0x4), region = 72 }

// kernel: generator_forward.46
= control target key start
LH: loop header
LB: loop body
LE: loop exit
PB: predicated region body
PF: predicated region fallthrough
CT: control target
= control target key end

     0   :  { %s512_s12 = smov 0   ;;  %s514_s13 = smov 0   ;;  %s578_s0 = inlined_call_operand.vmem [shape: bf16[2,8,8,64], index: 0, kind: input, shape index: {}]   ;;  %s579_s1 = inlined_call_operand.vmem [shape: bf16[1,1,64,128], index: 1, kind: input, shape index: {}]   ;;  %s580_s2 = inlined_call_operand.vmem [shape: f32[1,128], index: 2, kind: input, shape index: {}]   ;;  %s581_s3 = inlined_call_operand.vmem [shape: f32[2,8,8,128], index: 3, kind: output, shape index: {}]  }
   0x1   :  { %s516_s14 = smov 0   ;;  %s518_s15 = smov 0  }
   0x2   :  { %s520_s16 = smov 0  }
   0x3 LB: > { %s28_s17 = sadd.s32 1, %s482_s14  ;;  %s32_s18 = sadd.s32 1, %s486_s15  ;;  %s490_s16 = sphi %s520_s16, %s13_s16   ;;  %s486_s15 = sphi %s518_s15, %s585_s15   ;;  %s482_s14 = sphi %s516_s14, %s584_s14   ;;  %s478_s13 = sphi %s514_s13, %s583_s13   ;;  %s474_s12 = sphi %s512_s12, %s582_s12  }
   0x4   : > { %p30_p0 = scmp.ge.s32.totalorder %s28_s17, 8  ;;  %p383_p1 = scmp.ge.s32.totalorder %s490_s16, 1 }
   0x5   : > { %p167_p2 = scmp.lt.s32.totalorder %s490_s16, 17 }
   0x6   : > { %s587_s17 = smov (%p30_p0, %s28_s17), 0  ;;  %s589_s18 = smov (!%p30_p0, %s32_s18), %s486_s15 }
   0x7   : > { %p168_p3 = pnand %p383_p1, %p167_p2  ;;  %p34_p4 = scmp.ge.s32.totalorder %s589_s18, 2 }
   0x8   : > { %p199_p5 = scmp.lt.s32.totalorder (!%p168_p3), %s478_s13, 1  ;;  %p201_p6 = scmp.lt.s32.totalorder (!%p168_p3), %s474_s12, 7 }
   0x9   : > { %s591_s18 = smov (%p34_p4, %s589_s18), 0  ;;  %171 = sbr.rel (%p168_p3) target bundleno = 164 (0xa4), region = 32 }
   0xe   : > { %v410_v0 = vld [vmem:[%s579_s1 + $0x18] sm:$0xff]  ;;  %v409_v1 = vld [vmem:[%s579_s1 + $0x10] sm:$0xff]  ;;  %s593_s13 = smov (!%p199_p5, %s478_s13), 1  ;;  %s595_s12 = smov (!%p201_p6, %s474_s12), 7  ;;  %v408_v2 = vld [vmem:[%s579_s1 + $0x8] sm:$0xff]  ;;  %vm259_vm0 = vcmask 523264  }
   0xf   : > { %267 = vmatpush.bf16.msra.mxu0 %v410_v0  ;;  %s384_s23 = sshll.u32 %s593_s13, 3  ;;  %v407_v3 = vld [vmem:[%s579_s1] sm:$0xff] }
  0x10   : > { %s204_s24 = sadd.s32 %s384_s23, %s595_s12  ;;  %v451_v5 = vld [vmem:[%s580_s2] ss:$0 sm:$0xff] }
  0x11   : > { %s385_s27 = sshll.u32 %s204_s24, 2  ;;  %s387_s6 = sshll.u32 %s204_s24, 3 }
  0x12   : > { %s206_s5 = scalar_lea.vmem %s578_s0, %s385_s27  ;;  %s215_s11 = scalar_lea.vmem %s581_s3, %s387_s6 }
  0x13   : > { %268 = vmatpush.bf16.msra.mxu0 %v409_v1  ;;  %v222_v4 = vld [vmem:[%s206_s5] sm:$0xf] }
  0x17   : > { %269 = vmatpush.bf16.msra.mxu0 %v408_v2 }
  0x1b   : > { %270 = vmatpush.bf16.msra.mxu0 %v407_v3 }
  0x1e   : > { %404 = vmatmul.msk.bf16.vlgmr.msra.gmra.mxu0 %vm259_vm0, %v222_v4 }
  0x9b   : > { %v272_v6 = vpop.f32.mrf.mxu0 }
  0x9c   : > { %v286_v7 = vadd.f32 %v451_v5, %v272_v6 }
  0x9e   : > { %287 = vst [vmem:[%s215_s11] sm:$0xff] %v286_v7 }
  0xa3   : > { %v274_v8 = vpop.f32.mrf.mxu0 }
  0xa4 PF: > { %s13_s16 = sadd.s32 1, %s490_s16   ;;  %s582_s12 = smov %s482_s14 }
  0xa5   : > { %p10_p7 = scmp.ge.s32.totalorder %s13_s16, 18   ;;  %s583_s13 = smov %s486_s15 }
  0xa6   : > { %s584_s14 = smov %s587_s17  ;;  %s585_s15 = smov %s591_s18 }
  0xa7   :  { %12 = sbr.rel (!%p10_p7) target bundleno = 3 (0x3), region = 71 }

// kernel: generator_forward.47
= control target key start
LH: loop header
LB: loop body
LE: loop exit
PB: predicated region body
PF: predicated region fallthrough
CT: control target
= control target key end

     0   :  { %s392_s9 = smov 0   ;;  %s394_s10 = smov 0   ;;  %s438_s0 = inlined_call_operand.vmem [shape: f32[2,64,128], index: 0, kind: input, shape index: {}]   ;;  %s439_s1 = inlined_call_operand.vmem [shape: f32[2,1,128], index: 1, kind: output, shape index: {0}]   ;;  %s440_s2 = inlined_call_operand.vmem [shape: f32[2,1,128], index: 2, kind: output, shape index: {1}]  }
   0x1   :  { %s396_s11 = smov 0  }
   0x2 LB: > { %s25_s12 = sadd.s32 1, %s370_s10  ;;  %p321_p0 = scmp.ge.s32.totalorder %s374_s11, 1  ;;  %s374_s11 = sphi %s396_s11, %s13_s11   ;;  %s370_s10 = sphi %s394_s10, %s442_s10   ;;  %s366_s9 = sphi %s392_s9, %s441_s9  }
   0x3   : > { %p27_p1 = scmp.ge.s32.totalorder %s25_s12, 2  ;;  %p134_p2 = scmp.lt.s32.totalorder %s374_s11, 3 }
   0x5   : > { %s444_s12 = smov (%p27_p1, %s25_s12), 0  ;;  %p135_p3 = pnand %p321_p0, %p134_p2 }
   0x6   : > { %p162_p4 = scmp.lt.s32.totalorder (!%p135_p3), %s366_s9, 1 }
   0x7   : > { %138 = sbr.rel (%p135_p3) target bundleno = 47 (0x2f), region = 24 }
   0xc   : > { %s446_s9 = smov (!%p162_p4, %s366_s9), 1  ;;  %v376_v0 = vmov 0.0  }
   0xd   : > { %s326_s13 = sshll.u32 %s446_s9, 6  ;;  %s413_s16 = scalar_lea.vmem %s439_s1, %s446_s9 }
   0xe   : > { %s169_s19 = scalar_lea.vmem %s438_s0, %s326_s13  ;;  %181 = vst [vmem:[%s413_s16] sm:$0x1] %v376_v0  ;;  %s422_s22 = scalar_lea.vmem %s440_s2, %s446_s9 }
   0xf   : > { %182 = vst [vmem:[%s422_s22] sm:$0x1] %v376_v0  ;;  %v183_v1 = vld [vmem:[%s169_s19] sm:$0xff]  ;;  %v184_v2 = vld [vmem:[%s169_s19 + $0x8] sm:$0xff]  ;;  %v185_v3 = vld [vmem:[%s169_s19 + $0x10] sm:$0xff] }
  0x10   : > { %v186_v4 = vld [vmem:[%s169_s19 + $0x18] sm:$0xff]  ;;  %v192_v5 = vadd.f32 %v184_v2, %v183_v1  ;;  %v208_v6 = vmul.f32 %v183_v1, %v183_v1  ;;  %v209_v7 = vmul.f32 %v184_v2, %v184_v2  ;;  %v210_v8 = vmul.f32 %v185_v3, %v185_v3  ;;  %v187_v9 = vld [vmem:[%s169_s19 + $0x20] sm:$0xff]  ;;  %v188_v13 = vld [vmem:[%s169_s19 + $0x28] sm:$0xff] }
  0x11   : > { %v211_v11 = vmul.f32 %v186_v4, %v186_v4  ;;  %v212_v15 = vmul.f32 %v187_v9, %v187_v9  ;;  %v189_v17 = vld [vmem:[%s169_s19 + $0x30] sm:$0xff]  ;;  %v213_v19 = vmul.f32 %v188_v13, %v188_v13  ;;  %v190_v21 = vld [vmem:[%s169_s19 + $0x38] sm:$0xff] }
  0x12   : > { %v193_v10 = vadd.f32 %v192_v5, %v185_v3  ;;  %v216_v12 = vadd.f32 %v209_v7, %v208_v6  ;;  %v214_v23 = vmul.f32 %v189_v17, %v189_v17  ;;  %v215_v26 = vmul.f32 %v190_v21, %v190_v21 }
  0x14   : > { %v194_v14 = vadd.f32 %v193_v10, %v186_v4  ;;  %v217_v16 = vadd.f32 %v216_v12, %v210_v8 }
  0x15   : > { %v191_v40 = vld [vmem:[%s413_s16] sm:$0x1] }
  0x16   : > { %v195_v18 = vadd.f32 %v194_v14, %v187_v9  ;;  %v218_v20 = vadd.f32 %v217_v16, %v211_v11  ;;  %v207_v43 = vld [vmem:[%s422_s22] sm:$0x1] }
  0x18   : > { %v196_v22 = vadd.f32 %v195_v18, %v188_v13  ;;  %v219_v24 = vadd.f32 %v218_v20, %v212_v15 }
  0x1a   : > { %v197_v25 = vadd.f32 %v196_v22, %v189_v17  ;;  %v220_v27 = vadd.f32 %v219_v24, %v213_v19 }
  0x1c   : > { %v198_v28 = vadd.f32 %v197_v25, %v190_v21  ;;  %v221_v29 = vadd.f32 %v220_v27, %v214_v23 }
  0x1e   : > { %v199_v30 = vrot.slane %v198_v28, 4  ;;  %v222_v31 = vadd.f32 %v221_v29, %v215_v26 }
  0x20   : > { %v200_v32 = vadd.f32 %v199_v30, %v198_v28  ;;  %v223_v33 = vrot.slane %v222_v31, 4 }
  0x22   : > { %v201_v34 = vrot.slane %v200_v32, 2  ;;  %v224_v35 = vadd.f32 %v223_v33, %v222_v31 }
  0x24   : > { %v202_v36 = vadd.f32 %v201_v34, %v200_v32  ;;  %v225_v37 = vrot.slane %v224_v35, 2 }
  0x26   : > { %v203_v38 = vrot.slane %v202_v36, 1  ;;  %v226_v39 = vadd.f32 %v225_v37, %v224_v35 }
  0x28   : > { %v204_v41 = vadd.f32 %v203_v38, %v202_v36  ;;  %v227_v42 = vrot.slane %v226_v39, 1 }
  0x2a   : > { %v205_v44 = vadd.f32 %v204_v41, %v191_v40  ;;  %v228_v45 = vadd.f32 %v227_v42, %v226_v39 }
  0x2c   : > { %206 = vst [vmem:[%s413_s16] sm:$0x1] %v205_v44  ;;  %v229_v46 = vadd.f32 %v228_v45, %v207_v43 }
  0x2e   : > { %230 = vst [vmem:[%s422_s22] sm:$0x1] %v229_v46 }
  0x2f PF: > { %s13_s11 = sadd.s32 1, %s374_s11   ;;  %s441_s9 = smov %s370_s10 }
  0x30   : > { %p10_p5 = scmp.ge.s32.totalorder %s13_s11, 4   ;;  %s442_s10 = smov %s444_s12 }
  0x32   :  { %12 = sbr.rel (!%p10_p5) target bundleno = 2 (0x2), region = 70 }

// kernel: generator_forward.48
= control target key start
LH: loop header
LB: loop body
LE: loop exit
PB: predicated region body
PF: predicated region fallthrough
CT: control target
= control target key end

     0   :  { %s520_s12 = smov 0   ;;  %s522_s13 = smov 0   ;;  %s565_s0 = inlined_call_operand.vmem [shape: f32[2,64,128], index: 0, kind: input, shape index: {}]   ;;  %s566_s1 = inlined_call_operand.vmem [shape: f32[2,1,128], index: 1, kind: input, shape index: {}]   ;;  %s567_s2 = inlined_call_operand.vmem [shape: f32[2,1,128], index: 2, kind: input, shape index: {}]   ;;  %s568_s3 = inlined_call_operand.vmem [shape: bf16[2,64,128], index: 3, kind: output, shape index: {}]  }
   0x1   :  { %s524_s14 = smov 0  }
   0x2 LB: > { %s25_s15 = sadd.s32 1, %s494_s13  ;;  %p418_p0 = scmp.ge.s32.totalorder %s498_s14, 1  ;;  %s498_s14 = sphi %s524_s14, %s13_s14   ;;  %s494_s13 = sphi %s522_s13, %s570_s13   ;;  %s490_s12 = sphi %s520_s12, %s569_s12  }
   0x3   : > { %p27_p1 = scmp.ge.s32.totalorder %s25_s15, 2  ;;  %p174_p2 = scmp.lt.s32.totalorder %s498_s14, 3 }
   0x5   : > { %s572_s15 = smov (%p27_p1, %s25_s15), 0  ;;  %p175_p3 = pnand %p418_p0, %p174_p2 }
   0x6   : > { %p213_p4 = scmp.lt.s32.totalorder (!%p175_p3), %s490_s12, 1 }
   0x7   : > { %178 = sbr.rel (%p175_p3) target bundleno = 53 (0x35), region = 32 }
   0xc   : > { %s574_s12 = smov (!%p213_p4, %s490_s12), 1 }
   0xd   : > { %s224_s18 = scalar_lea.vmem %s566_s1, %s574_s12  ;;  %s227_s21 = scalar_lea.vmem %s567_s2, %s574_s12 }
   0xe   : > { %v246_v0 = vld [vmem:[%s224_s18] sm:$0x1]  ;;  %s425_s22 = sshll.u32 %s574_s12, 6  ;;  %s426_s26 = sshll.u32 %s574_s12, 5 }
   0xf   : > { %v247_v1 = vmul.f32 0.015625, %v246_v0  ;;  %v248_v2 = vld [vmem:[%s227_s21] sm:$0x1]  ;;  %s220_s25 = scalar_lea.vmem %s565_s0, %s425_s22  ;;  %s236_s29 = scalar_lea.vmem %s568_s3, %s426_s26 }
  0x10   : > { %v249_v3 = vmul.f32 0.015625, %v248_v2  ;;  %v238_v12 = vld [vmem:[%s220_s25] sm:$0xff]  ;;  %v239_v13 = vld [vmem:[%s220_s25 + $0x8] sm:$0xff]  ;;  %v240_v14 = vld [vmem:[%s220_s25 + $0x10] sm:$0xff] }
  0x11   : > { %v250_v4 = vmul.f32 %v247_v1, %v247_v1  ;;  %v253_v10 = vperm.slane %v247_v1, 0  ;;  %v241_v16 = vld [vmem:[%s220_s25 + $0x18] sm:$0xff]  ;;  %v242_v17 = vld [vmem:[%s220_s25 + $0x20] sm:$0xff]  ;;  %v243_v18 = vld [vmem:[%s220_s25 + $0x28] sm:$0xff] }
  0x12   : > { %v244_v19 = vld [vmem:[%s220_s25 + $0x30] sm:$0xff]  ;;  %v245_v20 = vld [vmem:[%s220_s25 + $0x38] sm:$0xff] }
  0x13   : > { %v251_v5 = vsub.f32 %v249_v3, %v250_v4  ;;  %v255_v21 = vsub.f32 %v238_v12, %v253_v10  ;;  %v256_v23 = vsub.f32 %v239_v13, %v253_v10  ;;  %v257_v24 = vsub.f32 %v240_v14, %v253_v10 }
  0x14   : > { %v258_v25 = vsub.f32 %v241_v16, %v253_v10  ;;  %v259_v26 = vsub.f32 %v242_v17, %v253_v10  ;;  %v260_v28 = vsub.f32 %v243_v18, %v253_v10  ;;  %v261_v29 = vsub.f32 %v244_v19, %v253_v10 }
  0x15   : > { %v263_v6 = vadd.f32 1e-05, %v251_v5  ;;  %v262_v30 = vsub.f32 %v245_v20, %v253_v10 }
  0x17   : > { %474 = vrsqrt.f32 %v263_v6  ;;  %vm270_vm0 = vweird.f32 %v263_v6 }
  0x1d   : > { %v475_v7 = vpop.eup %474 }
  0x1e   : > { %v265_v8 = vmul.f32 %v475_v7, %v263_v6  ;;  %vm271_vm1 = vweird.f32 %v475_v7 }
  0x1f   : > { %vm272_vm2 = vmor %vm270_vm0, %vm271_vm1 }
  0x20   : > { %v266_v9 = vmul.f32 %v475_v7, %v265_v8 }
  0x22   : > { %v267_v11 = vmul.f32 0.5, %v266_v9 }
  0x24   : > { %v268_v15 = vsub.f32 1.5, %v267_v11 }
  0x26   : > { %v269_v22 = vmul.f32 %v475_v7, %v268_v15 }
  0x28   : > { %v273_v27 = vsel %vm272_vm2, %v475_v7, %v269_v22 }
  0x29   : > { %v275_v31 = vperm.slane %v273_v27, 0 }
  0x2b   : > { %v277_v32 = vmul.f32 %v275_v31, %v255_v21  ;;  %v278_v33 = vmul.f32 %v275_v31, %v256_v23  ;;  %v279_v34 = vmul.f32 %v275_v31, %v257_v24  ;;  %v280_v35 = vmul.f32 %v275_v31, %v258_v25 }
  0x2c   : > { %v281_v36 = vmul.f32 %v275_v31, %v259_v26  ;;  %v282_v37 = vmul.f32 %v275_v31, %v260_v28  ;;  %v283_v38 = vmul.f32 %v275_v31, %v261_v29  ;;  %v284_v39 = vmul.f32 %v275_v31, %v262_v30 }
  0x2d   : > { %v285_v40 = vmax.f32 %v277_v32, 0.0  ;;  %v286_v41 = vmax.f32 %v278_v33, 0.0  ;;  %v287_v42 = vmax.f32 %v279_v34, 0.0  ;;  %v288_v43 = vmax.f32 %v280_v35, 0.0 }
  0x2e   : > { %v289_v44 = vmax.f32 %v281_v36, 0.0  ;;  %v290_v45 = vmax.f32 %v282_v37, 0.0  ;;  %v291_v46 = vmax.f32 %v283_v38, 0.0  ;;  %v292_v47 = vmax.f32 %v284_v39, 0.0 }
  0x2f   : > { %v430_v48 = vpack.c.bf16 %v286_v41, %v285_v40  ;;  %v435_v49 = vpack.c.bf16 %v288_v43, %v287_v42 }
  0x30   : > { %v440_v50 = vpack.c.bf16 %v290_v45, %v289_v44  ;;  %v445_v51 = vpack.c.bf16 %v292_v47, %v291_v46 }
  0x31   : > { %431 = vst [vmem:[%s236_s29] sm:$0xff] %v430_v48  }
  0x32   : > { %447 = vst [vmem:[%s236_s29 + $0x8] sm:$0xff] %v435_v49  }
  0x33   : > { %448 = vst [vmem:[%s236_s29 + $0x10] sm:$0xff] %v440_v50  }
  0x34   : > { %449 = vst [vmem:[%s236_s29 + $0x18] sm:$0xff] %v445_v51  }
  0x35 PF: > { %s13_s14 = sadd.s32 1, %s498_s14   ;;  %s569_s12 = smov %s494_s13 }
  0x36   : > { %p10_p5 = scmp.ge.s32.totalorder %s13_s14, 4   ;;  %s570_s13 = smov %s572_s15 }
  0x38   :  { %12 = sbr.rel (!%p10_p5) target bundleno = 2 (0x2), region = 68 }

// kernel: generator_forward.49
= control target key start
LH: loop header
LB: loop body
LE: loop exit
PB: predicated region body
PF: predicated region fallthrough
CT: control target
= control target key end

     0   :  { %s951_s12 = smov 0   ;;  %s953_s13 = smov 0   ;;  %s1108_s0 = inlined_call_operand.vmem [shape: bf16[2,5,5,128], index: 0, kind: input, shape index: {}]   ;;  %s1109_s1 = inlined_call_operand.vmem [shape: bf16[2,2,128,256], index: 1, kind: input, shape index: {}]   ;;  %s1110_s2 = inlined_call_operand.vmem [shape: f32[1,256], index: 2, kind: input, shape index: {}]   ;;  %s1111_s3 = inlined_call_operand.vmem [shape: f32[2,4,4,256], index: 3, kind: output, shape index: {}]  }
   0x1   :  { %s955_s14 = smov 0   ;;  %s957_s15 = smov 0  }
   0x2   :  { %s959_s16 = smov 0   ;;  %s961_s17 = smov 0  }
   0x3   :  { %s963_s18 = smov 0  }
   0x4 LB: > { %s25_s19 = sadd.s32 1, %s916_s15  ;;  %s28_s20 = sadd.s32 1, %s920_s16  ;;  %s928_s18 = sphi %s963_s18, %s13_s18   ;;  %s924_s17 = sphi %s961_s17, %s1117_s17   ;;  %s920_s16 = sphi %s959_s16, %s1116_s16   ;;  %s916_s15 = sphi %s957_s15, %s1115_s15   ;;  %s912_s14 = sphi %s955_s14, %s1114_s14   ;;  %s908_s13 = sphi %s953_s13, %s1113_s13   ;;  %s904_s12 = sphi %s951_s12, %s1112_s12  }
   0x5   : > { %p26_p0 = scmp.ge.s32.totalorder %s25_s19, 2  ;;  %p625_p1 = scmp.ge.s32.totalorder %s928_s18, 1 }
   0x6   : > { %p167_p2 = scmp.lt.s32.totalorder %s928_s18, 17  ;;  %s32_s21 = sadd.s32 1, %s924_s17 }
   0x7   : > { %s1119_s19 = smov (%p26_p0, %s25_s19), 0  ;;  %s1121_s20 = smov (!%p26_p0, %s28_s20), %s920_s16 }
   0x8   : > { %p168_p3 = pnand %p625_p1, %p167_p2  ;;  %p30_p4 = scmp.ge.s32.totalorder %s1121_s20, 4 }
   0x9   : > { %s199_s22 = sadd.s32 (!%p168_p3), %s904_s12, %s908_s13  ;;  %p200_p6 = scmp.lt.s32.totalorder (!%p168_p3), %s912_s14, 1 }
   0xa   : > { %s1123_s20 = smov (%p30_p4, %s1121_s20), 0  ;;  %s1125_s21 = smov (!%p30_p4, %s32_s21), %s924_s17 }
   0xb   : > { %p34_p5 = scmp.ge.s32.totalorder %s1125_s21, 2  ;;  %171 = sbr.rel (%p168_p3) target bundleno = 212 (0xd4), region = 32 }
   0xc   : > { %p202_p7 = scmp.lt.s32.totalorder (!%p168_p3), %s199_s22, 4  ;;  %p211_p8 = scmp.lt.s32.totalorder (!%p168_p3), %s908_s13, 3 }
   0xd   : > { %s1127_s21 = smov (%p34_p5, %s1125_s21), 0  ;;  %p630_p9 = scmp.ne.s32.totalorder (!%p168_p3), %s904_s12, 0 }
  0x10   : > { %s1129_s14 = smov (!%p200_p6, %s912_s14), 1  ;;  %s1131_s22 = smov (!%p202_p7, %s199_s22), 4 }
  0x11   : > { %s816_s23 = smul.u32 5, %s1129_s14  ;;  %s628_s24 = sshll.u32 %s1129_s14, 3 }
  0x12   : > { %s1133_s13 = smov (!%p211_p8, %s908_s13), 3  ;;  %221 = sbr.rel (%p630_p9) target bundleno = 25 (0x19), region = 36 }
  0x13   : > { %s205_s25 = sadd.s32 %s816_s23, %s1131_s22  ;;  %s627_s27 = sshll.u32 %s1133_s13, 1 }
  0x14   : > { %s626_s26 = sshll.u32 %s205_s25, 2  ;;  %s215_s4 = sadd.s32 %s628_s24, %s627_s27 }
  0x15   : > { %s999_s30 = scalar_lea.vmem %s1108_s0, %s626_s26  ;;  %s629_s5 = sshll.u32 %s215_s4, 2 }
  0x16   : > { %s1004_s8 = scalar_lea.vmem %s1111_s3, %s629_s5 }
  0x17   : > { %v930_v0 = vmov 0.0  }
  0x18   : > { %222 = vst [vmem:[#allocation2] sm:$0xff] %v930_v0 }
  0x19 PF: > { %s782_s9 = sshll.u32 %s904_s12, 8  ;;  %v358_v46 = vld [vmem:[%s999_s30] sm:$0x7]  ;;  %vm353_vm0 = vcmask 1043456   ;;  %p779_p10 = scmp.ne.s32.totalorder %s904_s12, 1 }
  0x1a   : > { %s1011_s13 = scalar_lea.vmem %s1109_s1, %s782_s9  ;;  %v380_v59 = vunpack.c.l.b16 %v358_v46 }
  0x1b   : > { %v691_v1 = vld [vmem:[%s1011_s13 + $0x70] sm:$0xf]  ;;  %v798_v2 = vld [vmem:[%s1011_s13 + $0x74] sm:$0xf0]  ;;  %v797_v3 = vld [vmem:[%s1011_s13 + $0x74] sm:$0xf] }
  0x1c   : > { %v692_v4 = vor.u32 %v798_v2, %v691_v1  ;;  %v693_v5 = vld [vmem:[%s1011_s13 + $0x78] sm:$0xf0]  ;;  %v773_v6 = vld [vmem:[%s1011_s13 + $0xf0] sm:$0xf]  ;;  %v815_v7 = vld [vmem:[%s1011_s13 + $0xf4] sm:$0xf0] }
  0x1d   : > { %v696_v8 = vor.u32 %v797_v3, %v693_v5  ;;  %v774_v9 = vor.u32 %v815_v7, %v773_v6  ;;  %v814_v10 = vld [vmem:[%s1011_s13 + $0xf4] sm:$0xf]  ;;  %v775_v11 = vld [vmem:[%s1011_s13 + $0xf8] sm:$0xf0]  ;;  %v683_v12 = vld [vmem:[%s1011_s13 + $0x60] sm:$0xf] }
  0x1e   : > { %324 = vmatpush.bf16.msra.mxu0 %v692_v4  ;;  %v778_v13 = vor.u32 %v814_v10, %v775_v11  ;;  %v796_v14 = vld [vmem:[%s1011_s13 + $0x64] sm:$0xf0]  ;;  %v795_v15 = vld [vmem:[%s1011_s13 + $0x64] sm:$0xf]  ;;  %v685_v16 = vld [vmem:[%s1011_s13 + $0x68] sm:$0xf0] }
  0x1f   : > { %337 = vmatpush.bf16.msra.mxu1 %v696_v8  ;;  %470 = vmatpush.bf16.msra.mxu2 %v774_v9  ;;  %v684_v17 = vor.u32 %v796_v14, %v683_v12  ;;  %v688_v18 = vor.u32 %v795_v15, %v685_v16  ;;  %v765_v19 = vld [vmem:[%s1011_s13 + $0xe0] sm:$0xf]  ;;  %v813_v20 = vld [vmem:[%s1011_s13 + $0xe4] sm:$0xf0]  ;;  %v812_v21 = vld [vmem:[%s1011_s13 + $0xe4] sm:$0xf]  ;;  %v381_v8 = vpack.c.b16 %v380_v59, %v380_v59 }
  0x20   : > { %483 = vmatpush.bf16.msra.mxu3 %v778_v13  ;;  %v766_v22 = vor.u32 %v813_v20, %v765_v19  ;;  %v767_v23 = vld [vmem:[%s1011_s13 + $0xe8] sm:$0xf0]  ;;  %v675_v24 = vld [vmem:[%s1011_s13 + $0x50] sm:$0xf]  ;;  %v794_v25 = vld [vmem:[%s1011_s13 + $0x54] sm:$0xf0] }
  0x21   : > { %v770_v26 = vor.u32 %v812_v21, %v767_v23  ;;  %v793_v27 = vld [vmem:[%s1011_s13 + $0x54] sm:$0xf]  ;;  %v677_v28 = vld [vmem:[%s1011_s13 + $0x58] sm:$0xf0]  ;;  %v757_v29 = vld [vmem:[%s1011_s13 + $0xd0] sm:$0xf]  ;;  %v676_v30 = vor.u32 %v794_v25, %v675_v24 }
  0x22   : > { %325 = vmatpush.bf16.msra.mxu0 %v684_v17  ;;  %v811_v31 = vld [vmem:[%s1011_s13 + $0xd4] sm:$0xf0]  ;;  %v810_v32 = vld [vmem:[%s1011_s13 + $0xd4] sm:$0xf]  ;;  %v759_v33 = vld [vmem:[%s1011_s13 + $0xd8] sm:$0xf0]  ;;  %v680_v34 = vor.u32 %v793_v27, %v677_v28 }
  0x23   : > { %338 = vmatpush.bf16.msra.mxu1 %v688_v18  ;;  %471 = vmatpush.bf16.msra.mxu2 %v766_v22  ;;  %v758_v35 = vor.u32 %v811_v31, %v757_v29  ;;  %v667_v36 = vld [vmem:[%s1011_s13 + $0x40] sm:$0xf]  ;;  %v792_v37 = vld [vmem:[%s1011_s13 + $0x44] sm:$0xf0]  ;;  %v791_v38 = vld [vmem:[%s1011_s13 + $0x44] sm:$0xf]  ;;  %v762_v39 = vor.u32 %v810_v32, %v759_v33 }
  0x24   : > { %484 = vmatpush.bf16.msra.mxu3 %v770_v26  ;;  %v669_v40 = vld [vmem:[%s1011_s13 + $0x48] sm:$0xf0]  ;;  %v749_v41 = vld [vmem:[%s1011_s13 + $0xc0] sm:$0xf]  ;;  %v809_v42 = vld [vmem:[%s1011_s13 + $0xc4] sm:$0xf0]  ;;  %v668_v45 = vor.u32 %v792_v37, %v667_v36 }
  0x25   : > { %v808_v43 = vld [vmem:[%s1011_s13 + $0xc4] sm:$0xf]  ;;  %v751_v44 = vld [vmem:[%s1011_s13 + $0xc8] sm:$0xf0]  ;;  %v672_v47 = vor.u32 %v791_v38, %v669_v40  ;;  %v750_v48 = vor.u32 %v809_v42, %v749_v41  ;;  %v659_v49 = vld [vmem:[%s1011_s13 + $0x30] sm:$0xf] }
  0x26   : > { %326 = vmatpush.bf16.msra.mxu0 %v676_v30  ;;  %v790_v50 = vld [vmem:[%s1011_s13 + $0x34] sm:$0xf0]  ;;  %v789_v51 = vld [vmem:[%s1011_s13 + $0x34] sm:$0xf]  ;;  %v754_v52 = vor.u32 %v808_v43, %v751_v44  ;;  %v661_v53 = vld [vmem:[%s1011_s13 + $0x38] sm:$0xf0] }
  0x27   : > { %339 = vmatpush.bf16.msra.mxu1 %v680_v34  ;;  %472 = vmatpush.bf16.msra.mxu2 %v758_v35  ;;  %v741_v54 = vld [vmem:[%s1011_s13 + $0xb0] sm:$0xf]  ;;  %v807_v55 = vld [vmem:[%s1011_s13 + $0xb4] sm:$0xf0]  ;;  %v806_v56 = vld [vmem:[%s1011_s13 + $0xb4] sm:$0xf]  ;;  %v660_v58 = vor.u32 %v790_v50, %v659_v49  ;;  %v664_v60 = vor.u32 %v789_v51, %v661_v53 }
  0x28   : > { %485 = vmatpush.bf16.msra.mxu3 %v762_v39  ;;  %v743_v57 = vld [vmem:[%s1011_s13 + $0xb8] sm:$0xf0]  ;;  %v742_v61 = vor.u32 %v807_v55, %v741_v54  ;;  %v651_v62 = vld [vmem:[%s1011_s13 + $0x20] sm:$0xf]  ;;  %v788_v63 = vld [vmem:[%s1011_s13 + $0x24] sm:$0xf0] }
  0x29   : > { %v787_v0 = vld [vmem:[%s1011_s13 + $0x24] sm:$0xf]  ;;  %v746_v1 = vor.u32 %v806_v56, %v743_v57  ;;  %v653_v2 = vld [vmem:[%s1011_s13 + $0x28] sm:$0xf0]  ;;  %v733_v3 = vld [vmem:[%s1011_s13 + $0xa0] sm:$0xf]  ;;  %v652_v7 = vor.u32 %v788_v63, %v651_v62 }
  0x2a   : > { %327 = vmatpush.bf16.msra.mxu0 %v668_v45  ;;  %v805_v4 = vld [vmem:[%s1011_s13 + $0xa4] sm:$0xf0]  ;;  %v804_v5 = vld [vmem:[%s1011_s13 + $0xa4] sm:$0xf]  ;;  %v735_v6 = vld [vmem:[%s1011_s13 + $0xa8] sm:$0xf0]  ;;  %v656_v9 = vor.u32 %v787_v0, %v653_v2 }
  0x2b   : > { %340 = vmatpush.bf16.msra.mxu1 %v672_v47  ;;  %473 = vmatpush.bf16.msra.mxu2 %v750_v48  ;;  %v734_v10 = vor.u32 %v805_v4, %v733_v3  ;;  %v643_v11 = vld [vmem:[%s1011_s13 + $0x10] sm:$0xf]  ;;  %v786_v12 = vld [vmem:[%s1011_s13 + $0x14] sm:$0xf0]  ;;  %v785_v13 = vld [vmem:[%s1011_s13 + $0x14] sm:$0xf]  ;;  %v738_v14 = vor.u32 %v804_v5, %v735_v6 }
  0x2c   : > { %486 = vmatpush.bf16.msra.mxu3 %v754_v52  ;;  %v645_v15 = vld [vmem:[%s1011_s13 + $0x18] sm:$0xf0]  ;;  %v725_v16 = vld [vmem:[%s1011_s13 + $0x90] sm:$0xf]  ;;  %v803_v17 = vld [vmem:[%s1011_s13 + $0x94] sm:$0xf0]  ;;  %v644_v20 = vor.u32 %v786_v12, %v643_v11 }
  0x2d   : > { %v802_v18 = vld [vmem:[%s1011_s13 + $0x94] sm:$0xf]  ;;  %v727_v19 = vld [vmem:[%s1011_s13 + $0x98] sm:$0xf0]  ;;  %v385_v21 = vshll.u32 %v381_v8, 16  ;;  %v648_v22 = vor.u32 %v785_v13, %v645_v15  ;;  %v726_v23 = vor.u32 %v803_v17, %v725_v16  ;;  %v383_v34 = vshrl.u32 %v381_v8, 16 }
  0x2e   : > { %328 = vmatpush.bf16.msra.mxu0 %v660_v58  ;;  %v635_v24 = vld [vmem:[%s1011_s13] sm:$0xf]  ;;  %v784_v25 = vld [vmem:[%s1011_s13 + $0x4] sm:$0xf0]  ;;  %v783_v26 = vld [vmem:[%s1011_s13 + $0x4] sm:$0xf]  ;;  %v730_v27 = vor.u32 %v802_v18, %v727_v19 }
  0x2f   : > { %341 = vmatpush.bf16.msra.mxu1 %v664_v60  ;;  %474 = vmatpush.bf16.msra.mxu2 %v742_v61  ;;  %v637_v28 = vld [vmem:[%s1011_s13 + $0x8] sm:$0xf0]  ;;  %v717_v29 = vld [vmem:[%s1011_s13 + $0x80] sm:$0xf]  ;;  %v801_v30 = vld [vmem:[%s1011_s13 + $0x84] sm:$0xf0]  ;;  %v636_v33 = vor.u32 %v784_v25, %v635_v24 }
  0x30   : > { %487 = vmatpush.bf16.msra.mxu3 %v746_v1  ;;  %v800_v31 = vld [vmem:[%s1011_s13 + $0x84] sm:$0xf]  ;;  %v719_v32 = vld [vmem:[%s1011_s13 + $0x88] sm:$0xf0]  ;;  %v387_v35 = vrot.slane %v385_v21, 1  ;;  %v640_v36 = vor.u32 %v783_v26, %v637_v28  ;;  %v718_v37 = vor.u32 %v801_v30, %v717_v29 }
  0x31   : > { %v722_v38 = vor.u32 %v800_v31, %v719_v32  ;;  %v223_v39 = vld [vmem:[%s999_s30] sm:$0x3] }
  0x32   : > { %329 = vmatpush.bf16.msra.mxu0 %v652_v7  ;;  %v388_v40 = vor.u32 %v387_v35, %v383_v34  ;;  %v243_v44 = vld [vmem:[#allocation2] sm:$0xff] }
  0x33   : > { %342 = vmatpush.bf16.msra.mxu1 %v656_v9  ;;  %475 = vmatpush.bf16.msra.mxu2 %v734_v10 }
  0x34   : > { %488 = vmatpush.bf16.msra.mxu3 %v738_v14 }
  0x36   : > { %330 = vmatpush.bf16.msra.mxu0 %v644_v20 }
  0x37   : > { %343 = vmatpush.bf16.msra.mxu1 %v648_v22  ;;  %476 = vmatpush.bf16.msra.mxu2 %v726_v23 }
  0x38   : > { %489 = vmatpush.bf16.msra.mxu3 %v730_v27 }
  0x3a   : > { %331 = vmatpush.bf16.msra.mxu0 %v636_v33 }
  0x3b   : > { %344 = vmatpush.bf16.msra.mxu1 %v640_v36  ;;  %477 = vmatpush.bf16.msra.mxu2 %v718_v37 }
  0x3c   : > { %490 = vmatpush.bf16.msra.mxu3 %v722_v38 }
  0x3d   : > { %332 = vmatmul.bf16.vlgmr.msra.gmra.mxu0 %v223_v39 }
  0x3e   : > { %345 = vmatmul.bf16.vlgmr.msra.gmra.mxu1 %v223_v39  ;;  %478 = vmatmul.bf16.vlgmr.msra.gmra.mxu2 %v388_v40 }
  0x3f   : > { %491 = vmatmul.bf16.vlgmr.msra.gmra.mxu3 %v388_v40 }
  0xba   : > { %v333_v41 = vpop.f32.mrf.mxu0 }
  0xbb   : > { %v346_v42 = vpop.f32.mrf.mxu1 }
  0xbc   : > { %v352_v43 = vrot.slane %v346_v42, 4 }
  0xbe   : > { %v354_v45 = vsel %vm353_vm0, %v333_v41, %v352_v43 }
  0xbf   : > { %v356_v47 = vadd.f32 %v354_v45, %v243_v44 }
  0xc1   : > { %v479_v46 = vpop.f32.mrf.mxu2 }
  0xc2   : > { %v492_v48 = vpop.f32.mrf.mxu3  ;;  %v335_v49 = vpop.f32.mrf.mxu0 }
  0xc3   : > { %v498_v50 = vrot.slane %v492_v48, 4  ;;  %v348_v51 = vpop.f32.mrf.mxu1 }
  0xc5   : > { %v499_v52 = vsel %vm353_vm0, %v479_v46, %v498_v50 }
  0xc6   : > { %v501_v53 = vadd.f32 %v499_v52, %v356_v47  ;;  %506 = sbr.rel (%p779_p10) target bundleno = 212 (0xd4), region = 40 }
  0xc8   : > { %502 = vst [vmem:[#allocation2] sm:$0xff] %v501_v53 }
  0xc9   : > { %v481_v54 = vpop.f32.mrf.mxu2 }
  0xca   : > { %v494_v55 = vpop.f32.mrf.mxu3 }
  0xcb   : > { %v508_v56 = vld [vmem:[%s1110_s2] sm:$0x3] }
  0xcc   : > { %v510_v57 = vperm.slane %v508_v56, 0  ;;  %v511_v58 = vperm.slane %v508_v56, 1 }
  0xce   : > { %v512_v60 = vrot.slane %v511_v58, 4 }
  0xcf   : > { %v507_v59 = vld [vmem:[#allocation2] sm:$0xff] }
  0xd0   : > { %v513_v61 = vsel %vm353_vm0, %v510_v57, %v512_v60 }
  0xd1   : > { %v515_v62 = vadd.f32 %v513_v61, %v507_v59 }
  0xd3   : > { %516 = vst [vmem:[%s1004_s8] sm:$0xff] %v515_v62 }
  0xd4 PF: > { %s13_s18 = sadd.s32 1, %s928_s18   ;;  %s1112_s12 = smov %s916_s15 }
  0xd5   : > { %p10_p11 = scmp.ge.s32.totalorder %s13_s18, 18   ;;  %s1113_s13 = smov %s920_s16 }
  0xd6   : > { %s1114_s14 = smov %s924_s17  ;;  %s1115_s15 = smov %s1119_s19 }
  0xd7   : > { %s1116_s16 = smov %s1123_s20  ;;  %s1117_s17 = smov %s1127_s21 }
  0xd8   :  { %12 = sbr.rel (!%p10_p11) target bundleno = 4 (0x4), region = 72 }

// kernel: generator_forward.51
= control target key start
LH: loop header
LB: loop body
LE: loop exit
PB: predicated region body
PF: predicated region fallthrough
CT: control target
= control target key end

     0   :  { %s905_s12 = smov 0   ;;  %s907_s13 = smov 0   ;;  %s1164_s0 = inlined_call_operand.vmem [shape: bf16[2,4,5,128], index: 0, kind: input, shape index: {}]   ;;  %s1165_s1 = inlined_call_operand.vmem [shape: bf16[1,2,128,256], index: 1, kind: input, shape index: {}]   ;;  %s1166_s2 = inlined_call_operand.vmem [shape: f32[1,256], index: 2, kind: input, shape index: {}]   ;;  %s1167_s3 = inlined_call_operand.vmem [shape: f32[2,4,4,256], index: 3, kind: output, shape index: {}]  }
   0x1   :  { %s909_s14 = smov 0   ;;  %s911_s15 = smov 0  }
   0x2   :  { %s913_s16 = smov 0  }
   0x3 LB: > { %s28_s17 = sadd.s32 1, %s875_s14  ;;  %s32_s18 = sadd.s32 1, %s879_s15  ;;  %s883_s16 = sphi %s913_s16, %s13_s16   ;;  %s879_s15 = sphi %s911_s15, %s1171_s15   ;;  %s875_s14 = sphi %s909_s14, %s1170_s14   ;;  %s871_s13 = sphi %s907_s13, %s1169_s13   ;;  %s867_s12 = sphi %s905_s12, %s1168_s12  }
   0x4   : > { %p30_p0 = scmp.ge.s32.totalorder %s28_s17, 4  ;;  %p621_p1 = scmp.ge.s32.totalorder %s883_s16, 1 }
   0x5   : > { %p167_p2 = scmp.lt.s32.totalorder %s883_s16, 9 }
   0x6   : > { %s1173_s17 = smov (%p30_p0, %s28_s17), 0  ;;  %s1175_s18 = smov (!%p30_p0, %s32_s18), %s879_s15 }
   0x7   : > { %p168_p3 = pnand %p621_p1, %p167_p2  ;;  %p34_p4 = scmp.ge.s32.totalorder %s1175_s18, 2 }
   0x8   : > { %p200_p5 = scmp.lt.s32.totalorder (!%p168_p3), %s871_s13, 1  ;;  %p202_p6 = scmp.lt.s32.totalorder (!%p168_p3), %s867_s12, 3 }
   0x9   : > { %s1177_s18 = smov (%p34_p4, %s1175_s18), 0  ;;  %171 = sbr.rel (%p168_p3) target bundleno = 191 (0xbf), region = 32 }
   0xe   : > { %v685_v0 = vld [vmem:[%s1165_s1 + $0x70] sm:$0xf]  ;;  %v788_v1 = vld [vmem:[%s1165_s1 + $0x74] sm:$0xf0]  ;;  %v787_v2 = vld [vmem:[%s1165_s1 + $0x74] sm:$0xf] }
   0xf   : > { %v686_v3 = vor.u32 %v788_v1, %v685_v0  ;;  %v687_v4 = vld [vmem:[%s1165_s1 + $0x78] sm:$0xf0]  ;;  %v765_v5 = vld [vmem:[%s1165_s1 + $0xf0] sm:$0xf]  ;;  %v804_v6 = vld [vmem:[%s1165_s1 + $0xf4] sm:$0xf0] }
  0x10   : > { %v690_v7 = vor.u32 %v787_v2, %v687_v4  ;;  %v766_v8 = vor.u32 %v804_v6, %v765_v5  ;;  %v803_v9 = vld [vmem:[%s1165_s1 + $0xf4] sm:$0xf]  ;;  %v767_v10 = vld [vmem:[%s1165_s1 + $0xf8] sm:$0xf0]  ;;  %v677_v11 = vld [vmem:[%s1165_s1 + $0x60] sm:$0xf] }
  0x11   : > { %324 = vmatpush.bf16.msra.mxu0 %v686_v3  ;;  %v770_v12 = vor.u32 %v803_v9, %v767_v10  ;;  %v786_v13 = vld [vmem:[%s1165_s1 + $0x64] sm:$0xf0]  ;;  %v785_v14 = vld [vmem:[%s1165_s1 + $0x64] sm:$0xf]  ;;  %v679_v15 = vld [vmem:[%s1165_s1 + $0x68] sm:$0xf0] }
  0x12   : > { %337 = vmatpush.bf16.msra.mxu1 %v690_v7  ;;  %470 = vmatpush.bf16.msra.mxu2 %v766_v8  ;;  %v678_v16 = vor.u32 %v786_v13, %v677_v11  ;;  %v682_v17 = vor.u32 %v785_v14, %v679_v15  ;;  %v757_v18 = vld [vmem:[%s1165_s1 + $0xe0] sm:$0xf]  ;;  %v802_v19 = vld [vmem:[%s1165_s1 + $0xe4] sm:$0xf0]  ;;  %v801_v20 = vld [vmem:[%s1165_s1 + $0xe4] sm:$0xf] }
  0x13   : > { %483 = vmatpush.bf16.msra.mxu3 %v770_v12  ;;  %v758_v21 = vor.u32 %v802_v19, %v757_v18  ;;  %v759_v22 = vld [vmem:[%s1165_s1 + $0xe8] sm:$0xf0]  ;;  %v669_v23 = vld [vmem:[%s1165_s1 + $0x50] sm:$0xf]  ;;  %v784_v24 = vld [vmem:[%s1165_s1 + $0x54] sm:$0xf0] }
  0x14   : > { %v762_v25 = vor.u32 %v801_v20, %v759_v22  ;;  %v783_v26 = vld [vmem:[%s1165_s1 + $0x54] sm:$0xf]  ;;  %v671_v27 = vld [vmem:[%s1165_s1 + $0x58] sm:$0xf0]  ;;  %v749_v28 = vld [vmem:[%s1165_s1 + $0xd0] sm:$0xf]  ;;  %v670_v29 = vor.u32 %v784_v24, %v669_v23 }
  0x15   : > { %325 = vmatpush.bf16.msra.mxu0 %v678_v16  ;;  %v800_v30 = vld [vmem:[%s1165_s1 + $0xd4] sm:$0xf0]  ;;  %v799_v31 = vld [vmem:[%s1165_s1 + $0xd4] sm:$0xf]  ;;  %v751_v32 = vld [vmem:[%s1165_s1 + $0xd8] sm:$0xf0]  ;;  %v674_v33 = vor.u32 %v783_v26, %v671_v27 }
  0x16   : > { %338 = vmatpush.bf16.msra.mxu1 %v682_v17  ;;  %471 = vmatpush.bf16.msra.mxu2 %v758_v21  ;;  %v750_v34 = vor.u32 %v800_v30, %v749_v28  ;;  %v661_v35 = vld [vmem:[%s1165_s1 + $0x40] sm:$0xf]  ;;  %v782_v36 = vld [vmem:[%s1165_s1 + $0x44] sm:$0xf0]  ;;  %v781_v37 = vld [vmem:[%s1165_s1 + $0x44] sm:$0xf]  ;;  %v754_v38 = vor.u32 %v799_v31, %v751_v32 }
  0x17   : > { %484 = vmatpush.bf16.msra.mxu3 %v762_v25  ;;  %v663_v39 = vld [vmem:[%s1165_s1 + $0x48] sm:$0xf0]  ;;  %v741_v40 = vld [vmem:[%s1165_s1 + $0xc0] sm:$0xf]  ;;  %v798_v41 = vld [vmem:[%s1165_s1 + $0xc4] sm:$0xf0]  ;;  %v662_v44 = vor.u32 %v782_v36, %v661_v35 }
  0x18   : > { %v797_v42 = vld [vmem:[%s1165_s1 + $0xc4] sm:$0xf]  ;;  %v743_v43 = vld [vmem:[%s1165_s1 + $0xc8] sm:$0xf0]  ;;  %v666_v45 = vor.u32 %v781_v37, %v663_v39  ;;  %v742_v46 = vor.u32 %v798_v41, %v741_v40  ;;  %v653_v47 = vld [vmem:[%s1165_s1 + $0x30] sm:$0xf] }
  0x19   : > { %326 = vmatpush.bf16.msra.mxu0 %v670_v29  ;;  %v780_v48 = vld [vmem:[%s1165_s1 + $0x34] sm:$0xf0]  ;;  %v779_v49 = vld [vmem:[%s1165_s1 + $0x34] sm:$0xf]  ;;  %v746_v50 = vor.u32 %v797_v42, %v743_v43  ;;  %v655_v51 = vld [vmem:[%s1165_s1 + $0x38] sm:$0xf0] }
  0x1a   : > { %339 = vmatpush.bf16.msra.mxu1 %v674_v33  ;;  %472 = vmatpush.bf16.msra.mxu2 %v750_v34  ;;  %v733_v52 = vld [vmem:[%s1165_s1 + $0xb0] sm:$0xf]  ;;  %v796_v53 = vld [vmem:[%s1165_s1 + $0xb4] sm:$0xf0]  ;;  %v795_v54 = vld [vmem:[%s1165_s1 + $0xb4] sm:$0xf]  ;;  %v654_v56 = vor.u32 %v780_v48, %v653_v47  ;;  %v658_v57 = vor.u32 %v779_v49, %v655_v51 }
  0x1b   : > { %485 = vmatpush.bf16.msra.mxu3 %v754_v38  ;;  %v735_v55 = vld [vmem:[%s1165_s1 + $0xb8] sm:$0xf0]  ;;  %v734_v58 = vor.u32 %v796_v53, %v733_v52  ;;  %v645_v59 = vld [vmem:[%s1165_s1 + $0x20] sm:$0xf]  ;;  %v778_v60 = vld [vmem:[%s1165_s1 + $0x24] sm:$0xf0] }
  0x1c   : > { %v777_v61 = vld [vmem:[%s1165_s1 + $0x24] sm:$0xf]  ;;  %v738_v62 = vor.u32 %v795_v54, %v735_v55  ;;  %v647_v63 = vld [vmem:[%s1165_s1 + $0x28] sm:$0xf0]  ;;  %v725_v0 = vld [vmem:[%s1165_s1 + $0xa0] sm:$0xf]  ;;  %v646_v4 = vor.u32 %v778_v60, %v645_v59 }
  0x1d   : > { %327 = vmatpush.bf16.msra.mxu0 %v662_v44  ;;  %v794_v1 = vld [vmem:[%s1165_s1 + $0xa4] sm:$0xf0]  ;;  %v793_v2 = vld [vmem:[%s1165_s1 + $0xa4] sm:$0xf]  ;;  %v727_v3 = vld [vmem:[%s1165_s1 + $0xa8] sm:$0xf0]  ;;  %v650_v6 = vor.u32 %v777_v61, %v647_v63 }
  0x1e   : > { %340 = vmatpush.bf16.msra.mxu1 %v666_v45  ;;  %473 = vmatpush.bf16.msra.mxu2 %v742_v46  ;;  %v637_v5 = vld [vmem:[%s1165_s1 + $0x10] sm:$0xf]  ;;  %v726_v7 = vor.u32 %v794_v1, %v725_v0  ;;  %v776_v8 = vld [vmem:[%s1165_s1 + $0x14] sm:$0xf0]  ;;  %v775_v9 = vld [vmem:[%s1165_s1 + $0x14] sm:$0xf]  ;;  %v730_v11 = vor.u32 %v793_v2, %v727_v3 }
  0x1f   : > { %486 = vmatpush.bf16.msra.mxu3 %v746_v50  ;;  %v639_v10 = vld [vmem:[%s1165_s1 + $0x18] sm:$0xf0]  ;;  %v717_v12 = vld [vmem:[%s1165_s1 + $0x90] sm:$0xf]  ;;  %v792_v13 = vld [vmem:[%s1165_s1 + $0x94] sm:$0xf0]  ;;  %v638_v16 = vor.u32 %v776_v8, %v637_v5 }
  0x20   : > { %v791_v14 = vld [vmem:[%s1165_s1 + $0x94] sm:$0xf]  ;;  %v719_v15 = vld [vmem:[%s1165_s1 + $0x98] sm:$0xf0]  ;;  %v629_v17 = vld [vmem:[%s1165_s1] sm:$0xf]  ;;  %v642_v19 = vor.u32 %v775_v9, %v639_v10  ;;  %v718_v20 = vor.u32 %v792_v13, %v717_v12 }
  0x21   : > { %328 = vmatpush.bf16.msra.mxu0 %v654_v56  ;;  %v774_v18 = vld [vmem:[%s1165_s1 + $0x4] sm:$0xf0]  ;;  %s1179_s13 = smov (!%p200_p5, %s871_s13), 1  ;;  %v773_v21 = vld [vmem:[%s1165_s1 + $0x4] sm:$0xf]  ;;  %s1181_s12 = smov (!%p202_p6, %s867_s12), 3  ;;  %v722_v23 = vor.u32 %v791_v14, %v719_v15 }
  0x22   : > { %341 = vmatpush.bf16.msra.mxu1 %v658_v57  ;;  %474 = vmatpush.bf16.msra.mxu2 %v734_v58  ;;  %v631_v22 = vld [vmem:[%s1165_s1 + $0x8] sm:$0xf0]  ;;  %v709_v24 = vld [vmem:[%s1165_s1 + $0x80] sm:$0xf]  ;;  %v790_v25 = vld [vmem:[%s1165_s1 + $0x84] sm:$0xf0]  ;;  %v630_v28 = vor.u32 %v774_v18, %v629_v17 }
  0x23   : > { %487 = vmatpush.bf16.msra.mxu3 %v738_v62  ;;  %s622_s23 = sshll.u32 %s1179_s13, 2  ;;  %s625_s24 = sshll.u32 %s1179_s13, 3  ;;  %v789_v26 = vld [vmem:[%s1165_s1 + $0x84] sm:$0xf]  ;;  %v711_v27 = vld [vmem:[%s1165_s1 + $0x88] sm:$0xf0]  ;;  %v634_v29 = vor.u32 %v773_v21, %v631_v22  ;;  %v710_v30 = vor.u32 %v790_v25, %v709_v24 }
  0x24   : > { %s205_s29 = sadd.s32 %s622_s23, %s1181_s12  ;;  %s624_s30 = sshll.u32 %s1181_s12, 1  ;;  %v714_v31 = vor.u32 %v789_v26, %v711_v27  ;;  %v507_v42 = vld [vmem:[%s1166_s2] sm:$0x3]  ;;  %vm353_vm0 = vcmask 1043456  }
  0x25   : > { %329 = vmatpush.bf16.msra.mxu0 %v646_v4  ;;  %s623_s4 = sshll.u32 %s205_s29, 2  ;;  %s1137_s5 = sadd.s32 %s625_s24, %s624_s30  ;;  %v510_v43 = vperm.slane %v507_v42, 1  ;;  %v509_v47 = vperm.slane %v507_v42, 0 }
  0x26   : > { %342 = vmatpush.bf16.msra.mxu1 %v650_v6  ;;  %475 = vmatpush.bf16.msra.mxu2 %v726_v7  ;;  %s207_s7 = scalar_lea.vmem %s1164_s0, %s623_s4  ;;  %s626_s9 = sshll.u32 %s1137_s5, 2 }
  0x27   : > { %488 = vmatpush.bf16.msra.mxu3 %v730_v11  ;;  %v358_v32 = vld [vmem:[%s207_s7] sm:$0x7]  ;;  %v511_v48 = vrot.slane %v510_v43, 4  ;;  %s217_s19 = scalar_lea.vmem %s1167_s3, %s626_s9 }
  0x28   : > { %v380_v33 = vunpack.c.l.b16 %v358_v32  ;;  %v223_v34 = vld [vmem:[%s207_s7] sm:$0x3] }
  0x29   : > { %330 = vmatpush.bf16.msra.mxu0 %v638_v16  ;;  %v512_v54 = vsel %vm353_vm0, %v509_v47, %v511_v48 }
  0x2a   : > { %343 = vmatpush.bf16.msra.mxu1 %v642_v19  ;;  %476 = vmatpush.bf16.msra.mxu2 %v718_v20  ;;  %v381_v35 = vpack.c.b16 %v380_v33, %v380_v33 }
  0x2b   : > { %489 = vmatpush.bf16.msra.mxu3 %v722_v23 }
  0x2c   : > { %v383_v36 = vshrl.u32 %v381_v35, 16  ;;  %v385_v37 = vshll.u32 %v381_v35, 16 }
  0x2d   : > { %331 = vmatpush.bf16.msra.mxu0 %v630_v28 }
  0x2e   : > { %344 = vmatpush.bf16.msra.mxu1 %v634_v29  ;;  %477 = vmatpush.bf16.msra.mxu2 %v710_v30  ;;  %v387_v38 = vrot.slane %v385_v37, 1 }
  0x2f   : > { %490 = vmatpush.bf16.msra.mxu3 %v714_v31 }
  0x30   : > { %332 = vmatmul.bf16.vlgmr.msra.gmra.mxu0 %v223_v34  ;;  %v388_v39 = vor.u32 %v387_v38, %v383_v36 }
  0x31   : > { %345 = vmatmul.bf16.vlgmr.msra.gmra.mxu1 %v223_v34 }
  0x32   : > { %478 = vmatmul.bf16.vlgmr.msra.gmra.mxu2 %v388_v39  ;;  %491 = vmatmul.bf16.vlgmr.msra.gmra.mxu3 %v388_v39 }
  0xad   : > { %v333_v40 = vpop.f32.mrf.mxu0 }
  0xae   : > { %v346_v41 = vpop.f32.mrf.mxu1 }
  0xaf   : > { %v352_v46 = vrot.slane %v346_v41, 4 }
  0xb1   : > { %v354_v52 = vsel %vm353_vm0, %v333_v40, %v352_v46 }
  0xb5   : > { %v335_v44 = vpop.f32.mrf.mxu0  ;;  %v479_v49 = vpop.f32.mrf.mxu2 }
  0xb6   : > { %v348_v45 = vpop.f32.mrf.mxu1  ;;  %v492_v50 = vpop.f32.mrf.mxu3 }
  0xb7   : > { %v498_v51 = vrot.slane %v492_v50, 4 }
  0xb9   : > { %v499_v53 = vsel %vm353_vm0, %v479_v49, %v498_v51 }
  0xba   : > { %v501_v55 = vadd.f32 %v499_v53, %v354_v52 }
  0xbc   : > { %v514_v56 = vadd.f32 %v512_v54, %v501_v55 }
  0xbd   : > { %v481_v57 = vpop.f32.mrf.mxu2 }
  0xbe   : > { %515 = vst [vmem:[%s217_s19] sm:$0xff] %v514_v56  ;;  %v494_v58 = vpop.f32.mrf.mxu3 }
  0xbf PF: > { %s13_s16 = sadd.s32 1, %s883_s16   ;;  %s1168_s12 = smov %s875_s14 }
  0xc0   : > { %p10_p7 = scmp.ge.s32.totalorder %s13_s16, 10   ;;  %s1169_s13 = smov %s879_s15 }
  0xc1   : > { %s1170_s14 = smov %s1173_s17  ;;  %s1171_s15 = smov %s1177_s18 }
  0xc2   :  { %12 = sbr.rel (!%p10_p7) target bundleno = 3 (0x3), region = 72 }

// kernel: generator_forward.50
= control target key start
LH: loop header
LB: loop body
LE: loop exit
PB: predicated region body
PF: predicated region fallthrough
CT: control target
= control target key end

     0   :  { %s703_s12 = smov 0   ;;  %s705_s13 = smov 0   ;;  %s824_s0 = inlined_call_operand.vmem [shape: bf16[2,5,4,128], index: 0, kind: input, shape index: {}]   ;;  %s825_s1 = inlined_call_operand.vmem [shape: bf16[2,1,128,256], index: 1, kind: input, shape index: {}]   ;;  %s826_s2 = inlined_call_operand.vmem [shape: f32[1,256], index: 2, kind: input, shape index: {}]   ;;  %s827_s3 = inlined_call_operand.vmem [shape: f32[2,4,4,256], index: 3, kind: output, shape index: {}]  }
   0x1   :  { %s707_s14 = smov 0   ;;  %s709_s15 = smov 0  }
   0x2   :  { %s711_s16 = smov 0   ;;  %s713_s17 = smov 0  }
   0x3   :  { %s715_s18 = smov 0  }
   0x4 LB: > { %s25_s19 = sadd.s32 1, %s668_s15  ;;  %s28_s20 = sadd.s32 1, %s672_s16  ;;  %s680_s18 = sphi %s715_s18, %s13_s18   ;;  %s676_s17 = sphi %s713_s17, %s833_s17   ;;  %s672_s16 = sphi %s711_s16, %s832_s16   ;;  %s668_s15 = sphi %s709_s15, %s831_s15   ;;  %s664_s14 = sphi %s707_s14, %s830_s14   ;;  %s660_s13 = sphi %s705_s13, %s829_s13   ;;  %s656_s12 = sphi %s703_s12, %s828_s12  }
   0x5   : > { %p26_p0 = scmp.ge.s32.totalorder %s25_s19, 2  ;;  %p476_p1 = scmp.ge.s32.totalorder %s680_s18, 1 }
   0x6   : > { %p167_p2 = scmp.lt.s32.totalorder %s680_s18, 17  ;;  %s32_s21 = sadd.s32 1, %s676_s17 }
   0x7   : > { %s835_s19 = smov (%p26_p0, %s25_s19), 0  ;;  %s837_s20 = smov (!%p26_p0, %s28_s20), %s672_s16 }
   0x8   : > { %p168_p3 = pnand %p476_p1, %p167_p2  ;;  %p30_p4 = scmp.ge.s32.totalorder %s837_s20, 4 }
   0x9   : > { %s199_s22 = sadd.s32 (!%p168_p3), %s656_s12, %s660_s13  ;;  %p200_p6 = scmp.lt.s32.totalorder (!%p168_p3), %s664_s14, 1 }
   0xa   : > { %s839_s20 = smov (%p30_p4, %s837_s20), 0  ;;  %s841_s21 = smov (!%p30_p4, %s32_s21), %s676_s17 }
   0xb   : > { %p34_p5 = scmp.ge.s32.totalorder %s841_s21, 2  ;;  %171 = sbr.rel (%p168_p3) target bundleno = 205 (0xcd), region = 32 }
   0xc   : > { %p202_p7 = scmp.lt.s32.totalorder (!%p168_p3), %s199_s22, 4  ;;  %p211_p8 = scmp.lt.s32.totalorder (!%p168_p3), %s660_s13, 3 }
   0xd   : > { %s843_s21 = smov (%p34_p5, %s841_s21), 0  ;;  %p481_p9 = scmp.ne.s32.totalorder (!%p168_p3), %s656_s12, 0 }
  0x10   : > { %s845_s14 = smov (!%p200_p6, %s664_s14), 1  ;;  %s847_s22 = smov (!%p202_p7, %s199_s22), 4 }
  0x11   : > { %s568_s23 = smul.u32 5, %s845_s14  ;;  %s479_s24 = sshll.u32 %s845_s14, 3 }
  0x12   : > { %s849_s13 = smov (!%p211_p8, %s660_s13), 3  ;;  %221 = sbr.rel (%p481_p9) target bundleno = 25 (0x19), region = 36 }
  0x13   : > { %s205_s25 = sadd.s32 %s568_s23, %s847_s22  ;;  %s478_s27 = sshll.u32 %s849_s13, 1 }
  0x14   : > { %s477_s26 = sshll.u32 %s205_s25, 1  ;;  %s215_s4 = sadd.s32 %s479_s24, %s478_s27 }
  0x15   : > { %s751_s30 = scalar_lea.vmem %s824_s0, %s477_s26  ;;  %s480_s5 = sshll.u32 %s215_s4, 2 }
  0x16   : > { %s756_s8 = scalar_lea.vmem %s827_s3, %s480_s5 }
  0x17   : > { %v682_v0 = vmov 0.0  }
  0x18   : > { %222 = vst [vmem:[#allocation2] sm:$0xff] %v682_v0 }
  0x19 PF: > { %s551_s9 = sshll.u32 %s656_s12, 7  ;;  %v223_v49 = vld [vmem:[%s751_s30] sm:$0x3]  ;;  %vm353_vm0 = vcmask 1043456   ;;  %p548_p10 = scmp.ne.s32.totalorder %s656_s12, 1 }
  0x1a   : > { %s763_s13 = scalar_lea.vmem %s825_s1, %s551_s9 }
  0x1b   : > { %v542_v1 = vld [vmem:[%s763_s13 + $0x70] sm:$0xf]  ;;  %v567_v2 = vld [vmem:[%s763_s13 + $0x74] sm:$0xf0]  ;;  %v566_v3 = vld [vmem:[%s763_s13 + $0x74] sm:$0xf] }
  0x1c   : > { %v543_v4 = vor.u32 %v567_v2, %v542_v1  ;;  %v544_v5 = vld [vmem:[%s763_s13 + $0x78] sm:$0xf0]  ;;  %v534_v6 = vld [vmem:[%s763_s13 + $0x60] sm:$0xf]  ;;  %v565_v7 = vld [vmem:[%s763_s13 + $0x64] sm:$0xf0] }
  0x1d   : > { %v547_v8 = vor.u32 %v566_v3, %v544_v5  ;;  %v564_v9 = vld [vmem:[%s763_s13 + $0x64] sm:$0xf]  ;;  %v536_v10 = vld [vmem:[%s763_s13 + $0x68] sm:$0xf0]  ;;  %v535_v11 = vor.u32 %v565_v7, %v534_v6  ;;  %v526_v13 = vld [vmem:[%s763_s13 + $0x50] sm:$0xf] }
  0x1e   : > { %324 = vmatpush.bf16.msra.mxu0 %v543_v4  ;;  %v539_v12 = vor.u32 %v564_v9, %v536_v10  ;;  %v563_v14 = vld [vmem:[%s763_s13 + $0x54] sm:$0xf0]  ;;  %v562_v15 = vld [vmem:[%s763_s13 + $0x54] sm:$0xf]  ;;  %v528_v16 = vld [vmem:[%s763_s13 + $0x58] sm:$0xf0] }
  0x1f   : > { %337 = vmatpush.bf16.msra.mxu1 %v547_v8  ;;  %v527_v17 = vor.u32 %v563_v14, %v526_v13  ;;  %v531_v18 = vor.u32 %v562_v15, %v528_v16  ;;  %v518_v19 = vld [vmem:[%s763_s13 + $0x40] sm:$0xf]  ;;  %v561_v20 = vld [vmem:[%s763_s13 + $0x44] sm:$0xf0]  ;;  %v560_v21 = vld [vmem:[%s763_s13 + $0x44] sm:$0xf] }
  0x20   : > { %v520_v22 = vld [vmem:[%s763_s13 + $0x48] sm:$0xf0]  ;;  %v519_v23 = vor.u32 %v561_v20, %v518_v19  ;;  %v510_v25 = vld [vmem:[%s763_s13 + $0x30] sm:$0xf]  ;;  %v559_v26 = vld [vmem:[%s763_s13 + $0x34] sm:$0xf0] }
  0x21   : > { %v523_v24 = vor.u32 %v560_v21, %v520_v22  ;;  %v558_v27 = vld [vmem:[%s763_s13 + $0x34] sm:$0xf]  ;;  %v512_v28 = vld [vmem:[%s763_s13 + $0x38] sm:$0xf0]  ;;  %v511_v29 = vor.u32 %v559_v26, %v510_v25  ;;  %v502_v31 = vld [vmem:[%s763_s13 + $0x20] sm:$0xf] }
  0x22   : > { %325 = vmatpush.bf16.msra.mxu0 %v535_v11  ;;  %v515_v30 = vor.u32 %v558_v27, %v512_v28  ;;  %v557_v32 = vld [vmem:[%s763_s13 + $0x24] sm:$0xf0]  ;;  %v556_v33 = vld [vmem:[%s763_s13 + $0x24] sm:$0xf]  ;;  %v504_v34 = vld [vmem:[%s763_s13 + $0x28] sm:$0xf0] }
  0x23   : > { %338 = vmatpush.bf16.msra.mxu1 %v539_v12  ;;  %v503_v35 = vor.u32 %v557_v32, %v502_v31  ;;  %v507_v36 = vor.u32 %v556_v33, %v504_v34  ;;  %v494_v37 = vld [vmem:[%s763_s13 + $0x10] sm:$0xf]  ;;  %v555_v38 = vld [vmem:[%s763_s13 + $0x14] sm:$0xf0]  ;;  %v554_v39 = vld [vmem:[%s763_s13 + $0x14] sm:$0xf] }
  0x24   : > { %v496_v40 = vld [vmem:[%s763_s13 + $0x18] sm:$0xf0]  ;;  %v495_v41 = vor.u32 %v555_v38, %v494_v37  ;;  %v486_v43 = vld [vmem:[%s763_s13] sm:$0xf]  ;;  %v553_v44 = vld [vmem:[%s763_s13 + $0x4] sm:$0xf0] }
  0x25   : > { %v499_v42 = vor.u32 %v554_v39, %v496_v40  ;;  %v552_v45 = vld [vmem:[%s763_s13 + $0x4] sm:$0xf]  ;;  %v488_v46 = vld [vmem:[%s763_s13 + $0x8] sm:$0xf0]  ;;  %v487_v47 = vor.u32 %v553_v44, %v486_v43 }
  0x26   : > { %326 = vmatpush.bf16.msra.mxu0 %v527_v17  ;;  %v491_v48 = vor.u32 %v552_v45, %v488_v46  ;;  %v243_v52 = vld [vmem:[#allocation2] sm:$0xff] }
  0x27   : > { %339 = vmatpush.bf16.msra.mxu1 %v531_v18 }
  0x2a   : > { %327 = vmatpush.bf16.msra.mxu0 %v519_v23 }
  0x2b   : > { %340 = vmatpush.bf16.msra.mxu1 %v523_v24 }
  0x2e   : > { %328 = vmatpush.bf16.msra.mxu0 %v511_v29 }
  0x2f   : > { %341 = vmatpush.bf16.msra.mxu1 %v515_v30 }
  0x32   : > { %329 = vmatpush.bf16.msra.mxu0 %v503_v35 }
  0x33   : > { %342 = vmatpush.bf16.msra.mxu1 %v507_v36 }
  0x36   : > { %330 = vmatpush.bf16.msra.mxu0 %v495_v41 }
  0x37   : > { %343 = vmatpush.bf16.msra.mxu1 %v499_v42 }
  0x3a   : > { %331 = vmatpush.bf16.msra.mxu0 %v487_v47 }
  0x3b   : > { %344 = vmatpush.bf16.msra.mxu1 %v491_v48 }
  0x3d   : > { %332 = vmatmul.bf16.vlgmr.msra.gmra.mxu0 %v223_v49 }
  0x3e   : > { %345 = vmatmul.bf16.vlgmr.msra.gmra.mxu1 %v223_v49 }
  0xba   : > { %v333_v50 = vpop.f32.mrf.mxu0 }
  0xbb   : > { %v346_v51 = vpop.f32.mrf.mxu1 }
  0xbc   : > { %v352_v53 = vrot.slane %v346_v51, 4 }
  0xbe   : > { %v354_v54 = vsel %vm353_vm0, %v333_v50, %v352_v53 }
  0xbf   : > { %v356_v55 = vadd.f32 %v354_v54, %v243_v52  ;;  %361 = sbr.rel (%p548_p10) target bundleno = 205 (0xcd), region = 40 }
  0xc1   : > { %357 = vst [vmem:[#allocation2] sm:$0xff] %v356_v55 }
  0xc2   : > { %v335_v56 = vpop.f32.mrf.mxu0 }
  0xc3   : > { %v348_v57 = vpop.f32.mrf.mxu1 }
  0xc4   : > { %v363_v58 = vld [vmem:[%s826_s2] sm:$0x3] }
  0xc5   : > { %v365_v59 = vperm.slane %v363_v58, 0  ;;  %v366_v60 = vperm.slane %v363_v58, 1 }
  0xc7   : > { %v367_v62 = vrot.slane %v366_v60, 4 }
  0xc8   : > { %v362_v61 = vld [vmem:[#allocation2] sm:$0xff] }
  0xc9   : > { %v368_v63 = vsel %vm353_vm0, %v365_v59, %v367_v62 }
  0xca   : > { %v370_v0 = vadd.f32 %v368_v63, %v362_v61 }
  0xcc   : > { %371 = vst [vmem:[%s756_s8] sm:$0xff] %v370_v0 }
  0xcd PF: > { %s13_s18 = sadd.s32 1, %s680_s18   ;;  %s828_s12 = smov %s668_s15 }
  0xce   : > { %p10_p11 = scmp.ge.s32.totalorder %s13_s18, 18   ;;  %s829_s13 = smov %s672_s16 }
  0xcf   : > { %s830_s14 = smov %s676_s17  ;;  %s831_s15 = smov %s835_s19 }
  0xd0   : > { %s832_s16 = smov %s839_s20  ;;  %s833_s17 = smov %s843_s21 }
  0xd1   :  { %12 = sbr.rel (!%p10_p11) target bundleno = 4 (0x4), region = 71 }

// kernel: generator_forward.52
= control target key start
LH: loop header
LB: loop body
LE: loop exit
PB: predicated region body
PF: predicated region fallthrough
CT: control target
= control target key end

     0   :  { %s660_s12 = smov 0   ;;  %s662_s13 = smov 0   ;;  %s821_s0 = inlined_call_operand.vmem [shape: bf16[2,4,4,128], index: 0, kind: input, shape index: {}]   ;;  %s822_s1 = inlined_call_operand.vmem [shape: bf16[1,1,128,256], index: 1, kind: input, shape index: {}]   ;;  %s823_s2 = inlined_call_operand.vmem [shape: f32[1,256], index: 2, kind: input, shape index: {}]   ;;  %s824_s3 = inlined_call_operand.vmem [shape: f32[2,4,4,256], index: 3, kind: output, shape index: {}]  }
   0x1   :  { %s664_s14 = smov 0   ;;  %s666_s15 = smov 0  }
   0x2   :  { %s668_s16 = smov 0  }
   0x3 LB: > { %s28_s17 = sadd.s32 1, %s630_s14  ;;  %s32_s18 = sadd.s32 1, %s634_s15  ;;  %s638_s16 = sphi %s668_s16, %s13_s16   ;;  %s634_s15 = sphi %s666_s15, %s828_s15   ;;  %s630_s14 = sphi %s664_s14, %s827_s14   ;;  %s626_s13 = sphi %s662_s13, %s826_s13   ;;  %s622_s12 = sphi %s660_s12, %s825_s12  }
   0x4   : > { %p30_p0 = scmp.ge.s32.totalorder %s28_s17, 4  ;;  %p472_p1 = scmp.ge.s32.totalorder %s638_s16, 1 }
   0x5   : > { %p167_p2 = scmp.lt.s32.totalorder %s638_s16, 9 }
   0x6   : > { %s830_s17 = smov (%p30_p0, %s28_s17), 0  ;;  %s832_s18 = smov (!%p30_p0, %s32_s18), %s634_s15 }
   0x7   : > { %p168_p3 = pnand %p472_p1, %p167_p2  ;;  %p34_p4 = scmp.ge.s32.totalorder %s832_s18, 2 }
   0x8   : > { %p200_p5 = scmp.lt.s32.totalorder (!%p168_p3), %s626_s13, 1  ;;  %p202_p6 = scmp.lt.s32.totalorder (!%p168_p3), %s622_s12, 3 }
   0x9   : > { %s834_s18 = smov (%p34_p4, %s832_s18), 0  ;;  %171 = sbr.rel (%p168_p3) target bundleno = 183 (0xb7), region = 32 }
   0xe   : > { %v536_v0 = vld [vmem:[%s822_s1 + $0x70] sm:$0xf]  ;;  %v559_v1 = vld [vmem:[%s822_s1 + $0x74] sm:$0xf0]  ;;  %v558_v2 = vld [vmem:[%s822_s1 + $0x74] sm:$0xf] }
   0xf   : > { %v537_v3 = vor.u32 %v559_v1, %v536_v0  ;;  %v538_v4 = vld [vmem:[%s822_s1 + $0x78] sm:$0xf0]  ;;  %v528_v5 = vld [vmem:[%s822_s1 + $0x60] sm:$0xf]  ;;  %v557_v6 = vld [vmem:[%s822_s1 + $0x64] sm:$0xf0] }
  0x10   : > { %v541_v7 = vor.u32 %v558_v2, %v538_v4  ;;  %v556_v8 = vld [vmem:[%s822_s1 + $0x64] sm:$0xf]  ;;  %v530_v9 = vld [vmem:[%s822_s1 + $0x68] sm:$0xf0]  ;;  %v529_v10 = vor.u32 %v557_v6, %v528_v5  ;;  %v520_v12 = vld [vmem:[%s822_s1 + $0x50] sm:$0xf] }
  0x11   : > { %324 = vmatpush.bf16.msra.mxu0 %v537_v3  ;;  %v533_v11 = vor.u32 %v556_v8, %v530_v9  ;;  %v555_v13 = vld [vmem:[%s822_s1 + $0x54] sm:$0xf0]  ;;  %v554_v14 = vld [vmem:[%s822_s1 + $0x54] sm:$0xf]  ;;  %v522_v15 = vld [vmem:[%s822_s1 + $0x58] sm:$0xf0] }
  0x12   : > { %337 = vmatpush.bf16.msra.mxu1 %v541_v7  ;;  %v521_v16 = vor.u32 %v555_v13, %v520_v12  ;;  %v525_v17 = vor.u32 %v554_v14, %v522_v15  ;;  %v512_v18 = vld [vmem:[%s822_s1 + $0x40] sm:$0xf]  ;;  %v553_v19 = vld [vmem:[%s822_s1 + $0x44] sm:$0xf0]  ;;  %v552_v20 = vld [vmem:[%s822_s1 + $0x44] sm:$0xf] }
  0x13   : > { %v514_v21 = vld [vmem:[%s822_s1 + $0x48] sm:$0xf0]  ;;  %v513_v22 = vor.u32 %v553_v19, %v512_v18  ;;  %v504_v24 = vld [vmem:[%s822_s1 + $0x30] sm:$0xf]  ;;  %v551_v25 = vld [vmem:[%s822_s1 + $0x34] sm:$0xf0] }
  0x14   : > { %v517_v23 = vor.u32 %v552_v20, %v514_v21  ;;  %s836_s13 = smov (!%p200_p5, %s626_s13), 1  ;;  %v550_v26 = vld [vmem:[%s822_s1 + $0x34] sm:$0xf]  ;;  %v506_v27 = vld [vmem:[%s822_s1 + $0x38] sm:$0xf0]  ;;  %s838_s12 = smov (!%p202_p6, %s622_s12), 3  ;;  %v505_v28 = vor.u32 %v551_v25, %v504_v24 }
  0x15   : > { %325 = vmatpush.bf16.msra.mxu0 %v529_v10  ;;  %s476_s19 = sshll.u32 %s836_s13, 3  ;;  %s475_s20 = sshll.u32 %s838_s12, 1  ;;  %v509_v29 = vor.u32 %v550_v26, %v506_v27  ;;  %v496_v30 = vld [vmem:[%s822_s1 + $0x20] sm:$0xf]  ;;  %v549_v31 = vld [vmem:[%s822_s1 + $0x24] sm:$0xf0] }
  0x16   : > { %338 = vmatpush.bf16.msra.mxu1 %v533_v11  ;;  %s764_s25 = sadd.s32 %s476_s19, %s475_s20  ;;  %v548_v32 = vld [vmem:[%s822_s1 + $0x24] sm:$0xf]  ;;  %v498_v33 = vld [vmem:[%s822_s1 + $0x28] sm:$0xf0]  ;;  %v497_v34 = vor.u32 %v549_v31, %v496_v30  ;;  %s473_s30 = sshll.u32 %s836_s13, 2  ;;  %vm353_vm0 = vcmask 1043456  }
  0x17   : > { %v501_v35 = vor.u32 %v548_v32, %v498_v33  ;;  %v488_v36 = vld [vmem:[%s822_s1 + $0x10] sm:$0xf]  ;;  %v547_v37 = vld [vmem:[%s822_s1 + $0x14] sm:$0xf0]  ;;  %v546_v38 = vld [vmem:[%s822_s1 + $0x14] sm:$0xf]  ;;  %s205_s19 = sadd.s32 %s473_s30, %s838_s12 }
  0x18   : > { %v490_v39 = vld [vmem:[%s822_s1 + $0x18] sm:$0xf0]  ;;  %v489_v40 = vor.u32 %v547_v37, %v488_v36  ;;  %v480_v42 = vld [vmem:[%s822_s1] sm:$0xf]  ;;  %v545_v43 = vld [vmem:[%s822_s1 + $0x4] sm:$0xf0] }
  0x19   : > { %326 = vmatpush.bf16.msra.mxu0 %v521_v16  ;;  %v493_v41 = vor.u32 %v546_v38, %v490_v39  ;;  %v544_v44 = vld [vmem:[%s822_s1 + $0x4] sm:$0xf]  ;;  %v482_v45 = vld [vmem:[%s822_s1 + $0x8] sm:$0xf0]  ;;  %s474_s12 = sshll.u32 %s205_s19, 1  ;;  %v481_v46 = vor.u32 %v545_v43, %v480_v42  ;;  %s477_s6 = sshll.u32 %s764_s25, 2 }
  0x1a   : > { %339 = vmatpush.bf16.msra.mxu1 %v525_v17  ;;  %v485_v47 = vor.u32 %v544_v44, %v482_v45  ;;  %s207_s30 = scalar_lea.vmem %s821_s0, %s474_s12  ;;  %v362_v49 = vld [vmem:[%s823_s2] sm:$0x3]  ;;  %s217_s9 = scalar_lea.vmem %s824_s3, %s477_s6 }
  0x1b   : > { %v223_v48 = vld [vmem:[%s207_s30] sm:$0x3]  ;;  %v365_v50 = vperm.slane %v362_v49, 1  ;;  %v364_v51 = vperm.slane %v362_v49, 0 }
  0x1d   : > { %327 = vmatpush.bf16.msra.mxu0 %v513_v22  ;;  %v366_v52 = vrot.slane %v365_v50, 4 }
  0x1e   : > { %340 = vmatpush.bf16.msra.mxu1 %v517_v23 }
  0x1f   : > { %v367_v56 = vsel %vm353_vm0, %v364_v51, %v366_v52 }
  0x21   : > { %328 = vmatpush.bf16.msra.mxu0 %v505_v28 }
  0x22   : > { %341 = vmatpush.bf16.msra.mxu1 %v509_v29 }
  0x25   : > { %329 = vmatpush.bf16.msra.mxu0 %v497_v34 }
  0x26   : > { %342 = vmatpush.bf16.msra.mxu1 %v501_v35 }
  0x29   : > { %330 = vmatpush.bf16.msra.mxu0 %v489_v40 }
  0x2a   : > { %343 = vmatpush.bf16.msra.mxu1 %v493_v41 }
  0x2d   : > { %331 = vmatpush.bf16.msra.mxu0 %v481_v46 }
  0x2e   : > { %344 = vmatpush.bf16.msra.mxu1 %v485_v47 }
  0x30   : > { %332 = vmatmul.bf16.vlgmr.msra.gmra.mxu0 %v223_v48 }
  0x31   : > { %345 = vmatmul.bf16.vlgmr.msra.gmra.mxu1 %v223_v48 }
  0xad   : > { %v333_v53 = vpop.f32.mrf.mxu0 }
  0xae   : > { %v346_v54 = vpop.f32.mrf.mxu1 }
  0xaf   : > { %v352_v55 = vrot.slane %v346_v54, 4 }
  0xb1   : > { %v354_v57 = vsel %vm353_vm0, %v333_v53, %v352_v55 }
  0xb2   : > { %v369_v58 = vadd.f32 %v367_v56, %v354_v57 }
  0xb4   : > { %370 = vst [vmem:[%s217_s9] sm:$0xff] %v369_v58 }
  0xb5   : > { %v335_v59 = vpop.f32.mrf.mxu0 }
  0xb6   : > { %v348_v60 = vpop.f32.mrf.mxu1 }
  0xb7 PF: > { %s13_s16 = sadd.s32 1, %s638_s16   ;;  %s825_s12 = smov %s630_s14 }
  0xb8   : > { %p10_p7 = scmp.ge.s32.totalorder %s13_s16, 10   ;;  %s826_s13 = smov %s634_s15 }
  0xb9   : > { %s827_s14 = smov %s830_s17  ;;  %s828_s15 = smov %s834_s18 }
  0xba   :  { %12 = sbr.rel (!%p10_p7) target bundleno = 3 (0x3), region = 71 }

// kernel: generator_forward.54
= control target key start
LH: loop header
LB: loop body
LE: loop exit
PB: predicated region body
PF: predicated region fallthrough
CT: control target
= control target key end

     0   :  { %s501_s12 = smov 0   ;;  %s503_s13 = smov 0   ;;  %s545_s0 = inlined_call_operand.vmem [shape: f32[2,16,256], index: 0, kind: input, shape index: {}]   ;;  %s546_s1 = inlined_call_operand.vmem [shape: f32[2,1,256], index: 1, kind: input, shape index: {}]   ;;  %s547_s2 = inlined_call_operand.vmem [shape: f32[2,1,256], index: 2, kind: input, shape index: {}]   ;;  %s548_s3 = inlined_call_operand.vmem [shape: bf16[2,16,256], index: 3, kind: output, shape index: {}]  }
   0x1   :  { %s505_s14 = smov 0  }
   0x2 LB: > { %s25_s15 = sadd.s32 1, %s475_s13  ;;  %p420_p0 = scmp.ge.s32.totalorder %s479_s14, 1  ;;  %s479_s14 = sphi %s505_s14, %s13_s14   ;;  %s475_s13 = sphi %s503_s13, %s550_s13   ;;  %s471_s12 = sphi %s501_s12, %s549_s12  }
   0x3   : > { %p27_p1 = scmp.ge.s32.totalorder %s25_s15, 2  ;;  %p177_p2 = scmp.lt.s32.totalorder %s479_s14, 3 }
   0x5   : > { %s552_s15 = smov (%p27_p1, %s25_s15), 0  ;;  %p178_p3 = pnand %p420_p0, %p177_p2 }
   0x6   : > { %p220_p4 = scmp.lt.s32.totalorder (!%p178_p3), %s471_s12, 1 }
   0x7   : > { %181 = sbr.rel (%p178_p3) target bundleno = 52 (0x34), region = 32 }
   0xc   : > { %s554_s12 = smov (!%p220_p4, %s471_s12), 1 }
   0xd   : > { %s423_s16 = sshll.u32 %s554_s12, 1  ;;  %s429_s23 = sshll.u32 %s554_s12, 5 }
   0xe   : > { %s233_s19 = scalar_lea.vmem %s546_s1, %s423_s16  ;;  %s237_s22 = scalar_lea.vmem %s547_s2, %s423_s16 }
   0xf   : > { %v253_v0 = vld [vmem:[%s233_s19] sm:$0x3]  ;;  %s228_s26 = scalar_lea.vmem %s545_s0, %s429_s23  ;;  %s430_s27 = sshll.u32 %s554_s12, 4 }
  0x10   : > { %v254_v1 = vmul.f32 0.0625, %v253_v0  ;;  %v255_v2 = vld [vmem:[%s237_s22] sm:$0x3]  ;;  %v250_v14 = vld [vmem:[%s228_s26 + $0x8] sm:$0xff]  ;;  %v251_v16 = vld [vmem:[%s228_s26 + $0x10] sm:$0xff]  ;;  %s247_s30 = scalar_lea.vmem %s548_s3, %s430_s27 }
  0x11   : > { %v256_v3 = vmul.f32 0.0625, %v255_v2  ;;  %v249_v11 = vld [vmem:[%s228_s26] sm:$0xff]  ;;  %v252_v17 = vld [vmem:[%s228_s26 + $0x18] sm:$0xff] }
  0x12   : > { %v257_v4 = vmul.f32 %v254_v1, %v254_v1  ;;  %v260_v12 = vperm.slane %v254_v1, 0  ;;  %v261_v13 = vperm.slane %v254_v1, 1 }
  0x14   : > { %v258_v5 = vsub.f32 %v256_v3, %v257_v4  ;;  %v264_v19 = vsub.f32 %v249_v11, %v260_v12  ;;  %v265_v20 = vsub.f32 %v250_v14, %v261_v13  ;;  %v266_v21 = vsub.f32 %v251_v16, %v260_v12 }
  0x15   : > { %v267_v22 = vsub.f32 %v252_v17, %v261_v13 }
  0x16   : > { %v268_v6 = vadd.f32 1e-05, %v258_v5 }
  0x18   : > { %455 = vrsqrt.f32 %v268_v6  ;;  %vm275_vm0 = vweird.f32 %v268_v6 }
  0x1e   : > { %v456_v7 = vpop.eup %455 }
  0x1f   : > { %v270_v8 = vmul.f32 %v456_v7, %v268_v6  ;;  %vm276_vm1 = vweird.f32 %v456_v7 }
  0x20   : > { %vm277_vm2 = vmor %vm275_vm0, %vm276_vm1 }
  0x21   : > { %v271_v9 = vmul.f32 %v456_v7, %v270_v8 }
  0x23   : > { %v272_v10 = vmul.f32 0.5, %v271_v9 }
  0x25   : > { %v273_v15 = vsub.f32 1.5, %v272_v10 }
  0x27   : > { %v274_v18 = vmul.f32 %v456_v7, %v273_v15 }
  0x29   : > { %v278_v23 = vsel %vm277_vm2, %v456_v7, %v274_v18 }
  0x2a   : > { %v280_v24 = vperm.slane %v278_v23, 0  ;;  %v281_v25 = vperm.slane %v278_v23, 1 }
  0x2c   : > { %v284_v26 = vmul.f32 %v280_v24, %v264_v19  ;;  %v285_v27 = vmul.f32 %v281_v25, %v265_v20  ;;  %v286_v28 = vmul.f32 %v280_v24, %v266_v21  ;;  %v287_v29 = vmul.f32 %v281_v25, %v267_v22 }
  0x2e   : > { %v288_v30 = vmax.f32 %v284_v26, 0.0  ;;  %v289_v31 = vmax.f32 %v285_v27, 0.0  ;;  %v290_v32 = vmax.f32 %v286_v28, 0.0  ;;  %v291_v33 = vmax.f32 %v287_v29, 0.0 }
  0x30   : > { %v292_v34 = vpack.c.bf16 %v289_v31, %v288_v30  ;;  %v293_v35 = vpack.c.bf16 %v291_v33, %v290_v32 }
  0x32   : > { %294 = vst [vmem:[%s247_s30] sm:$0xff] %v292_v34 }
  0x33   : > { %295 = vst [vmem:[%s247_s30 + $0x8] sm:$0xff] %v293_v35 }
  0x34 PF: > { %s13_s14 = sadd.s32 1, %s479_s14   ;;  %s549_s12 = smov %s475_s13 }
  0x35   : > { %p10_p5 = scmp.ge.s32.totalorder %s13_s14, 4   ;;  %s550_s13 = smov %s552_s15 }
  0x37   :  { %12 = sbr.rel (!%p10_p5) target bundleno = 2 (0x2), region = 68 }

// kernel: generator_forward.53
= control target key start
LH: loop header
LB: loop body
LE: loop exit
PB: predicated region body
PF: predicated region fallthrough
CT: control target
= control target key end

     0   :  { %s429_s9 = smov 0   ;;  %s431_s10 = smov 0   ;;  %s487_s0 = inlined_call_operand.vmem [shape: f32[2,16,256], index: 0, kind: input, shape index: {}]   ;;  %s488_s1 = inlined_call_operand.vmem [shape: f32[2,1,256], index: 1, kind: output, shape index: {0}]   ;;  %s489_s2 = inlined_call_operand.vmem [shape: f32[2,1,256], index: 2, kind: output, shape index: {1}]  }
   0x1   :  { %s433_s11 = smov 0  }
   0x2 LB: > { %s25_s12 = sadd.s32 1, %s407_s10  ;;  %p356_p0 = scmp.ge.s32.totalorder %s411_s11, 1  ;;  %s411_s11 = sphi %s433_s11, %s13_s11   ;;  %s407_s10 = sphi %s431_s10, %s493_s10   ;;  %s403_s9 = sphi %s429_s9, %s492_s9  }
   0x3   : > { %p27_p1 = scmp.ge.s32.totalorder %s25_s12, 2  ;;  %p135_p2 = scmp.lt.s32.totalorder %s411_s11, 3 }
   0x5   : > { %s495_s12 = smov (%p27_p1, %s25_s12), 0  ;;  %p136_p3 = pnand %p356_p0, %p135_p2 }
   0x6   : > { %p166_p4 = scmp.lt.s32.totalorder (!%p136_p3), %s403_s9, 1 }
   0x7   : > { %139 = sbr.rel (%p136_p3) target bundleno = 39 (0x27), region = 24 }
   0xc   : > { %v188_v0 = vlaneseq  ;;  %s497_s9 = smov (!%p166_p4, %s403_s9), 1  ;;  %v413_v2 = vmov 0.0   ;;  %vm216_vm1 = vcmask 1040384  }
   0xd   : > { %s363_s13 = sshll.u32 %s497_s9, 5  ;;  %s359_s14 = sshll.u32 %s497_s9, 1 }
   0xe   : > { %vm447_vm0 = vcmp.lt.s32.totalorder %v188_v0, 256  ;;  %s174_s17 = scalar_lea.vmem %s487_s0, %s363_s13  ;;  %s457_s20 = scalar_lea.vmem %s488_s1, %s359_s14 }
   0xf   : > { %192 = vst.msk [vmem:[%s457_s20] sm:$0x3] %vm447_vm0, %v413_v2  ;;  %v194_v3 = vld [vmem:[%s174_s17] sm:$0xff]  ;;  %v195_v4 = vld [vmem:[%s174_s17 + $0x8] sm:$0xff]  ;;  %v196_v5 = vld [vmem:[%s174_s17 + $0x10] sm:$0xff]  ;;  %s465_s23 = scalar_lea.vmem %s489_s2, %s359_s14 }
  0x10   : > { %v197_v6 = vld [vmem:[%s174_s17 + $0x18] sm:$0xff]  ;;  %v199_v7 = vadd.f32 %v196_v5, %v194_v3  ;;  %v226_v8 = vmul.f32 %v194_v3, %v194_v3  ;;  %v227_v9 = vmul.f32 %v195_v4, %v195_v4  ;;  %v228_v10 = vmul.f32 %v196_v5, %v196_v5  ;;  %193 = vst.msk [vmem:[%s465_s23] sm:$0x3] %vm447_vm0, %v413_v2 }
  0x11   : > { %v206_v11 = vadd.f32 %v197_v6, %v195_v4  ;;  %v229_v12 = vmul.f32 %v197_v6, %v197_v6 }
  0x12   : > { %v200_v13 = vrot.slane %v199_v7, 4  ;;  %v230_v14 = vadd.f32 %v228_v10, %v226_v8 }
  0x13   : > { %v207_v15 = vrot.slane %v206_v11, 4  ;;  %v237_v16 = vadd.f32 %v229_v12, %v227_v9 }
  0x14   : > { %v201_v17 = vadd.f32 %v200_v13, %v199_v7  ;;  %v231_v18 = vrot.slane %v230_v14, 4 }
  0x15   : > { %v208_v19 = vadd.f32 %v207_v15, %v206_v11  ;;  %v238_v20 = vrot.slane %v237_v16, 4 }
  0x16   : > { %v202_v21 = vrot.slane %v201_v17, 2  ;;  %v232_v22 = vadd.f32 %v231_v18, %v230_v14  ;;  %v198_v37 = vld [vmem:[%s457_s20] sm:$0x3] }
  0x17   : > { %v209_v23 = vrot.slane %v208_v19, 2  ;;  %v239_v24 = vadd.f32 %v238_v20, %v237_v16  ;;  %v225_v42 = vld [vmem:[%s465_s23] sm:$0x3] }
  0x18   : > { %v203_v25 = vadd.f32 %v202_v21, %v201_v17  ;;  %v233_v26 = vrot.slane %v232_v22, 2 }
  0x19   : > { %v210_v27 = vadd.f32 %v209_v23, %v208_v19  ;;  %v240_v28 = vrot.slane %v239_v24, 2 }
  0x1a   : > { %v204_v29 = vrot.slane %v203_v25, 1  ;;  %v234_v30 = vadd.f32 %v233_v26, %v232_v22 }
  0x1b   : > { %v211_v31 = vrot.slane %v210_v27, 1  ;;  %v241_v32 = vadd.f32 %v240_v28, %v239_v24 }
  0x1c   : > { %v235_v33 = vrot.slane %v234_v30, 1  ;;  %v205_v34 = vadd.f32 %v204_v29, %v203_v25 }
  0x1d   : > { %v212_v35 = vadd.f32 %v211_v31, %v210_v27  ;;  %v242_v36 = vrot.slane %v241_v32, 1 }
  0x1e   : > { %v236_v39 = vadd.f32 %v235_v33, %v234_v30 }
  0x1f   : > { %v215_v38 = vrot.slane %v212_v35, 7  ;;  %v243_v40 = vadd.f32 %v242_v36, %v241_v32 }
  0x21   : > { %v217_v41 = vsel %vm216_vm1, %v205_v34, %v215_v38  ;;  %v246_v43 = vrot.slane %v243_v40, 7 }
  0x22   : > { %v219_v44 = vadd.f32 %v217_v41, %v198_v37 }
  0x23   : > { %v247_v45 = vsel %vm216_vm1, %v236_v39, %v246_v43 }
  0x24   : > { %224 = vst.msk [vmem:[%s457_s20] sm:$0x3] %vm447_vm0, %v219_v44  ;;  %v249_v46 = vadd.f32 %v247_v45, %v225_v42 }
  0x26   : > { %250 = vst.msk [vmem:[%s465_s23] sm:$0x3] %vm447_vm0, %v249_v46 }
  0x27 PF: > { %s13_s11 = sadd.s32 1, %s411_s11   ;;  %s492_s9 = smov %s407_s10 }
  0x28   : > { %p10_p5 = scmp.ge.s32.totalorder %s13_s11, 4   ;;  %s493_s10 = smov %s495_s12 }
  0x2a   :  { %12 = sbr.rel (!%p10_p5) target bundleno = 2 (0x2), region = 70 }

// kernel: generator_forward.60
= control target key start
LH: loop header
LB: loop body
LE: loop exit
PB: predicated region body
PF: predicated region fallthrough
CT: control target
= control target key end

     0   :  { %s602_s15 = smov 0   ;;  %s604_s16 = smov 0   ;;  %s653_s0 = inlined_call_operand.vmem [shape: f32[2,16,256], index: 0, kind: input, shape index: {}]   ;;  %s654_s1 = inlined_call_operand.vmem [shape: f32[2,1,256], index: 1, kind: input, shape index: {}]   ;;  %s655_s2 = inlined_call_operand.vmem [shape: f32[2,1,256], index: 2, kind: input, shape index: {}]   ;;  %s656_s3 = inlined_call_operand.vmem [shape: bf16[2,16,256], index: 3, kind: input, shape index: {}]   ;;  %s657_s4 = inlined_call_operand.vmem [shape: bf16[2,16,256], index: 4, kind: output, shape index: {}]  }
   0x1   :  { %s606_s17 = smov 0  }
   0x2 LB: > { %s26_s18 = sadd.s32 1, %s571_s16  ;;  %p513_p0 = scmp.ge.s32.totalorder %s575_s17, 1  ;;  %s575_s17 = sphi %s606_s17, %s14_s17   ;;  %s571_s16 = sphi %s604_s16, %s659_s16   ;;  %s567_s15 = sphi %s602_s15, %s658_s15  }
   0x3   : > { %p28_p1 = scmp.ge.s32.totalorder %s26_s18, 2  ;;  %p220_p2 = scmp.lt.s32.totalorder %s575_s17, 3 }
   0x5   : > { %s661_s18 = smov (%p28_p1, %s26_s18), 0  ;;  %p221_p3 = pnand %p513_p0, %p220_p2 }
   0x6   : > { %p275_p4 = scmp.lt.s32.totalorder (!%p221_p3), %s567_s15, 1 }
   0x7   : > { %224 = sbr.rel (%p221_p3) target bundleno = 52 (0x34), region = 36 }
   0xc   : > { %s663_s15 = smov (!%p275_p4, %s567_s15), 1 }
   0xd   : > { %s516_s19 = sshll.u32 %s663_s15, 1  ;;  %s524_s26 = sshll.u32 %s663_s15, 5 }
   0xe   : > { %s288_s22 = scalar_lea.vmem %s654_s1, %s516_s19  ;;  %s292_s25 = scalar_lea.vmem %s655_s2, %s516_s19 }
   0xf   : > { %v319_v0 = vld [vmem:[%s288_s22] sm:$0x3]  ;;  %s525_s27 = sshll.u32 %s663_s15, 4  ;;  %s283_s30 = scalar_lea.vmem %s653_s0, %s524_s26 }
  0x10   : > { %v320_v1 = vmul.f32 0.0625, %v319_v0  ;;  %v321_v2 = vld [vmem:[%s292_s25] sm:$0x3]  ;;  %s302_s7 = scalar_lea.vmem %s656_s3, %s525_s27  ;;  %v316_v14 = vld [vmem:[%s283_s30 + $0x8] sm:$0xff]  ;;  %v317_v16 = vld [vmem:[%s283_s30 + $0x10] sm:$0xff]  ;;  %s313_s10 = scalar_lea.vmem %s657_s4, %s525_s27 }
  0x11   : > { %v322_v3 = vmul.f32 0.0625, %v321_v2  ;;  %v315_v11 = vld [vmem:[%s283_s30] sm:$0xff]  ;;  %v318_v17 = vld [vmem:[%s283_s30 + $0x18] sm:$0xff]  ;;  %v355_v20 = vld [vmem:[%s302_s7 + $0x8] sm:$0xff] }
  0x12   : > { %v323_v4 = vmul.f32 %v320_v1, %v320_v1  ;;  %v326_v12 = vperm.slane %v320_v1, 0  ;;  %v327_v13 = vperm.slane %v320_v1, 1  ;;  %v354_v18 = vld [vmem:[%s302_s7] sm:$0xff]  ;;  %v358_v30 = vunpack.c.l.bf16 %v355_v20 }
  0x13   : > { %v356_v26 = vunpack.c.l.bf16 %v354_v18  ;;  %v357_v27 = vunpack.c.h.bf16 %v354_v18  ;;  %v359_v31 = vunpack.c.h.bf16 %v355_v20 }
  0x14   : > { %v324_v5 = vsub.f32 %v322_v3, %v323_v4  ;;  %v330_v21 = vsub.f32 %v315_v11, %v326_v12  ;;  %v331_v22 = vsub.f32 %v316_v14, %v327_v13  ;;  %v332_v23 = vsub.f32 %v317_v16, %v326_v12 }
  0x15   : > { %v333_v24 = vsub.f32 %v318_v17, %v327_v13 }
  0x16   : > { %v334_v6 = vadd.f32 1e-05, %v324_v5 }
  0x18   : > { %551 = vrsqrt.f32 %v334_v6  ;;  %vm341_vm0 = vweird.f32 %v334_v6 }
  0x1e   : > { %v552_v7 = vpop.eup %551 }
  0x1f   : > { %v336_v8 = vmul.f32 %v552_v7, %v334_v6  ;;  %vm342_vm1 = vweird.f32 %v552_v7 }
  0x20   : > { %vm343_vm2 = vmor %vm341_vm0, %vm342_vm1 }
  0x21   : > { %v337_v9 = vmul.f32 %v552_v7, %v336_v8 }
  0x23   : > { %v338_v10 = vmul.f32 0.5, %v337_v9 }
  0x25   : > { %v339_v15 = vsub.f32 1.5, %v338_v10 }
  0x27   : > { %v340_v19 = vmul.f32 %v552_v7, %v339_v15 }
  0x29   : > { %v344_v25 = vsel %vm343_vm2, %v552_v7, %v340_v19 }
  0x2a   : > { %v346_v28 = vperm.slane %v344_v25, 0  ;;  %v347_v29 = vperm.slane %v344_v25, 1 }
  0x2c   : > { %v350_v32 = vmul.f32 %v346_v28, %v330_v21  ;;  %v351_v33 = vmul.f32 %v347_v29, %v331_v22  ;;  %v352_v34 = vmul.f32 %v346_v28, %v332_v23  ;;  %v353_v35 = vmul.f32 %v347_v29, %v333_v24 }
  0x2e   : > { %v360_v36 = vadd.f32 %v356_v26, %v350_v32  ;;  %v361_v37 = vadd.f32 %v357_v27, %v351_v33  ;;  %v362_v38 = vadd.f32 %v358_v30, %v352_v34  ;;  %v363_v39 = vadd.f32 %v359_v31, %v353_v35 }
  0x30   : > { %v364_v40 = vpack.c.bf16 %v361_v37, %v360_v36  ;;  %v365_v41 = vpack.c.bf16 %v363_v39, %v362_v38 }
  0x32   : > { %366 = vst [vmem:[%s313_s10] sm:$0xff] %v364_v40 }
  0x33   : > { %367 = vst [vmem:[%s313_s10 + $0x8] sm:$0xff] %v365_v41 }
  0x34 PF: > { %s14_s17 = sadd.s32 1, %s575_s17   ;;  %s658_s15 = smov %s571_s16 }
  0x35   : > { %p11_p5 = scmp.ge.s32.totalorder %s14_s17, 4   ;;  %s659_s16 = smov %s661_s18 }
  0x37   :  { %13 = sbr.rel (!%p11_p5) target bundleno = 2 (0x2), region = 75 }

// kernel: generator_forward.55
= control target key start
LH: loop header
LB: loop body
LE: loop exit
PB: predicated region body
PF: predicated region fallthrough
CT: control target
= control target key end

     0   :  { %s1854_s12 = smov 0   ;;  %s1856_s13 = smov 0   ;;  %s2146_s0 = inlined_call_operand.vmem [shape: bf16[2,6,6,256], index: 0, kind: input, shape index: {}]   ;;  %s2147_s1 = inlined_call_operand.vmem [shape: bf16[3,3,256,256], index: 1, kind: input, shape index: {}]   ;;  %s2148_s2 = inlined_call_operand.vmem [shape: f32[1,256], index: 2, kind: input, shape index: {}]   ;;  %s2149_s3 = inlined_call_operand.vmem [shape: f32[2,4,4,256], index: 3, kind: output, shape index: {}]  }
   0x1   :  { %s1858_s14 = smov 0   ;;  %s1860_s15 = smov 0  }
   0x2   :  { %s1862_s16 = smov 0   ;;  %s1864_s17 = smov 0  }
   0x3   :  { %s1866_s18 = smov 0  }
   0x4 LB: > { %s25_s19 = sadd.s32 1, %s1819_s15  ;;  %s28_s20 = sadd.s32 1, %s1823_s16  ;;  %s1831_s18 = sphi %s1866_s18, %s13_s18   ;;  %s1827_s17 = sphi %s1864_s17, %s2155_s17   ;;  %s1823_s16 = sphi %s1862_s16, %s2154_s16   ;;  %s1819_s15 = sphi %s1860_s15, %s2153_s15   ;;  %s1815_s14 = sphi %s1858_s14, %s2152_s14   ;;  %s1811_s13 = sphi %s1856_s13, %s2151_s13   ;;  %s1807_s12 = sphi %s1854_s12, %s2150_s12  }
   0x5   : > { %p26_p0 = scmp.ge.s32.totalorder %s25_s19, 3  ;;  %p1161_p1 = scmp.ge.s32.totalorder %s1831_s18, 1 }
   0x6   : > { %p168_p2 = scmp.lt.s32.totalorder %s1831_s18, 25  ;;  %s32_s21 = sadd.s32 1, %s1827_s17 }
   0x7   : > { %s2157_s19 = smov (%p26_p0, %s25_s19), 0  ;;  %s2159_s20 = smov (!%p26_p0, %s28_s20), %s1823_s16 }
   0x8   : > { %p169_p3 = pnand %p1161_p1, %p168_p2  ;;  %p30_p4 = scmp.ge.s32.totalorder %s2159_s20, 4 }
   0x9   : > { %s201_s22 = sadd.s32 (!%p169_p3), %s1807_s12, %s1811_s13  ;;  %p202_p6 = scmp.lt.s32.totalorder (!%p169_p3), %s1815_s14, 1 }
   0xa   : > { %s2161_s20 = smov (%p30_p4, %s2159_s20), 0  ;;  %s2163_s21 = smov (!%p30_p4, %s32_s21), %s1827_s17 }
   0xb   : > { %p34_p5 = scmp.ge.s32.totalorder %s2163_s21, 2  ;;  %172 = sbr.rel (%p169_p3) target bundleno = 282 (0x11a), region = 32 }
   0xc   : > { %p204_p7 = scmp.lt.s32.totalorder (!%p169_p3), %s201_s22, 5  ;;  %p214_p8 = scmp.lt.s32.totalorder (!%p169_p3), %s1811_s13, 3 }
   0xd   : > { %s2165_s21 = smov (%p34_p5, %s2163_s21), 0  ;;  %p1167_p9 = scmp.ne.s32.totalorder (!%p169_p3), %s1807_s12, 0 }
  0x10   : > { %s2167_s14 = smov (!%p202_p6, %s1815_s14), 1  ;;  %s2169_s22 = smov (!%p204_p7, %s201_s22), 5 }
  0x11   : > { %s1719_s23 = smul.u32 12, %s2167_s14  ;;  %s1162_s24 = sshll.u32 %s2169_s22, 1 }
  0x12   : > { %s1165_s30 = sshll.u32 %s2167_s14, 3  ;;  %s2171_s13 = smov (!%p214_p8, %s1811_s13), 3 }
  0x13   : > { %s208_s25 = sadd.s32 %s1719_s23, %s1162_s24  ;;  %s1164_s4 = sshll.u32 %s2171_s13, 1 }
  0x14   : > { %s1163_s26 = sshll.u32 %s208_s25, 2  ;;  %s218_s5 = sadd.s32 %s1165_s30, %s1164_s4 }
  0x15   : > { %s1906_s29 = scalar_lea.vmem %s2146_s0, %s1163_s26  ;;  %s1166_s6 = sshll.u32 %s218_s5, 2 }
  0x16   : > { %s1912_s9 = scalar_lea.vmem %s2149_s3, %s1166_s6  ;;  %224 = sbr.rel (%p1167_p9) target bundleno = 29 (0x1d), region = 36 }
  0x1b   : > { %v1833_v0 = vmov 0.0  }
  0x1c   : > { %225 = vst [vmem:[#allocation2] sm:$0xff] %v1833_v0 }
  0x1d PF: > { %s1622_s10 = smul.u32 768, %s1807_s12  ;;  %vm485_vm0 = vcmask 1043456   ;;  %p1619_p10 = scmp.ne.s32.totalorder %s1807_s12, 2 }
  0x1f   : > { %s1919_s14 = scalar_lea.vmem %s2147_s1, %s1622_s10 }
  0x20   : > { %v1227_v1 = vld [vmem:[%s1919_s14 + $0x70] sm:$0xf]  ;;  %v1638_v2 = vld [vmem:[%s1919_s14 + $0x74] sm:$0xf0]  ;;  %v1637_v6 = vld [vmem:[%s1919_s14 + $0x74] sm:$0xf] }
  0x21   : > { %v1291_v3 = vld [vmem:[%s1919_s14 + $0xf0] sm:$0xf]  ;;  %v1228_v4 = vor.u32 %v1638_v2, %v1227_v1  ;;  %v1654_v5 = vld [vmem:[%s1919_s14 + $0xf4] sm:$0xf0]  ;;  %v1229_v7 = vld [vmem:[%s1919_s14 + $0x78] sm:$0xf0] }
  0x22   : > { %v1292_v8 = vor.u32 %v1654_v5, %v1291_v3  ;;  %v1232_v9 = vor.u32 %v1637_v6, %v1229_v7  ;;  %v1653_v10 = vld [vmem:[%s1919_s14 + $0xf4] sm:$0xf]  ;;  %v1293_v11 = vld [vmem:[%s1919_s14 + $0xf8] sm:$0xf0]  ;;  %v1219_v12 = vld [vmem:[%s1919_s14 + $0x60] sm:$0xf] }
  0x23   : > { %430 = vmatpush.bf16.msra.mxu0 %v1228_v4  ;;  %v1296_v13 = vor.u32 %v1653_v10, %v1293_v11  ;;  %v1636_v14 = vld [vmem:[%s1919_s14 + $0x64] sm:$0xf0]  ;;  %v1283_v15 = vld [vmem:[%s1919_s14 + $0xe0] sm:$0xf]  ;;  %v1635_v19 = vld [vmem:[%s1919_s14 + $0x64] sm:$0xf] }
  0x24   : > { %v1652_v16 = vld [vmem:[%s1919_s14 + $0xe4] sm:$0xf0]  ;;  %443 = vmatpush.bf16.msra.mxu1 %v1292_v8  ;;  %456 = vmatpush.bf16.msra.mxu2 %v1232_v9  ;;  %v1220_v17 = vor.u32 %v1636_v14, %v1219_v12  ;;  %v1221_v20 = vld [vmem:[%s1919_s14 + $0x68] sm:$0xf0]  ;;  %v1651_v21 = vld [vmem:[%s1919_s14 + $0xe4] sm:$0xf] }
  0x25   : > { %v1284_v18 = vor.u32 %v1652_v16, %v1283_v15  ;;  %469 = vmatpush.bf16.msra.mxu3 %v1296_v13  ;;  %v1224_v22 = vor.u32 %v1635_v19, %v1221_v20  ;;  %v1285_v23 = vld [vmem:[%s1919_s14 + $0xe8] sm:$0xf0]  ;;  %v1211_v24 = vld [vmem:[%s1919_s14 + $0x50] sm:$0xf]  ;;  %v1634_v25 = vld [vmem:[%s1919_s14 + $0x54] sm:$0xf0] }
  0x26   : > { %v1288_v26 = vor.u32 %v1651_v21, %v1285_v23  ;;  %v1275_v27 = vld [vmem:[%s1919_s14 + $0xd0] sm:$0xf]  ;;  %v1650_v28 = vld [vmem:[%s1919_s14 + $0xd4] sm:$0xf0]  ;;  %v1633_v29 = vld [vmem:[%s1919_s14 + $0x54] sm:$0xf]  ;;  %v1212_v30 = vor.u32 %v1634_v25, %v1211_v24 }
  0x27   : > { %431 = vmatpush.bf16.msra.mxu0 %v1220_v17  ;;  %v1213_v31 = vld [vmem:[%s1919_s14 + $0x58] sm:$0xf0]  ;;  %v1649_v32 = vld [vmem:[%s1919_s14 + $0xd4] sm:$0xf]  ;;  %v1276_v34 = vor.u32 %v1650_v28, %v1275_v27  ;;  %v1203_v36 = vld [vmem:[%s1919_s14 + $0x40] sm:$0xf] }
  0x28   : > { %v1277_v33 = vld [vmem:[%s1919_s14 + $0xd8] sm:$0xf0]  ;;  %444 = vmatpush.bf16.msra.mxu1 %v1284_v18  ;;  %457 = vmatpush.bf16.msra.mxu2 %v1224_v22  ;;  %v1216_v35 = vor.u32 %v1633_v29, %v1213_v31  ;;  %v1632_v37 = vld [vmem:[%s1919_s14 + $0x44] sm:$0xf0]  ;;  %v1267_v38 = vld [vmem:[%s1919_s14 + $0xc0] sm:$0xf] }
  0x29   : > { %470 = vmatpush.bf16.msra.mxu3 %v1288_v26  ;;  %v1280_v39 = vor.u32 %v1649_v32, %v1277_v33  ;;  %v1648_v40 = vld [vmem:[%s1919_s14 + $0xc4] sm:$0xf0]  ;;  %v1631_v41 = vld [vmem:[%s1919_s14 + $0x44] sm:$0xf]  ;;  %v1205_v42 = vld [vmem:[%s1919_s14 + $0x48] sm:$0xf0]  ;;  %v1204_v45 = vor.u32 %v1632_v37, %v1203_v36 }
  0x2a   : > { %v1647_v43 = vld [vmem:[%s1919_s14 + $0xc4] sm:$0xf]  ;;  %v1269_v44 = vld [vmem:[%s1919_s14 + $0xc8] sm:$0xf0]  ;;  %v1268_v46 = vor.u32 %v1648_v40, %v1267_v38  ;;  %v1208_v47 = vor.u32 %v1631_v41, %v1205_v42  ;;  %v1195_v48 = vld [vmem:[%s1919_s14 + $0x30] sm:$0xf] }
  0x2b   : > { %432 = vmatpush.bf16.msra.mxu0 %v1212_v30  ;;  %v1630_v49 = vld [vmem:[%s1919_s14 + $0x34] sm:$0xf0]  ;;  %v1259_v50 = vld [vmem:[%s1919_s14 + $0xb0] sm:$0xf]  ;;  %v1272_v51 = vor.u32 %v1647_v43, %v1269_v44  ;;  %v1629_v53 = vld [vmem:[%s1919_s14 + $0x34] sm:$0xf] }
  0x2c   : > { %445 = vmatpush.bf16.msra.mxu1 %v1276_v34  ;;  %458 = vmatpush.bf16.msra.mxu2 %v1216_v35  ;;  %v1646_v52 = vld [vmem:[%s1919_s14 + $0xb4] sm:$0xf0]  ;;  %v1197_v54 = vld [vmem:[%s1919_s14 + $0x38] sm:$0xf0]  ;;  %v1645_v55 = vld [vmem:[%s1919_s14 + $0xb4] sm:$0xf]  ;;  %v1196_v57 = vor.u32 %v1630_v49, %v1195_v48 }
  0x2d   : > { %471 = vmatpush.bf16.msra.mxu3 %v1280_v39  ;;  %v1261_v56 = vld [vmem:[%s1919_s14 + $0xb8] sm:$0xf0]  ;;  %v1260_v58 = vor.u32 %v1646_v52, %v1259_v50  ;;  %v1200_v59 = vor.u32 %v1629_v53, %v1197_v54  ;;  %v1187_v60 = vld [vmem:[%s1919_s14 + $0x20] sm:$0xf]  ;;  %v1628_v61 = vld [vmem:[%s1919_s14 + $0x24] sm:$0xf0] }
  0x2e   : > { %v1251_v62 = vld [vmem:[%s1919_s14 + $0xa0] sm:$0xf]  ;;  %v1264_v63 = vor.u32 %v1645_v55, %v1261_v56  ;;  %v1644_v0 = vld [vmem:[%s1919_s14 + $0xa4] sm:$0xf0]  ;;  %v1627_v1 = vld [vmem:[%s1919_s14 + $0x24] sm:$0xf]  ;;  %v1188_v5 = vor.u32 %v1628_v61, %v1187_v60 }
  0x2f   : > { %433 = vmatpush.bf16.msra.mxu0 %v1204_v45  ;;  %v1189_v2 = vld [vmem:[%s1919_s14 + $0x28] sm:$0xf0]  ;;  %v1643_v3 = vld [vmem:[%s1919_s14 + $0xa4] sm:$0xf]  ;;  %v1252_v6 = vor.u32 %v1644_v0, %v1251_v62  ;;  %v1179_v8 = vld [vmem:[%s1919_s14 + $0x10] sm:$0xf] }
  0x30   : > { %446 = vmatpush.bf16.msra.mxu1 %v1268_v46  ;;  %459 = vmatpush.bf16.msra.mxu2 %v1208_v47  ;;  %v1253_v4 = vld [vmem:[%s1919_s14 + $0xa8] sm:$0xf0]  ;;  %v1192_v7 = vor.u32 %v1627_v1, %v1189_v2  ;;  %v1626_v9 = vld [vmem:[%s1919_s14 + $0x14] sm:$0xf0]  ;;  %v1243_v10 = vld [vmem:[%s1919_s14 + $0x90] sm:$0xf] }
  0x31   : > { %472 = vmatpush.bf16.msra.mxu3 %v1272_v51  ;;  %v1256_v11 = vor.u32 %v1643_v3, %v1253_v4  ;;  %v1642_v12 = vld [vmem:[%s1919_s14 + $0x94] sm:$0xf0]  ;;  %v1625_v13 = vld [vmem:[%s1919_s14 + $0x14] sm:$0xf]  ;;  %v1181_v14 = vld [vmem:[%s1919_s14 + $0x18] sm:$0xf0]  ;;  %v1180_v17 = vor.u32 %v1626_v9, %v1179_v8 }
  0x32   : > { %v1641_v15 = vld [vmem:[%s1919_s14 + $0x94] sm:$0xf]  ;;  %v1245_v16 = vld [vmem:[%s1919_s14 + $0x98] sm:$0xf0]  ;;  %v1171_v18 = vld [vmem:[%s1919_s14] sm:$0xf]  ;;  %v1244_v20 = vor.u32 %v1642_v12, %v1243_v10  ;;  %v1184_v21 = vor.u32 %v1625_v13, %v1181_v14 }
  0x33   : > { %434 = vmatpush.bf16.msra.mxu0 %v1196_v57  ;;  %v1624_v19 = vld [vmem:[%s1919_s14 + $0x4] sm:$0xf0]  ;;  %v1235_v22 = vld [vmem:[%s1919_s14 + $0x80] sm:$0xf]  ;;  %v1623_v24 = vld [vmem:[%s1919_s14 + $0x4] sm:$0xf]  ;;  %v1248_v25 = vor.u32 %v1641_v15, %v1245_v16 }
  0x34   : > { %447 = vmatpush.bf16.msra.mxu1 %v1260_v58  ;;  %460 = vmatpush.bf16.msra.mxu2 %v1200_v59  ;;  %v1640_v23 = vld [vmem:[%s1919_s14 + $0x84] sm:$0xf0]  ;;  %v1173_v26 = vld [vmem:[%s1919_s14 + $0x8] sm:$0xf0]  ;;  %v1639_v27 = vld [vmem:[%s1919_s14 + $0x84] sm:$0xf]  ;;  %v1172_v32 = vor.u32 %v1624_v19, %v1171_v18 }
  0x35   : > { %473 = vmatpush.bf16.msra.mxu3 %v1264_v63  ;;  %v1237_v28 = vld [vmem:[%s1919_s14 + $0x88] sm:$0xf0]  ;;  %v1388_v29 = vld [vmem:[%s1919_s14 + $0x170] sm:$0xf]  ;;  %v1670_v30 = vld [vmem:[%s1919_s14 + $0x174] sm:$0xf0]  ;;  %v1236_v36 = vor.u32 %v1640_v23, %v1235_v22  ;;  %v1176_v37 = vor.u32 %v1623_v24, %v1173_v26 }
  0x36   : > { %v1452_v31 = vld [vmem:[%s1919_s14 + $0x1f0] sm:$0xf]  ;;  %v1686_v33 = vld [vmem:[%s1919_s14 + $0x1f4] sm:$0xf0]  ;;  %v1669_v34 = vld [vmem:[%s1919_s14 + $0x174] sm:$0xf]  ;;  %v1240_v40 = vor.u32 %v1639_v27, %v1237_v28  ;;  %v1389_v41 = vor.u32 %v1670_v30, %v1388_v29 }
  0x37   : > { %435 = vmatpush.bf16.msra.mxu0 %v1188_v5  ;;  %v1390_v35 = vld [vmem:[%s1919_s14 + $0x178] sm:$0xf0]  ;;  %v1685_v38 = vld [vmem:[%s1919_s14 + $0x1f4] sm:$0xf]  ;;  %v1453_v42 = vor.u32 %v1686_v33, %v1452_v31  ;;  %v1380_v44 = vld [vmem:[%s1919_s14 + $0x160] sm:$0xf] }
  0x38   : > { %448 = vmatpush.bf16.msra.mxu1 %v1252_v6  ;;  %461 = vmatpush.bf16.msra.mxu2 %v1192_v7  ;;  %v1454_v39 = vld [vmem:[%s1919_s14 + $0x1f8] sm:$0xf0]  ;;  %v1393_v43 = vor.u32 %v1669_v34, %v1390_v35  ;;  %v1668_v45 = vld [vmem:[%s1919_s14 + $0x164] sm:$0xf0]  ;;  %v1444_v46 = vld [vmem:[%s1919_s14 + $0x1e0] sm:$0xf] }
  0x39   : > { %474 = vmatpush.bf16.msra.mxu3 %v1256_v11  ;;  %v1457_v47 = vor.u32 %v1685_v38, %v1454_v39  ;;  %v1684_v48 = vld [vmem:[%s1919_s14 + $0x1e4] sm:$0xf0]  ;;  %v1667_v49 = vld [vmem:[%s1919_s14 + $0x164] sm:$0xf]  ;;  %v1382_v50 = vld [vmem:[%s1919_s14 + $0x168] sm:$0xf0]  ;;  %v1381_v53 = vor.u32 %v1668_v45, %v1380_v44 }
  0x3a   : > { %v1683_v51 = vld [vmem:[%s1919_s14 + $0x1e4] sm:$0xf]  ;;  %v1446_v52 = vld [vmem:[%s1919_s14 + $0x1e8] sm:$0xf0]  ;;  %v1372_v54 = vld [vmem:[%s1919_s14 + $0x150] sm:$0xf]  ;;  %v1445_v55 = vor.u32 %v1684_v48, %v1444_v46  ;;  %v1385_v56 = vor.u32 %v1667_v49, %v1382_v50 }
  0x3b   : > { %436 = vmatpush.bf16.msra.mxu0 %v1180_v17  ;;  %v1666_v57 = vld [vmem:[%s1919_s14 + $0x154] sm:$0xf0]  ;;  %v1436_v58 = vld [vmem:[%s1919_s14 + $0x1d0] sm:$0xf]  ;;  %v226_v59 = vld [vmem:[%s1906_s29] sm:$0x33]  ;;  %v1449_v60 = vor.u32 %v1683_v51, %v1446_v52 }
  0x3c   : > { %449 = vmatpush.bf16.msra.mxu1 %v1244_v20  ;;  %462 = vmatpush.bf16.msra.mxu2 %v1184_v21  ;;  %v1682_v61 = vld [vmem:[%s1919_s14 + $0x1d4] sm:$0xf0]  ;;  %v1665_v62 = vld [vmem:[%s1919_s14 + $0x154] sm:$0xf]  ;;  %v1374_v63 = vld [vmem:[%s1919_s14 + $0x158] sm:$0xf0]  ;;  %v264_v0 = vunpack.c.l.b16 %v226_v59  ;;  %v265_v1 = vunpack.c.h.b16 %v226_v59  ;;  %v1373_v4 = vor.u32 %v1666_v57, %v1372_v54 }
  0x3d   : > { %475 = vmatpush.bf16.msra.mxu3 %v1248_v25  ;;  %v1681_v2 = vld [vmem:[%s1919_s14 + $0x1d4] sm:$0xf]  ;;  %v1438_v3 = vld [vmem:[%s1919_s14 + $0x1d8] sm:$0xf0]  ;;  %v1437_v7 = vor.u32 %v1682_v61, %v1436_v58  ;;  %v1377_v8 = vor.u32 %v1665_v62, %v1374_v63  ;;  %v1364_v9 = vld [vmem:[%s1919_s14 + $0x140] sm:$0xf] }
  0x3e   : > { %v266_v5 = vpack.c.b16 %v264_v0, %v264_v0  ;;  %v267_v6 = vpack.c.b16 %v265_v1, %v265_v1  ;;  %v1664_v10 = vld [vmem:[%s1919_s14 + $0x144] sm:$0xf0]  ;;  %v1428_v11 = vld [vmem:[%s1919_s14 + $0x1c0] sm:$0xf]  ;;  %v1441_v12 = vor.u32 %v1681_v2, %v1438_v3  ;;  %v1663_v14 = vld [vmem:[%s1919_s14 + $0x144] sm:$0xf] }
  0x3f   : > { %437 = vmatpush.bf16.msra.mxu0 %v1172_v32  ;;  %v1680_v13 = vld [vmem:[%s1919_s14 + $0x1c4] sm:$0xf0]  ;;  %v1366_v15 = vld [vmem:[%s1919_s14 + $0x148] sm:$0xf0]  ;;  %v1679_v16 = vld [vmem:[%s1919_s14 + $0x1c4] sm:$0xf]  ;;  %v1365_v18 = vor.u32 %v1664_v10, %v1364_v9 }
  0x40   : > { %450 = vmatpush.bf16.msra.mxu1 %v1236_v36  ;;  %463 = vmatpush.bf16.msra.mxu2 %v1176_v37  ;;  %v1430_v17 = vld [vmem:[%s1919_s14 + $0x1c8] sm:$0xf0]  ;;  %v1429_v19 = vor.u32 %v1680_v13, %v1428_v11  ;;  %v1369_v20 = vor.u32 %v1663_v14, %v1366_v15  ;;  %v1356_v21 = vld [vmem:[%s1919_s14 + $0x130] sm:$0xf]  ;;  %v1662_v22 = vld [vmem:[%s1919_s14 + $0x134] sm:$0xf0] }
  0x41   : > { %476 = vmatpush.bf16.msra.mxu3 %v1240_v40  ;;  %v1420_v23 = vld [vmem:[%s1919_s14 + $0x1b0] sm:$0xf]  ;;  %v1433_v24 = vor.u32 %v1679_v16, %v1430_v17  ;;  %v1678_v25 = vld [vmem:[%s1919_s14 + $0x1b4] sm:$0xf0]  ;;  %v1661_v26 = vld [vmem:[%s1919_s14 + $0x134] sm:$0xf]  ;;  %v1357_v30 = vor.u32 %v1662_v22, %v1356_v21 }
  0x42   : > { %438 = vmatmul.bf16.vlgmr.msra.gmra.mxu0 %v266_v5  ;;  %v1358_v27 = vld [vmem:[%s1919_s14 + $0x138] sm:$0xf0]  ;;  %v1677_v28 = vld [vmem:[%s1919_s14 + $0x1b4] sm:$0xf]  ;;  %v1421_v31 = vor.u32 %v1678_v25, %v1420_v23  ;;  %v1348_v33 = vld [vmem:[%s1919_s14 + $0x120] sm:$0xf] }
  0x43   : > { %708 = vmatpush.bf16.msrb.mxu0 %v1389_v41  ;;  %464 = vmatmul.bf16.vlgmr.msra.gmra.mxu2 %v266_v5  ;;  %v1422_v29 = vld [vmem:[%s1919_s14 + $0x1b8] sm:$0xf0]  ;;  %v1361_v32 = vor.u32 %v1661_v26, %v1358_v27  ;;  %v1660_v34 = vld [vmem:[%s1919_s14 + $0x124] sm:$0xf0]  ;;  %v1412_v35 = vld [vmem:[%s1919_s14 + $0x1a0] sm:$0xf] }
  0x44   : > { %721 = vmatpush.bf16.msrb.mxu1 %v1453_v42  ;;  %734 = vmatpush.bf16.msrb.mxu2 %v1393_v43  ;;  %v1425_v36 = vor.u32 %v1677_v28, %v1422_v29  ;;  %v1676_v37 = vld [vmem:[%s1919_s14 + $0x1a4] sm:$0xf0]  ;;  %v1659_v38 = vld [vmem:[%s1919_s14 + $0x124] sm:$0xf]  ;;  %v1350_v39 = vld [vmem:[%s1919_s14 + $0x128] sm:$0xf0]  ;;  %v1349_v43 = vor.u32 %v1660_v34, %v1348_v33 }
  0x45   : > { %747 = vmatpush.bf16.msrb.mxu3 %v1457_v47  ;;  %451 = vmatmul.bf16.vlgmr.msra.gmra.mxu1 %v267_v6  ;;  %v1675_v40 = vld [vmem:[%s1919_s14 + $0x1a4] sm:$0xf]  ;;  %v1414_v41 = vld [vmem:[%s1919_s14 + $0x1a8] sm:$0xf0]  ;;  %v1340_v44 = vld [vmem:[%s1919_s14 + $0x110] sm:$0xf]  ;;  %v1413_v47 = vor.u32 %v1676_v37, %v1412_v35  ;;  %v1353_v48 = vor.u32 %v1659_v38, %v1350_v39 }
  0x46   : > { %477 = vmatmul.bf16.vlgmr.msra.gmra.mxu3 %v267_v6  ;;  %v490_v42 = vld [vmem:[%s1906_s29] sm:$0x77]  ;;  %v1658_v49 = vld [vmem:[%s1919_s14 + $0x114] sm:$0xf0]  ;;  %v1404_v50 = vld [vmem:[%s1919_s14 + $0x190] sm:$0xf]  ;;  %v1417_v52 = vor.u32 %v1675_v40, %v1414_v41 }
  0x47   : > { %709 = vmatpush.bf16.msrb.mxu0 %v1381_v53  ;;  %v528_v45 = vunpack.c.l.b16 %v490_v42  ;;  %v529_v46 = vunpack.c.h.b16 %v490_v42  ;;  %v1674_v51 = vld [vmem:[%s1919_s14 + $0x194] sm:$0xf0]  ;;  %v1657_v53 = vld [vmem:[%s1919_s14 + $0x114] sm:$0xf]  ;;  %v1342_v54 = vld [vmem:[%s1919_s14 + $0x118] sm:$0xf0]  ;;  %v1341_v61 = vor.u32 %v1658_v49, %v1340_v44 }
  0x48   : > { %722 = vmatpush.bf16.msrb.mxu1 %v1445_v55  ;;  %735 = vmatpush.bf16.msrb.mxu2 %v1385_v56  ;;  %v1673_v55 = vld [vmem:[%s1919_s14 + $0x194] sm:$0xf]  ;;  %v1406_v58 = vld [vmem:[%s1919_s14 + $0x198] sm:$0xf0]  ;;  %v1332_v59 = vld [vmem:[%s1919_s14 + $0x100] sm:$0xf]  ;;  %v1405_v1 = vor.u32 %v1674_v51, %v1404_v50  ;;  %v1345_v2 = vor.u32 %v1657_v53, %v1342_v54 }
  0x49   : > { %748 = vmatpush.bf16.msrb.mxu3 %v1449_v60  ;;  %v530_v56 = vpack.c.b16 %v528_v45, %v528_v45  ;;  %v531_v57 = vpack.c.b16 %v529_v46, %v529_v46  ;;  %v1656_v60 = vld [vmem:[%s1919_s14 + $0x104] sm:$0xf0]  ;;  %v1396_v62 = vld [vmem:[%s1919_s14 + $0x180] sm:$0xf]  ;;  %v1655_v3 = vld [vmem:[%s1919_s14 + $0x104] sm:$0xf]  ;;  %v1409_v6 = vor.u32 %v1673_v55, %v1406_v58 }
  0x4a   : > { %v1672_v63 = vld [vmem:[%s1919_s14 + $0x184] sm:$0xf0]  ;;  %v1549_v9 = vld [vmem:[%s1919_s14 + $0x270] sm:$0xf]  ;;  %v1702_v10 = vld [vmem:[%s1919_s14 + $0x274] sm:$0xf0]  ;;  %v1333_v13 = vor.u32 %v1656_v60, %v1332_v59 }
  0x4b   : > { %710 = vmatpush.bf16.msrb.mxu0 %v1373_v4  ;;  %v535_v0 = vshll.u32 %v530_v56, 16  ;;  %v1334_v4 = vld [vmem:[%s1919_s14 + $0x108] sm:$0xf0]  ;;  %v542_v5 = vshll.u32 %v531_v57, 16  ;;  %v1613_v11 = vld [vmem:[%s1919_s14 + $0x2f0] sm:$0xf]  ;;  %v1550_v25 = vor.u32 %v1702_v10, %v1549_v9 }
  0x4c   : > { %723 = vmatpush.bf16.msrb.mxu1 %v1437_v7  ;;  %736 = vmatpush.bf16.msrb.mxu2 %v1377_v8  ;;  %v1671_v7 = vld [vmem:[%s1919_s14 + $0x184] sm:$0xf]  ;;  %v1398_v8 = vld [vmem:[%s1919_s14 + $0x188] sm:$0xf0]  ;;  %v1701_v14 = vld [vmem:[%s1919_s14 + $0x274] sm:$0xf] }
  0x4d   : > { %749 = vmatpush.bf16.msrb.mxu3 %v1441_v12  ;;  %v1718_v12 = vld [vmem:[%s1919_s14 + $0x2f4] sm:$0xf0]  ;;  %v1551_v15 = vld [vmem:[%s1919_s14 + $0x278] sm:$0xf0]  ;;  %v533_v16 = vshrl.u32 %v530_v56, 16  ;;  %v537_v17 = vrot.slane %v535_v0, 1 }
  0x4e   : > { %v1615_v21 = vld [vmem:[%s1919_s14 + $0x2f8] sm:$0xf0]  ;;  %v540_v22 = vshrl.u32 %v531_v57, 16  ;;  %v544_v23 = vrot.slane %v542_v5, 1  ;;  %v1614_v26 = vor.u32 %v1718_v12, %v1613_v11  ;;  %v1554_v27 = vor.u32 %v1701_v14, %v1551_v15  ;;  %v1541_v28 = vld [vmem:[%s1919_s14 + $0x260] sm:$0xf] }
  0x4f   : > { %711 = vmatpush.bf16.msrb.mxu0 %v1365_v18  ;;  %v1397_v18 = vor.u32 %v1672_v63, %v1396_v62  ;;  %v1700_v29 = vld [vmem:[%s1919_s14 + $0x264] sm:$0xf0]  ;;  %v1699_v33 = vld [vmem:[%s1919_s14 + $0x264] sm:$0xf]  ;;  %v1543_v34 = vld [vmem:[%s1919_s14 + $0x268] sm:$0xf0]  ;;  %v538_v35 = vor.u32 %v537_v17, %v533_v16 }
  0x50   : > { %724 = vmatpush.bf16.msrb.mxu1 %v1429_v19  ;;  %737 = vmatpush.bf16.msrb.mxu2 %v1369_v20  ;;  %v1337_v19 = vor.u32 %v1655_v3, %v1334_v4  ;;  %v1717_v20 = vld [vmem:[%s1919_s14 + $0x2f4] sm:$0xf]  ;;  %v1607_v37 = vld [vmem:[%s1919_s14 + $0x2e8] sm:$0xf0]  ;;  %v545_v38 = vor.u32 %v544_v23, %v540_v22  ;;  %v1542_v39 = vor.u32 %v1700_v29, %v1541_v28  ;;  %v1533_v42 = vld [vmem:[%s1919_s14 + $0x250] sm:$0xf] }
  0x51   : > { %750 = vmatpush.bf16.msrb.mxu3 %v1433_v24  ;;  %v1401_v24 = vor.u32 %v1671_v7, %v1398_v8  ;;  %v1546_v41 = vor.u32 %v1699_v33, %v1543_v34  ;;  %v1597_v44 = vld [vmem:[%s1919_s14 + $0x2d0] sm:$0xf]  ;;  %v1714_v46 = vld [vmem:[%s1919_s14 + $0x2d4] sm:$0xf0]  ;;  %v1713_v49 = vld [vmem:[%s1919_s14 + $0x2d4] sm:$0xf] }
  0x52   : > { %v1599_v50 = vld [vmem:[%s1919_s14 + $0x2d8] sm:$0xf0]  ;;  %v1525_v54 = vld [vmem:[%s1919_s14 + $0x240] sm:$0xf]  ;;  %v1696_v55 = vld [vmem:[%s1919_s14 + $0x244] sm:$0xf0] }
  0x53   : > { %712 = vmatpush.bf16.msrb.mxu0 %v1357_v30  ;;  %v1605_v30 = vld [vmem:[%s1919_s14 + $0x2e0] sm:$0xf]  ;;  %v1602_v57 = vor.u32 %v1713_v49, %v1599_v50  ;;  %v1712_v58 = vld [vmem:[%s1919_s14 + $0x2c4] sm:$0xf0]  ;;  %v1695_v59 = vld [vmem:[%s1919_s14 + $0x244] sm:$0xf]  ;;  %v1526_v63 = vor.u32 %v1696_v55, %v1525_v54 }
  0x54   : > { %725 = vmatpush.bf16.msrb.mxu1 %v1421_v31  ;;  %738 = vmatpush.bf16.msrb.mxu2 %v1361_v32  ;;  %v1618_v31 = vor.u32 %v1717_v20, %v1615_v21  ;;  %v1716_v32 = vld [vmem:[%s1919_s14 + $0x2e4] sm:$0xf0]  ;;  %v1589_v56 = vld [vmem:[%s1919_s14 + $0x2c0] sm:$0xf]  ;;  %v1527_v60 = vld [vmem:[%s1919_s14 + $0x248] sm:$0xf0] }
  0x55   : > { %751 = vmatpush.bf16.msrb.mxu3 %v1425_v36  ;;  %v1715_v36 = vld [vmem:[%s1919_s14 + $0x2e4] sm:$0xf]  ;;  %v1606_v40 = vor.u32 %v1716_v32, %v1605_v30  ;;  %v1591_v62 = vld [vmem:[%s1919_s14 + $0x2c8] sm:$0xf0]  ;;  %v1590_v0 = vor.u32 %v1712_v58, %v1589_v56  ;;  %v1694_v3 = vld [vmem:[%s1919_s14 + $0x234] sm:$0xf0] }
  0x56   : > { %v1610_v45 = vor.u32 %v1715_v36, %v1607_v37  ;;  %v1581_v4 = vld [vmem:[%s1919_s14 + $0x2b0] sm:$0xf]  ;;  %v1693_v7 = vld [vmem:[%s1919_s14 + $0x234] sm:$0xf]  ;;  %v1519_v8 = vld [vmem:[%s1919_s14 + $0x238] sm:$0xf0] }
  0x57   : > { %713 = vmatpush.bf16.msrb.mxu0 %v1349_v43  ;;  %v1698_v43 = vld [vmem:[%s1919_s14 + $0x254] sm:$0xf0]  ;;  %v1709_v9 = vld [vmem:[%s1919_s14 + $0x2b4] sm:$0xf]  ;;  %v1583_v10 = vld [vmem:[%s1919_s14 + $0x2b8] sm:$0xf0] }
  0x58   : > { %726 = vmatpush.bf16.msrb.mxu1 %v1413_v47  ;;  %739 = vmatpush.bf16.msrb.mxu2 %v1353_v48  ;;  %v1697_v47 = vld [vmem:[%s1919_s14 + $0x254] sm:$0xf]  ;;  %v1535_v48 = vld [vmem:[%s1919_s14 + $0x258] sm:$0xf0]  ;;  %v1534_v51 = vor.u32 %v1698_v43, %v1533_v42  ;;  %v1509_v14 = vld [vmem:[%s1919_s14 + $0x220] sm:$0xf]  ;;  %v1586_v17 = vor.u32 %v1709_v9, %v1583_v10 }
  0x59   : > { %752 = vmatpush.bf16.msrb.mxu3 %v1417_v52  ;;  %v1598_v52 = vor.u32 %v1714_v46, %v1597_v44  ;;  %v1538_v53 = vor.u32 %v1697_v47, %v1535_v48  ;;  %v1692_v15 = vld [vmem:[%s1919_s14 + $0x224] sm:$0xf0]  ;;  %v1573_v16 = vld [vmem:[%s1919_s14 + $0x2a0] sm:$0xf]  ;;  %v1511_v20 = vld [vmem:[%s1919_s14 + $0x228] sm:$0xf0] }
  0x5a   : > { %v1707_v21 = vld [vmem:[%s1919_s14 + $0x2a4] sm:$0xf]  ;;  %v1575_v22 = vld [vmem:[%s1919_s14 + $0x2a8] sm:$0xf0]  ;;  %v1510_v23 = vor.u32 %v1692_v15, %v1509_v14  ;;  %v1690_v28 = vld [vmem:[%s1919_s14 + $0x214] sm:$0xf0] }
  0x5b   : > { %714 = vmatpush.bf16.msrb.mxu0 %v1341_v61  ;;  %v1711_v61 = vld [vmem:[%s1919_s14 + $0x2c4] sm:$0xf]  ;;  %v1565_v29 = vld [vmem:[%s1919_s14 + $0x290] sm:$0xf]  ;;  %v1578_v30 = vor.u32 %v1707_v21, %v1575_v22  ;;  %v1689_v32 = vld [vmem:[%s1919_s14 + $0x214] sm:$0xf] }
  0x5c   : > { %727 = vmatpush.bf16.msrb.mxu1 %v1405_v1  ;;  %740 = vmatpush.bf16.msrb.mxu2 %v1345_v2  ;;  %v1530_v1 = vor.u32 %v1695_v59, %v1527_v60  ;;  %v1517_v2 = vld [vmem:[%s1919_s14 + $0x230] sm:$0xf]  ;;  %v1594_v5 = vor.u32 %v1711_v61, %v1591_v62  ;;  %v1503_v33 = vld [vmem:[%s1919_s14 + $0x218] sm:$0xf0]  ;;  %v1705_v34 = vld [vmem:[%s1919_s14 + $0x294] sm:$0xf] }
  0x5d   : > { %753 = vmatpush.bf16.msrb.mxu3 %v1409_v6  ;;  %v1710_v6 = vld [vmem:[%s1919_s14 + $0x2b4] sm:$0xf0]  ;;  %v1518_v11 = vor.u32 %v1694_v3, %v1517_v2  ;;  %v1688_v42 = vld [vmem:[%s1919_s14 + $0x204] sm:$0xf0]  ;;  %v1557_v43 = vld [vmem:[%s1919_s14 + $0x280] sm:$0xf] }
  0x5e   : > { %v1582_v12 = vor.u32 %v1710_v6, %v1581_v4  ;;  %v1687_v46 = vld [vmem:[%s1919_s14 + $0x204] sm:$0xf]  ;;  %v1495_v47 = vld [vmem:[%s1919_s14 + $0x208] sm:$0xf0] }
  0x5f   : > { %715 = vmatpush.bf16.msrb.mxu0 %v1333_v13  ;;  %v1522_v13 = vor.u32 %v1693_v7, %v1519_v8  ;;  %v1703_v48 = vld [vmem:[%s1919_s14 + $0x284] sm:$0xf]  ;;  %v1559_v49 = vld [vmem:[%s1919_s14 + $0x288] sm:$0xf0]  ;;  %v1498_v54 = vor.u32 %v1687_v46, %v1495_v47 }
  0x60   : > { %728 = vmatpush.bf16.msrb.mxu1 %v1397_v18  ;;  %741 = vmatpush.bf16.msrb.mxu2 %v1337_v19  ;;  %v1708_v18 = vld [vmem:[%s1919_s14 + $0x2a4] sm:$0xf0]  ;;  %v1691_v19 = vld [vmem:[%s1919_s14 + $0x224] sm:$0xf]  ;;  %v1562_v55 = vor.u32 %v1703_v48, %v1559_v49 }
  0x61   : > { %754 = vmatpush.bf16.msrb.mxu3 %v1401_v24  ;;  %v767_v24 = vld [vmem:[%s1906_s29] sm:$0x66] }
  0x62   : > { %716 = vmatmul.bf16.vlgmr.msrb.gmra.mxu0 %v538_v35  ;;  %v805_v36 = vunpack.c.l.b16 %v767_v24 }
  0x63   : > { %973 = vmatpush.bf16.msra.mxu0 %v1550_v25  ;;  %742 = vmatmul.bf16.vlgmr.msrb.gmra.mxu2 %v538_v35  ;;  %v1574_v25 = vor.u32 %v1708_v18, %v1573_v16  ;;  %v1567_v35 = vld [vmem:[%s1919_s14 + $0x298] sm:$0xf0]  ;;  %v262_v18 = vld [vmem:[#allocation2] sm:$0xff] }
  0x64   : > { %986 = vmatpush.bf16.msra.mxu1 %v1614_v26  ;;  %999 = vmatpush.bf16.msra.mxu2 %v1554_v27  ;;  %v1514_v26 = vor.u32 %v1691_v19, %v1511_v20  ;;  %v1501_v27 = vld [vmem:[%s1919_s14 + $0x210] sm:$0xf]  ;;  %v1570_v44 = vor.u32 %v1705_v34, %v1567_v35  ;;  %v807_v50 = vpack.c.b16 %v805_v36, %v805_v36 }
  0x65   : > { %1012 = vmatpush.bf16.msra.mxu3 %v1618_v31  ;;  %729 = vmatmul.bf16.vlgmr.msrb.gmra.mxu1 %v545_v38  ;;  %v1706_v31 = vld [vmem:[%s1919_s14 + $0x294] sm:$0xf0]  ;;  %v1502_v37 = vor.u32 %v1690_v28, %v1501_v27 }
  0x66   : > { %755 = vmatmul.bf16.vlgmr.msrb.gmra.mxu3 %v545_v38  ;;  %v806_v38 = vunpack.c.h.b16 %v767_v24  ;;  %v809_v56 = vrot.slane %v807_v50, 1 }
  0x67   : > { %974 = vmatpush.bf16.msra.mxu0 %v1542_v39  ;;  %v1566_v39 = vor.u32 %v1706_v31, %v1565_v29 }
  0x68   : > { %987 = vmatpush.bf16.msra.mxu1 %v1606_v40  ;;  %1000 = vmatpush.bf16.msra.mxu2 %v1546_v41  ;;  %v1506_v40 = vor.u32 %v1689_v32, %v1503_v33  ;;  %v1493_v41 = vld [vmem:[%s1919_s14 + $0x200] sm:$0xf] }
  0x69   : > { %1013 = vmatpush.bf16.msra.mxu3 %v1610_v45  ;;  %v1704_v45 = vld [vmem:[%s1919_s14 + $0x284] sm:$0xf0] }
  0x6b   : > { %975 = vmatpush.bf16.msra.mxu0 %v1534_v51  ;;  %v1494_v51 = vor.u32 %v1688_v42, %v1493_v41 }
  0x6c   : > { %988 = vmatpush.bf16.msra.mxu1 %v1598_v52  ;;  %1001 = vmatpush.bf16.msra.mxu2 %v1538_v53  ;;  %v808_v52 = vpack.c.b16 %v806_v38, %v806_v38  ;;  %v1558_v53 = vor.u32 %v1704_v45, %v1557_v43 }
  0x6d   : > { %1014 = vmatpush.bf16.msra.mxu3 %v1602_v57 }
  0x6e   : > { %v810_v57 = vrot.slane %v808_v52, 1 }
  0x6f   : > { %976 = vmatpush.bf16.msra.mxu0 %v1526_v63 }
  0x70   : > { %989 = vmatpush.bf16.msra.mxu1 %v1590_v0  ;;  %1002 = vmatpush.bf16.msra.mxu2 %v1530_v1 }
  0x71   : > { %1015 = vmatpush.bf16.msra.mxu3 %v1594_v5 }
  0x73   : > { %977 = vmatpush.bf16.msra.mxu0 %v1518_v11 }
  0x74   : > { %990 = vmatpush.bf16.msra.mxu1 %v1582_v12  ;;  %1003 = vmatpush.bf16.msra.mxu2 %v1522_v13 }
  0x75   : > { %1016 = vmatpush.bf16.msra.mxu3 %v1586_v17 }
  0x77   : > { %978 = vmatpush.bf16.msra.mxu0 %v1510_v23 }
  0x78   : > { %991 = vmatpush.bf16.msra.mxu1 %v1574_v25  ;;  %1004 = vmatpush.bf16.msra.mxu2 %v1514_v26 }
  0x79   : > { %1017 = vmatpush.bf16.msra.mxu3 %v1578_v30 }
  0x7b   : > { %979 = vmatpush.bf16.msra.mxu0 %v1502_v37 }
  0x7c   : > { %992 = vmatpush.bf16.msra.mxu1 %v1566_v39  ;;  %1005 = vmatpush.bf16.msra.mxu2 %v1506_v40 }
  0x7d   : > { %1018 = vmatpush.bf16.msra.mxu3 %v1570_v44 }
  0x7f   : > { %980 = vmatpush.bf16.msra.mxu0 %v1494_v51 }
  0x80   : > { %993 = vmatpush.bf16.msra.mxu1 %v1558_v53  ;;  %1006 = vmatpush.bf16.msra.mxu2 %v1498_v54 }
  0x81   : > { %1019 = vmatpush.bf16.msra.mxu3 %v1562_v55 }
  0x82   : > { %981 = vmatmul.bf16.vlgmr.msra.gmra.mxu0 %v809_v56 }
  0x83   : > { %994 = vmatmul.bf16.vlgmr.msra.gmra.mxu1 %v810_v57  ;;  %1007 = vmatmul.bf16.vlgmr.msra.gmra.mxu2 %v809_v56 }
  0x84   : > { %1020 = vmatmul.bf16.vlgmr.msra.gmra.mxu3 %v810_v57 }
  0xbf   : > { %v439_v58 = vpop.f32.mrf.mxu0 }
  0xc2   : > { %v452_v59 = vpop.f32.mrf.mxu1 }
  0xc3   : > { %v453_v14 = vadd.f32 %v452_v59, %v439_v58 }
  0xc6   : > { %v465_v60 = vpop.f32.mrf.mxu2 }
  0xc7   : > { %v441_v62 = vpop.f32.mrf.mxu0 }
  0xc9   : > { %v478_v61 = vpop.f32.mrf.mxu3 }
  0xca   : > { %v454_v63 = vpop.f32.mrf.mxu1  ;;  %v479_v10 = vadd.f32 %v478_v61, %v465_v60 }
  0xcc   : > { %v484_v15 = vrot.slane %v479_v10, 4 }
  0xce   : > { %v467_v0 = vpop.f32.mrf.mxu2  ;;  %v486_v19 = vsel %vm485_vm0, %v453_v14, %v484_v15 }
  0xcf   : > { %v488_v26 = vadd.f32 %v486_v19, %v262_v18 }
  0xd1   : > { %v480_v1 = vpop.f32.mrf.mxu3 }
  0xdf   : > { %v717_v2 = vpop.f32.mrf.mxu0 }
  0xe2   : > { %v730_v3 = vpop.f32.mrf.mxu1 }
  0xe3   : > { %v731_v16 = vadd.f32 %v730_v3, %v717_v2 }
  0xe6   : > { %v743_v4 = vpop.f32.mrf.mxu2 }
  0xe7   : > { %v719_v6 = vpop.f32.mrf.mxu0 }
  0xe9   : > { %v756_v5 = vpop.f32.mrf.mxu3 }
  0xea   : > { %v732_v7 = vpop.f32.mrf.mxu1  ;;  %v757_v12 = vadd.f32 %v756_v5, %v743_v4 }
  0xec   : > { %v762_v17 = vrot.slane %v757_v12, 4 }
  0xee   : > { %v745_v8 = vpop.f32.mrf.mxu2  ;;  %v763_v23 = vsel %vm485_vm0, %v731_v16, %v762_v17 }
  0xef   : > { %v765_v29 = vadd.f32 %v763_v23, %v488_v26 }
  0xf1   : > { %v758_v9 = vpop.f32.mrf.mxu3 }
  0xff   : > { %v982_v11 = vpop.f32.mrf.mxu0 }
 0x100   : > { %v995_v13 = vpop.f32.mrf.mxu1 }
 0x101   : > { %v996_v27 = vadd.f32 %v995_v13, %v982_v11 }
 0x106   : > { %v1008_v20 = vpop.f32.mrf.mxu2 }
 0x107   : > { %v1021_v21 = vpop.f32.mrf.mxu3  ;;  %v984_v22 = vpop.f32.mrf.mxu0 }
 0x108   : > { %v1022_v24 = vadd.f32 %v1021_v21, %v1008_v20  ;;  %v997_v25 = vpop.f32.mrf.mxu1 }
 0x10a   : > { %v1027_v28 = vrot.slane %v1022_v24, 4 }
 0x10b   : > { %1035 = sbr.rel (%p1619_p10) target bundleno = 282 (0x11a), region = 40 }
 0x10c   : > { %v1028_v30 = vsel %vm485_vm0, %v996_v27, %v1027_v28 }
 0x10d   : > { %v1030_v31 = vadd.f32 %v1028_v30, %v765_v29 }
 0x10e   : > { %v1010_v32 = vpop.f32.mrf.mxu2 }
 0x10f   : > { %1031 = vst [vmem:[#allocation2] sm:$0xff] %v1030_v31  ;;  %v1023_v33 = vpop.f32.mrf.mxu3 }
 0x110   : > { %v1037_v34 = vld [vmem:[%s2148_s2] sm:$0x3] }
 0x111   : > { %v1039_v35 = vperm.slane %v1037_v34, 0  ;;  %v1040_v36 = vperm.slane %v1037_v34, 1 }
 0x113   : > { %v1041_v38 = vrot.slane %v1040_v36, 4 }
 0x115   : > { %v1042_v39 = vsel %vm485_vm0, %v1039_v35, %v1041_v38 }
 0x116   : > { %v1036_v37 = vld [vmem:[#allocation2] sm:$0xff] }
 0x117   : > { %v1044_v40 = vadd.f32 %v1042_v39, %v1036_v37 }
 0x119   : > { %1045 = vst [vmem:[%s1912_s9] sm:$0xff] %v1044_v40 }
 0x11a PF: > { %s13_s18 = sadd.s32 1, %s1831_s18   ;;  %s2150_s12 = smov %s1819_s15 }
 0x11b   : > { %p10_p11 = scmp.ge.s32.totalorder %s13_s18, 26   ;;  %s2151_s13 = smov %s1823_s16 }
 0x11c   : > { %s2152_s14 = smov %s1827_s17  ;;  %s2153_s15 = smov %s2157_s19 }
 0x11d   : > { %s2154_s16 = smov %s2161_s20  ;;  %s2155_s17 = smov %s2165_s21 }
 0x11e   :  { %12 = sbr.rel (!%p10_p11) target bundleno = 4 (0x4), region = 73 }

// kernel: generator_forward.64
= control target key start
LH: loop header
LB: loop body
LE: loop exit
PB: predicated region body
PF: predicated region fallthrough
CT: control target
= control target key end

     0   :  { %8 = vsyncpa [#allocation4], 0  ;;  %s1936_s12 = smov 0   ;;  %s1938_s13 = smov 0   ;;  %s2251_s0 = inlined_call_operand.vmem [shape: bf16[2,6,6,256], index: 0, kind: input, shape index: {}]   ;;  %s2252_s1 = inlined_call_operand.hbm [shape: bf16[3,3,256,256], index: 1, kind: input, shape index: {}]   ;;  %s2253_s2 = inlined_call_operand.vmem [shape: f32[1,256], index: 2, kind: input, shape index: {}]   ;;  %s2254_s3 = inlined_call_operand.vmem [shape: f32[2,4,4,256], index: 3, kind: output, shape index: {}]  }
   0x1   :  { %s1940_s14 = smov 0   ;;  %s1942_s15 = smov 0  }
   0x2   :  { %s1944_s16 = smov 0   ;;  %s1946_s17 = smov 0  }
   0x3   :  { %s1948_s18 = smov 0  }
   0x4 LB: > { %s1187_s19 = sadd.s32 4294967295, %s1910_s18   ;;  %s26_s20 = sadd.s32 1, %s1898_s15  ;;  %s1910_s18 = sphi %s1948_s18, %s14_s18   ;;  %s1906_s17 = sphi %s1946_s17, %s2262_s17   ;;  %s1902_s16 = sphi %s1944_s16, %s2261_s16   ;;  %s1898_s15 = sphi %s1942_s15, %s2260_s15   ;;  %s1894_s14 = sphi %s1940_s14, %s2259_s14   ;;  %s1890_s13 = sphi %s1938_s13, %s2258_s13   ;;  %s1886_s12 = sphi %s1936_s12, %s2257_s12  }
   0x5   : > { %p27_p0 = scmp.ge.s32.totalorder %s26_s20, 3  ;;  %s29_s21 = sadd.s32 1, %s1902_s16 }
   0x6   : > { %s33_s22 = sadd.s32 1, %s1906_s17  ;;  %p1189_p1 = scmp.ge.s32.totalorder %s1910_s18, 1 }
   0x7   : > { %s2264_s20 = smov (%p27_p0, %s26_s20), 0  ;;  %s2266_s21 = smov (!%p27_p0, %s29_s21), %s1902_s16 }
   0x8   : > { %p138_p2 = scmp.lt.s32.totalorder %s1910_s18, 25  ;;  %p31_p3 = scmp.ge.s32.totalorder %s2266_s21, 4 }
   0x9   : > { %p1980_p4 = scmp.eq.s32.totalorder %s1187_s19, 0  ;;  %s149_s27 = sshll.u32 %s2252_s1, 4  ;;  %s150_s27 = int_to_ptr.hbm [resolvable:$true] %s149_s27 }
   0xa   : > { %p1984_p5 = pnand %p1189_p1, %p138_p2  ;;  %s2268_s21 = smov (%p31_p3, %s2266_s21), 0 }
   0xb   : > { %s2270_s22 = smov (!%p31_p3, %s33_s22), %s1906_s17  ;;  %s1912_s28 = smov [#allocation3]  }
   0xc   : > { %p1756_p6 = pneg %p1984_p5  ;;  %p35_p7 = scmp.ge.s32.totalorder %s2270_s22, 2 }
   0xd   : > { %s151_s29 = sshll.u32 %s1912_s28, 4  ;;  %s1913_s30 = smov 128   ;;  %s152_s29 = int_to_ptr.vmem [resolvable:$true] %s151_s29 }
   0xe   : > { %p1757_p8 = pnand %p1980_p4, %p1756_p6  ;;  %s2272_s22 = smov (%p35_p7, %s2270_s22), 0 }
   0xf   : > { %s1914_s4 = smov 8   ;;  %184 = sbr.rel (%p1984_p5) target bundleno = 289 (0x121), region = 32 }
  0x10   : > { %1759 = dma.hbm_to_vmem [thread:$0]  (!%p1757_p8), %s150_s27, 36864, %s152_s29, [#allocation4], %s1913_s30, %s1913_s30, %s1914_s4  }
  0x14   : > { %1881 = dma.done.wait (%p1980_p4), [#allocation4], 36864  }
  0x15   : > { %1883 = vsyncadd (%p1980_p4), [#allocation4], 4294930432  ;;  %s218_s5 = sadd.s32 %s1886_s12, %s1890_s13  ;;  %p219_p9 = scmp.lt.s32.totalorder %s1894_s14, 1 }
  0x16   : > { %p221_p10 = scmp.lt.s32.totalorder %s218_s5, 5  ;;  %p231_p11 = scmp.lt.s32.totalorder %s1890_s13, 3 }
  0x17   : > { %s2274_s14 = smov (!%p219_p9, %s1894_s14), 1  ;;  %p1199_p12 = scmp.ne.s32.totalorder %s1886_s12, 0 }
  0x18   : > { %s2276_s5 = smov (!%p221_p10, %s218_s5), 5  ;;  %s1751_s6 = smul.u32 12, %s2274_s14 }
  0x19   : > { %s1194_s7 = sshll.u32 %s2276_s5, 1  ;;  %s1197_s23 = sshll.u32 %s2274_s14, 3 }
  0x1a   : > { %s225_s8 = sadd.s32 %s1751_s6, %s1194_s7  ;;  %s2278_s13 = smov (!%p231_p11, %s1890_s13), 3 }
  0x1b   : > { %s1195_s9 = sshll.u32 %s225_s8, 2  ;;  %s1196_s24 = sshll.u32 %s2278_s13, 1 }
  0x1c   : > { %s2014_s19 = scalar_lea.vmem %s2251_s0, %s1195_s9  ;;  %s235_s25 = sadd.s32 %s1197_s23, %s1196_s24 }
  0x1d   : > { %s1198_s26 = sshll.u32 %s235_s25, 2  ;;  %241 = sbr.rel (%p1199_p12) target bundleno = 36 (0x24), region = 40 }
  0x1e   : > { %s2020_s29 = scalar_lea.vmem %s2254_s3, %s1198_s26 }
  0x22   : > { %v1915_v0 = vmov 0.0  }
  0x23   : > { %242 = vst [vmem:[#allocation2] sm:$0xff] %v1915_v0 }
  0x24 PF: > { %s1654_s30 = smul.u32 768, %s1886_s12  ;;  %vm502_vm0 = vcmask 1043456   ;;  %p1651_p13 = scmp.ne.s32.totalorder %s1886_s12, 2 }
  0x26   : > { %s2024_s4 = scalar_lea.vmem [#allocation3], %s1654_s30 }
  0x27   : > { %v1259_v1 = vld [vmem:[%s2024_s4 + $0x70] sm:$0xf]  ;;  %v1670_v2 = vld [vmem:[%s2024_s4 + $0x74] sm:$0xf0]  ;;  %v1669_v6 = vld [vmem:[%s2024_s4 + $0x74] sm:$0xf] }
  0x28   : > { %v1323_v3 = vld [vmem:[%s2024_s4 + $0xf0] sm:$0xf]  ;;  %v1260_v4 = vor.u32 %v1670_v2, %v1259_v1  ;;  %v1686_v5 = vld [vmem:[%s2024_s4 + $0xf4] sm:$0xf0]  ;;  %v1261_v7 = vld [vmem:[%s2024_s4 + $0x78] sm:$0xf0] }
  0x29   : > { %v1324_v8 = vor.u32 %v1686_v5, %v1323_v3  ;;  %v1264_v9 = vor.u32 %v1669_v6, %v1261_v7  ;;  %v1685_v10 = vld [vmem:[%s2024_s4 + $0xf4] sm:$0xf]  ;;  %v1325_v11 = vld [vmem:[%s2024_s4 + $0xf8] sm:$0xf0]  ;;  %v1251_v12 = vld [vmem:[%s2024_s4 + $0x60] sm:$0xf] }
  0x2a   : > { %447 = vmatpush.bf16.msra.mxu0 %v1260_v4  ;;  %v1328_v13 = vor.u32 %v1685_v10, %v1325_v11  ;;  %v1668_v14 = vld [vmem:[%s2024_s4 + $0x64] sm:$0xf0]  ;;  %v1315_v15 = vld [vmem:[%s2024_s4 + $0xe0] sm:$0xf]  ;;  %v1667_v19 = vld [vmem:[%s2024_s4 + $0x64] sm:$0xf] }
  0x2b   : > { %v1684_v16 = vld [vmem:[%s2024_s4 + $0xe4] sm:$0xf0]  ;;  %460 = vmatpush.bf16.msra.mxu1 %v1324_v8  ;;  %473 = vmatpush.bf16.msra.mxu2 %v1264_v9  ;;  %v1252_v17 = vor.u32 %v1668_v14, %v1251_v12  ;;  %v1253_v20 = vld [vmem:[%s2024_s4 + $0x68] sm:$0xf0]  ;;  %v1683_v21 = vld [vmem:[%s2024_s4 + $0xe4] sm:$0xf] }
  0x2c   : > { %v1316_v18 = vor.u32 %v1684_v16, %v1315_v15  ;;  %486 = vmatpush.bf16.msra.mxu3 %v1328_v13  ;;  %v1256_v22 = vor.u32 %v1667_v19, %v1253_v20  ;;  %v1317_v23 = vld [vmem:[%s2024_s4 + $0xe8] sm:$0xf0]  ;;  %v1243_v24 = vld [vmem:[%s2024_s4 + $0x50] sm:$0xf]  ;;  %v1666_v25 = vld [vmem:[%s2024_s4 + $0x54] sm:$0xf0] }
  0x2d   : > { %v1320_v26 = vor.u32 %v1683_v21, %v1317_v23  ;;  %v1307_v27 = vld [vmem:[%s2024_s4 + $0xd0] sm:$0xf]  ;;  %v1682_v28 = vld [vmem:[%s2024_s4 + $0xd4] sm:$0xf0]  ;;  %v1665_v29 = vld [vmem:[%s2024_s4 + $0x54] sm:$0xf]  ;;  %v1244_v30 = vor.u32 %v1666_v25, %v1243_v24 }
  0x2e   : > { %448 = vmatpush.bf16.msra.mxu0 %v1252_v17  ;;  %v1245_v31 = vld [vmem:[%s2024_s4 + $0x58] sm:$0xf0]  ;;  %v1681_v32 = vld [vmem:[%s2024_s4 + $0xd4] sm:$0xf]  ;;  %v1308_v34 = vor.u32 %v1682_v28, %v1307_v27  ;;  %v1235_v36 = vld [vmem:[%s2024_s4 + $0x40] sm:$0xf] }
  0x2f   : > { %v1309_v33 = vld [vmem:[%s2024_s4 + $0xd8] sm:$0xf0]  ;;  %461 = vmatpush.bf16.msra.mxu1 %v1316_v18  ;;  %474 = vmatpush.bf16.msra.mxu2 %v1256_v22  ;;  %v1248_v35 = vor.u32 %v1665_v29, %v1245_v31  ;;  %v1664_v37 = vld [vmem:[%s2024_s4 + $0x44] sm:$0xf0]  ;;  %v1299_v38 = vld [vmem:[%s2024_s4 + $0xc0] sm:$0xf] }
  0x30   : > { %487 = vmatpush.bf16.msra.mxu3 %v1320_v26  ;;  %v1312_v39 = vor.u32 %v1681_v32, %v1309_v33  ;;  %v1680_v40 = vld [vmem:[%s2024_s4 + $0xc4] sm:$0xf0]  ;;  %v1663_v41 = vld [vmem:[%s2024_s4 + $0x44] sm:$0xf]  ;;  %v1237_v42 = vld [vmem:[%s2024_s4 + $0x48] sm:$0xf0]  ;;  %v1236_v45 = vor.u32 %v1664_v37, %v1235_v36 }
  0x31   : > { %v1679_v43 = vld [vmem:[%s2024_s4 + $0xc4] sm:$0xf]  ;;  %v1301_v44 = vld [vmem:[%s2024_s4 + $0xc8] sm:$0xf0]  ;;  %v1300_v46 = vor.u32 %v1680_v40, %v1299_v38  ;;  %v1240_v47 = vor.u32 %v1663_v41, %v1237_v42  ;;  %v1227_v48 = vld [vmem:[%s2024_s4 + $0x30] sm:$0xf] }
  0x32   : > { %449 = vmatpush.bf16.msra.mxu0 %v1244_v30  ;;  %v1662_v49 = vld [vmem:[%s2024_s4 + $0x34] sm:$0xf0]  ;;  %v1291_v50 = vld [vmem:[%s2024_s4 + $0xb0] sm:$0xf]  ;;  %v1304_v51 = vor.u32 %v1679_v43, %v1301_v44  ;;  %v1661_v53 = vld [vmem:[%s2024_s4 + $0x34] sm:$0xf] }
  0x33   : > { %462 = vmatpush.bf16.msra.mxu1 %v1308_v34  ;;  %475 = vmatpush.bf16.msra.mxu2 %v1248_v35  ;;  %v1678_v52 = vld [vmem:[%s2024_s4 + $0xb4] sm:$0xf0]  ;;  %v1229_v54 = vld [vmem:[%s2024_s4 + $0x38] sm:$0xf0]  ;;  %v1677_v55 = vld [vmem:[%s2024_s4 + $0xb4] sm:$0xf]  ;;  %v1228_v57 = vor.u32 %v1662_v49, %v1227_v48 }
  0x34   : > { %488 = vmatpush.bf16.msra.mxu3 %v1312_v39  ;;  %v1293_v56 = vld [vmem:[%s2024_s4 + $0xb8] sm:$0xf0]  ;;  %v1292_v58 = vor.u32 %v1678_v52, %v1291_v50  ;;  %v1232_v59 = vor.u32 %v1661_v53, %v1229_v54  ;;  %v1219_v60 = vld [vmem:[%s2024_s4 + $0x20] sm:$0xf]  ;;  %v1660_v61 = vld [vmem:[%s2024_s4 + $0x24] sm:$0xf0] }
  0x35   : > { %v1283_v62 = vld [vmem:[%s2024_s4 + $0xa0] sm:$0xf]  ;;  %v1296_v63 = vor.u32 %v1677_v55, %v1293_v56  ;;  %v1676_v0 = vld [vmem:[%s2024_s4 + $0xa4] sm:$0xf0]  ;;  %v1659_v1 = vld [vmem:[%s2024_s4 + $0x24] sm:$0xf]  ;;  %v1220_v5 = vor.u32 %v1660_v61, %v1219_v60 }
  0x36   : > { %450 = vmatpush.bf16.msra.mxu0 %v1236_v45  ;;  %v1221_v2 = vld [vmem:[%s2024_s4 + $0x28] sm:$0xf0]  ;;  %v1675_v3 = vld [vmem:[%s2024_s4 + $0xa4] sm:$0xf]  ;;  %v1284_v6 = vor.u32 %v1676_v0, %v1283_v62  ;;  %v1211_v8 = vld [vmem:[%s2024_s4 + $0x10] sm:$0xf] }
  0x37   : > { %463 = vmatpush.bf16.msra.mxu1 %v1300_v46  ;;  %476 = vmatpush.bf16.msra.mxu2 %v1240_v47  ;;  %v1285_v4 = vld [vmem:[%s2024_s4 + $0xa8] sm:$0xf0]  ;;  %v1224_v7 = vor.u32 %v1659_v1, %v1221_v2  ;;  %v1658_v9 = vld [vmem:[%s2024_s4 + $0x14] sm:$0xf0]  ;;  %v1275_v10 = vld [vmem:[%s2024_s4 + $0x90] sm:$0xf] }
  0x38   : > { %489 = vmatpush.bf16.msra.mxu3 %v1304_v51  ;;  %v1288_v11 = vor.u32 %v1675_v3, %v1285_v4  ;;  %v1674_v12 = vld [vmem:[%s2024_s4 + $0x94] sm:$0xf0]  ;;  %v1657_v13 = vld [vmem:[%s2024_s4 + $0x14] sm:$0xf]  ;;  %v1213_v14 = vld [vmem:[%s2024_s4 + $0x18] sm:$0xf0]  ;;  %v1212_v17 = vor.u32 %v1658_v9, %v1211_v8 }
  0x39   : > { %v1673_v15 = vld [vmem:[%s2024_s4 + $0x94] sm:$0xf]  ;;  %v1277_v16 = vld [vmem:[%s2024_s4 + $0x98] sm:$0xf0]  ;;  %v1203_v18 = vld [vmem:[%s2024_s4] sm:$0xf]  ;;  %v1276_v20 = vor.u32 %v1674_v12, %v1275_v10  ;;  %v1216_v21 = vor.u32 %v1657_v13, %v1213_v14 }
  0x3a   : > { %451 = vmatpush.bf16.msra.mxu0 %v1228_v57  ;;  %v1656_v19 = vld [vmem:[%s2024_s4 + $0x4] sm:$0xf0]  ;;  %v1267_v22 = vld [vmem:[%s2024_s4 + $0x80] sm:$0xf]  ;;  %v1655_v24 = vld [vmem:[%s2024_s4 + $0x4] sm:$0xf]  ;;  %v1280_v25 = vor.u32 %v1673_v15, %v1277_v16 }
  0x3b   : > { %464 = vmatpush.bf16.msra.mxu1 %v1292_v58  ;;  %477 = vmatpush.bf16.msra.mxu2 %v1232_v59  ;;  %v1672_v23 = vld [vmem:[%s2024_s4 + $0x84] sm:$0xf0]  ;;  %v1205_v26 = vld [vmem:[%s2024_s4 + $0x8] sm:$0xf0]  ;;  %v1671_v27 = vld [vmem:[%s2024_s4 + $0x84] sm:$0xf]  ;;  %v1204_v32 = vor.u32 %v1656_v19, %v1203_v18 }
  0x3c   : > { %490 = vmatpush.bf16.msra.mxu3 %v1296_v63  ;;  %v1269_v28 = vld [vmem:[%s2024_s4 + $0x88] sm:$0xf0]  ;;  %v1420_v29 = vld [vmem:[%s2024_s4 + $0x170] sm:$0xf]  ;;  %v1702_v30 = vld [vmem:[%s2024_s4 + $0x174] sm:$0xf0]  ;;  %v1268_v36 = vor.u32 %v1672_v23, %v1267_v22  ;;  %v1208_v37 = vor.u32 %v1655_v24, %v1205_v26 }
  0x3d   : > { %v1484_v31 = vld [vmem:[%s2024_s4 + $0x1f0] sm:$0xf]  ;;  %v1718_v33 = vld [vmem:[%s2024_s4 + $0x1f4] sm:$0xf0]  ;;  %v1701_v34 = vld [vmem:[%s2024_s4 + $0x174] sm:$0xf]  ;;  %v1272_v40 = vor.u32 %v1671_v27, %v1269_v28  ;;  %v1421_v41 = vor.u32 %v1702_v30, %v1420_v29 }
  0x3e   : > { %452 = vmatpush.bf16.msra.mxu0 %v1220_v5  ;;  %v1422_v35 = vld [vmem:[%s2024_s4 + $0x178] sm:$0xf0]  ;;  %v1717_v38 = vld [vmem:[%s2024_s4 + $0x1f4] sm:$0xf]  ;;  %v1485_v42 = vor.u32 %v1718_v33, %v1484_v31  ;;  %v1412_v44 = vld [vmem:[%s2024_s4 + $0x160] sm:$0xf] }
  0x3f   : > { %465 = vmatpush.bf16.msra.mxu1 %v1284_v6  ;;  %478 = vmatpush.bf16.msra.mxu2 %v1224_v7  ;;  %v1486_v39 = vld [vmem:[%s2024_s4 + $0x1f8] sm:$0xf0]  ;;  %v1425_v43 = vor.u32 %v1701_v34, %v1422_v35  ;;  %v1700_v45 = vld [vmem:[%s2024_s4 + $0x164] sm:$0xf0]  ;;  %v1476_v46 = vld [vmem:[%s2024_s4 + $0x1e0] sm:$0xf] }
  0x40   : > { %491 = vmatpush.bf16.msra.mxu3 %v1288_v11  ;;  %v1489_v47 = vor.u32 %v1717_v38, %v1486_v39  ;;  %v1716_v48 = vld [vmem:[%s2024_s4 + $0x1e4] sm:$0xf0]  ;;  %v1699_v49 = vld [vmem:[%s2024_s4 + $0x164] sm:$0xf]  ;;  %v1414_v50 = vld [vmem:[%s2024_s4 + $0x168] sm:$0xf0]  ;;  %v1413_v53 = vor.u32 %v1700_v45, %v1412_v44 }
  0x41   : > { %v1715_v51 = vld [vmem:[%s2024_s4 + $0x1e4] sm:$0xf]  ;;  %v1478_v52 = vld [vmem:[%s2024_s4 + $0x1e8] sm:$0xf0]  ;;  %v1404_v54 = vld [vmem:[%s2024_s4 + $0x150] sm:$0xf]  ;;  %v1477_v55 = vor.u32 %v1716_v48, %v1476_v46  ;;  %v1417_v56 = vor.u32 %v1699_v49, %v1414_v50 }
  0x42   : > { %453 = vmatpush.bf16.msra.mxu0 %v1212_v17  ;;  %v1698_v57 = vld [vmem:[%s2024_s4 + $0x154] sm:$0xf0]  ;;  %v1468_v58 = vld [vmem:[%s2024_s4 + $0x1d0] sm:$0xf]  ;;  %v243_v59 = vld [vmem:[%s2014_s19] sm:$0x33]  ;;  %v1481_v60 = vor.u32 %v1715_v51, %v1478_v52 }
  0x43   : > { %466 = vmatpush.bf16.msra.mxu1 %v1276_v20  ;;  %479 = vmatpush.bf16.msra.mxu2 %v1216_v21  ;;  %v1714_v61 = vld [vmem:[%s2024_s4 + $0x1d4] sm:$0xf0]  ;;  %v1697_v62 = vld [vmem:[%s2024_s4 + $0x154] sm:$0xf]  ;;  %v1406_v63 = vld [vmem:[%s2024_s4 + $0x158] sm:$0xf0]  ;;  %v281_v0 = vunpack.c.l.b16 %v243_v59  ;;  %v282_v1 = vunpack.c.h.b16 %v243_v59  ;;  %v1405_v4 = vor.u32 %v1698_v57, %v1404_v54 }
  0x44   : > { %492 = vmatpush.bf16.msra.mxu3 %v1280_v25  ;;  %v1713_v2 = vld [vmem:[%s2024_s4 + $0x1d4] sm:$0xf]  ;;  %v1470_v3 = vld [vmem:[%s2024_s4 + $0x1d8] sm:$0xf0]  ;;  %v1469_v7 = vor.u32 %v1714_v61, %v1468_v58  ;;  %v1409_v8 = vor.u32 %v1697_v62, %v1406_v63  ;;  %v1396_v9 = vld [vmem:[%s2024_s4 + $0x140] sm:$0xf] }
  0x45   : > { %v283_v5 = vpack.c.b16 %v281_v0, %v281_v0  ;;  %v284_v6 = vpack.c.b16 %v282_v1, %v282_v1  ;;  %v1696_v10 = vld [vmem:[%s2024_s4 + $0x144] sm:$0xf0]  ;;  %v1460_v11 = vld [vmem:[%s2024_s4 + $0x1c0] sm:$0xf]  ;;  %v1473_v12 = vor.u32 %v1713_v2, %v1470_v3  ;;  %v1695_v14 = vld [vmem:[%s2024_s4 + $0x144] sm:$0xf] }
  0x46   : > { %454 = vmatpush.bf16.msra.mxu0 %v1204_v32  ;;  %v1712_v13 = vld [vmem:[%s2024_s4 + $0x1c4] sm:$0xf0]  ;;  %v1398_v15 = vld [vmem:[%s2024_s4 + $0x148] sm:$0xf0]  ;;  %v1711_v16 = vld [vmem:[%s2024_s4 + $0x1c4] sm:$0xf]  ;;  %v1397_v18 = vor.u32 %v1696_v10, %v1396_v9 }
  0x47   : > { %467 = vmatpush.bf16.msra.mxu1 %v1268_v36  ;;  %480 = vmatpush.bf16.msra.mxu2 %v1208_v37  ;;  %v1462_v17 = vld [vmem:[%s2024_s4 + $0x1c8] sm:$0xf0]  ;;  %v1461_v19 = vor.u32 %v1712_v13, %v1460_v11  ;;  %v1401_v20 = vor.u32 %v1695_v14, %v1398_v15  ;;  %v1388_v21 = vld [vmem:[%s2024_s4 + $0x130] sm:$0xf]  ;;  %v1694_v22 = vld [vmem:[%s2024_s4 + $0x134] sm:$0xf0] }
  0x48   : > { %493 = vmatpush.bf16.msra.mxu3 %v1272_v40  ;;  %v1452_v23 = vld [vmem:[%s2024_s4 + $0x1b0] sm:$0xf]  ;;  %v1465_v24 = vor.u32 %v1711_v16, %v1462_v17  ;;  %v1710_v25 = vld [vmem:[%s2024_s4 + $0x1b4] sm:$0xf0]  ;;  %v1693_v26 = vld [vmem:[%s2024_s4 + $0x134] sm:$0xf]  ;;  %v1389_v30 = vor.u32 %v1694_v22, %v1388_v21 }
  0x49   : > { %455 = vmatmul.bf16.vlgmr.msra.gmra.mxu0 %v283_v5  ;;  %v1390_v27 = vld [vmem:[%s2024_s4 + $0x138] sm:$0xf0]  ;;  %v1709_v28 = vld [vmem:[%s2024_s4 + $0x1b4] sm:$0xf]  ;;  %v1453_v31 = vor.u32 %v1710_v25, %v1452_v23  ;;  %v1380_v33 = vld [vmem:[%s2024_s4 + $0x120] sm:$0xf] }
  0x4a   : > { %725 = vmatpush.bf16.msrb.mxu0 %v1421_v41  ;;  %481 = vmatmul.bf16.vlgmr.msra.gmra.mxu2 %v283_v5  ;;  %v1454_v29 = vld [vmem:[%s2024_s4 + $0x1b8] sm:$0xf0]  ;;  %v1393_v32 = vor.u32 %v1693_v26, %v1390_v27  ;;  %v1692_v34 = vld [vmem:[%s2024_s4 + $0x124] sm:$0xf0]  ;;  %v1444_v35 = vld [vmem:[%s2024_s4 + $0x1a0] sm:$0xf] }
  0x4b   : > { %738 = vmatpush.bf16.msrb.mxu1 %v1485_v42  ;;  %751 = vmatpush.bf16.msrb.mxu2 %v1425_v43  ;;  %v1457_v36 = vor.u32 %v1709_v28, %v1454_v29  ;;  %v1708_v37 = vld [vmem:[%s2024_s4 + $0x1a4] sm:$0xf0]  ;;  %v1691_v38 = vld [vmem:[%s2024_s4 + $0x124] sm:$0xf]  ;;  %v1382_v39 = vld [vmem:[%s2024_s4 + $0x128] sm:$0xf0]  ;;  %v1381_v43 = vor.u32 %v1692_v34, %v1380_v33 }
  0x4c   : > { %764 = vmatpush.bf16.msrb.mxu3 %v1489_v47  ;;  %468 = vmatmul.bf16.vlgmr.msra.gmra.mxu1 %v284_v6  ;;  %v1707_v40 = vld [vmem:[%s2024_s4 + $0x1a4] sm:$0xf]  ;;  %v1446_v41 = vld [vmem:[%s2024_s4 + $0x1a8] sm:$0xf0]  ;;  %v1372_v44 = vld [vmem:[%s2024_s4 + $0x110] sm:$0xf]  ;;  %v1445_v47 = vor.u32 %v1708_v37, %v1444_v35  ;;  %v1385_v48 = vor.u32 %v1691_v38, %v1382_v39 }
  0x4d   : > { %494 = vmatmul.bf16.vlgmr.msra.gmra.mxu3 %v284_v6  ;;  %v507_v42 = vld [vmem:[%s2014_s19] sm:$0x77]  ;;  %v1690_v49 = vld [vmem:[%s2024_s4 + $0x114] sm:$0xf0]  ;;  %v1436_v50 = vld [vmem:[%s2024_s4 + $0x190] sm:$0xf]  ;;  %v1449_v52 = vor.u32 %v1707_v40, %v1446_v41 }
  0x4e   : > { %726 = vmatpush.bf16.msrb.mxu0 %v1413_v53  ;;  %v545_v45 = vunpack.c.l.b16 %v507_v42  ;;  %v546_v46 = vunpack.c.h.b16 %v507_v42  ;;  %v1706_v51 = vld [vmem:[%s2024_s4 + $0x194] sm:$0xf0]  ;;  %v1689_v53 = vld [vmem:[%s2024_s4 + $0x114] sm:$0xf]  ;;  %v1374_v54 = vld [vmem:[%s2024_s4 + $0x118] sm:$0xf0]  ;;  %v1373_v61 = vor.u32 %v1690_v49, %v1372_v44 }
  0x4f   : > { %739 = vmatpush.bf16.msrb.mxu1 %v1477_v55  ;;  %752 = vmatpush.bf16.msrb.mxu2 %v1417_v56  ;;  %v1705_v55 = vld [vmem:[%s2024_s4 + $0x194] sm:$0xf]  ;;  %v1438_v58 = vld [vmem:[%s2024_s4 + $0x198] sm:$0xf0]  ;;  %v1364_v59 = vld [vmem:[%s2024_s4 + $0x100] sm:$0xf]  ;;  %v1437_v1 = vor.u32 %v1706_v51, %v1436_v50  ;;  %v1377_v2 = vor.u32 %v1689_v53, %v1374_v54 }
  0x50   : > { %765 = vmatpush.bf16.msrb.mxu3 %v1481_v60  ;;  %v547_v56 = vpack.c.b16 %v545_v45, %v545_v45  ;;  %v548_v57 = vpack.c.b16 %v546_v46, %v546_v46  ;;  %v1688_v60 = vld [vmem:[%s2024_s4 + $0x104] sm:$0xf0]  ;;  %v1428_v62 = vld [vmem:[%s2024_s4 + $0x180] sm:$0xf]  ;;  %v1687_v3 = vld [vmem:[%s2024_s4 + $0x104] sm:$0xf]  ;;  %v1441_v6 = vor.u32 %v1705_v55, %v1438_v58 }
  0x51   : > { %v1704_v63 = vld [vmem:[%s2024_s4 + $0x184] sm:$0xf0]  ;;  %v1581_v9 = vld [vmem:[%s2024_s4 + $0x270] sm:$0xf]  ;;  %v1734_v10 = vld [vmem:[%s2024_s4 + $0x274] sm:$0xf0]  ;;  %v1365_v13 = vor.u32 %v1688_v60, %v1364_v59 }
  0x52   : > { %727 = vmatpush.bf16.msrb.mxu0 %v1405_v4  ;;  %v552_v0 = vshll.u32 %v547_v56, 16  ;;  %v1366_v4 = vld [vmem:[%s2024_s4 + $0x108] sm:$0xf0]  ;;  %v559_v5 = vshll.u32 %v548_v57, 16  ;;  %v1645_v11 = vld [vmem:[%s2024_s4 + $0x2f0] sm:$0xf]  ;;  %v1582_v25 = vor.u32 %v1734_v10, %v1581_v9 }
  0x53   : > { %740 = vmatpush.bf16.msrb.mxu1 %v1469_v7  ;;  %753 = vmatpush.bf16.msrb.mxu2 %v1409_v8  ;;  %v1703_v7 = vld [vmem:[%s2024_s4 + $0x184] sm:$0xf]  ;;  %v1430_v8 = vld [vmem:[%s2024_s4 + $0x188] sm:$0xf0]  ;;  %v1733_v14 = vld [vmem:[%s2024_s4 + $0x274] sm:$0xf] }
  0x54   : > { %766 = vmatpush.bf16.msrb.mxu3 %v1473_v12  ;;  %v1750_v12 = vld [vmem:[%s2024_s4 + $0x2f4] sm:$0xf0]  ;;  %v1583_v15 = vld [vmem:[%s2024_s4 + $0x278] sm:$0xf0]  ;;  %v550_v16 = vshrl.u32 %v547_v56, 16  ;;  %v554_v17 = vrot.slane %v552_v0, 1 }
  0x55   : > { %v1647_v21 = vld [vmem:[%s2024_s4 + $0x2f8] sm:$0xf0]  ;;  %v557_v22 = vshrl.u32 %v548_v57, 16  ;;  %v561_v23 = vrot.slane %v559_v5, 1  ;;  %v1646_v26 = vor.u32 %v1750_v12, %v1645_v11  ;;  %v1586_v27 = vor.u32 %v1733_v14, %v1583_v15  ;;  %v1573_v28 = vld [vmem:[%s2024_s4 + $0x260] sm:$0xf] }
  0x56   : > { %728 = vmatpush.bf16.msrb.mxu0 %v1397_v18  ;;  %v1429_v18 = vor.u32 %v1704_v63, %v1428_v62  ;;  %v1732_v29 = vld [vmem:[%s2024_s4 + $0x264] sm:$0xf0]  ;;  %v1731_v33 = vld [vmem:[%s2024_s4 + $0x264] sm:$0xf]  ;;  %v1575_v34 = vld [vmem:[%s2024_s4 + $0x268] sm:$0xf0]  ;;  %v555_v35 = vor.u32 %v554_v17, %v550_v16 }
  0x57   : > { %741 = vmatpush.bf16.msrb.mxu1 %v1461_v19  ;;  %754 = vmatpush.bf16.msrb.mxu2 %v1401_v20  ;;  %v1369_v19 = vor.u32 %v1687_v3, %v1366_v4  ;;  %v1749_v20 = vld [vmem:[%s2024_s4 + $0x2f4] sm:$0xf]  ;;  %v1639_v37 = vld [vmem:[%s2024_s4 + $0x2e8] sm:$0xf0]  ;;  %v562_v38 = vor.u32 %v561_v23, %v557_v22  ;;  %v1574_v39 = vor.u32 %v1732_v29, %v1573_v28  ;;  %v1565_v42 = vld [vmem:[%s2024_s4 + $0x250] sm:$0xf] }
  0x58   : > { %767 = vmatpush.bf16.msrb.mxu3 %v1465_v24  ;;  %v1433_v24 = vor.u32 %v1703_v7, %v1430_v8  ;;  %v1578_v41 = vor.u32 %v1731_v33, %v1575_v34  ;;  %v1629_v44 = vld [vmem:[%s2024_s4 + $0x2d0] sm:$0xf]  ;;  %v1746_v46 = vld [vmem:[%s2024_s4 + $0x2d4] sm:$0xf0]  ;;  %v1745_v49 = vld [vmem:[%s2024_s4 + $0x2d4] sm:$0xf] }
  0x59   : > { %v1631_v50 = vld [vmem:[%s2024_s4 + $0x2d8] sm:$0xf0]  ;;  %v1557_v54 = vld [vmem:[%s2024_s4 + $0x240] sm:$0xf]  ;;  %v1728_v55 = vld [vmem:[%s2024_s4 + $0x244] sm:$0xf0] }
  0x5a   : > { %729 = vmatpush.bf16.msrb.mxu0 %v1389_v30  ;;  %v1637_v30 = vld [vmem:[%s2024_s4 + $0x2e0] sm:$0xf]  ;;  %v1634_v57 = vor.u32 %v1745_v49, %v1631_v50  ;;  %v1744_v58 = vld [vmem:[%s2024_s4 + $0x2c4] sm:$0xf0]  ;;  %v1727_v59 = vld [vmem:[%s2024_s4 + $0x244] sm:$0xf]  ;;  %v1558_v63 = vor.u32 %v1728_v55, %v1557_v54 }
  0x5b   : > { %742 = vmatpush.bf16.msrb.mxu1 %v1453_v31  ;;  %755 = vmatpush.bf16.msrb.mxu2 %v1393_v32  ;;  %v1650_v31 = vor.u32 %v1749_v20, %v1647_v21  ;;  %v1748_v32 = vld [vmem:[%s2024_s4 + $0x2e4] sm:$0xf0]  ;;  %v1621_v56 = vld [vmem:[%s2024_s4 + $0x2c0] sm:$0xf]  ;;  %v1559_v60 = vld [vmem:[%s2024_s4 + $0x248] sm:$0xf0] }
  0x5c   : > { %768 = vmatpush.bf16.msrb.mxu3 %v1457_v36  ;;  %v1747_v36 = vld [vmem:[%s2024_s4 + $0x2e4] sm:$0xf]  ;;  %v1638_v40 = vor.u32 %v1748_v32, %v1637_v30  ;;  %v1623_v62 = vld [vmem:[%s2024_s4 + $0x2c8] sm:$0xf0]  ;;  %v1622_v0 = vor.u32 %v1744_v58, %v1621_v56  ;;  %v1726_v3 = vld [vmem:[%s2024_s4 + $0x234] sm:$0xf0] }
  0x5d   : > { %v1642_v45 = vor.u32 %v1747_v36, %v1639_v37  ;;  %v1613_v4 = vld [vmem:[%s2024_s4 + $0x2b0] sm:$0xf]  ;;  %v1725_v7 = vld [vmem:[%s2024_s4 + $0x234] sm:$0xf]  ;;  %v1551_v8 = vld [vmem:[%s2024_s4 + $0x238] sm:$0xf0] }
  0x5e   : > { %730 = vmatpush.bf16.msrb.mxu0 %v1381_v43  ;;  %v1730_v43 = vld [vmem:[%s2024_s4 + $0x254] sm:$0xf0]  ;;  %v1741_v9 = vld [vmem:[%s2024_s4 + $0x2b4] sm:$0xf]  ;;  %v1615_v10 = vld [vmem:[%s2024_s4 + $0x2b8] sm:$0xf0] }
  0x5f   : > { %743 = vmatpush.bf16.msrb.mxu1 %v1445_v47  ;;  %756 = vmatpush.bf16.msrb.mxu2 %v1385_v48  ;;  %v1729_v47 = vld [vmem:[%s2024_s4 + $0x254] sm:$0xf]  ;;  %v1567_v48 = vld [vmem:[%s2024_s4 + $0x258] sm:$0xf0]  ;;  %v1566_v51 = vor.u32 %v1730_v43, %v1565_v42  ;;  %v1541_v14 = vld [vmem:[%s2024_s4 + $0x220] sm:$0xf]  ;;  %v1618_v17 = vor.u32 %v1741_v9, %v1615_v10 }
  0x60   : > { %769 = vmatpush.bf16.msrb.mxu3 %v1449_v52  ;;  %v1630_v52 = vor.u32 %v1746_v46, %v1629_v44  ;;  %v1570_v53 = vor.u32 %v1729_v47, %v1567_v48  ;;  %v1724_v15 = vld [vmem:[%s2024_s4 + $0x224] sm:$0xf0]  ;;  %v1605_v16 = vld [vmem:[%s2024_s4 + $0x2a0] sm:$0xf]  ;;  %v1543_v20 = vld [vmem:[%s2024_s4 + $0x228] sm:$0xf0] }
  0x61   : > { %v1739_v21 = vld [vmem:[%s2024_s4 + $0x2a4] sm:$0xf]  ;;  %v1607_v22 = vld [vmem:[%s2024_s4 + $0x2a8] sm:$0xf0]  ;;  %v1542_v23 = vor.u32 %v1724_v15, %v1541_v14  ;;  %v1722_v28 = vld [vmem:[%s2024_s4 + $0x214] sm:$0xf0] }
  0x62   : > { %731 = vmatpush.bf16.msrb.mxu0 %v1373_v61  ;;  %v1743_v61 = vld [vmem:[%s2024_s4 + $0x2c4] sm:$0xf]  ;;  %v1597_v29 = vld [vmem:[%s2024_s4 + $0x290] sm:$0xf]  ;;  %v1610_v30 = vor.u32 %v1739_v21, %v1607_v22  ;;  %v1721_v32 = vld [vmem:[%s2024_s4 + $0x214] sm:$0xf] }
  0x63   : > { %744 = vmatpush.bf16.msrb.mxu1 %v1437_v1  ;;  %757 = vmatpush.bf16.msrb.mxu2 %v1377_v2  ;;  %v1562_v1 = vor.u32 %v1727_v59, %v1559_v60  ;;  %v1549_v2 = vld [vmem:[%s2024_s4 + $0x230] sm:$0xf]  ;;  %v1626_v5 = vor.u32 %v1743_v61, %v1623_v62  ;;  %v1535_v33 = vld [vmem:[%s2024_s4 + $0x218] sm:$0xf0]  ;;  %v1737_v34 = vld [vmem:[%s2024_s4 + $0x294] sm:$0xf] }
  0x64   : > { %770 = vmatpush.bf16.msrb.mxu3 %v1441_v6  ;;  %v1742_v6 = vld [vmem:[%s2024_s4 + $0x2b4] sm:$0xf0]  ;;  %v1550_v11 = vor.u32 %v1726_v3, %v1549_v2  ;;  %v1720_v42 = vld [vmem:[%s2024_s4 + $0x204] sm:$0xf0]  ;;  %v1589_v43 = vld [vmem:[%s2024_s4 + $0x280] sm:$0xf] }
  0x65   : > { %v1614_v12 = vor.u32 %v1742_v6, %v1613_v4  ;;  %v1719_v46 = vld [vmem:[%s2024_s4 + $0x204] sm:$0xf]  ;;  %v1527_v47 = vld [vmem:[%s2024_s4 + $0x208] sm:$0xf0] }
  0x66   : > { %732 = vmatpush.bf16.msrb.mxu0 %v1365_v13  ;;  %v1554_v13 = vor.u32 %v1725_v7, %v1551_v8  ;;  %v1735_v48 = vld [vmem:[%s2024_s4 + $0x284] sm:$0xf]  ;;  %v1591_v49 = vld [vmem:[%s2024_s4 + $0x288] sm:$0xf0]  ;;  %v1530_v54 = vor.u32 %v1719_v46, %v1527_v47 }
  0x67   : > { %745 = vmatpush.bf16.msrb.mxu1 %v1429_v18  ;;  %758 = vmatpush.bf16.msrb.mxu2 %v1369_v19  ;;  %v1740_v18 = vld [vmem:[%s2024_s4 + $0x2a4] sm:$0xf0]  ;;  %v1723_v19 = vld [vmem:[%s2024_s4 + $0x224] sm:$0xf]  ;;  %v1594_v55 = vor.u32 %v1735_v48, %v1591_v49 }
  0x68   : > { %771 = vmatpush.bf16.msrb.mxu3 %v1433_v24  ;;  %v784_v24 = vld [vmem:[%s2014_s19] sm:$0x66] }
  0x69   : > { %733 = vmatmul.bf16.vlgmr.msrb.gmra.mxu0 %v555_v35  ;;  %v822_v36 = vunpack.c.l.b16 %v784_v24 }
  0x6a   : > { %990 = vmatpush.bf16.msra.mxu0 %v1582_v25  ;;  %759 = vmatmul.bf16.vlgmr.msrb.gmra.mxu2 %v555_v35  ;;  %v1606_v25 = vor.u32 %v1740_v18, %v1605_v16  ;;  %v1599_v35 = vld [vmem:[%s2024_s4 + $0x298] sm:$0xf0]  ;;  %v279_v18 = vld [vmem:[#allocation2] sm:$0xff] }
  0x6b   : > { %1003 = vmatpush.bf16.msra.mxu1 %v1646_v26  ;;  %1016 = vmatpush.bf16.msra.mxu2 %v1586_v27  ;;  %v1546_v26 = vor.u32 %v1723_v19, %v1543_v20  ;;  %v1533_v27 = vld [vmem:[%s2024_s4 + $0x210] sm:$0xf]  ;;  %v1602_v44 = vor.u32 %v1737_v34, %v1599_v35  ;;  %v824_v50 = vpack.c.b16 %v822_v36, %v822_v36 }
  0x6c   : > { %1029 = vmatpush.bf16.msra.mxu3 %v1650_v31  ;;  %746 = vmatmul.bf16.vlgmr.msrb.gmra.mxu1 %v562_v38  ;;  %v1738_v31 = vld [vmem:[%s2024_s4 + $0x294] sm:$0xf0]  ;;  %v1534_v37 = vor.u32 %v1722_v28, %v1533_v27 }
  0x6d   : > { %772 = vmatmul.bf16.vlgmr.msrb.gmra.mxu3 %v562_v38  ;;  %v823_v38 = vunpack.c.h.b16 %v784_v24  ;;  %v826_v56 = vrot.slane %v824_v50, 1 }
  0x6e   : > { %991 = vmatpush.bf16.msra.mxu0 %v1574_v39  ;;  %v1598_v39 = vor.u32 %v1738_v31, %v1597_v29 }
  0x6f   : > { %1004 = vmatpush.bf16.msra.mxu1 %v1638_v40  ;;  %1017 = vmatpush.bf16.msra.mxu2 %v1578_v41  ;;  %v1538_v40 = vor.u32 %v1721_v32, %v1535_v33  ;;  %v1525_v41 = vld [vmem:[%s2024_s4 + $0x200] sm:$0xf] }
  0x70   : > { %1030 = vmatpush.bf16.msra.mxu3 %v1642_v45  ;;  %v1736_v45 = vld [vmem:[%s2024_s4 + $0x284] sm:$0xf0] }
  0x72   : > { %992 = vmatpush.bf16.msra.mxu0 %v1566_v51  ;;  %v1526_v51 = vor.u32 %v1720_v42, %v1525_v41 }
  0x73   : > { %1005 = vmatpush.bf16.msra.mxu1 %v1630_v52  ;;  %1018 = vmatpush.bf16.msra.mxu2 %v1570_v53  ;;  %v825_v52 = vpack.c.b16 %v823_v38, %v823_v38  ;;  %v1590_v53 = vor.u32 %v1736_v45, %v1589_v43 }
  0x74   : > { %1031 = vmatpush.bf16.msra.mxu3 %v1634_v57 }
  0x75   : > { %v827_v57 = vrot.slane %v825_v52, 1 }
  0x76   : > { %993 = vmatpush.bf16.msra.mxu0 %v1558_v63 }
  0x77   : > { %1006 = vmatpush.bf16.msra.mxu1 %v1622_v0  ;;  %1019 = vmatpush.bf16.msra.mxu2 %v1562_v1 }
  0x78   : > { %1032 = vmatpush.bf16.msra.mxu3 %v1626_v5 }
  0x7a   : > { %994 = vmatpush.bf16.msra.mxu0 %v1550_v11 }
  0x7b   : > { %1007 = vmatpush.bf16.msra.mxu1 %v1614_v12  ;;  %1020 = vmatpush.bf16.msra.mxu2 %v1554_v13 }
  0x7c   : > { %1033 = vmatpush.bf16.msra.mxu3 %v1618_v17 }
  0x7e   : > { %995 = vmatpush.bf16.msra.mxu0 %v1542_v23 }
  0x7f   : > { %1008 = vmatpush.bf16.msra.mxu1 %v1606_v25  ;;  %1021 = vmatpush.bf16.msra.mxu2 %v1546_v26 }
  0x80   : > { %1034 = vmatpush.bf16.msra.mxu3 %v1610_v30 }
  0x82   : > { %996 = vmatpush.bf16.msra.mxu0 %v1534_v37 }
  0x83   : > { %1009 = vmatpush.bf16.msra.mxu1 %v1598_v39  ;;  %1022 = vmatpush.bf16.msra.mxu2 %v1538_v40 }
  0x84   : > { %1035 = vmatpush.bf16.msra.mxu3 %v1602_v44 }
  0x86   : > { %997 = vmatpush.bf16.msra.mxu0 %v1526_v51 }
  0x87   : > { %1010 = vmatpush.bf16.msra.mxu1 %v1590_v53  ;;  %1023 = vmatpush.bf16.msra.mxu2 %v1530_v54 }
  0x88   : > { %1036 = vmatpush.bf16.msra.mxu3 %v1594_v55 }
  0x89   : > { %998 = vmatmul.bf16.vlgmr.msra.gmra.mxu0 %v826_v56 }
  0x8a   : > { %1011 = vmatmul.bf16.vlgmr.msra.gmra.mxu1 %v827_v57  ;;  %1024 = vmatmul.bf16.vlgmr.msra.gmra.mxu2 %v826_v56 }
  0x8b   : > { %1037 = vmatmul.bf16.vlgmr.msra.gmra.mxu3 %v827_v57 }
  0xc6   : > { %v456_v58 = vpop.f32.mrf.mxu0 }
  0xc9   : > { %v469_v59 = vpop.f32.mrf.mxu1 }
  0xca   : > { %v470_v14 = vadd.f32 %v469_v59, %v456_v58 }
  0xcd   : > { %v482_v60 = vpop.f32.mrf.mxu2 }
  0xce   : > { %v458_v62 = vpop.f32.mrf.mxu0 }
  0xd0   : > { %v495_v61 = vpop.f32.mrf.mxu3 }
  0xd1   : > { %v471_v63 = vpop.f32.mrf.mxu1  ;;  %v496_v10 = vadd.f32 %v495_v61, %v482_v60 }
  0xd3   : > { %v501_v15 = vrot.slane %v496_v10, 4 }
  0xd5   : > { %v484_v0 = vpop.f32.mrf.mxu2  ;;  %v503_v19 = vsel %vm502_vm0, %v470_v14, %v501_v15 }
  0xd6   : > { %v505_v26 = vadd.f32 %v503_v19, %v279_v18 }
  0xd8   : > { %v497_v1 = vpop.f32.mrf.mxu3 }
  0xe6   : > { %v734_v2 = vpop.f32.mrf.mxu0 }
  0xe9   : > { %v747_v3 = vpop.f32.mrf.mxu1 }
  0xea   : > { %v748_v16 = vadd.f32 %v747_v3, %v734_v2 }
  0xed   : > { %v760_v4 = vpop.f32.mrf.mxu2 }
  0xee   : > { %v736_v6 = vpop.f32.mrf.mxu0 }
  0xf0   : > { %v773_v5 = vpop.f32.mrf.mxu3 }
  0xf1   : > { %v749_v7 = vpop.f32.mrf.mxu1  ;;  %v774_v12 = vadd.f32 %v773_v5, %v760_v4 }
  0xf3   : > { %v779_v17 = vrot.slane %v774_v12, 4 }
  0xf5   : > { %v762_v8 = vpop.f32.mrf.mxu2  ;;  %v780_v23 = vsel %vm502_vm0, %v748_v16, %v779_v17 }
  0xf6   : > { %v782_v29 = vadd.f32 %v780_v23, %v505_v26 }
  0xf8   : > { %v775_v9 = vpop.f32.mrf.mxu3 }
 0x106   : > { %v999_v11 = vpop.f32.mrf.mxu0 }
 0x107   : > { %v1012_v13 = vpop.f32.mrf.mxu1 }
 0x108   : > { %v1013_v27 = vadd.f32 %v1012_v13, %v999_v11 }
 0x10d   : > { %v1025_v20 = vpop.f32.mrf.mxu2 }
 0x10e   : > { %v1038_v21 = vpop.f32.mrf.mxu3  ;;  %v1001_v22 = vpop.f32.mrf.mxu0 }
 0x10f   : > { %v1039_v24 = vadd.f32 %v1038_v21, %v1025_v20  ;;  %v1014_v25 = vpop.f32.mrf.mxu1 }
 0x111   : > { %v1044_v28 = vrot.slane %v1039_v24, 4 }
 0x112   : > { %1052 = sbr.rel (%p1651_p13) target bundleno = 289 (0x121), region = 44 }
 0x113   : > { %v1045_v30 = vsel %vm502_vm0, %v1013_v27, %v1044_v28 }
 0x114   : > { %v1047_v31 = vadd.f32 %v1045_v30, %v782_v29 }
 0x115   : > { %v1027_v32 = vpop.f32.mrf.mxu2 }
 0x116   : > { %1048 = vst [vmem:[#allocation2] sm:$0xff] %v1047_v31  ;;  %v1040_v33 = vpop.f32.mrf.mxu3 }
 0x117   : > { %v1054_v34 = vld [vmem:[%s2253_s2] sm:$0x3] }
 0x118   : > { %v1056_v35 = vperm.slane %v1054_v34, 0  ;;  %v1057_v36 = vperm.slane %v1054_v34, 1 }
 0x11a   : > { %v1058_v38 = vrot.slane %v1057_v36, 4 }
 0x11c   : > { %v1059_v39 = vsel %vm502_vm0, %v1056_v35, %v1058_v38 }
 0x11d   : > { %v1053_v37 = vld [vmem:[#allocation2] sm:$0xff] }
 0x11e   : > { %v1061_v40 = vadd.f32 %v1059_v39, %v1053_v37 }
 0x120   : > { %1062 = vst [vmem:[%s2020_s29] sm:$0xff] %v1061_v40 }
 0x121 PF: > { %s14_s18 = sadd.s32 1, %s1910_s18   ;;  %s2257_s12 = smov %s1898_s15 }
 0x122   : > { %p11_p0 = scmp.ge.s32.totalorder %s14_s18, 26   ;;  %s2258_s13 = smov %s1902_s16 }
 0x123   : > { %s2259_s14 = smov %s1906_s17  ;;  %s2260_s15 = smov %s2264_s20 }
 0x124   : > { %s2261_s16 = smov %s2268_s21  ;;  %s2262_s17 = smov %s2272_s22 }
 0x125   :  { %13 = sbr.rel (!%p11_p0) target bundleno = 4 (0x4), region = 78 }
 0x12a   :  { %1092 = vsyncpa [#allocation4], 1 }
 0x12b   :  { %1094 = vsyncpa [#allocation4 + $0x1], 1 }

// kernel: generator_forward.67
= control target key start
LH: loop header
LB: loop body
LE: loop exit
PB: predicated region body
PF: predicated region fallthrough
CT: control target
= control target key end

     0   :  { %s690_s12 = smov 0   ;;  %s692_s13 = smov 0   ;;  %s795_s0 = inlined_call_operand.vmem [shape: bf16[2,4,4,256], index: 0, kind: input, shape index: {}]   ;;  %s796_s1 = inlined_call_operand.vmem [shape: bf16[1,1,256,128], index: 1, kind: input, shape index: {}]   ;;  %s797_s2 = inlined_call_operand.vmem [shape: f32[1,128], index: 2, kind: input, shape index: {}]   ;;  %s798_s3 = inlined_call_operand.vmem [shape: f32[2,4,4,128], index: 3, kind: output, shape index: {}]  }
   0x1   :  { %s694_s14 = smov 0   ;;  %s696_s15 = smov 0  }
   0x2   :  { %s698_s16 = smov 0  }
   0x3 LB: > { %s28_s17 = sadd.s32 1, %s659_s14  ;;  %s32_s18 = sadd.s32 1, %s663_s15  ;;  %s667_s16 = sphi %s698_s16, %s13_s16   ;;  %s663_s15 = sphi %s696_s15, %s802_s15   ;;  %s659_s14 = sphi %s694_s14, %s801_s14   ;;  %s655_s13 = sphi %s692_s13, %s800_s13   ;;  %s651_s12 = sphi %s690_s12, %s799_s12  }
   0x4   : > { %p30_p0 = scmp.ge.s32.totalorder %s28_s17, 4  ;;  %p499_p1 = scmp.ge.s32.totalorder %s667_s16, 1 }
   0x5   : > { %p168_p2 = scmp.lt.s32.totalorder %s667_s16, 9 }
   0x6   : > { %s804_s17 = smov (%p30_p0, %s28_s17), 0  ;;  %s806_s18 = smov (!%p30_p0, %s32_s18), %s663_s15 }
   0x7   : > { %p169_p3 = pnand %p499_p1, %p168_p2  ;;  %p34_p4 = scmp.ge.s32.totalorder %s806_s18, 2 }
   0x8   : > { %p201_p5 = scmp.lt.s32.totalorder (!%p169_p3), %s655_s13, 1  ;;  %p203_p6 = scmp.lt.s32.totalorder (!%p169_p3), %s651_s12, 3 }
   0x9   : > { %s808_s18 = smov (%p34_p4, %s806_s18), 0  ;;  %172 = sbr.rel (%p169_p3) target bundleno = 188 (0xbc), region = 32 }
   0xe   : > { %v578_v0 = vld [vmem:[%s796_s1 + $0x38] sm:$0xff]  ;;  %v577_v2 = vld [vmem:[%s796_s1 + $0x30] sm:$0xff]  ;;  %s810_s13 = smov (!%p201_p5, %s655_s13), 1  ;;  %s812_s12 = smov (!%p203_p6, %s651_s12), 3  ;;  %v576_v4 = vld [vmem:[%s796_s1 + $0x28] sm:$0xff]  ;;  %v669_v19 = vmov 0.0  }
   0xf   : > { %v586_v1 = vld [vmem:[%s796_s1 + $0x78] sm:$0xff]  ;;  %363 = vmatpush.bf16.msra.mxu0 %v578_v0  ;;  %v585_v3 = vld [vmem:[%s796_s1 + $0x70] sm:$0xff]  ;;  %s501_s27 = sshll.u32 %s810_s13, 3  ;;  %s503_s28 = sshll.u32 %s810_s13, 2  ;;  %v584_v5 = vld [vmem:[%s796_s1 + $0x68] sm:$0xff] }
  0x10   : > { %376 = vmatpush.bf16.msra.mxu1 %v586_v1  ;;  %s500_s29 = sshll.u32 %s812_s12, 1  ;;  %s732_s30 = sadd.s32 %s503_s28, %s812_s12  ;;  %v575_v7 = vld [vmem:[%s796_s1 + $0x20] sm:$0xff]  ;;  %v574_v9 = vld [vmem:[%s796_s1 + $0x18] sm:$0xff]  ;;  %v573_v11 = vld [vmem:[%s796_s1 + $0x10] sm:$0xff]  ;;  %223 = vst [vmem:[#allocation2] sm:$0xf] %v669_v19 }
  0x11   : > { %s207_s8 = sadd.s32 %s501_s27, %s500_s29  ;;  %v583_v8 = vld [vmem:[%s796_s1 + $0x60] sm:$0xff]  ;;  %v582_v10 = vld [vmem:[%s796_s1 + $0x58] sm:$0xff]  ;;  %v581_v12 = vld [vmem:[%s796_s1 + $0x50] sm:$0xff] }
  0x12   : > { %s502_s9 = sshll.u32 %s207_s8, 1  ;;  %v572_v13 = vld [vmem:[%s796_s1 + $0x8] sm:$0xff]  ;;  %v571_v15 = vld [vmem:[%s796_s1] sm:$0xff] }
  0x13   : > { %364 = vmatpush.bf16.msra.mxu0 %v577_v2  ;;  %s209_s19 = scalar_lea.vmem %s795_s0, %s502_s9  ;;  %v580_v14 = vld [vmem:[%s796_s1 + $0x48] sm:$0xff]  ;;  %v579_v16 = vld [vmem:[%s796_s1 + $0x40] sm:$0xff] }
  0x14   : > { %377 = vmatpush.bf16.msra.mxu1 %v585_v3  ;;  %v224_v6 = vld [vmem:[%s209_s19] sm:$0xf]  ;;  %s504_s19 = sshll.u32 %s732_s30, 2 }
  0x15   : > { %262 = vst [vmem:[#allocation1] ss:$4 sm:$0xff] %v224_v6  ;;  %v628_v27 = vld [vmem:[%s797_s2] ss:$0 sm:$0xff]  ;;  %s218_s22 = scalar_lea.vmem %s798_s3, %s504_s19 }
  0x17   : > { %365 = vmatpush.bf16.msra.mxu0 %v576_v4  ;;  %v260_v21 = vld [vmem:[#allocation2] sm:$0xf] }
  0x18   : > { %378 = vmatpush.bf16.msra.mxu1 %v584_v5 }
  0x1b   : > { %366 = vmatpush.bf16.msra.mxu0 %v575_v7 }
  0x1c   : > { %379 = vmatpush.bf16.msra.mxu1 %v583_v8  ;;  %v263_v17 = vld.sshfl [vmem:[#allocation1] sm:$0xff pattern:$0x73625140]  ;;  %v264_v18 = vld.sshfl [vmem:[#allocation1 + $0x8] sm:$0xff pattern:$0x73625140] }
  0x1f   : > { %367 = vmatpush.bf16.msra.mxu0 %v574_v9 }
  0x20   : > { %380 = vmatpush.bf16.msra.mxu1 %v582_v10 }
  0x23   : > { %368 = vmatpush.bf16.msra.mxu0 %v573_v11 }
  0x24   : > { %381 = vmatpush.bf16.msra.mxu1 %v581_v12 }
  0x27   : > { %369 = vmatpush.bf16.msra.mxu0 %v572_v13 }
  0x28   : > { %382 = vmatpush.bf16.msra.mxu1 %v580_v14 }
  0x2b   : > { %370 = vmatpush.bf16.msra.mxu0 %v571_v15 }
  0x2c   : > { %383 = vmatpush.bf16.msra.mxu1 %v579_v16 }
  0x2e   : > { %371 = vmatmul.bf16.vlgmr.msra.gmra.mxu0 %v263_v17 }
  0x2f   : > { %384 = vmatmul.bf16.vlgmr.msra.gmra.mxu1 %v264_v18 }
  0xab   : > { %v372_v20 = vpop.f32.mrf.mxu0 }
  0xac   : > { %v385_v22 = vpop.f32.mrf.mxu1 }
  0xad   : > { %v386_v23 = vadd.f32 %v385_v22, %v372_v20 }
  0xaf   : > { %v389_v24 = vadd.f32 %v386_v23, %v260_v21 }
  0xb1   : > { %390 = vst [vmem:[#allocation2] sm:$0xf] %v389_v24 }
  0xb3   : > { %v374_v25 = vpop.f32.mrf.mxu0 }
  0xb4   : > { %v387_v26 = vpop.f32.mrf.mxu1 }
  0xb8   : > { %v394_v28 = vld [vmem:[#allocation2] sm:$0xf] }
  0xb9   : > { %v399_v29 = vadd.f32 %v628_v27, %v394_v28 }
  0xbb   : > { %400 = vst [vmem:[%s218_s22] sm:$0xf] %v399_v29 }
  0xbc PF: > { %s13_s16 = sadd.s32 1, %s667_s16   ;;  %s799_s12 = smov %s659_s14 }
  0xbd   : > { %p10_p7 = scmp.ge.s32.totalorder %s13_s16, 10   ;;  %s800_s13 = smov %s663_s15 }
  0xbe   : > { %s801_s14 = smov %s804_s17  ;;  %s802_s15 = smov %s808_s18 }
  0xbf   :  { %12 = sbr.rel (!%p10_p7) target bundleno = 3 (0x3), region = 71 }

// kernel: generator_forward.68
= control target key start
LH: loop header
LB: loop body
LE: loop exit
PB: predicated region body
PF: predicated region fallthrough
CT: control target
= control target key end

     0   :  { %s989_s12 = smov 0   ;;  %s991_s13 = smov 0   ;;  %s1150_s0 = inlined_call_operand.vmem [shape: bf16[2,4,5,256], index: 0, kind: input, shape index: {}]   ;;  %s1151_s1 = inlined_call_operand.vmem [shape: bf16[1,2,256,128], index: 1, kind: input, shape index: {}]   ;;  %s1152_s2 = inlined_call_operand.vmem [shape: f32[1,128], index: 2, kind: input, shape index: {}]   ;;  %s1153_s3 = inlined_call_operand.vmem [shape: f32[2,4,4,128], index: 3, kind: output, shape index: {}]  }
   0x1   :  { %s993_s14 = smov 0   ;;  %s995_s15 = smov 0  }
   0x2   :  { %s997_s16 = smov 0  }
   0x3 LB: > { %s28_s17 = sadd.s32 1, %s958_s14  ;;  %s32_s18 = sadd.s32 1, %s962_s15  ;;  %s966_s16 = sphi %s997_s16, %s13_s16   ;;  %s962_s15 = sphi %s995_s15, %s1157_s15   ;;  %s958_s14 = sphi %s993_s14, %s1156_s14   ;;  %s954_s13 = sphi %s991_s13, %s1155_s13   ;;  %s950_s12 = sphi %s989_s12, %s1154_s12  }
   0x4   : > { %p30_p0 = scmp.ge.s32.totalorder %s28_s17, 4  ;;  %p686_p1 = scmp.ge.s32.totalorder %s966_s16, 1 }
   0x5   : > { %p168_p2 = scmp.lt.s32.totalorder %s966_s16, 9 }
   0x6   : > { %s1159_s17 = smov (%p30_p0, %s28_s17), 0  ;;  %s1161_s18 = smov (!%p30_p0, %s32_s18), %s962_s15 }
   0x7   : > { %p169_p3 = pnand %p686_p1, %p168_p2  ;;  %p34_p4 = scmp.ge.s32.totalorder %s1161_s18, 2 }
   0x8   : > { %p201_p5 = scmp.lt.s32.totalorder (!%p169_p3), %s954_s13, 1  ;;  %p203_p6 = scmp.lt.s32.totalorder (!%p169_p3), %s950_s12, 3 }
   0x9   : > { %s1163_s18 = smov (%p34_p4, %s1161_s18), 0  ;;  %172 = sbr.rel (%p169_p3) target bundleno = 198 (0xc6), region = 32 }
   0xe   : > { %v861_v0 = vld [vmem:[%s1151_s1 + $0x38] sm:$0xff]  ;;  %v860_v4 = vld [vmem:[%s1151_s1 + $0x30] sm:$0xff]  ;;  %s1165_s13 = smov (!%p201_p5, %s954_s13), 1  ;;  %s1167_s12 = smov (!%p203_p6, %s950_s12), 3  ;;  %v859_v8 = vld [vmem:[%s1151_s1 + $0x28] sm:$0xff]  ;;  %v968_v50 = vmov 0.0  }
   0xf   : > { %v869_v1 = vld [vmem:[%s1151_s1 + $0x78] sm:$0xff]  ;;  %364 = vmatpush.bf16.msra.mxu0 %v861_v0  ;;  %v868_v5 = vld [vmem:[%s1151_s1 + $0x70] sm:$0xff]  ;;  %s688_s8 = sshll.u32 %s1165_s13, 3  ;;  %s690_s9 = sshll.u32 %s1165_s13, 2  ;;  %v867_v9 = vld [vmem:[%s1151_s1 + $0x68] sm:$0xff] }
  0x10   : > { %v877_v2 = vld [vmem:[%s1151_s1 + $0xb8] sm:$0xff]  ;;  %377 = vmatpush.bf16.msra.mxu1 %v869_v1  ;;  %v876_v6 = vld [vmem:[%s1151_s1 + $0xb0] sm:$0xff]  ;;  %s687_s10 = sshll.u32 %s1167_s12, 1  ;;  %s1047_s11 = sadd.s32 %s690_s9, %s1167_s12  ;;  %v875_v10 = vld [vmem:[%s1151_s1 + $0xa8] sm:$0xff]  ;;  %223 = vst [vmem:[#allocation2] sm:$0xf] %v968_v50 }
  0x11   : > { %v885_v3 = vld [vmem:[%s1151_s1 + $0xf8] sm:$0xff]  ;;  %546 = vmatpush.bf16.msra.mxu2 %v877_v2  ;;  %v884_v7 = vld [vmem:[%s1151_s1 + $0xf0] sm:$0xff]  ;;  %s207_s23 = sadd.s32 %s688_s8, %s687_s10  ;;  %v883_v11 = vld [vmem:[%s1151_s1 + $0xe8] sm:$0xff]  ;;  %s691_s28 = sshll.u32 %s1047_s11, 2 }
  0x12   : > { %559 = vmatpush.bf16.msra.mxu3 %v885_v3  ;;  %s689_s26 = sshll.u32 %s207_s23, 2  ;;  %v858_v12 = vld [vmem:[%s1151_s1 + $0x20] sm:$0xff]  ;;  %v857_v17 = vld [vmem:[%s1151_s1 + $0x18] sm:$0xff]  ;;  %v856_v23 = vld [vmem:[%s1151_s1 + $0x10] sm:$0xff]  ;;  %s218_s7 = scalar_lea.vmem %s1153_s3, %s691_s28 }
  0x13   : > { %365 = vmatpush.bf16.msra.mxu0 %v860_v4  ;;  %s1064_s29 = scalar_lea.vmem %s1150_s0, %s689_s26  ;;  %v866_v13 = vld [vmem:[%s1151_s1 + $0x60] sm:$0xff]  ;;  %v865_v18 = vld [vmem:[%s1151_s1 + $0x58] sm:$0xff]  ;;  %v864_v24 = vld [vmem:[%s1151_s1 + $0x50] sm:$0xff] }
  0x14   : > { %378 = vmatpush.bf16.msra.mxu1 %v868_v5  ;;  %v874_v14 = vld [vmem:[%s1151_s1 + $0xa0] sm:$0xff]  ;;  %v873_v21 = vld [vmem:[%s1151_s1 + $0x98] sm:$0xff]  ;;  %v872_v27 = vld [vmem:[%s1151_s1 + $0x90] sm:$0xff] }
  0x15   : > { %547 = vmatpush.bf16.msra.mxu2 %v876_v6  ;;  %v882_v15 = vld [vmem:[%s1151_s1 + $0xe0] sm:$0xff]  ;;  %v881_v22 = vld [vmem:[%s1151_s1 + $0xd8] sm:$0xff]  ;;  %v880_v28 = vld [vmem:[%s1151_s1 + $0xd0] sm:$0xff] }
  0x16   : > { %560 = vmatpush.bf16.msra.mxu3 %v884_v7  ;;  %v392_v16 = vld [vmem:[%s1064_s29] sm:$0x77]  ;;  %v855_v29 = vld [vmem:[%s1151_s1 + $0x8] sm:$0xff] }
  0x17   : > { %366 = vmatpush.bf16.msra.mxu0 %v859_v8  ;;  %v430_v19 = vunpack.c.l.b16 %v392_v16  ;;  %v431_v20 = vunpack.c.h.b16 %v392_v16  ;;  %v863_v30 = vld [vmem:[%s1151_s1 + $0x48] sm:$0xff]  ;;  %v224_v31 = vld [vmem:[%s1064_s29] sm:$0x33] }
  0x18   : > { %379 = vmatpush.bf16.msra.mxu1 %v867_v9  ;;  %v871_v34 = vld [vmem:[%s1151_s1 + $0x88] sm:$0xff]  ;;  %v262_v36 = vunpack.c.l.b16 %v224_v31  ;;  %v263_v37 = vunpack.c.h.b16 %v224_v31  ;;  %v854_v38 = vld [vmem:[%s1151_s1] sm:$0xff] }
  0x19   : > { %548 = vmatpush.bf16.msra.mxu2 %v875_v10  ;;  %v432_v25 = vpack.c.b16 %v430_v19, %v430_v19  ;;  %v433_v26 = vpack.c.b16 %v431_v20, %v431_v20  ;;  %v879_v35 = vld [vmem:[%s1151_s1 + $0xc8] sm:$0xff]  ;;  %v862_v39 = vld [vmem:[%s1151_s1 + $0x40] sm:$0xff] }
  0x1a   : > { %561 = vmatpush.bf16.msra.mxu3 %v883_v11  ;;  %v870_v44 = vld [vmem:[%s1151_s1 + $0x80] sm:$0xff]  ;;  %v264_v46 = vpack.c.b16 %v262_v36, %v262_v36  ;;  %v265_v47 = vpack.c.b16 %v263_v37, %v263_v37 }
  0x1b   : > { %367 = vmatpush.bf16.msra.mxu0 %v858_v12  ;;  %v437_v32 = vshll.u32 %v432_v25, 16  ;;  %v444_v33 = vshll.u32 %v433_v26, 16  ;;  %v435_v40 = vshrl.u32 %v432_v25, 16  ;;  %v442_v42 = vshrl.u32 %v433_v26, 16  ;;  %v878_v45 = vld [vmem:[%s1151_s1 + $0xc0] sm:$0xff] }
  0x1c   : > { %380 = vmatpush.bf16.msra.mxu1 %v866_v13  ;;  %v260_v52 = vld [vmem:[#allocation2] sm:$0xf] }
  0x1d   : > { %549 = vmatpush.bf16.msra.mxu2 %v874_v14  ;;  %v439_v41 = vrot.slane %v437_v32, 1  ;;  %v446_v43 = vrot.slane %v444_v33, 1  ;;  %v927_v1 = vld [vmem:[%s1152_s2] ss:$0 sm:$0xff] }
  0x1e   : > { %562 = vmatpush.bf16.msra.mxu3 %v882_v15 }
  0x1f   : > { %368 = vmatpush.bf16.msra.mxu0 %v857_v17  ;;  %v440_v48 = vor.u32 %v439_v41, %v435_v40  ;;  %v447_v49 = vor.u32 %v446_v43, %v442_v42 }
  0x20   : > { %381 = vmatpush.bf16.msra.mxu1 %v865_v18 }
  0x21   : > { %550 = vmatpush.bf16.msra.mxu2 %v873_v21 }
  0x22   : > { %563 = vmatpush.bf16.msra.mxu3 %v881_v22 }
  0x23   : > { %369 = vmatpush.bf16.msra.mxu0 %v856_v23 }
  0x24   : > { %382 = vmatpush.bf16.msra.mxu1 %v864_v24 }
  0x25   : > { %551 = vmatpush.bf16.msra.mxu2 %v872_v27 }
  0x26   : > { %564 = vmatpush.bf16.msra.mxu3 %v880_v28 }
  0x27   : > { %370 = vmatpush.bf16.msra.mxu0 %v855_v29 }
  0x28   : > { %383 = vmatpush.bf16.msra.mxu1 %v863_v30 }
  0x29   : > { %552 = vmatpush.bf16.msra.mxu2 %v871_v34 }
  0x2a   : > { %565 = vmatpush.bf16.msra.mxu3 %v879_v35 }
  0x2b   : > { %371 = vmatpush.bf16.msra.mxu0 %v854_v38 }
  0x2c   : > { %384 = vmatpush.bf16.msra.mxu1 %v862_v39 }
  0x2d   : > { %553 = vmatpush.bf16.msra.mxu2 %v870_v44 }
  0x2e   : > { %566 = vmatpush.bf16.msra.mxu3 %v878_v45  ;;  %372 = vmatmul.bf16.vlgmr.msra.gmra.mxu0 %v264_v46 }
  0x2f   : > { %385 = vmatmul.bf16.vlgmr.msra.gmra.mxu1 %v265_v47 }
  0x30   : > { %554 = vmatmul.bf16.vlgmr.msra.gmra.mxu2 %v440_v48 }
  0x31   : > { %567 = vmatmul.bf16.vlgmr.msra.gmra.mxu3 %v447_v49 }
  0xab   : > { %v373_v51 = vpop.f32.mrf.mxu0 }
  0xac   : > { %v386_v53 = vpop.f32.mrf.mxu1 }
  0xad   : > { %v387_v54 = vadd.f32 %v386_v53, %v373_v51 }
  0xaf   : > { %v390_v55 = vadd.f32 %v387_v54, %v260_v52 }
  0xb1   : > { %391 = vst [vmem:[#allocation2] sm:$0xf] %v390_v55 }
  0xb3   : > { %v555_v56 = vpop.f32.mrf.mxu2  ;;  %v375_v58 = vpop.f32.mrf.mxu0 }
  0xb4   : > { %v568_v57 = vpop.f32.mrf.mxu3  ;;  %v388_v59 = vpop.f32.mrf.mxu1 }
  0xb5   : > { %v569_v60 = vadd.f32 %v568_v57, %v555_v56 }
  0xb8   : > { %v428_v61 = vld [vmem:[#allocation2] sm:$0xf] }
  0xb9   : > { %v572_v62 = vadd.f32 %v569_v60, %v428_v61 }
  0xbb   : > { %573 = vst [vmem:[#allocation2] sm:$0xf] %v572_v62  ;;  %v557_v63 = vpop.f32.mrf.mxu2 }
  0xbc   : > { %v570_v0 = vpop.f32.mrf.mxu3 }
  0xc2   : > { %v577_v2 = vld [vmem:[#allocation2] sm:$0xf] }
  0xc3   : > { %v582_v3 = vadd.f32 %v927_v1, %v577_v2 }
  0xc5   : > { %583 = vst [vmem:[%s218_s7] sm:$0xf] %v582_v3 }
  0xc6 PF: > { %s13_s16 = sadd.s32 1, %s966_s16   ;;  %s1154_s12 = smov %s958_s14 }
  0xc7   : > { %p10_p7 = scmp.ge.s32.totalorder %s13_s16, 10   ;;  %s1155_s13 = smov %s962_s15 }
  0xc8   : > { %s1156_s14 = smov %s1159_s17  ;;  %s1157_s15 = smov %s1163_s18 }
  0xc9   :  { %12 = sbr.rel (!%p10_p7) target bundleno = 3 (0x3), region = 72 }

// kernel: generator_forward.69
= control target key start
LH: loop header
LB: loop body
LE: loop exit
PB: predicated region body
PF: predicated region fallthrough
CT: control target
= control target key end

     0   :  { %s731_s12 = smov 0   ;;  %s733_s13 = smov 0   ;;  %s838_s0 = inlined_call_operand.vmem [shape: bf16[2,5,4,256], index: 0, kind: input, shape index: {}]   ;;  %s839_s1 = inlined_call_operand.vmem [shape: bf16[2,1,256,128], index: 1, kind: input, shape index: {}]   ;;  %s840_s2 = inlined_call_operand.vmem [shape: f32[1,128], index: 2, kind: input, shape index: {}]   ;;  %s841_s3 = inlined_call_operand.vmem [shape: f32[2,4,4,128], index: 3, kind: output, shape index: {}]  }
   0x1   :  { %s735_s14 = smov 0   ;;  %s737_s15 = smov 0  }
   0x2   :  { %s739_s16 = smov 0   ;;  %s741_s17 = smov 0  }
   0x3   :  { %s743_s18 = smov 0  }
   0x4 LB: > { %s25_s19 = sadd.s32 1, %s696_s15  ;;  %s28_s20 = sadd.s32 1, %s700_s16  ;;  %s708_s18 = sphi %s743_s18, %s13_s18   ;;  %s704_s17 = sphi %s741_s17, %s847_s17   ;;  %s700_s16 = sphi %s739_s16, %s846_s16   ;;  %s696_s15 = sphi %s737_s15, %s845_s15   ;;  %s692_s14 = sphi %s735_s14, %s844_s14   ;;  %s688_s13 = sphi %s733_s13, %s843_s13   ;;  %s684_s12 = sphi %s731_s12, %s842_s12  }
   0x5   : > { %p26_p0 = scmp.ge.s32.totalorder %s25_s19, 2  ;;  %p503_p1 = scmp.ge.s32.totalorder %s708_s18, 1 }
   0x6   : > { %p168_p2 = scmp.lt.s32.totalorder %s708_s18, 17  ;;  %s32_s21 = sadd.s32 1, %s704_s17 }
   0x7   : > { %s849_s19 = smov (%p26_p0, %s25_s19), 0  ;;  %s851_s20 = smov (!%p26_p0, %s28_s20), %s700_s16 }
   0x8   : > { %p169_p3 = pnand %p503_p1, %p168_p2  ;;  %p30_p4 = scmp.ge.s32.totalorder %s851_s20, 4 }
   0x9   : > { %s200_s22 = sadd.s32 (!%p169_p3), %s684_s12, %s688_s13  ;;  %p201_p6 = scmp.lt.s32.totalorder (!%p169_p3), %s692_s14, 1 }
   0xa   : > { %s853_s20 = smov (%p30_p4, %s851_s20), 0  ;;  %s855_s21 = smov (!%p30_p4, %s32_s21), %s704_s17 }
   0xb   : > { %p34_p5 = scmp.ge.s32.totalorder %s855_s21, 2  ;;  %172 = sbr.rel (%p169_p3) target bundleno = 205 (0xcd), region = 32 }
   0xc   : > { %p203_p7 = scmp.lt.s32.totalorder (!%p169_p3), %s200_s22, 4  ;;  %p213_p8 = scmp.lt.s32.totalorder (!%p169_p3), %s688_s13, 3 }
   0xd   : > { %s857_s21 = smov (%p34_p5, %s855_s21), 0  ;;  %p508_p9 = scmp.ne.s32.totalorder (!%p169_p3), %s684_s12, 0 }
  0x10   : > { %s859_s14 = smov (!%p201_p6, %s692_s14), 1  ;;  %s861_s22 = smov (!%p203_p7, %s200_s22), 4 }
  0x11   : > { %s595_s23 = smul.u32 10, %s859_s14  ;;  %s504_s24 = sshll.u32 %s861_s22, 1 }
  0x12   : > { %s506_s30 = sshll.u32 %s859_s14, 2  ;;  %s863_s13 = smov (!%p213_p8, %s688_s13), 3 }
  0x13   : > { %s207_s25 = sadd.s32 %s595_s23, %s504_s24  ;;  %s216_s4 = sadd.s32 %s506_s30, %s863_s13 }
  0x14   : > { %s505_s26 = sshll.u32 %s207_s25, 1  ;;  %s507_s5 = sshll.u32 %s216_s4, 2 }
  0x15   : > { %s209_s29 = scalar_lea.vmem %s838_s0, %s505_s26  ;;  %s787_s8 = scalar_lea.vmem %s841_s3, %s507_s5 }
  0x16   : > { %222 = sbr.rel (%p508_p9) target bundleno = 29 (0x1d), region = 36 }
  0x1b   : > { %v710_v0 = vmov 0.0  }
  0x1c   : > { %223 = vst [vmem:[#allocation2] sm:$0xf] %v710_v0 }
  0x1d PF: > { %s578_s9 = sshll.u32 %s684_s12, 7  ;;  %v224_v1 = vld [vmem:[%s209_s29] sm:$0xf]  ;;  %p575_p10 = scmp.ne.s32.totalorder %s684_s12, 1 }
  0x1e   : > { %s794_s14 = scalar_lea.vmem %s839_s1, %s578_s9  ;;  %262 = vst [vmem:[#allocation1] ss:$4 sm:$0xff] %v224_v1 }
  0x1f   : > { %v586_v2 = vld [vmem:[%s794_s14 + $0x38] sm:$0xff]  ;;  %v585_v4 = vld [vmem:[%s794_s14 + $0x30] sm:$0xff]  ;;  %v584_v6 = vld [vmem:[%s794_s14 + $0x28] sm:$0xff] }
  0x20   : > { %v594_v3 = vld [vmem:[%s794_s14 + $0x78] sm:$0xff]  ;;  %363 = vmatpush.bf16.msra.mxu0 %v586_v2  ;;  %v593_v5 = vld [vmem:[%s794_s14 + $0x70] sm:$0xff]  ;;  %v592_v7 = vld [vmem:[%s794_s14 + $0x68] sm:$0xff] }
  0x21   : > { %376 = vmatpush.bf16.msra.mxu1 %v594_v3  ;;  %v583_v8 = vld [vmem:[%s794_s14 + $0x20] sm:$0xff]  ;;  %v582_v10 = vld [vmem:[%s794_s14 + $0x18] sm:$0xff]  ;;  %v581_v12 = vld [vmem:[%s794_s14 + $0x10] sm:$0xff] }
  0x22   : > { %v591_v9 = vld [vmem:[%s794_s14 + $0x60] sm:$0xff]  ;;  %v590_v11 = vld [vmem:[%s794_s14 + $0x58] sm:$0xff]  ;;  %v589_v13 = vld [vmem:[%s794_s14 + $0x50] sm:$0xff] }
  0x23   : > { %v580_v14 = vld [vmem:[%s794_s14 + $0x8] sm:$0xff]  ;;  %v579_v16 = vld [vmem:[%s794_s14] sm:$0xff] }
  0x24   : > { %364 = vmatpush.bf16.msra.mxu0 %v585_v4  ;;  %v588_v15 = vld [vmem:[%s794_s14 + $0x48] sm:$0xff]  ;;  %v587_v17 = vld [vmem:[%s794_s14 + $0x40] sm:$0xff] }
  0x25   : > { %377 = vmatpush.bf16.msra.mxu1 %v593_v5  ;;  %v263_v18 = vld.sshfl [vmem:[#allocation1] sm:$0xff pattern:$0x73625140]  ;;  %v264_v19 = vld.sshfl [vmem:[#allocation1 + $0x8] sm:$0xff pattern:$0x73625140] }
  0x26   : > { %v260_v21 = vld [vmem:[#allocation2] sm:$0xf] }
  0x28   : > { %365 = vmatpush.bf16.msra.mxu0 %v584_v6 }
  0x29   : > { %378 = vmatpush.bf16.msra.mxu1 %v592_v7 }
  0x2c   : > { %366 = vmatpush.bf16.msra.mxu0 %v583_v8 }
  0x2d   : > { %379 = vmatpush.bf16.msra.mxu1 %v591_v9 }
  0x30   : > { %367 = vmatpush.bf16.msra.mxu0 %v582_v10 }
  0x31   : > { %380 = vmatpush.bf16.msra.mxu1 %v590_v11 }
  0x34   : > { %368 = vmatpush.bf16.msra.mxu0 %v581_v12 }
  0x35   : > { %381 = vmatpush.bf16.msra.mxu1 %v589_v13 }
  0x38   : > { %369 = vmatpush.bf16.msra.mxu0 %v580_v14 }
  0x39   : > { %382 = vmatpush.bf16.msra.mxu1 %v588_v15 }
  0x3c   : > { %370 = vmatpush.bf16.msra.mxu0 %v579_v16 }
  0x3d   : > { %383 = vmatpush.bf16.msra.mxu1 %v587_v17 }
  0x3f   : > { %371 = vmatmul.bf16.vlgmr.msra.gmra.mxu0 %v263_v18 }
  0x40   : > { %384 = vmatmul.bf16.vlgmr.msra.gmra.mxu1 %v264_v19 }
  0xbc   : > { %v372_v20 = vpop.f32.mrf.mxu0 }
  0xbd   : > { %v385_v22 = vpop.f32.mrf.mxu1 }
  0xbe   : > { %v386_v23 = vadd.f32 %v385_v22, %v372_v20 }
  0xc0   : > { %v389_v24 = vadd.f32 %v386_v23, %v260_v21 }
  0xc1   : > { %394 = sbr.rel (%p575_p10) target bundleno = 205 (0xcd), region = 40 }
  0xc2   : > { %390 = vst [vmem:[#allocation2] sm:$0xf] %v389_v24 }
  0xc4   : > { %v374_v25 = vpop.f32.mrf.mxu0 }
  0xc5   : > { %v387_v26 = vpop.f32.mrf.mxu1 }
  0xc6   : > { %v653_v28 = vld [vmem:[%s840_s2] ss:$0 sm:$0xff] }
  0xc9   : > { %v395_v27 = vld [vmem:[#allocation2] sm:$0xf] }
  0xca   : > { %v400_v29 = vadd.f32 %v653_v28, %v395_v27 }
  0xcc   : > { %401 = vst [vmem:[%s787_s8] sm:$0xf] %v400_v29 }
  0xcd PF: > { %s13_s18 = sadd.s32 1, %s708_s18   ;;  %s842_s12 = smov %s696_s15 }
  0xce   : > { %p10_p11 = scmp.ge.s32.totalorder %s13_s18, 18   ;;  %s843_s13 = smov %s700_s16 }
  0xcf   : > { %s844_s14 = smov %s704_s17  ;;  %s845_s15 = smov %s849_s19 }
  0xd0   : > { %s846_s16 = smov %s853_s20  ;;  %s847_s17 = smov %s857_s21 }
  0xd1   :  { %12 = sbr.rel (!%p10_p11) target bundleno = 4 (0x4), region = 71 }

// kernel: generator_forward.70
= control target key start
LH: loop header
LB: loop body
LE: loop exit
PB: predicated region body
PF: predicated region fallthrough
CT: control target
= control target key end

     0   :  { %s1033_s12 = smov 0   ;;  %s1035_s13 = smov 0   ;;  %s1160_s0 = inlined_call_operand.vmem [shape: bf16[2,5,5,256], index: 0, kind: input, shape index: {}]   ;;  %s1161_s1 = inlined_call_operand.vmem [shape: bf16[2,2,256,128], index: 1, kind: input, shape index: {}]   ;;  %s1162_s2 = inlined_call_operand.vmem [shape: f32[1,128], index: 2, kind: input, shape index: {}]   ;;  %s1163_s3 = inlined_call_operand.vmem [shape: f32[2,4,4,128], index: 3, kind: output, shape index: {}]  }
   0x1   :  { %s1037_s14 = smov 0   ;;  %s1039_s15 = smov 0  }
   0x2   :  { %s1041_s16 = smov 0   ;;  %s1043_s17 = smov 0  }
   0x3   :  { %s1045_s18 = smov 0  }
   0x4 LB: > { %s25_s19 = sadd.s32 1, %s998_s15  ;;  %s28_s20 = sadd.s32 1, %s1002_s16  ;;  %s1010_s18 = sphi %s1045_s18, %s13_s18   ;;  %s1006_s17 = sphi %s1043_s17, %s1169_s17   ;;  %s1002_s16 = sphi %s1041_s16, %s1168_s16   ;;  %s998_s15 = sphi %s1039_s15, %s1167_s15   ;;  %s994_s14 = sphi %s1037_s14, %s1166_s14   ;;  %s990_s13 = sphi %s1035_s13, %s1165_s13   ;;  %s986_s12 = sphi %s1033_s12, %s1164_s12  }
   0x5   : > { %p26_p0 = scmp.ge.s32.totalorder %s25_s19, 2  ;;  %p690_p1 = scmp.ge.s32.totalorder %s1010_s18, 1 }
   0x6   : > { %p168_p2 = scmp.lt.s32.totalorder %s1010_s18, 17  ;;  %s32_s21 = sadd.s32 1, %s1006_s17 }
   0x7   : > { %s1171_s19 = smov (%p26_p0, %s25_s19), 0  ;;  %s1173_s20 = smov (!%p26_p0, %s28_s20), %s1002_s16 }
   0x8   : > { %p169_p3 = pnand %p690_p1, %p168_p2  ;;  %p30_p4 = scmp.ge.s32.totalorder %s1173_s20, 4 }
   0x9   : > { %s200_s22 = sadd.s32 (!%p169_p3), %s986_s12, %s990_s13  ;;  %p201_p6 = scmp.lt.s32.totalorder (!%p169_p3), %s994_s14, 1 }
   0xa   : > { %s1175_s20 = smov (%p30_p4, %s1173_s20), 0  ;;  %s1177_s21 = smov (!%p30_p4, %s32_s21), %s1006_s17 }
   0xb   : > { %p34_p5 = scmp.ge.s32.totalorder %s1177_s21, 2  ;;  %172 = sbr.rel (%p169_p3) target bundleno = 215 (0xd7), region = 32 }
   0xc   : > { %p203_p7 = scmp.lt.s32.totalorder (!%p169_p3), %s200_s22, 4  ;;  %p213_p8 = scmp.lt.s32.totalorder (!%p169_p3), %s990_s13, 3 }
   0xd   : > { %s1179_s21 = smov (%p34_p5, %s1177_s21), 0  ;;  %p695_p9 = scmp.ne.s32.totalorder (!%p169_p3), %s986_s12, 0 }
  0x10   : > { %s1181_s14 = smov (!%p201_p6, %s994_s14), 1  ;;  %s1183_s22 = smov (!%p203_p7, %s200_s22), 4 }
  0x11   : > { %s897_s23 = smul.u32 10, %s1181_s14  ;;  %s691_s24 = sshll.u32 %s1183_s22, 1 }
  0x12   : > { %s693_s30 = sshll.u32 %s1181_s14, 2  ;;  %s1185_s13 = smov (!%p213_p8, %s990_s13), 3 }
  0x13   : > { %s207_s25 = sadd.s32 %s897_s23, %s691_s24  ;;  %s216_s4 = sadd.s32 %s693_s30, %s1185_s13 }
  0x14   : > { %s692_s26 = sshll.u32 %s207_s25, 2  ;;  %s694_s5 = sshll.u32 %s216_s4, 2 }
  0x15   : > { %s1085_s29 = scalar_lea.vmem %s1160_s0, %s692_s26  ;;  %s1091_s8 = scalar_lea.vmem %s1163_s3, %s694_s5 }
  0x16   : > { %222 = sbr.rel (%p695_p9) target bundleno = 29 (0x1d), region = 36 }
  0x1b   : > { %v1012_v0 = vmov 0.0  }
  0x1c   : > { %223 = vst [vmem:[#allocation2] sm:$0xf] %v1012_v0 }
  0x1d PF: > { %s863_s9 = sshll.u32 %s986_s12, 8  ;;  %v392_v17 = vld [vmem:[%s1085_s29] sm:$0x77]  ;;  %p860_p10 = scmp.ne.s32.totalorder %s986_s12, 1 }
  0x1e   : > { %s1098_s14 = scalar_lea.vmem %s1161_s1, %s863_s9  ;;  %v430_v20 = vunpack.c.l.b16 %v392_v17  ;;  %v431_v21 = vunpack.c.h.b16 %v392_v17  ;;  %v224_v32 = vld [vmem:[%s1085_s29] sm:$0x33] }
  0x1f   : > { %v871_v1 = vld [vmem:[%s1098_s14 + $0x38] sm:$0xff]  ;;  %v870_v5 = vld [vmem:[%s1098_s14 + $0x30] sm:$0xff]  ;;  %v869_v9 = vld [vmem:[%s1098_s14 + $0x28] sm:$0xff]  ;;  %v262_v37 = vunpack.c.l.b16 %v224_v32  ;;  %v263_v38 = vunpack.c.h.b16 %v224_v32 }
  0x20   : > { %v879_v2 = vld [vmem:[%s1098_s14 + $0x78] sm:$0xff]  ;;  %364 = vmatpush.bf16.msra.mxu0 %v871_v1  ;;  %v878_v6 = vld [vmem:[%s1098_s14 + $0x70] sm:$0xff]  ;;  %v877_v10 = vld [vmem:[%s1098_s14 + $0x68] sm:$0xff]  ;;  %v432_v26 = vpack.c.b16 %v430_v20, %v430_v20  ;;  %v433_v27 = vpack.c.b16 %v431_v21, %v431_v21 }
  0x21   : > { %v888_v3 = vld [vmem:[%s1098_s14 + $0xb8] sm:$0xff]  ;;  %377 = vmatpush.bf16.msra.mxu1 %v879_v2  ;;  %v887_v7 = vld [vmem:[%s1098_s14 + $0xb0] sm:$0xff]  ;;  %v886_v11 = vld [vmem:[%s1098_s14 + $0xa8] sm:$0xff]  ;;  %v264_v47 = vpack.c.b16 %v262_v37, %v262_v37  ;;  %v265_v48 = vpack.c.b16 %v263_v38, %v263_v38 }
  0x22   : > { %v896_v4 = vld [vmem:[%s1098_s14 + $0xf8] sm:$0xff]  ;;  %546 = vmatpush.bf16.msra.mxu2 %v888_v3  ;;  %v895_v8 = vld [vmem:[%s1098_s14 + $0xf0] sm:$0xff]  ;;  %v894_v12 = vld [vmem:[%s1098_s14 + $0xe8] sm:$0xff]  ;;  %v437_v33 = vshll.u32 %v432_v26, 16  ;;  %v444_v34 = vshll.u32 %v433_v27, 16  ;;  %v435_v41 = vshrl.u32 %v432_v26, 16 }
  0x23   : > { %559 = vmatpush.bf16.msra.mxu3 %v896_v4  ;;  %v868_v13 = vld [vmem:[%s1098_s14 + $0x20] sm:$0xff]  ;;  %v867_v18 = vld [vmem:[%s1098_s14 + $0x18] sm:$0xff]  ;;  %v866_v24 = vld [vmem:[%s1098_s14 + $0x10] sm:$0xff]  ;;  %v442_v43 = vshrl.u32 %v433_v27, 16 }
  0x24   : > { %365 = vmatpush.bf16.msra.mxu0 %v870_v5  ;;  %v876_v14 = vld [vmem:[%s1098_s14 + $0x60] sm:$0xff]  ;;  %v875_v19 = vld [vmem:[%s1098_s14 + $0x58] sm:$0xff]  ;;  %v874_v25 = vld [vmem:[%s1098_s14 + $0x50] sm:$0xff]  ;;  %v439_v42 = vrot.slane %v437_v33, 1  ;;  %v446_v44 = vrot.slane %v444_v34, 1 }
  0x25   : > { %378 = vmatpush.bf16.msra.mxu1 %v878_v6  ;;  %v885_v15 = vld [vmem:[%s1098_s14 + $0xa0] sm:$0xff]  ;;  %v884_v22 = vld [vmem:[%s1098_s14 + $0x98] sm:$0xff]  ;;  %v883_v28 = vld [vmem:[%s1098_s14 + $0x90] sm:$0xff] }
  0x26   : > { %547 = vmatpush.bf16.msra.mxu2 %v887_v7  ;;  %v893_v16 = vld [vmem:[%s1098_s14 + $0xe0] sm:$0xff]  ;;  %v892_v23 = vld [vmem:[%s1098_s14 + $0xd8] sm:$0xff]  ;;  %v891_v29 = vld [vmem:[%s1098_s14 + $0xd0] sm:$0xff]  ;;  %v440_v49 = vor.u32 %v439_v42, %v435_v41  ;;  %v447_v50 = vor.u32 %v446_v44, %v442_v43 }
  0x27   : > { %560 = vmatpush.bf16.msra.mxu3 %v895_v8  ;;  %v865_v30 = vld [vmem:[%s1098_s14 + $0x8] sm:$0xff]  ;;  %v864_v39 = vld [vmem:[%s1098_s14] sm:$0xff] }
  0x28   : > { %366 = vmatpush.bf16.msra.mxu0 %v869_v9  ;;  %v873_v31 = vld [vmem:[%s1098_s14 + $0x48] sm:$0xff]  ;;  %v872_v40 = vld [vmem:[%s1098_s14 + $0x40] sm:$0xff] }
  0x29   : > { %379 = vmatpush.bf16.msra.mxu1 %v877_v10  ;;  %v882_v35 = vld [vmem:[%s1098_s14 + $0x88] sm:$0xff]  ;;  %v881_v45 = vld [vmem:[%s1098_s14 + $0x80] sm:$0xff] }
  0x2a   : > { %548 = vmatpush.bf16.msra.mxu2 %v886_v11  ;;  %v890_v36 = vld [vmem:[%s1098_s14 + $0xc8] sm:$0xff]  ;;  %v889_v46 = vld [vmem:[%s1098_s14 + $0xc0] sm:$0xff] }
  0x2b   : > { %561 = vmatpush.bf16.msra.mxu3 %v894_v12  ;;  %v260_v52 = vld [vmem:[#allocation2] sm:$0xf] }
  0x2c   : > { %367 = vmatpush.bf16.msra.mxu0 %v868_v13 }
  0x2d   : > { %380 = vmatpush.bf16.msra.mxu1 %v876_v14 }
  0x2e   : > { %549 = vmatpush.bf16.msra.mxu2 %v885_v15 }
  0x2f   : > { %562 = vmatpush.bf16.msra.mxu3 %v893_v16 }
  0x30   : > { %368 = vmatpush.bf16.msra.mxu0 %v867_v18 }
  0x31   : > { %381 = vmatpush.bf16.msra.mxu1 %v875_v19 }
  0x32   : > { %550 = vmatpush.bf16.msra.mxu2 %v884_v22 }
  0x33   : > { %563 = vmatpush.bf16.msra.mxu3 %v892_v23 }
  0x34   : > { %369 = vmatpush.bf16.msra.mxu0 %v866_v24 }
  0x35   : > { %382 = vmatpush.bf16.msra.mxu1 %v874_v25 }
  0x36   : > { %551 = vmatpush.bf16.msra.mxu2 %v883_v28 }
  0x37   : > { %564 = vmatpush.bf16.msra.mxu3 %v891_v29 }
  0x38   : > { %370 = vmatpush.bf16.msra.mxu0 %v865_v30 }
  0x39   : > { %383 = vmatpush.bf16.msra.mxu1 %v873_v31 }
  0x3a   : > { %552 = vmatpush.bf16.msra.mxu2 %v882_v35 }
  0x3b   : > { %565 = vmatpush.bf16.msra.mxu3 %v890_v36 }
  0x3c   : > { %371 = vmatpush.bf16.msra.mxu0 %v864_v39 }
  0x3d   : > { %384 = vmatpush.bf16.msra.mxu1 %v872_v40 }
  0x3e   : > { %553 = vmatpush.bf16.msra.mxu2 %v881_v45 }
  0x3f   : > { %566 = vmatpush.bf16.msra.mxu3 %v889_v46  ;;  %372 = vmatmul.bf16.vlgmr.msra.gmra.mxu0 %v264_v47 }
  0x40   : > { %385 = vmatmul.bf16.vlgmr.msra.gmra.mxu1 %v265_v48 }
  0x41   : > { %554 = vmatmul.bf16.vlgmr.msra.gmra.mxu2 %v440_v49 }
  0x42   : > { %567 = vmatmul.bf16.vlgmr.msra.gmra.mxu3 %v447_v50 }
  0xbc   : > { %v373_v51 = vpop.f32.mrf.mxu0 }
  0xbd   : > { %v386_v53 = vpop.f32.mrf.mxu1 }
  0xbe   : > { %v387_v54 = vadd.f32 %v386_v53, %v373_v51 }
  0xc0   : > { %v390_v55 = vadd.f32 %v387_v54, %v260_v52 }
  0xc2   : > { %391 = vst [vmem:[#allocation2] sm:$0xf] %v390_v55 }
  0xc4   : > { %v555_v56 = vpop.f32.mrf.mxu2  ;;  %v375_v58 = vpop.f32.mrf.mxu0 }
  0xc5   : > { %v568_v57 = vpop.f32.mrf.mxu3  ;;  %v388_v59 = vpop.f32.mrf.mxu1 }
  0xc6   : > { %v569_v60 = vadd.f32 %v568_v57, %v555_v56 }
  0xc9   : > { %v428_v61 = vld [vmem:[#allocation2] sm:$0xf]  ;;  %577 = sbr.rel (%p860_p10) target bundleno = 215 (0xd7), region = 40 }
  0xca   : > { %v572_v62 = vadd.f32 %v569_v60, %v428_v61 }
  0xcc   : > { %573 = vst [vmem:[#allocation2] sm:$0xf] %v572_v62  ;;  %v557_v63 = vpop.f32.mrf.mxu2 }
  0xcd   : > { %v570_v0 = vpop.f32.mrf.mxu3 }
  0xce   : > { %v955_v2 = vld [vmem:[%s1162_s2] ss:$0 sm:$0xff] }
  0xd3   : > { %v578_v1 = vld [vmem:[#allocation2] sm:$0xf] }
  0xd4   : > { %v583_v3 = vadd.f32 %v955_v2, %v578_v1 }
  0xd6   : > { %584 = vst [vmem:[%s1091_s8] sm:$0xf] %v583_v3 }
  0xd7 PF: > { %s13_s18 = sadd.s32 1, %s1010_s18   ;;  %s1164_s12 = smov %s998_s15 }
  0xd8   : > { %p10_p11 = scmp.ge.s32.totalorder %s13_s18, 18   ;;  %s1165_s13 = smov %s1002_s16 }
  0xd9   : > { %s1166_s14 = smov %s1006_s17  ;;  %s1167_s15 = smov %s1171_s19 }
  0xda   : > { %s1168_s16 = smov %s1175_s20  ;;  %s1169_s17 = smov %s1179_s21 }
  0xdb   :  { %12 = sbr.rel (!%p10_p11) target bundleno = 4 (0x4), region = 72 }

// kernel: generator_forward.73
= control target key start
LH: loop header
LB: loop body
LE: loop exit
PB: predicated region body
PF: predicated region fallthrough
CT: control target
= control target key end

     0   :  { %s562_s12 = smov 0   ;;  %s564_s13 = smov 0   ;;  %s647_s0 = inlined_call_operand.vmem [shape: bf16[2,8,8,128], index: 0, kind: input, shape index: {}]   ;;  %s648_s1 = inlined_call_operand.vmem [shape: bf16[1,1,128,64], index: 1, kind: input, shape index: {}]   ;;  %s649_s2 = inlined_call_operand.vmem [shape: f32[1,64], index: 2, kind: input, shape index: {}]   ;;  %s650_s3 = inlined_call_operand.vmem [shape: f32[2,8,8,64], index: 3, kind: output, shape index: {}]  }
   0x1   :  { %s566_s14 = smov 0   ;;  %s568_s15 = smov 0  }
   0x2   :  { %s570_s16 = smov 0  }
   0x3 LB: > { %s28_s17 = sadd.s32 1, %s531_s14  ;;  %s32_s18 = sadd.s32 1, %s535_s15  ;;  %s539_s16 = sphi %s570_s16, %s13_s16   ;;  %s535_s15 = sphi %s568_s15, %s654_s15   ;;  %s531_s14 = sphi %s566_s14, %s653_s14   ;;  %s527_s13 = sphi %s564_s13, %s652_s13   ;;  %s523_s12 = sphi %s562_s12, %s651_s12  }
   0x4   : > { %p30_p0 = scmp.ge.s32.totalorder %s28_s17, 8  ;;  %p412_p1 = scmp.ge.s32.totalorder %s539_s16, 1 }
   0x5   : > { %p167_p2 = scmp.lt.s32.totalorder %s539_s16, 17 }
   0x6   : > { %s656_s17 = smov (%p30_p0, %s28_s17), 0  ;;  %s658_s18 = smov (!%p30_p0, %s32_s18), %s535_s15 }
   0x7   : > { %p168_p3 = pnand %p412_p1, %p167_p2  ;;  %p34_p4 = scmp.ge.s32.totalorder %s658_s18, 2 }
   0x8   : > { %p199_p5 = scmp.lt.s32.totalorder (!%p168_p3), %s527_s13, 1  ;;  %p201_p6 = scmp.lt.s32.totalorder (!%p168_p3), %s523_s12, 7 }
   0x9   : > { %s660_s18 = smov (%p34_p4, %s658_s18), 0  ;;  %171 = sbr.rel (%p168_p3) target bundleno = 185 (0xb9), region = 32 }
   0xe   : > { %v458_v0 = vld [vmem:[%s648_s1 + $0x38] sm:$0xff]  ;;  %vm220_vm0 = vcmask 523264   ;;  %v457_v1 = vld [vmem:[%s648_s1 + $0x30] sm:$0xff]  ;;  %v541_v2 = vmov 0.0   ;;  %v456_v3 = vld [vmem:[%s648_s1 + $0x28] sm:$0xff]  ;;  %s662_s13 = smov (!%p199_p5, %s527_s13), 1 }
   0xf   : > { %291 = vmatpush.bf16.msra.mxu0 %v458_v0  ;;  %221 = vst.msk [vmem:[#allocation2] sm:$0xff] %vm220_vm0, %v541_v2  ;;  %v455_v4 = vld [vmem:[%s648_s1 + $0x20] sm:$0xff]  ;;  %v454_v5 = vld [vmem:[%s648_s1 + $0x18] sm:$0xff]  ;;  %s664_s12 = smov (!%p201_p6, %s523_s12), 7  ;;  %v453_v6 = vld [vmem:[%s648_s1 + $0x10] sm:$0xff]  ;;  %s413_s4 = sshll.u32 %s662_s13, 3 }
  0x10   : > { %s204_s5 = sadd.s32 %s413_s4, %s664_s12  ;;  %v452_v7 = vld [vmem:[%s648_s1 + $0x8] sm:$0xff]  ;;  %v451_v8 = vld [vmem:[%s648_s1] sm:$0xff] }
  0x11   : > { %s414_s8 = sshll.u32 %s204_s5, 2  ;;  %s416_s12 = sshll.u32 %s204_s5, 3  ;;  %v500_v13 = vld [vmem:[%s649_s2] ss:$0 sm:$0xff] }
  0x12   : > { %s206_s20 = scalar_lea.vmem %s647_s0, %s414_s8  ;;  %s215_s24 = scalar_lea.vmem %s650_s3, %s416_s12 }
  0x13   : > { %292 = vmatpush.bf16.msra.mxu0 %v457_v1  ;;  %v222_v9 = vld [vmem:[%s206_s20] sm:$0xf] }
  0x16   : > { %v242_v10 = vld [vmem:[#allocation2] sm:$0xff] }
  0x17   : > { %293 = vmatpush.bf16.msra.mxu0 %v456_v3 }
  0x1b   : > { %294 = vmatpush.bf16.msra.mxu0 %v455_v4 }
  0x1f   : > { %295 = vmatpush.bf16.msra.mxu0 %v454_v5 }
  0x23   : > { %296 = vmatpush.bf16.msra.mxu0 %v453_v6 }
  0x27   : > { %297 = vmatpush.bf16.msra.mxu0 %v452_v7 }
  0x2b   : > { %298 = vmatpush.bf16.msra.mxu0 %v451_v8 }
  0x2e   : > { %299 = vmatmul.bf16.vlgmr.msra.gmra.mxu0 %v222_v9 }
  0xab   : > { %v300_v11 = vpop.f32.mrf.mxu0 }
  0xac   : > { %v304_v12 = vadd.f32 %v300_v11, %v242_v10 }
  0xae   : > { %306 = vst.msk [vmem:[#allocation2] sm:$0xff] %vm220_vm0, %v304_v12 }
  0xb3   : > { %v302_v14 = vpop.f32.mrf.mxu0 }
  0xb5   : > { %v310_v15 = vld [vmem:[#allocation2] sm:$0xff] }
  0xb6   : > { %v315_v16 = vadd.f32 %v500_v13, %v310_v15 }
  0xb8   : > { %316 = vst.msk [vmem:[%s215_s24] sm:$0xff] %vm220_vm0, %v315_v16 }
  0xb9 PF: > { %s13_s16 = sadd.s32 1, %s539_s16   ;;  %s651_s12 = smov %s531_s14 }
  0xba   : > { %p10_p7 = scmp.ge.s32.totalorder %s13_s16, 18   ;;  %s652_s13 = smov %s535_s15 }
  0xbb   : > { %s653_s14 = smov %s656_s17  ;;  %s654_s15 = smov %s660_s18 }
  0xbc   :  { %12 = sbr.rel (!%p10_p7) target bundleno = 3 (0x3), region = 71 }

// kernel: generator_forward.74
= control target key start
LH: loop header
LB: loop body
LE: loop exit
PB: predicated region body
PF: predicated region fallthrough
CT: control target
= control target key end

     0   :  { %s732_s12 = smov 0   ;;  %s734_s13 = smov 0   ;;  %s841_s0 = inlined_call_operand.vmem [shape: bf16[2,8,9,128], index: 0, kind: input, shape index: {}]   ;;  %s842_s1 = inlined_call_operand.vmem [shape: bf16[1,2,128,64], index: 1, kind: input, shape index: {}]   ;;  %s843_s2 = inlined_call_operand.vmem [shape: f32[1,64], index: 2, kind: input, shape index: {}]   ;;  %s844_s3 = inlined_call_operand.vmem [shape: f32[2,8,8,64], index: 3, kind: output, shape index: {}]  }
   0x1   :  { %s736_s14 = smov 0   ;;  %s738_s15 = smov 0  }
   0x2   :  { %s740_s16 = smov 0  }
   0x3 LB: > { %s28_s17 = sadd.s32 1, %s701_s14  ;;  %s32_s18 = sadd.s32 1, %s705_s15  ;;  %s709_s16 = sphi %s740_s16, %s13_s16   ;;  %s705_s15 = sphi %s738_s15, %s848_s15   ;;  %s701_s14 = sphi %s736_s14, %s847_s14   ;;  %s697_s13 = sphi %s734_s13, %s846_s13   ;;  %s693_s12 = sphi %s732_s12, %s845_s12  }
   0x4   : > { %p30_p0 = scmp.ge.s32.totalorder %s28_s17, 8  ;;  %p520_p1 = scmp.ge.s32.totalorder %s709_s16, 1 }
   0x5   : > { %p168_p2 = scmp.lt.s32.totalorder %s709_s16, 17 }
   0x6   : > { %s850_s17 = smov (%p30_p0, %s28_s17), 0  ;;  %s852_s18 = smov (!%p30_p0, %s32_s18), %s705_s15 }
   0x7   : > { %p169_p3 = pnand %p520_p1, %p168_p2  ;;  %p34_p4 = scmp.ge.s32.totalorder %s852_s18, 2 }
   0x8   : > { %p201_p5 = scmp.lt.s32.totalorder (!%p169_p3), %s697_s13, 1  ;;  %p203_p6 = scmp.lt.s32.totalorder (!%p169_p3), %s693_s12, 7 }
   0x9   : > { %s854_s18 = smov (%p34_p4, %s852_s18), 0  ;;  %172 = sbr.rel (%p169_p3) target bundleno = 195 (0xc3), region = 32 }
   0xe   : > { %v619_v0 = vld [vmem:[%s842_s1 + $0x38] sm:$0xff]  ;;  %vm223_vm0 = vcmask 523264   ;;  %v618_v2 = vld [vmem:[%s842_s1 + $0x30] sm:$0xff]  ;;  %s856_s13 = smov (!%p201_p5, %s697_s13), 1  ;;  %v711_v4 = vmov 0.0   ;;  %s858_s12 = smov (!%p203_p6, %s693_s12), 7 }
   0xf   : > { %v628_v1 = vld [vmem:[%s842_s1 + $0x78] sm:$0xff]  ;;  %294 = vmatpush.bf16.msra.mxu0 %v619_v0  ;;  %v627_v3 = vld [vmem:[%s842_s1 + $0x70] sm:$0xff]  ;;  %224 = vst.msk [vmem:[#allocation2] sm:$0xff] %vm223_vm0, %v711_v4  ;;  %s522_s27 = sshll.u32 %s856_s13, 4  ;;  %s524_s28 = sshll.u32 %s856_s13, 3  ;;  %v617_v5 = vld [vmem:[%s842_s1 + $0x28] sm:$0xff] }
  0x10   : > { %393 = vmatpush.bf16.msra.mxu1 %v628_v1  ;;  %s521_s29 = sshll.u32 %s858_s12, 1  ;;  %s775_s30 = sadd.s32 %s524_s28, %s858_s12  ;;  %v626_v6 = vld [vmem:[%s842_s1 + $0x68] sm:$0xff]  ;;  %v616_v7 = vld [vmem:[%s842_s1 + $0x20] sm:$0xff]  ;;  %v615_v9 = vld [vmem:[%s842_s1 + $0x18] sm:$0xff] }
  0x11   : > { %s207_s8 = sadd.s32 %s522_s27, %s521_s29  ;;  %v625_v8 = vld [vmem:[%s842_s1 + $0x60] sm:$0xff]  ;;  %v624_v10 = vld [vmem:[%s842_s1 + $0x58] sm:$0xff]  ;;  %v614_v14 = vld [vmem:[%s842_s1 + $0x10] sm:$0xff]  ;;  %s525_s12 = sshll.u32 %s775_s30, 3 }
  0x12   : > { %s523_s9 = sshll.u32 %s207_s8, 2  ;;  %v623_v15 = vld [vmem:[%s842_s1 + $0x50] sm:$0xff]  ;;  %v613_v17 = vld [vmem:[%s842_s1 + $0x8] sm:$0xff]  ;;  %v612_v21 = vld [vmem:[%s842_s1] sm:$0xff]  ;;  %s218_s22 = scalar_lea.vmem %s844_s3, %s525_s12 }
  0x13   : > { %295 = vmatpush.bf16.msra.mxu0 %v618_v2  ;;  %s209_s21 = scalar_lea.vmem %s841_s0, %s523_s9  ;;  %v622_v18 = vld [vmem:[%s842_s1 + $0x48] sm:$0xff]  ;;  %v621_v22 = vld [vmem:[%s842_s1 + $0x40] sm:$0xff] }
  0x14   : > { %394 = vmatpush.bf16.msra.mxu1 %v627_v3  ;;  %v576_v11 = vld [vmem:[%s209_s21] sm:$0xf]  ;;  %v620_v12 = vld [vmem:[%s209_s21] sm:$0x10] }
  0x15   : > { %v577_v13 = vor.u32 %v620_v12, %v576_v11  ;;  %v225_v24 = vld [vmem:[%s209_s21] sm:$0xf] }
  0x16   : > { %v245_v25 = vld [vmem:[#allocation2] sm:$0xff] }
  0x17   : > { %296 = vmatpush.bf16.msra.mxu0 %v617_v5  ;;  %v340_v16 = vshll.u32 %v577_v13, 16  ;;  %v338_v19 = vshrl.u32 %v577_v13, 16  ;;  %v670_v33 = vld [vmem:[%s843_s2] ss:$0 sm:$0xff] }
  0x18   : > { %395 = vmatpush.bf16.msra.mxu1 %v626_v6 }
  0x19   : > { %v342_v20 = vrot.slane %v340_v16, 1 }
  0x1b   : > { %297 = vmatpush.bf16.msra.mxu0 %v616_v7  ;;  %v343_v23 = vor.u32 %v342_v20, %v338_v19 }
  0x1c   : > { %396 = vmatpush.bf16.msra.mxu1 %v625_v8 }
  0x1f   : > { %298 = vmatpush.bf16.msra.mxu0 %v615_v9 }
  0x20   : > { %397 = vmatpush.bf16.msra.mxu1 %v624_v10 }
  0x23   : > { %299 = vmatpush.bf16.msra.mxu0 %v614_v14 }
  0x24   : > { %398 = vmatpush.bf16.msra.mxu1 %v623_v15 }
  0x27   : > { %300 = vmatpush.bf16.msra.mxu0 %v613_v17 }
  0x28   : > { %399 = vmatpush.bf16.msra.mxu1 %v622_v18 }
  0x2b   : > { %301 = vmatpush.bf16.msra.mxu0 %v612_v21 }
  0x2c   : > { %400 = vmatpush.bf16.msra.mxu1 %v621_v22 }
  0x2e   : > { %302 = vmatmul.bf16.vlgmr.msra.gmra.mxu0 %v225_v24 }
  0x2f   : > { %401 = vmatmul.bf16.vlgmr.msra.gmra.mxu1 %v343_v23 }
  0xab   : > { %v303_v26 = vpop.f32.mrf.mxu0 }
  0xac   : > { %v402_v27 = vpop.f32.mrf.mxu1  ;;  %v307_v28 = vadd.f32 %v303_v26, %v245_v25 }
  0xae   : > { %309 = vst.msk [vmem:[#allocation2] sm:$0xff] %vm223_vm0, %v307_v28 }
  0xb3   : > { %v305_v29 = vpop.f32.mrf.mxu0 }
  0xb4   : > { %v404_v30 = vpop.f32.mrf.mxu1 }
  0xb5   : > { %v331_v31 = vld [vmem:[#allocation2] sm:$0xff] }
  0xb6   : > { %v406_v32 = vadd.f32 %v402_v27, %v331_v31 }
  0xb8   : > { %407 = vst.msk [vmem:[#allocation2] sm:$0xff] %vm223_vm0, %v406_v32 }
  0xbf   : > { %v411_v34 = vld [vmem:[#allocation2] sm:$0xff] }
  0xc0   : > { %v416_v35 = vadd.f32 %v670_v33, %v411_v34 }
  0xc2   : > { %417 = vst.msk [vmem:[%s218_s22] sm:$0xff] %vm223_vm0, %v416_v35 }
  0xc3 PF: > { %s13_s16 = sadd.s32 1, %s709_s16   ;;  %s845_s12 = smov %s701_s14 }
  0xc4   : > { %p10_p7 = scmp.ge.s32.totalorder %s13_s16, 18   ;;  %s846_s13 = smov %s705_s15 }
  0xc5   : > { %s847_s14 = smov %s850_s17  ;;  %s848_s15 = smov %s854_s18 }
  0xc6   :  { %12 = sbr.rel (!%p10_p7) target bundleno = 3 (0x3), region = 72 }

// kernel: generator_forward.75
= control target key start
LH: loop header
LB: loop body
LE: loop exit
PB: predicated region body
PF: predicated region fallthrough
CT: control target
= control target key end

     0   :  { %s603_s12 = smov 0   ;;  %s605_s13 = smov 0   ;;  %s687_s0 = inlined_call_operand.vmem [shape: bf16[2,9,8,128], index: 0, kind: input, shape index: {}]   ;;  %s688_s1 = inlined_call_operand.vmem [shape: bf16[2,1,128,64], index: 1, kind: input, shape index: {}]   ;;  %s689_s2 = inlined_call_operand.vmem [shape: f32[1,64], index: 2, kind: input, shape index: {}]   ;;  %s690_s3 = inlined_call_operand.vmem [shape: f32[2,8,8,64], index: 3, kind: output, shape index: {}]  }
   0x1   :  { %s607_s14 = smov 0   ;;  %s609_s15 = smov 0  }
   0x2   :  { %s611_s16 = smov 0   ;;  %s613_s17 = smov 0  }
   0x3   :  { %s615_s18 = smov 0  }
   0x4 LB: > { %s25_s19 = sadd.s32 1, %s568_s15  ;;  %s28_s20 = sadd.s32 1, %s572_s16  ;;  %s580_s18 = sphi %s615_s18, %s13_s18   ;;  %s576_s17 = sphi %s613_s17, %s696_s17   ;;  %s572_s16 = sphi %s611_s16, %s695_s16   ;;  %s568_s15 = sphi %s609_s15, %s694_s15   ;;  %s564_s14 = sphi %s607_s14, %s693_s14   ;;  %s560_s13 = sphi %s605_s13, %s692_s13   ;;  %s556_s12 = sphi %s603_s12, %s691_s12  }
   0x5   : > { %p26_p0 = scmp.ge.s32.totalorder %s25_s19, 2  ;;  %p416_p1 = scmp.ge.s32.totalorder %s580_s18, 1 }
   0x6   : > { %p167_p2 = scmp.lt.s32.totalorder %s580_s18, 33  ;;  %s32_s21 = sadd.s32 1, %s576_s17 }
   0x7   : > { %s698_s19 = smov (%p26_p0, %s25_s19), 0  ;;  %s700_s20 = smov (!%p26_p0, %s28_s20), %s572_s16 }
   0x8   : > { %p168_p3 = pnand %p416_p1, %p167_p2  ;;  %p30_p4 = scmp.ge.s32.totalorder %s700_s20, 8 }
   0x9   : > { %s198_s22 = sadd.s32 (!%p168_p3), %s556_s12, %s560_s13  ;;  %p199_p6 = scmp.lt.s32.totalorder (!%p168_p3), %s564_s14, 1 }
   0xa   : > { %s702_s20 = smov (%p30_p4, %s700_s20), 0  ;;  %s704_s21 = smov (!%p30_p4, %s32_s21), %s576_s17 }
   0xb   : > { %p34_p5 = scmp.ge.s32.totalorder %s704_s21, 2  ;;  %171 = sbr.rel (%p168_p3) target bundleno = 198 (0xc6), region = 32 }
   0xc   : > { %p201_p7 = scmp.lt.s32.totalorder (!%p168_p3), %s198_s22, 8  ;;  %p210_p8 = scmp.lt.s32.totalorder (!%p168_p3), %s560_s13, 7 }
   0xd   : > { %s706_s21 = smov (%p34_p5, %s704_s21), 0  ;;  %p420_p9 = scmp.ne.s32.totalorder (!%p168_p3), %s556_s12, 0 }
  0x10   : > { %s708_s14 = smov (!%p199_p6, %s564_s14), 1  ;;  %s710_s22 = smov (!%p201_p7, %s198_s22), 8 }
  0x11   : > { %s467_s23 = smul.u32 9, %s708_s14  ;;  %s418_s24 = sshll.u32 %s708_s14, 3 }
  0x12   : > { %s712_s13 = smov (!%p210_p8, %s560_s13), 7  ;;  %219 = sbr.rel (%p420_p9) target bundleno = 25 (0x19), region = 36 }
  0x13   : > { %s204_s25 = sadd.s32 %s467_s23, %s710_s22  ;;  %s213_s27 = sadd.s32 %s418_s24, %s712_s13 }
  0x14   : > { %s417_s26 = sshll.u32 %s204_s25, 2  ;;  %s419_s4 = sshll.u32 %s213_s27, 3 }
  0x15   : > { %s206_s30 = scalar_lea.vmem %s687_s0, %s417_s26  ;;  %s654_s7 = scalar_lea.vmem %s690_s3, %s419_s4 }
  0x17   : > { %vm220_vm0 = vcmask 523264   ;;  %v582_v0 = vmov 0.0  }
  0x18   : > { %221 = vst.msk [vmem:[#allocation2] sm:$0xff] %vm220_vm0, %v582_v0 }
  0x19 PF: > { %s458_s8 = sshll.u32 %s556_s12, 6  ;;  %v222_v9 = vld [vmem:[%s206_s30] sm:$0xf]  ;;  %vm305_vm1 = vcmask 523264   ;;  %p455_p10 = scmp.ne.s32.totalorder %s556_s12, 1 }
  0x1a   : > { %s225_s11 = scalar_lea.vmem %s688_s1, %s458_s8 }
  0x1b   : > { %v466_v1 = vld [vmem:[%s225_s11 + $0x38] sm:$0xff]  ;;  %v465_v2 = vld [vmem:[%s225_s11 + $0x30] sm:$0xff]  ;;  %v464_v3 = vld [vmem:[%s225_s11 + $0x28] sm:$0xff] }
  0x1c   : > { %291 = vmatpush.bf16.msra.mxu0 %v466_v1  ;;  %v463_v4 = vld [vmem:[%s225_s11 + $0x20] sm:$0xff]  ;;  %v462_v5 = vld [vmem:[%s225_s11 + $0x18] sm:$0xff]  ;;  %v461_v6 = vld [vmem:[%s225_s11 + $0x10] sm:$0xff] }
  0x1d   : > { %v460_v7 = vld [vmem:[%s225_s11 + $0x8] sm:$0xff]  ;;  %v459_v8 = vld [vmem:[%s225_s11] sm:$0xff] }
  0x1f   : > { %v242_v10 = vld [vmem:[#allocation2] sm:$0xff] }
  0x20   : > { %292 = vmatpush.bf16.msra.mxu0 %v465_v2 }
  0x24   : > { %293 = vmatpush.bf16.msra.mxu0 %v464_v3 }
  0x28   : > { %294 = vmatpush.bf16.msra.mxu0 %v463_v4 }
  0x2c   : > { %295 = vmatpush.bf16.msra.mxu0 %v462_v5 }
  0x30   : > { %296 = vmatpush.bf16.msra.mxu0 %v461_v6 }
  0x34   : > { %297 = vmatpush.bf16.msra.mxu0 %v460_v7 }
  0x38   : > { %298 = vmatpush.bf16.msra.mxu0 %v459_v8 }
  0x3b   : > { %299 = vmatmul.bf16.vlgmr.msra.gmra.mxu0 %v222_v9 }
  0xb8   : > { %v300_v11 = vpop.f32.mrf.mxu0 }
  0xb9   : > { %v304_v12 = vadd.f32 %v300_v11, %v242_v10 }
  0xbb   : > { %306 = vst.msk [vmem:[#allocation2] sm:$0xff] %vm305_vm1, %v304_v12 }
  0xbc   : > { %310 = sbr.rel (%p455_p10) target bundleno = 198 (0xc6), region = 40 }
  0xc0   : > { %v302_v13 = vpop.f32.mrf.mxu0 }
  0xc1   : > { %v525_v15 = vld [vmem:[%s689_s2] ss:$0 sm:$0xff] }
  0xc2   : > { %v311_v14 = vld [vmem:[#allocation2] sm:$0xff] }
  0xc3   : > { %v316_v16 = vadd.f32 %v525_v15, %v311_v14 }
  0xc5   : > { %317 = vst.msk [vmem:[%s654_s7] sm:$0xff] %vm305_vm1, %v316_v16 }
  0xc6 PF: > { %s13_s18 = sadd.s32 1, %s580_s18   ;;  %s691_s12 = smov %s568_s15 }
  0xc7   : > { %p10_p11 = scmp.ge.s32.totalorder %s13_s18, 34   ;;  %s692_s13 = smov %s572_s16 }
  0xc8   : > { %s693_s14 = smov %s576_s17  ;;  %s694_s15 = smov %s698_s19 }
  0xc9   : > { %s695_s16 = smov %s702_s20  ;;  %s696_s17 = smov %s706_s21 }
  0xca   :  { %12 = sbr.rel (!%p10_p11) target bundleno = 4 (0x4), region = 71 }

// kernel: generator_forward.76
= control target key start
LH: loop header
LB: loop body
LE: loop exit
PB: predicated region body
PF: predicated region fallthrough
CT: control target
= control target key end

     0   :  { %s776_s12 = smov 0   ;;  %s778_s13 = smov 0   ;;  %s888_s0 = inlined_call_operand.vmem [shape: bf16[2,9,9,128], index: 0, kind: input, shape index: {}]   ;;  %s889_s1 = inlined_call_operand.vmem [shape: bf16[2,2,128,64], index: 1, kind: input, shape index: {}]   ;;  %s890_s2 = inlined_call_operand.vmem [shape: f32[1,64], index: 2, kind: input, shape index: {}]   ;;  %s891_s3 = inlined_call_operand.vmem [shape: f32[2,8,8,64], index: 3, kind: output, shape index: {}]  }
   0x1   :  { %s780_s14 = smov 0   ;;  %s782_s15 = smov 0  }
   0x2   :  { %s784_s16 = smov 0   ;;  %s786_s17 = smov 0  }
   0x3   :  { %s788_s18 = smov 0  }
   0x4 LB: > { %s25_s19 = sadd.s32 1, %s741_s15  ;;  %s28_s20 = sadd.s32 1, %s745_s16  ;;  %s753_s18 = sphi %s788_s18, %s13_s18   ;;  %s749_s17 = sphi %s786_s17, %s897_s17   ;;  %s745_s16 = sphi %s784_s16, %s896_s16   ;;  %s741_s15 = sphi %s782_s15, %s895_s15   ;;  %s737_s14 = sphi %s780_s14, %s894_s14   ;;  %s733_s13 = sphi %s778_s13, %s893_s13   ;;  %s729_s12 = sphi %s776_s12, %s892_s12  }
   0x5   : > { %p26_p0 = scmp.ge.s32.totalorder %s25_s19, 2  ;;  %p524_p1 = scmp.ge.s32.totalorder %s753_s18, 1 }
   0x6   : > { %p168_p2 = scmp.lt.s32.totalorder %s753_s18, 33  ;;  %s32_s21 = sadd.s32 1, %s749_s17 }
   0x7   : > { %s899_s19 = smov (%p26_p0, %s25_s19), 0  ;;  %s901_s20 = smov (!%p26_p0, %s28_s20), %s745_s16 }
   0x8   : > { %p169_p3 = pnand %p524_p1, %p168_p2  ;;  %p30_p4 = scmp.ge.s32.totalorder %s901_s20, 8 }
   0x9   : > { %s200_s22 = sadd.s32 (!%p169_p3), %s729_s12, %s733_s13  ;;  %p201_p6 = scmp.lt.s32.totalorder (!%p169_p3), %s737_s14, 1 }
   0xa   : > { %s903_s20 = smov (%p30_p4, %s901_s20), 0  ;;  %s905_s21 = smov (!%p30_p4, %s32_s21), %s749_s17 }
   0xb   : > { %p34_p5 = scmp.ge.s32.totalorder %s905_s21, 2  ;;  %172 = sbr.rel (%p169_p3) target bundleno = 212 (0xd4), region = 32 }
   0xc   : > { %p203_p7 = scmp.lt.s32.totalorder (!%p169_p3), %s200_s22, 8  ;;  %p213_p8 = scmp.lt.s32.totalorder (!%p169_p3), %s733_s13, 7 }
   0xd   : > { %s907_s21 = smov (%p34_p5, %s905_s21), 0  ;;  %p529_p9 = scmp.ne.s32.totalorder (!%p169_p3), %s729_s12, 0 }
  0x10   : > { %s909_s14 = smov (!%p201_p6, %s737_s14), 1  ;;  %s911_s22 = smov (!%p203_p7, %s200_s22), 8 }
  0x11   : > { %s640_s23 = smul.u32 18, %s909_s14  ;;  %s525_s24 = sshll.u32 %s911_s22, 1 }
  0x12   : > { %s527_s30 = sshll.u32 %s909_s14, 3  ;;  %s913_s13 = smov (!%p213_p8, %s733_s13), 7 }
  0x13   : > { %s207_s25 = sadd.s32 %s640_s23, %s525_s24  ;;  %s216_s4 = sadd.s32 %s527_s30, %s913_s13 }
  0x14   : > { %s526_s26 = sshll.u32 %s207_s25, 2  ;;  %s528_s5 = sshll.u32 %s216_s4, 3 }
  0x15   : > { %s828_s29 = scalar_lea.vmem %s888_s0, %s526_s26  ;;  %s834_s8 = scalar_lea.vmem %s891_s3, %s528_s5 }
  0x16   : > { %222 = sbr.rel (%p529_p9) target bundleno = 29 (0x1d), region = 36 }
  0x1b   : > { %vm223_vm0 = vcmask 523264   ;;  %v755_v0 = vmov 0.0  }
  0x1c   : > { %224 = vst.msk [vmem:[#allocation2] sm:$0xff] %vm223_vm0, %v755_v0 }
  0x1d PF: > { %s621_s9 = sshll.u32 %s729_s12, 7  ;;  %v584_v9 = vld [vmem:[%s828_s29] sm:$0xf]  ;;  %v630_v12 = vld [vmem:[%s828_s29] sm:$0x10]  ;;  %vm308_vm1 = vcmask 523264  }
  0x1e   : > { %s841_s13 = scalar_lea.vmem %s889_s1, %s621_s9  ;;  %v585_v13 = vor.u32 %v630_v12, %v584_v9  ;;  %v225_v24 = vld [vmem:[%s828_s29] sm:$0xf]  ;;  %p618_p10 = scmp.ne.s32.totalorder %s729_s12, 1 }
  0x1f   : > { %v629_v1 = vld [vmem:[%s841_s13 + $0x38] sm:$0xff]  ;;  %v628_v3 = vld [vmem:[%s841_s13 + $0x30] sm:$0xff]  ;;  %v627_v5 = vld [vmem:[%s841_s13 + $0x28] sm:$0xff] }
  0x20   : > { %v639_v2 = vld [vmem:[%s841_s13 + $0x78] sm:$0xff]  ;;  %294 = vmatpush.bf16.msra.mxu0 %v629_v1  ;;  %v638_v4 = vld [vmem:[%s841_s13 + $0x70] sm:$0xff]  ;;  %v637_v6 = vld [vmem:[%s841_s13 + $0x68] sm:$0xff]  ;;  %v340_v16 = vshll.u32 %v585_v13, 16  ;;  %v338_v19 = vshrl.u32 %v585_v13, 16 }
  0x21   : > { %393 = vmatpush.bf16.msra.mxu1 %v639_v2  ;;  %v626_v7 = vld [vmem:[%s841_s13 + $0x20] sm:$0xff]  ;;  %v625_v10 = vld [vmem:[%s841_s13 + $0x18] sm:$0xff]  ;;  %v624_v14 = vld [vmem:[%s841_s13 + $0x10] sm:$0xff] }
  0x22   : > { %v636_v8 = vld [vmem:[%s841_s13 + $0x60] sm:$0xff]  ;;  %v635_v11 = vld [vmem:[%s841_s13 + $0x58] sm:$0xff]  ;;  %v634_v15 = vld [vmem:[%s841_s13 + $0x50] sm:$0xff]  ;;  %v342_v20 = vrot.slane %v340_v16, 1 }
  0x23   : > { %v623_v17 = vld [vmem:[%s841_s13 + $0x8] sm:$0xff]  ;;  %v622_v21 = vld [vmem:[%s841_s13] sm:$0xff] }
  0x24   : > { %295 = vmatpush.bf16.msra.mxu0 %v628_v3  ;;  %v633_v18 = vld [vmem:[%s841_s13 + $0x48] sm:$0xff]  ;;  %v632_v22 = vld [vmem:[%s841_s13 + $0x40] sm:$0xff]  ;;  %v343_v23 = vor.u32 %v342_v20, %v338_v19 }
  0x25   : > { %394 = vmatpush.bf16.msra.mxu1 %v638_v4  ;;  %v245_v25 = vld [vmem:[#allocation2] sm:$0xff] }
  0x28   : > { %296 = vmatpush.bf16.msra.mxu0 %v627_v5 }
  0x29   : > { %395 = vmatpush.bf16.msra.mxu1 %v637_v6 }
  0x2c   : > { %297 = vmatpush.bf16.msra.mxu0 %v626_v7 }
  0x2d   : > { %396 = vmatpush.bf16.msra.mxu1 %v636_v8 }
  0x30   : > { %298 = vmatpush.bf16.msra.mxu0 %v625_v10 }
  0x31   : > { %397 = vmatpush.bf16.msra.mxu1 %v635_v11 }
  0x34   : > { %299 = vmatpush.bf16.msra.mxu0 %v624_v14 }
  0x35   : > { %398 = vmatpush.bf16.msra.mxu1 %v634_v15 }
  0x38   : > { %300 = vmatpush.bf16.msra.mxu0 %v623_v17 }
  0x39   : > { %399 = vmatpush.bf16.msra.mxu1 %v633_v18 }
  0x3c   : > { %301 = vmatpush.bf16.msra.mxu0 %v622_v21 }
  0x3d   : > { %400 = vmatpush.bf16.msra.mxu1 %v632_v22 }
  0x3f   : > { %302 = vmatmul.bf16.vlgmr.msra.gmra.mxu0 %v225_v24 }
  0x40   : > { %401 = vmatmul.bf16.vlgmr.msra.gmra.mxu1 %v343_v23 }
  0xbc   : > { %v303_v26 = vpop.f32.mrf.mxu0 }
  0xbd   : > { %v402_v27 = vpop.f32.mrf.mxu1  ;;  %v307_v28 = vadd.f32 %v303_v26, %v245_v25 }
  0xbf   : > { %309 = vst.msk [vmem:[#allocation2] sm:$0xff] %vm308_vm1, %v307_v28 }
  0xc4   : > { %v305_v29 = vpop.f32.mrf.mxu0 }
  0xc5   : > { %v404_v30 = vpop.f32.mrf.mxu1  ;;  %411 = sbr.rel (%p618_p10) target bundleno = 212 (0xd4), region = 40 }
  0xc6   : > { %v331_v31 = vld [vmem:[#allocation2] sm:$0xff] }
  0xc7   : > { %v406_v32 = vadd.f32 %v402_v27, %v331_v31 }
  0xc9   : > { %407 = vst.msk [vmem:[#allocation2] sm:$0xff] %vm308_vm1, %v406_v32 }
  0xca   : > { %v698_v34 = vld [vmem:[%s890_s2] ss:$0 sm:$0xff] }
  0xd0   : > { %v412_v33 = vld [vmem:[#allocation2] sm:$0xff] }
  0xd1   : > { %v417_v35 = vadd.f32 %v698_v34, %v412_v33 }
  0xd3   : > { %418 = vst.msk [vmem:[%s834_s8] sm:$0xff] %vm308_vm1, %v417_v35 }
  0xd4 PF: > { %s13_s18 = sadd.s32 1, %s753_s18   ;;  %s892_s12 = smov %s741_s15 }
  0xd5   : > { %p10_p11 = scmp.ge.s32.totalorder %s13_s18, 34   ;;  %s893_s13 = smov %s745_s16 }
  0xd6   : > { %s894_s14 = smov %s749_s17  ;;  %s895_s15 = smov %s899_s19 }
  0xd7   : > { %s896_s16 = smov %s903_s20  ;;  %s897_s17 = smov %s907_s21 }
  0xd8   :  { %12 = sbr.rel (!%p10_p11) target bundleno = 4 (0x4), region = 72 }

// kernel: generator_forward.79
= control target key start
LH: loop header
LB: loop body
LE: loop exit
PB: predicated region body
PF: predicated region fallthrough
CT: control target
= control target key end

     0   :  { %s1304_s12 = smov 0   ;;  %s1306_s13 = smov 0   ;;  %s1454_s0 = inlined_call_operand.vmem [shape: bf16[2,22,22,64], index: 0, kind: input, shape index: {}]   ;;  %s1455_s1 = inlined_call_operand.vmem [shape: bf16[7,7,64,128], index: 1, kind: input, shape index: {}]   ;;  %s1456_s2 = inlined_call_operand.vmem [shape: f32[1,128], index: 2, kind: input, shape index: {}]   ;;  %s1457_s3 = inlined_call_operand.vmem [shape: f32[2,16,16,128], index: 3, kind: output, shape index: {}]  }
   0x1   :  { %s1308_s14 = smov 0   ;;  %s1310_s15 = smov 0  }
   0x2   :  { %s1312_s16 = smov 0   ;;  %s1314_s17 = smov 0  }
   0x3   :  { %s1316_s18 = smov 0  }
   0x4 LB: > { %s25_s19 = sadd.s32 1, %s1269_s15  ;;  %s28_s20 = sadd.s32 1, %s1273_s16  ;;  %s1281_s18 = sphi %s1316_s18, %s13_s18   ;;  %s1277_s17 = sphi %s1314_s17, %s1463_s17   ;;  %s1273_s16 = sphi %s1312_s16, %s1462_s16   ;;  %s1269_s15 = sphi %s1310_s15, %s1461_s15   ;;  %s1265_s14 = sphi %s1308_s14, %s1460_s14   ;;  %s1261_s13 = sphi %s1306_s13, %s1459_s13   ;;  %s1257_s12 = sphi %s1304_s12, %s1458_s12  }
   0x5   : > { %p26_p0 = scmp.ge.s32.totalorder %s25_s19, 7  ;;  %p916_p1 = scmp.ge.s32.totalorder %s1281_s18, 1 }
   0x6   : > { %p168_p2 = scmp.lt.s32.totalorder %s1281_s18, 225  ;;  %s32_s21 = sadd.s32 1, %s1277_s17 }
   0x7   : > { %s1465_s19 = smov (%p26_p0, %s25_s19), 0  ;;  %s1467_s20 = smov (!%p26_p0, %s28_s20), %s1273_s16 }
   0x8   : > { %p169_p3 = pnand %p916_p1, %p168_p2  ;;  %p30_p4 = scmp.ge.s32.totalorder %s1467_s20, 16 }
   0x9   : > { %s201_s22 = sadd.s32 (!%p169_p3), %s1257_s12, %s1261_s13  ;;  %p202_p6 = scmp.lt.s32.totalorder (!%p169_p3), %s1265_s14, 1 }
   0xa   : > { %s1469_s20 = smov (%p30_p4, %s1467_s20), 0  ;;  %s1471_s21 = smov (!%p30_p4, %s32_s21), %s1277_s17 }
   0xb   : > { %p34_p5 = scmp.ge.s32.totalorder %s1471_s21, 2  ;;  %172 = sbr.rel (%p169_p3) target bundleno = 224 (0xe0), region = 32 }
   0xc   : > { %p204_p7 = scmp.lt.s32.totalorder (!%p169_p3), %s201_s22, 21  ;;  %p214_p8 = scmp.lt.s32.totalorder (!%p169_p3), %s1261_s13, 15 }
   0xd   : > { %s1473_s21 = smov (%p34_p5, %s1471_s21), 0  ;;  %p921_p9 = scmp.ne.s32.totalorder (!%p169_p3), %s1257_s12, 0 }
  0x10   : > { %s1475_s14 = smov (!%p202_p6, %s1265_s14), 1  ;;  %s1477_s22 = smov (!%p204_p7, %s201_s22), 21 }
  0x11   : > { %s1164_s23 = smul.u32 66, %s1475_s14  ;;  %s919_s25 = sshll.u32 %s1475_s14, 5 }
  0x12   : > { %s1163_s24 = smul.u32 3, %s1477_s22  ;;  %s1479_s13 = smov (!%p214_p8, %s1261_s13), 15 }
  0x13   : > { %s918_s28 = sshll.u32 %s1479_s13, 1  ;;  %225 = sbr.rel (%p921_p9) target bundleno = 27 (0x1b), region = 36 }
  0x14   : > { %s208_s26 = sadd.s32 %s1164_s23, %s1163_s24  ;;  %s218_s5 = sadd.s32 %s919_s25, %s918_s28 }
  0x15   : > { %s917_s27 = sshll.u32 %s208_s26, 2  ;;  %s920_s6 = sshll.u32 %s218_s5, 3 }
  0x16   : > { %s1357_s4 = scalar_lea.vmem %s1454_s0, %s917_s27  ;;  %s1362_s9 = scalar_lea.vmem %s1457_s3, %s920_s6 }
  0x18   : > { %v1283_v0 = vmov 0.0  }
  0x19   : > { %226 = vst [vmem:[#allocation2] sm:$0xff] %v1283_v0 }
  0x1a   : > { %227 = vst [vmem:[#allocation2 + $0x8] sm:$0xff] %v1283_v0 }
  0x1b PF: > { %s1128_s10 = smul.u32 224, %s1257_s12  ;;  %v1133_v1 = vld [vmem:[%s1357_s4] sm:$0xff]  ;;  %v296_v2 = vld [vmem:[%s1357_s4 + $0x8] sm:$0x1]  ;;  %vm318_vm0 = vsmask.f32 7424 }
  0x1c   : > { %v315_v3 = vunpack.c.l.b16 %v296_v2  ;;  %v378_v4 = vld [vmem:[%s1357_s4 + $0x8] sm:$0x1]  ;;  %v322_v8 = vshll.u32 %v1133_v1, 16  ;;  %v985_v9 = vld [vmem:[%s1357_s4] sm:$0xe]  ;;  %v320_v17 = vshrl.u32 %v1133_v1, 16 }
  0x1d   : > { %s1371_s14 = scalar_lea.vmem %s1455_s1, %s1128_s10  ;;  %v1138_v13 = vld [vmem:[%s1357_s4] sm:$0xf0]  ;;  %v397_v14 = vunpack.c.l.b16 %v378_v4  ;;  %v1015_v21 = vld [vmem:[%s1357_s4] sm:$0xe]  ;;  %v451_v27 = vld [vmem:[%s1357_s4 + $0x8] sm:$0x3] }
  0x1e   : > { %v1132_v5 = vld [vmem:[%s1371_s14 + $0x18] sm:$0xff]  ;;  %v1131_v10 = vld [vmem:[%s1371_s14 + $0x10] sm:$0xff]  ;;  %v317_v12 = vpack.c.b16 %v315_v3, %v315_v3  ;;  %v324_v18 = vrot.slane %v322_v8, 1  ;;  %v986_v20 = vor.u32 %v1138_v13, %v985_v9  ;;  %v1143_v22 = vld [vmem:[%s1357_s4] sm:$0xf0]  ;;  %v470_v30 = vunpack.c.l.b16 %v451_v27  ;;  %p1124_p10 = scmp.ne.s32.totalorder %s1257_s12, 6 }
  0x1f   : > { %v1137_v6 = vld [vmem:[%s1371_s14 + $0x38] sm:$0xff]  ;;  %280 = vmatpush.bf16.msra.mxu0 %v1132_v5  ;;  %v1136_v11 = vld [vmem:[%s1371_s14 + $0x30] sm:$0xff]  ;;  %v1130_v23 = vld [vmem:[%s1371_s14 + $0x8] sm:$0xff]  ;;  %v399_v26 = vpack.c.b16 %v397_v14, %v397_v14  ;;  %v1016_v28 = vor.u32 %v1143_v22, %v1015_v21  ;;  %vm400_vm1 = vcmask 1046528   ;;  %vm272_vm2 = vcmask 523264  }
  0x20   : > { %v1142_v7 = vld [vmem:[%s1371_s14 + $0x58] sm:$0xff]  ;;  %362 = vmatpush.bf16.msra.mxu1 %v1137_v6  ;;  %v1141_v15 = vld [vmem:[%s1371_s14 + $0x50] sm:$0xff]  ;;  %v1135_v24 = vld [vmem:[%s1371_s14 + $0x28] sm:$0xff]  ;;  %v327_v25 = vshll.u32 %v317_v12, 16  ;;  %v325_v35 = vor.u32 %v324_v18, %v320_v17  ;;  %v401_v36 = vrot.slane %v986_v20, 1  ;;  %v472_v38 = vpack.c.b16 %v470_v30, %v470_v30 }
  0x21   : > { %435 = vmatpush.bf16.msra.mxu2 %v1142_v7  ;;  %v1147_v16 = vld [vmem:[%s1371_s14 + $0x78] sm:$0xff]  ;;  %v1146_v19 = vld [vmem:[%s1371_s14 + $0x70] sm:$0xff]  ;;  %v1140_v29 = vld [vmem:[%s1371_s14 + $0x48] sm:$0xff]  ;;  %v475_v31 = vshrl.u32 %v1016_v28, 16  ;;  %v478_v32 = vshll.u32 %v1016_v28, 16  ;;  %v402_v41 = vrot.slane %v399_v26, 1 }
  0x22   : > { %522 = vmatpush.bf16.msra.mxu3 %v1147_v16  ;;  %v1129_v33 = vld [vmem:[%s1371_s14] sm:$0xff]  ;;  %v1145_v37 = vld [vmem:[%s1371_s14 + $0x68] sm:$0xff]  ;;  %v329_v39 = vrot.slane %v327_v25, 1  ;;  %v1152_v44 = vld [vmem:[%s1371_s14 + $0x98] sm:$0xff]  ;;  %v483_v45 = vshrl.u32 %v472_v38, 16  ;;  %v486_v46 = vshll.u32 %v472_v38, 16 }
  0x23   : > { %281 = vmatpush.bf16.msra.mxu0 %v1131_v10  ;;  %v1134_v34 = vld [vmem:[%s1371_s14 + $0x20] sm:$0xff]  ;;  %v477_v42 = vrot.slane %v475_v31, 1  ;;  %v480_v43 = vrot.slane %v478_v32, 2  ;;  %v1157_v49 = vld [vmem:[%s1371_s14 + $0xb8] sm:$0xff]  ;;  %v611_v51 = vld [vmem:[%s1357_s4 + $0x8] sm:$0x7]  ;;  %v403_v61 = vsel %vm400_vm1, %v401_v36, %v402_v41 }
  0x24   : > { %363 = vmatpush.bf16.msra.mxu1 %v1136_v11  ;;  %v1139_v40 = vld [vmem:[%s1371_s14 + $0x40] sm:$0xff]  ;;  %v1162_v50 = vld [vmem:[%s1371_s14 + $0xd8] sm:$0xff]  ;;  %v485_v53 = vrot.slane %v483_v45, 1  ;;  %v488_v54 = vrot.slane %v486_v46, 2  ;;  %v630_v55 = vunpack.c.l.b16 %v611_v51  ;;  %v330_v57 = vsel %vm318_vm0, %v325_v35, %v329_v39  ;;  %v538_v60 = vld [vmem:[%s1357_s4 + $0x8] sm:$0x3] }
  0x25   : > { %436 = vmatpush.bf16.msra.mxu2 %v1141_v15  ;;  %v1075_v47 = vld [vmem:[%s1357_s4] sm:$0xc]  ;;  %v1153_v48 = vld [vmem:[%s1357_s4] sm:$0xf0]  ;;  %v481_v59 = vor.u32 %v480_v43, %v477_v42  ;;  %vm473_vm3 = vsmask.f32 6400  ;;  %v557_v5 = vunpack.c.l.b16 %v538_v60 }
  0x26   : > { %523 = vmatpush.bf16.msra.mxu3 %v1146_v19  ;;  %v1127_v52 = vld [vmem:[%s1357_s4] sm:$0xff]  ;;  %v1076_v56 = vor.u32 %v1153_v48, %v1075_v47  ;;  %v489_v62 = vor.u32 %v488_v54, %v485_v53  ;;  %v1151_v63 = vld [vmem:[%s1371_s14 + $0x90] sm:$0xff]  ;;  %v632_v0 = vpack.c.b16 %v630_v55, %v630_v55  ;;  %v698_v3 = vld [vmem:[%s1357_s4 + $0x8] sm:$0x7]  ;;  %vm560_vm4 = vcmask 1045504  }
  0x27   : > { %282 = vmatpush.bf16.msra.mxu0 %v1130_v23  ;;  %v1144_v58 = vld [vmem:[%s1371_s14 + $0x60] sm:$0xff]  ;;  %v1156_v1 = vld [vmem:[%s1371_s14 + $0xb0] sm:$0xff]  ;;  %v1150_v12 = vld [vmem:[%s1371_s14 + $0x88] sm:$0xff]  ;;  %v717_v14 = vunpack.c.l.b16 %v698_v3  ;;  %v559_v19 = vpack.c.b16 %v557_v5, %v557_v5  ;;  %vm633_vm5 = vsmask.f32 5376  ;;  %vm720_vm6 = vcmask 1044480  }
  0x28   : > { %364 = vmatpush.bf16.msra.mxu1 %v1135_v24  ;;  %v1161_v2 = vld [vmem:[%s1371_s14 + $0xd0] sm:$0xff]  ;;  %v1045_v4 = vld [vmem:[%s1357_s4] sm:$0xc]  ;;  %v635_v6 = vshrl.u32 %v1076_v56, 16  ;;  %v490_v7 = vsel %vm473_vm3, %v481_v59, %v489_v62  ;;  %v1148_v8 = vld [vmem:[%s1357_s4] sm:$0xf0] }
  0x29   : > { %437 = vmatpush.bf16.msra.mxu2 %v1140_v29  ;;  %v638_v9 = vshll.u32 %v1076_v56, 16  ;;  %v643_v10 = vshrl.u32 %v632_v0, 16  ;;  %v646_v11 = vshll.u32 %v632_v0, 16  ;;  %v1155_v13 = vld [vmem:[%s1371_s14 + $0xa8] sm:$0xff]  ;;  %v1105_v16 = vld [vmem:[%s1357_s4] sm:$0x8]  ;;  %v1046_v18 = vor.u32 %v1148_v8, %v1045_v4 }
  0x2a   : > { %524 = vmatpush.bf16.msra.mxu3 %v1145_v37  ;;  %v1160_v15 = vld [vmem:[%s1371_s14 + $0xc8] sm:$0xff]  ;;  %v1158_v17 = vld [vmem:[%s1357_s4] sm:$0xf0]  ;;  %v637_v20 = vrot.slane %v635_v6, 2  ;;  %v719_v26 = vpack.c.b16 %v717_v14, %v717_v14  ;;  %v562_v30 = vrot.slane %v559_v19, 2 }
  0x2b   : > { %283 = vmatpush.bf16.msra.mxu0 %v1129_v33  ;;  %v640_v21 = vrot.slane %v638_v9, 3  ;;  %v645_v22 = vrot.slane %v643_v10, 2  ;;  %v648_v23 = vrot.slane %v646_v11, 3  ;;  %v1149_v24 = vld [vmem:[%s1371_s14 + $0x80] sm:$0xff]  ;;  %v1106_v25 = vor.u32 %v1158_v17, %v1105_v16  ;;  %v242_v46 = vld [vmem:[#allocation2 + $0x8] sm:$0xff] }
  0x2c   : > { %365 = vmatpush.bf16.msra.mxu1 %v1134_v34  ;;  %v1154_v27 = vld [vmem:[%s1371_s14 + $0xa0] sm:$0xff]  ;;  %v561_v29 = vrot.slane %v1046_v18, 2  ;;  %v722_v34 = vrot.slane %v719_v26, 3 }
  0x2d   : > { %438 = vmatpush.bf16.msra.mxu2 %v1139_v40  ;;  %v1159_v28 = vld [vmem:[%s1371_s14 + $0xc0] sm:$0xff]  ;;  %v641_v31 = vor.u32 %v640_v21, %v637_v20  ;;  %v649_v32 = vor.u32 %v648_v23, %v645_v22  ;;  %v721_v33 = vrot.slane %v1106_v25, 3 }
  0x2e   : > { %943 = vmatmul.msk.bf16.vlgmr.msra.gmra.mxu0 %vm272_vm2, %v1127_v52  ;;  %525 = vmatpush.bf16.msra.mxu3 %v1144_v58  ;;  %v563_v35 = vsel %vm560_vm4, %v561_v29, %v562_v30  ;;  %v241_v40 = vld [vmem:[#allocation2] sm:$0xff] }
  0x2f   : > { %595 = vmatpush.bf16.msrb.mxu0 %v1152_v44  ;;  %973 = vmatmul.msk.bf16.vlgmr.msra.gmra.mxu1 %vm272_vm2, %v330_v57  ;;  %v650_v36 = vsel %vm633_vm5, %v641_v31, %v649_v32  ;;  %v723_v37 = vsel %vm720_vm6, %v721_v33, %v722_v34 }
  0x30   : > { %682 = vmatpush.bf16.msrb.mxu1 %v1157_v49  ;;  %1003 = vmatmul.msk.bf16.vlgmr.msra.gmra.mxu2 %vm272_vm2, %v403_v61 }
  0x31   : > { %755 = vmatpush.bf16.msrb.mxu2 %v1162_v50  ;;  %1033 = vmatmul.msk.bf16.vlgmr.msra.gmra.mxu3 %vm272_vm2, %v490_v7 }
  0x33   : > { %596 = vmatpush.bf16.msrb.mxu0 %v1151_v63 }
  0x34   : > { %683 = vmatpush.bf16.msrb.mxu1 %v1156_v1 }
  0x35   : > { %756 = vmatpush.bf16.msrb.mxu2 %v1161_v2 }
  0x37   : > { %597 = vmatpush.bf16.msrb.mxu0 %v1150_v12 }
  0x38   : > { %684 = vmatpush.bf16.msrb.mxu1 %v1155_v13 }
  0x39   : > { %757 = vmatpush.bf16.msrb.mxu2 %v1160_v15 }
  0x3b   : > { %598 = vmatpush.bf16.msrb.mxu0 %v1149_v24 }
  0x3c   : > { %685 = vmatpush.bf16.msrb.mxu1 %v1154_v27 }
  0x3d   : > { %758 = vmatpush.bf16.msrb.mxu2 %v1159_v28 }
  0x3e   : > { %1063 = vmatmul.msk.bf16.vlgmr.msrb.gmra.mxu0 %vm272_vm2, %v563_v35 }
  0x3f   : > { %1093 = vmatmul.msk.bf16.vlgmr.msrb.gmra.mxu1 %vm272_vm2, %v650_v36 }
  0x40   : > { %1123 = vmatmul.msk.bf16.vlgmr.msrb.gmra.mxu2 %vm272_vm2, %v723_v37 }
  0xab   : > { %v285_v38 = vpop.f32.mrf.mxu0 }
  0xac   : > { %v367_v39 = vpop.f32.mrf.mxu1  ;;  %v290_v41 = vadd.f32 %v285_v38, %v241_v40 }
  0xae   : > { %v372_v43 = vadd.f32 %v367_v39, %v290_v41 }
  0xb3   : > { %v440_v42 = vpop.f32.mrf.mxu2  ;;  %v287_v44 = vpop.f32.mrf.mxu0 }
  0xb4   : > { %v369_v45 = vpop.f32.mrf.mxu1  ;;  %v527_v47 = vpop.f32.mrf.mxu3  ;;  %v445_v48 = vadd.f32 %v440_v42, %v372_v43  ;;  %v291_v49 = vadd.f32 %v287_v44, %v242_v46 }
  0xb6   : > { %v532_v51 = vadd.f32 %v527_v47, %v445_v48  ;;  %v373_v53 = vadd.f32 %v369_v45, %v291_v49 }
  0xbb   : > { %v442_v50 = vpop.f32.mrf.mxu2  ;;  %v600_v52 = vpop.f32.mrf.mxu0 }
  0xbc   : > { %v605_v54 = vadd.f32 %v600_v52, %v532_v51  ;;  %v687_v55 = vpop.f32.mrf.mxu1  ;;  %v446_v56 = vadd.f32 %v442_v50, %v373_v53  ;;  %v529_v57 = vpop.f32.mrf.mxu3 }
  0xbe   : > { %v692_v58 = vadd.f32 %v687_v55, %v605_v54  ;;  %v533_v60 = vadd.f32 %v529_v57, %v446_v56 }
  0xc3   : > { %v760_v59 = vpop.f32.mrf.mxu2  ;;  %v602_v61 = vpop.f32.mrf.mxu0 }
  0xc4   : > { %v765_v62 = vadd.f32 %v760_v59, %v692_v58  ;;  %v606_v63 = vadd.f32 %v602_v61, %v533_v60  ;;  %v689_v0 = vpop.f32.mrf.mxu1 }
  0xc6   : > { %767 = vst [vmem:[#allocation2] sm:$0xff] %v765_v62  ;;  %v693_v1 = vadd.f32 %v689_v0, %v606_v63 }
  0xca   : > { %772 = sbr.rel (%p1124_p10) target bundleno = 224 (0xe0), region = 40 }
  0xcb   : > { %v762_v2 = vpop.f32.mrf.mxu2 }
  0xcc   : > { %v766_v3 = vadd.f32 %v762_v2, %v693_v1 }
  0xce   : > { %768 = vst [vmem:[#allocation2 + $0x8] sm:$0xff] %v766_v3 }
  0xcf   : > { %v773_v4 = vld [vmem:[#allocation2] sm:$0xff] }
  0xd0   : > { %v1222_v5 = vld [vmem:[%s1456_s2] ss:$0 sm:$0xff] }
  0xd1   : > { %v779_v7 = vadd.f32 %v1222_v5, %v773_v4 }
  0xd3   : > { %1223 = vtanh.f32 %v779_v7 }
  0xd5   : > { %v774_v6 = vld [vmem:[#allocation2 + $0x8] sm:$0xff] }
  0xd6   : > { %v780_v8 = vadd.f32 %v1222_v5, %v774_v6 }
  0xd8   : > { %1225 = vtanh.f32 %v780_v8 }
  0xd9   : > { %v1224_v9 = vpop.eup %1223 }
  0xda   : > { %783 = vst [vmem:[%s1362_s9] sm:$0xff] %v1224_v9 }
  0xde   : > { %v1226_v10 = vpop.eup %1225 }
  0xdf   : > { %784 = vst [vmem:[%s1362_s9 + $0x8] sm:$0xff] %v1226_v10 }
  0xe0 PF: > { %s13_s18 = sadd.s32 1, %s1281_s18   ;;  %s1458_s12 = smov %s1269_s15 }
  0xe1   : > { %p10_p11 = scmp.ge.s32.totalorder %s13_s18, 226   ;;  %s1459_s13 = smov %s1273_s16 }
  0xe2   : > { %s1460_s14 = smov %s1277_s17  ;;  %s1461_s15 = smov %s1465_s19 }
  0xe3   : > { %s1462_s16 = smov %s1469_s20  ;;  %s1463_s17 = smov %s1473_s21 }
  0xe4   :  { %12 = sbr.rel (!%p10_p11) target bundleno = 4 (0x4), region = 77 }

</bundles_post_ra>
